<compile_context>
chip_gen: v6e
topology: v6e:2x2x1
jax: 0.10.0
libtpu: 0.0.40
codegen_flags: <defaults>
</compile_context>

<pallas_src>
import math

import jax
import jax.numpy as jnp
from jax.experimental import pallas as pl
from jax.experimental.pallas import tpu as pltpu

LN_EPS = 1e-5  # torch.nn.LayerNorm default

# Row indices inside HSLAB.
_ROW_BM, _ROW_BHC, _ROW_BZH = 0, 1, 2
_ROW_R, _ROW_TAU, _ROW_S = 3, 4, 5
_ROW_LNC_W, _ROW_LNC_B = 6, 7
_ROW_LNM_W, _ROW_LNM_B = 8, 9
_ROW_LNH_W, _ROW_LNH_B = 10, 11
_ROW_BATTN = 12
_HSLAB_ROWS = 16  # padded to a multiple of 8 sublanes


def _round_up(x, m):
    return ((x + m - 1) // m) * m


def _layer_norm(v, gamma, beta):
    # Two-pass (centered) variance - matches torch.nn.LayerNorm exactly.
    mu = jnp.mean(v, axis=-1, keepdims=True)
    d = v - mu
    var = jnp.mean(d * d, axis=-1, keepdims=True)
    return d * jax.lax.rsqrt(var + LN_EPS) * gamma + beta


def xlstm_block_kernel(xt_ref, s0_ref, wxa_ref, wha_ref, whczh_ref,
                       tslab_ref, hslab_ref, out_ref, h_sc, c_sc, m_sc):
    H = hslab_ref.shape[1]
    TT, B, IP1 = xt_ref.shape
    I = IP1 - 1
    OUT_W = out_ref.shape[2]

    tb = pl.program_id(1)

    @pl.when(tb == 0)
    def _init():
        s0 = s0_ref[...]
        h_sc[...] = s0[:, 0:H]
        c_sc[...] = s0[:, H:2 * H]
        m_sc[...] = s0[:, 2 * H:3 * H]

    # ---- per-block (recurrence-independent) work, hoisted off the serial path
    hslab = hslab_ref[...]

    def row(r):  # (1, H) static sublane slice
        return hslab[r:r + 1, :]

    # Pre-broadcast the per-hidden constants once per block (JAX does not CSE
    # broadcast_in_dim inside the unrolled loop).
    b_m = jnp.broadcast_to(row(_ROW_BM), (B, H))
    b_hc = jnp.broadcast_to(row(_ROW_BHC), (B, H))
    b_zh = jnp.broadcast_to(row(_ROW_BZH), (B, H))
    lnc_w = jnp.broadcast_to(row(_ROW_LNC_W), (B, H))
    lnc_b = jnp.broadcast_to(row(_ROW_LNC_B), (B, H))
    lnm_w = jnp.broadcast_to(row(_ROW_LNM_W), (B, H))
    lnm_b = jnp.broadcast_to(row(_ROW_LNM_B), (B, H))
    lnh_w = jnp.broadcast_to(row(_ROW_LNH_W), (B, H))
    lnh_b = jnp.broadcast_to(row(_ROW_LNH_B), (B, H))
    b_attn = hslab[_ROW_BATTN:_ROW_BATTN + 1, 0:1]            # (1, 1)
    r_row, tau_row, s_row = row(_ROW_R), row(_ROW_TAU), row(_ROW_S)

    tslab = tslab_ref[...]
    w_time4 = tslab[0:1, :]       # time-gate weights laid out as [i, f, 0, o]
    b_gate = tslab[1:2, :]        # b_ih + b_hh + b_time (4H layout)

    # Fused x-side matmul for the whole time block: (TT*B, I+1) @ (I+1, 5H+1).
    # Columns: [W_ih gates | W_im (+ tm*w_tm via the t row) | w_attn_x].
    xt = xt_ref[...].reshape(TT * B, IP1)
    xw = jnp.dot(xt, wxa_ref[...], preferred_element_type=jnp.float32)
    tm = xt[:, I:I + 1]                                       # (TT*B, 1)

    # Time-gate bias and periodic gate k, vectorized over the block.
    tbias = tm * w_time4 + b_gate                             # (TT*B, 4H)
    phi = jnp.remainder(tm - r_row, tau_row) / tau_row        # (TT*B, H)
    k_blk = jnp.clip(
        0.5 * (1.0 + jnp.cos((2.0 * math.pi) * phi / s_row)), 0.0, 1.0)

    wha = wha_ref[...]                                        # (H, 5H+1)
    whczh = whczh_ref[...]
    w_hc = whczh[:, 0:H]
    w_zh = whczh[:, H:2 * H]

    h = h_sc[...]
    c = c_sc[...]
    m = m_sc[...]

    # ---- serial recurrence over the TT steps of this block (static unroll) --
    for t in range(TT):
        r0 = t * B
        xw_t = xw[r0:r0 + B]                                  # (B, 5H+1)
        hw_t = jnp.dot(h, wha, preferred_element_type=jnp.float32)

        # Attention logit: just two column picks (folded into the matmuls).
        attn_w = jax.nn.sigmoid(
            xw_t[:, 5 * H:5 * H + 1] + hw_t[:, 5 * H:5 * H + 1] + b_attn)

        # (x*attn_w)@W_ih == attn_w*(x@W_ih) since attn_w is per-row (B,1).
        gates = attn_w * xw_t[:, 0:4 * H] + hw_t[:, 0:4 * H] + tbias[r0:r0 + B]
        sig = jax.nn.sigmoid(gates)   # one EUP pass over the whole 4H slab
        tng = jnp.tanh(gates)         # one EUP pass over the whole 4H slab
        i_g = sig[:, 0:H]
        f_g = sig[:, H:2 * H]         # coupling*h already folded into WHA
        g_g = tng[:, 2 * H:3 * H]
        o_g = sig[:, 3 * H:4 * H]

        c_next = f_g * c + i_g * g_g

        # Extended memory (xw memory cols already include tm*w_tm).
        m_upd = jnp.tanh(xw_t[:, 4 * H:5 * H] + hw_t[:, 4 * H:5 * H] + b_m)
        hc = jax.nn.sigmoid(
            jnp.dot(c_next, w_hc, preferred_element_type=jnp.float32) + b_hc)
        m_next = hc * m + (1.0 - hc) * m_upd

        c_next = _layer_norm(c_next, lnc_w, lnc_b)
        m_next = _layer_norm(m_next, lnm_w, lnm_b)

        # Hidden update (periodic gate k precomputed per block).
        k_t = k_blk[r0:r0 + B]
        z = jax.nn.sigmoid(
            jnp.dot(m_next, w_zh, preferred_element_type=jnp.float32) + b_zh)
        h_next = (z * (k_t * (o_g * jnp.tanh(c_next)) + (1.0 - k_t) * h)
                  + (1.0 - z) * jnp.tanh(m_next))
        h_next = _layer_norm(h_next, lnh_w, lnh_b)

        # Store directly into the lane-dense output block (no concatenate).
        out_ref[t, :, 0:H] = h_next
        out_ref[t, :, H:2 * H] = c_next
        out_ref[t, :, 2 * H:3 * H] = m_next

        h, c, m = h_next, c_next, m_next

    if OUT_W > 3 * H:
        out_ref[:, :, 3 * H:OUT_W] = jnp.zeros(
            (TT, B, OUT_W - 3 * H), jnp.float32)

    # carry state across time blocks
    h_sc[...] = h
    c_sc[...] = c
    m_sc[...] = m


# --------------------------------------------------------------------------- #
# Wrappers                                                                    #
# --------------------------------------------------------------------------- #
def xlstm_sequence_forward(packed, x_seq, t_seq, hidden=None, *,
                           block_t=8, batch_shards=1):
    """Run T steps of the xLSTM cell, time-blocked, in one pallas_call.

    Args:
      packed: dict from pack_params().
      x_seq:  (T, B, I) float32
      t_seq:  (T, B, 1) float32
      hidden: optional (h0, c0, m0), each (B, H)
      block_t: timesteps per grid iteration (amortizes per-step overhead).
      batch_shards: leading "parallel" grid axis over independent batch rows
        (use >1 on v7x to occupy both TensorCores). B/batch_shards must be a
        multiple of 8 (or equal B).
    Returns:
      (h_seq, c_seq, m_seq), each (T, B, H)
    """
    T, B, I = x_seq.shape
    H = packed["HSLAB"].shape[1]
    assert B % batch_shards == 0
    Bs = B // batch_shards
    assert Bs == B or Bs % 8 == 0, "per-shard batch must be a multiple of 8"

    bt = max(1, min(block_t, T))
    n_tblk = pl.cdiv(T, bt)
    T_pad = n_tblk * bt

    # Fold t into x as an extra trailing column (avoids a separate 1-lane block).
    xt = jnp.concatenate(
        [x_seq.astype(jnp.float32), t_seq.astype(jnp.float32)], axis=-1)
    if T_pad > T:
        xt = jnp.concatenate(
            [xt, jnp.zeros((T_pad - T, B, I + 1), jnp.float32)], axis=0)

    if hidden is None:
        state0 = jnp.zeros((B, 3 * H), jnp.float32)
    else:
        state0 = jnp.concatenate(
            [a.astype(jnp.float32) for a in hidden], axis=-1)

    OUT_W = _round_up(3 * H, 128)
    WXA, WHA, WHCZH = packed["WXA"], packed["WHA"], packed["WHCZH"]
    TSLAB, HSLAB = packed["TSLAB"], packed["HSLAB"]

    # VMEM use is tiny at these sizes; if block_t/B/H are scaled up, budget
    # against v7x's 64 MiB VMEM and set vmem_limit_bytes explicitly.
    grid_spec = pltpu.PrefetchScalarGridSpec(
        num_scalar_prefetch=0,
        grid=(batch_shards, n_tblk),
        in_specs=[
            pl.BlockSpec((bt, Bs, I + 1), lambda bs, tb: (tb, bs, 0)),
            pl.BlockSpec((Bs, 3 * H), lambda bs, tb: (bs, 0)),
            pl.BlockSpec(WXA.shape, lambda bs, tb: (0, 0)),
            pl.BlockSpec(WHA.shape, lambda bs, tb: (0, 0)),
            pl.BlockSpec(WHCZH.shape, lambda bs, tb: (0, 0)),
            pl.BlockSpec(TSLAB.shape, lambda bs, tb: (0, 0)),
            pl.BlockSpec(HSLAB.shape, lambda bs, tb: (0, 0)),
        ],
        out_specs=pl.BlockSpec((bt, Bs, OUT_W), lambda bs, tb: (tb, bs, 0)),
        scratch_shapes=[
            pltpu.VMEM((Bs, H), jnp.float32),
            pltpu.VMEM((Bs, H), jnp.float32),
            pltpu.VMEM((Bs, H), jnp.float32),
        ],
    )

    out = pl.pallas_call(
        xlstm_block_kernel,
        out_shape=jax.ShapeDtypeStruct((T_pad, B, OUT_W), jnp.float32),
        grid_spec=grid_spec,
        compiler_params=pltpu.CompilerParams(
            dimension_semantics=("parallel", "arbitrary")),
    )(xt, state0, WXA, WHA, WHCZH, TSLAB, HSLAB)

    h_seq = out[:T, :, 0:H]
    c_seq = out[:T, :, H:2 * H]
    m_seq = out[:T, :, 2 * H:3 * H]
    return h_seq, c_seq, m_seq


def xlstm_cell_forward(packed, x, time, hidden=None):
    """Single-step xLSTMCell.forward (eval mode)."""
    h_seq, c_seq, m_seq = xlstm_sequence_forward(
        packed, x[None], time[None], hidden, block_t=1, batch_shards=1)
    return h_seq[0], c_seq[0], m_seq[0]


# --------------------------------------------------------------------------- #
# Parameter construction & packing                                            #
# --------------------------------------------------------------------------- #
def init_params(key, input_size, hidden_size):
    """Natural (unpacked) parameters, mirroring __init__/reset_parameters shapes.

    Linear weights are stored as (in_features, out_features); biases and
    per-hidden parameters as (1, N) rows.
    """
    def xavier(k, shape):  # shape = (fan_in, fan_out)
        lim = math.sqrt(6.0 / (shape[0] + shape[1]))
        return jax.random.uniform(k, shape, jnp.float32, -lim, lim)

    ks = jax.random.split(key, 16)
    I, H = input_size, hidden_size
    return {
        "w_ih": xavier(ks[0], (I, 4 * H)),   "b_ih": jnp.zeros((1, 4 * H), jnp.float32),
        "w_hh": xavier(ks[1], (H, 4 * H)),   "b_hh": jnp.zeros((1, 4 * H), jnp.float32),
        "w_time": xavier(ks[2], (1, 3 * H)), "b_time": jnp.zeros((1, 3 * H), jnp.float32),
        "w_im": xavier(ks[3], (I, H)),       "b_im": jnp.zeros((1, H), jnp.float32),
        "w_hm": xavier(ks[4], (H, H)),       "b_hm": jnp.zeros((1, H), jnp.float32),
        "w_tm": xavier(ks[5], (1, H)),       "b_tm": jnp.zeros((1, H), jnp.float32),
        "w_hc": xavier(ks[6], (H, H)),       "b_hc": jnp.zeros((1, H), jnp.float32),
        "w_zh": xavier(ks[7], (H, H)),       "b_zh": jnp.zeros((1, H), jnp.float32),
        "w_attn_x": xavier(ks[8], (I, 1)),
        "w_attn_h": xavier(ks[9], (H, 1)),
        "b_attn": jnp.zeros((1, 1), jnp.float32),
        "tau": jax.random.uniform(ks[10], (1, H), jnp.float32, 10.0, 1000.0),
        "r": jax.random.uniform(ks[11], (1, H), jnp.float32, 0.0, 1.0),
        "s": jax.random.uniform(ks[12], (1, H), jnp.float32, 0.05, 0.2),
        "coupling": jnp.full((1, H), 0.5, jnp.float32),
        "ln_cell_w": jnp.ones((1, H), jnp.float32), "ln_cell_b": jnp.zeros((1, H), jnp.float32),
        "ln_mem_w": jnp.ones((1, H), jnp.float32),  "ln_mem_b": jnp.zeros((1, H), jnp.float32),
        "ln_hid_w": jnp.ones((1, H), jnp.float32),  "ln_hid_b": jnp.zeros((1, H), jnp.float32),
    }


def pack_params(p, input_size, hidden_size):
    """Pack the natural parameter dict into 5 fused kernel inputs."""
    I, H = input_size, hidden_size

    # WXA (I+1, 5H+1): rows 0..I-1 = [W_ih | W_im | w_attn_x];
    #                  row  I      = [0 .. 0 | w_tm | 0]  (matches the t column).
    x_rows = jnp.concatenate([p["w_ih"], p["w_im"], p["w_attn_x"]], axis=1)
    t_row = jnp.concatenate(
        [jnp.zeros((1, 4 * H), jnp.float32), p["w_tm"],
         jnp.zeros((1, 1), jnp.float32)], axis=1)
    WXA = jnp.concatenate([x_rows, t_row], axis=0)

    # WHA (H, 5H+1): [W_hh (coupling folded onto the f-gate diagonal) | W_hm | w_attn_h].
    w_hh_mod = p["w_hh"].at[:, H:2 * H].add(jnp.diag(p["coupling"][0]))
    WHA = jnp.concatenate([w_hh_mod, p["w_hm"], p["w_attn_h"]], axis=1)

    WHCZH = jnp.concatenate([p["w_hc"], p["w_zh"]], axis=1)     # (H, 2H)

    zeros_h = jnp.zeros((1, H), jnp.float32)
    # time-gate order: added to (i, f, o); lay out over 4H as [i, f, 0, o]
    w_time4 = jnp.concatenate([p["w_time"][:, 0:H], p["w_time"][:, H:2 * H],
                               zeros_h, p["w_time"][:, 2 * H:3 * H]], axis=1)
    b_time4 = jnp.concatenate([p["b_time"][:, 0:H], p["b_time"][:, H:2 * H],
                               zeros_h, p["b_time"][:, 2 * H:3 * H]], axis=1)
    b_gate = p["b_ih"] + p["b_hh"] + b_time4
    TSLAB = jnp.concatenate([w_time4, b_gate], axis=0)          # (2, 4H)

    rows = [
        p["b_im"] + p["b_hm"] + p["b_tm"],          # _ROW_BM
        p["b_hc"], p["b_zh"],                       # _ROW_BHC, _ROW_BZH
        p["r"], p["tau"], p["s"],                   # _ROW_R, _ROW_TAU, _ROW_S
        p["ln_cell_w"], p["ln_cell_b"],
        p["ln_mem_w"], p["ln_mem_b"],
        p["ln_hid_w"], p["ln_hid_b"],
        jnp.broadcast_to(p["b_attn"], (1, H)),      # _ROW_BATTN
    ]
    pad_rows = _HSLAB_ROWS - len(rows)
    HSLAB = jnp.concatenate(
        rows + [jnp.zeros((pad_rows, H), jnp.float32)], axis=0)

    return {"WXA": WXA, "WHA": WHA, "WHCZH": WHCZH,
            "TSLAB": TSLAB, "HSLAB": HSLAB}


# --------------------------------------------------------------------------- #
# Pure-JAX reference (mirrors PyTorch forward, eval mode)                     #
# --------------------------------------------------------------------------- #
def _ln_ref(v, gamma, beta):
    mu = jnp.mean(v, axis=-1, keepdims=True)
    var = jnp.mean((v - mu) * (v - mu), axis=-1, keepdims=True)
    return (v - mu) * jax.lax.rsqrt(var + LN_EPS) * gamma + beta


def xlstm_ref_step(p, x, t, h, c, m):
    attn_w = jax.nn.sigmoid(x @ p["w_attn_x"] + h @ p["w_attn_h"] + p["b_attn"])
    ax = x * attn_w
    gates = ax @ p["w_ih"] + p["b_ih"] + h @ p["w_hh"] + p["b_hh"]
    H = h.shape[1]
    i_g, f_g, g_g, o_g = (gates[:, k * H:(k + 1) * H] for k in range(4))
    tg = t * p["w_time"] + p["b_time"]
    t_i, t_f, t_o = (tg[:, k * H:(k + 1) * H] for k in range(3))
    i_ = jax.nn.sigmoid(i_g + t_i)
    f_ = jax.nn.sigmoid(f_g + t_f + p["coupling"] * h)
    g_ = jnp.tanh(g_g)
    o_ = jax.nn.sigmoid(o_g + t_o)
    c_next = f_ * c + i_ * g_
    m_update = jnp.tanh(x @ p["w_im"] + p["b_im"] + h @ p["w_hm"] + p["b_hm"]
                        + t * p["w_tm"] + p["b_tm"])
    hc = jax.nn.sigmoid(c_next @ p["w_hc"] + p["b_hc"])
    m_next = hc * m + (1 - hc) * m_update
    c_next = _ln_ref(c_next, p["ln_cell_w"], p["ln_cell_b"])
    m_next = _ln_ref(m_next, p["ln_mem_w"], p["ln_mem_b"])
    phi = jnp.remainder(t - p["r"], p["tau"]) / p["tau"]
    k = jnp.clip(0.5 * (1 + jnp.cos(2 * math.pi * phi / p["s"])), 0, 1)
    z = jax.nn.sigmoid(m_next @ p["w_zh"] + p["b_zh"])
    h_lstm = o_ * jnp.tanh(c_next)
    h_next = z * (k * h_lstm + (1 - k) * h) + (1 - z) * jnp.tanh(m_next)
    h_next = _ln_ref(h_next, p["ln_hid_w"], p["ln_hid_b"])
    return h_next, c_next, m_next


if __name__ == "__main__":
    # T=12 with block_t=8 exercises the cross-block state carry and time
    # padding; batch_shards=2 (Bs=8) exercises the parallel batch-shard axis.
    B, I, H, T = 16, 16, 32, 12
    BLOCK_T, BATCH_SHARDS = 8, 2

    root = jax.random.PRNGKey(0)
    k_param, k_x, k_t, k_h, k_c, k_m = jax.random.split(root, 6)

    params = init_params(k_param, I, H)
    packed = pack_params(params, I, H)

    x_seq = jax.random.normal(k_x, (T, B, I), jnp.float32)
    t_seq = jax.random.uniform(k_t, (T, B, 1), jnp.float32, 0.0, 100.0)
    h0 = jax.random.normal(k_h, (B, H), jnp.float32) * 0.1
    c0 = jax.random.normal(k_c, (B, H), jnp.float32) * 0.1
    m0 = jax.random.normal(k_m, (B, H), jnp.float32) * 0.1

    # --- fused, time-blocked kernel --------------------------------------------
    h_seq, c_seq, m_seq = xlstm_sequence_forward(
        packed, x_seq, t_seq, (h0, c0, m0),
        block_t=BLOCK_T, batch_shards=BATCH_SHARDS)
    jax.block_until_ready((h_seq, c_seq, m_seq))

    # --- pure-JAX reference loop ------------------------------------------------
    h, c, m = h0, c0, m0
    h_r, c_r, m_r = [], [], []
    for step in range(T):
        h, c, m = xlstm_ref_step(params, x_seq[step], t_seq[step], h, c, m)
        h_r.append(h); c_r.append(c); m_r.append(m)
    h_ref = jnp.stack(h_r); c_ref = jnp.stack(c_r); m_ref = jnp.stack(m_r)

    assert h_seq.shape == (T, B, H) and c_seq.shape == (T, B, H) and m_seq.shape == (T, B, H)
    assert jnp.allclose(h_seq, h_ref, rtol=2e-4, atol=2e-4)
    assert jnp.allclose(c_seq, c_ref, rtol=2e-4, atol=2e-4)
    assert jnp.allclose(m_seq, m_ref, rtol=2e-4, atol=2e-4)

    # --- single-step path (original cell API) -----------------------------------
    h1, c1, m1 = xlstm_cell_forward(packed, x_seq[0], t_seq[0], (h0, c0, m0))
    jax.block_until_ready((h1, c1, m1))
    assert jnp.allclose(h1, h_ref[0], rtol=2e-4, atol=2e-4)
    assert jnp.allclose(c1, c_ref[0], rtol=2e-4, atol=2e-4)
    assert jnp.allclose(m1, m_ref[0], rtol=2e-4, atol=2e-4)

    print("KERNEL_OK")
</pallas_src>

<mosaic_0001>
module attributes {stable_mosaic.version = 11 : i64} {
  func.func @xlstm_block_kernel(%arg0: i32, %arg1: i32, %arg2: memref<8x8x17xf32, #tpu.memory_space<vmem>>, %arg3: memref<8x96xf32, #tpu.memory_space<vmem>>, %arg4: memref<17x161xf32, #tpu.memory_space<vmem>>, %arg5: memref<32x161xf32, #tpu.memory_space<vmem>>, %arg6: memref<32x64xf32, #tpu.memory_space<vmem>>, %arg7: memref<2x128xf32, #tpu.memory_space<vmem>>, %arg8: memref<16x32xf32, #tpu.memory_space<vmem>>, %arg9: memref<8x8x128xf32, #tpu.memory_space<vmem>>, %arg10: memref<8x32xf32, #tpu.memory_space<vmem>>, %arg11: memref<8x32xf32, #tpu.memory_space<vmem>>, %arg12: memref<8x32xf32, #tpu.memory_space<vmem>>) attributes {dimension_semantics = [#tpu.dimension_semantics<parallel>, #tpu.dimension_semantics<arbitrary>], iteration_bounds = array<i64: 2, 2>, scalar_prefetch = 0 : i64, scratch_operands = 3 : i64, tpu.core_type = #tpu.core_type<tc>, window_params = [{transform_indices = @transform_0, window_bounds = array<i64: 8, 8, 17>}, {transform_indices = @transform_1, window_bounds = array<i64: 8, 96>}, {pipeline_mode = #tpu.pipeline_mode<synchronous>, transform_indices = @transform_2, window_bounds = array<i64: 17, 161>}, {pipeline_mode = #tpu.pipeline_mode<synchronous>, transform_indices = @transform_3, window_bounds = array<i64: 32, 161>}, {pipeline_mode = #tpu.pipeline_mode<synchronous>, transform_indices = @transform_4, window_bounds = array<i64: 32, 64>}, {pipeline_mode = #tpu.pipeline_mode<synchronous>, transform_indices = @transform_5, window_bounds = array<i64: 2, 128>}, {pipeline_mode = #tpu.pipeline_mode<synchronous>, transform_indices = @transform_6, window_bounds = array<i64: 16, 32>}, {transform_indices = @transform_7, window_bounds = array<i64: 8, 8, 128>}]} {
    %c0_i32 = arith.constant 0 : i32
    %0 = arith.cmpi eq, %arg1, %c0_i32 : i32
    %1 = arith.extui %0 : i1 to i32
    %c0_i32_0 = arith.constant 0 : i32
    %2 = arith.cmpi ne, %1, %c0_i32_0 : i32
    scf.if %2 {
      %c0_299 = arith.constant 0 : index
      %c0_300 = arith.constant 0 : index
      %1157 = vector.load %arg3[%c0_299, %c0_300] : memref<8x96xf32, #tpu.memory_space<vmem>>, vector<8x96xf32>
      %1158 = vector.extract_strided_slice %1157 {offsets = [0, 0], sizes = [8, 32], strides = [1, 1]} : vector<8x96xf32> to vector<8x32xf32>
      %c0_301 = arith.constant 0 : index
      %c0_302 = arith.constant 0 : index
      %1159 = vector.load %arg10[%c0_301, %c0_302] : memref<8x32xf32, #tpu.memory_space<vmem>>, vector<8x32xf32>
      tpu.vector_store %arg10[%c0_301, %c0_302], %1158 {strides = array<i32>} : memref<8x32xf32, #tpu.memory_space<vmem>>, vector<8x32xf32>,
      %1160 = vector.extract_strided_slice %1157 {offsets = [0, 32], sizes = [8, 32], strides = [1, 1]} : vector<8x96xf32> to vector<8x32xf32>
      %c0_303 = arith.constant 0 : index
      %c0_304 = arith.constant 0 : index
      %1161 = vector.load %arg11[%c0_303, %c0_304] : memref<8x32xf32, #tpu.memory_space<vmem>>, vector<8x32xf32>
      tpu.vector_store %arg11[%c0_303, %c0_304], %1160 {strides = array<i32>} : memref<8x32xf32, #tpu.memory_space<vmem>>, vector<8x32xf32>,
      %1162 = vector.extract_strided_slice %1157 {offsets = [0, 64], sizes = [8, 32], strides = [1, 1]} : vector<8x96xf32> to vector<8x32xf32>
      %c0_305 = arith.constant 0 : index
      %c0_306 = arith.constant 0 : index
      %1163 = vector.load %arg12[%c0_305, %c0_306] : memref<8x32xf32, #tpu.memory_space<vmem>>, vector<8x32xf32>
      tpu.vector_store %arg12[%c0_305, %c0_306], %1162 {strides = array<i32>} : memref<8x32xf32, #tpu.memory_space<vmem>>, vector<8x32xf32>,
    } else {
    }
    %c0 = arith.constant 0 : index
    %c0_1 = arith.constant 0 : index
    %3 = vector.load %arg8[%c0, %c0_1] : memref<16x32xf32, #tpu.memory_space<vmem>>, vector<16x32xf32>
    %4 = vector.extract_strided_slice %3 {offsets = [0, 0], sizes = [1, 32], strides = [1, 1]} : vector<16x32xf32> to vector<1x32xf32>
    %5 = vector.shape_cast %4 : vector<1x32xf32> to vector<1x32xf32>
    %6 = vector.broadcast %5 : vector<1x32xf32> to vector<8x32xf32>
    %7 = vector.extract_strided_slice %3 {offsets = [1, 0], sizes = [1, 32], strides = [1, 1]} : vector<16x32xf32> to vector<1x32xf32>
    %8 = vector.shape_cast %7 : vector<1x32xf32> to vector<1x32xf32>
    %9 = vector.broadcast %8 : vector<1x32xf32> to vector<8x32xf32>
    %10 = vector.extract_strided_slice %3 {offsets = [2, 0], sizes = [1, 32], strides = [1, 1]} : vector<16x32xf32> to vector<1x32xf32>
    %11 = vector.shape_cast %10 : vector<1x32xf32> to vector<1x32xf32>
    %12 = vector.broadcast %11 : vector<1x32xf32> to vector<8x32xf32>
    %13 = vector.extract_strided_slice %3 {offsets = [6, 0], sizes = [1, 32], strides = [1, 1]} : vector<16x32xf32> to vector<1x32xf32>
    %14 = vector.shape_cast %13 : vector<1x32xf32> to vector<1x32xf32>
    %15 = vector.broadcast %14 : vector<1x32xf32> to vector<8x32xf32>
    %16 = vector.extract_strided_slice %3 {offsets = [7, 0], sizes = [1, 32], strides = [1, 1]} : vector<16x32xf32> to vector<1x32xf32>
    %17 = vector.shape_cast %16 : vector<1x32xf32> to vector<1x32xf32>
    %18 = vector.broadcast %17 : vector<1x32xf32> to vector<8x32xf32>
    %19 = vector.extract_strided_slice %3 {offsets = [8, 0], sizes = [1, 32], strides = [1, 1]} : vector<16x32xf32> to vector<1x32xf32>
    %20 = vector.shape_cast %19 : vector<1x32xf32> to vector<1x32xf32>
    %21 = vector.broadcast %20 : vector<1x32xf32> to vector<8x32xf32>
    %22 = vector.extract_strided_slice %3 {offsets = [9, 0], sizes = [1, 32], strides = [1, 1]} : vector<16x32xf32> to vector<1x32xf32>
    %23 = vector.shape_cast %22 : vector<1x32xf32> to vector<1x32xf32>
    %24 = vector.broadcast %23 : vector<1x32xf32> to vector<8x32xf32>
    %25 = vector.extract_strided_slice %3 {offsets = [10, 0], sizes = [1, 32], strides = [1, 1]} : vector<16x32xf32> to vector<1x32xf32>
    %26 = vector.shape_cast %25 : vector<1x32xf32> to vector<1x32xf32>
    %27 = vector.broadcast %26 : vector<1x32xf32> to vector<8x32xf32>
    %28 = vector.extract_strided_slice %3 {offsets = [11, 0], sizes = [1, 32], strides = [1, 1]} : vector<16x32xf32> to vector<1x32xf32>
    %29 = vector.shape_cast %28 : vector<1x32xf32> to vector<1x32xf32>
    %30 = vector.broadcast %29 : vector<1x32xf32> to vector<8x32xf32>
    %31 = vector.extract_strided_slice %3 {offsets = [12, 0], sizes = [1, 1], strides = [1, 1]} : vector<16x32xf32> to vector<1x1xf32>
    %32 = vector.extract_strided_slice %3 {offsets = [3, 0], sizes = [1, 32], strides = [1, 1]} : vector<16x32xf32> to vector<1x32xf32>
    %33 = vector.extract_strided_slice %3 {offsets = [4, 0], sizes = [1, 32], strides = [1, 1]} : vector<16x32xf32> to vector<1x32xf32>
    %34 = vector.extract_strided_slice %3 {offsets = [5, 0], sizes = [1, 32], strides = [1, 1]} : vector<16x32xf32> to vector<1x32xf32>
    %c0_2 = arith.constant 0 : index
    %c0_3 = arith.constant 0 : index
    %35 = vector.load %arg7[%c0_2, %c0_3] : memref<2x128xf32, #tpu.memory_space<vmem>>, vector<2x128xf32>
    %36 = vector.extract_strided_slice %35 {offsets = [0, 0], sizes = [1, 128], strides = [1, 1]} : vector<2x128xf32> to vector<1x128xf32>
    %37 = vector.extract_strided_slice %35 {offsets = [1, 0], sizes = [1, 128], strides = [1, 1]} : vector<2x128xf32> to vector<1x128xf32>
    %c0_4 = arith.constant 0 : index
    %c0_5 = arith.constant 0 : index
    %c0_6 = arith.constant 0 : index
    %38 = vector.load %arg2[%c0_4, %c0_5, %c0_6] : memref<8x8x17xf32, #tpu.memory_space<vmem>>, vector<8x8x17xf32>
    %39 = vector.shape_cast %38 : vector<8x8x17xf32> to vector<64x17xf32>
    %c0_7 = arith.constant 0 : index
    %c0_8 = arith.constant 0 : index
    %40 = vector.load %arg4[%c0_7, %c0_8] : memref<17x161xf32, #tpu.memory_space<vmem>>, vector<17x161xf32>
    %cst = arith.constant dense<0.000000e+00> : vector<64x161xf32>
    %41 = tpu.matmul %39, %40, %cst {dimension_numbers = #tpu.dot_dimension_numbers<[1], [0], [0], [1], [0, 0, 1, 1], [], []>} : vector<64x17xf32>, vector<17x161xf32>, vector<64x161xf32> -> vector<64x161xf32>
    %42 = vector.extract_strided_slice %39 {offsets = [0, 16], sizes = [64, 1], strides = [1, 1]} : vector<64x17xf32> to vector<64x1xf32>
    %43 = vector.broadcast %42 : vector<64x1xf32> to vector<64x128xf32>
    %44 = vector.broadcast %36 : vector<1x128xf32> to vector<64x128xf32>
    %45 = arith.mulf %43, %44 : vector<64x128xf32>
    %46 = vector.broadcast %37 : vector<1x128xf32> to vector<64x128xf32>
    %47 = arith.addf %45, %46 : vector<64x128xf32>
    %48 = vector.broadcast %42 : vector<64x1xf32> to vector<64x32xf32>
    %49 = vector.broadcast %32 : vector<1x32xf32> to vector<64x32xf32>
    %50 = arith.subf %48, %49 : vector<64x32xf32>
    %51 = vector.broadcast %33 : vector<1x32xf32> to vector<64x32xf32>
    %52 = arith.remf %50, %51 : vector<64x32xf32>
    %cst_9 = arith.constant 0.000000e+00 : f32
    %53 = vector.broadcast %cst_9 : f32 to vector<64x32xf32>
    %54 = arith.cmpf one, %52, %53 : vector<64x32xf32>
    %cst_10 = arith.constant 0.000000e+00 : f32
    %55 = vector.broadcast %cst_10 : f32 to vector<64x32xf32>
    %56 = arith.cmpf olt, %52, %55 : vector<64x32xf32>
    %cst_11 = arith.constant 0.000000e+00 : f32
    %57 = vector.broadcast %cst_11 : f32 to vector<1x32xf32>
    %58 = arith.cmpf olt, %33, %57 : vector<1x32xf32>
    %59 = vector.broadcast %58 : vector<1x32xi1> to vector<64x32xi1>
    %60 = vector.broadcast %59 : vector<64x32xi1> to vector<64x32xi1>
    %61 = arith.xori %56, %60 : vector<64x32xi1>
    %62 = arith.andi %61, %54 : vector<64x32xi1>
    %63 = vector.broadcast %33 : vector<1x32xf32> to vector<64x32xf32>
    %64 = arith.addf %52, %63 : vector<64x32xf32>
    %65 = arith.select %62, %64, %52 : vector<64x32xi1>, vector<64x32xf32>
    %66 = vector.broadcast %33 : vector<1x32xf32> to vector<64x32xf32>
    %67 = arith.divf %65, %66 : vector<64x32xf32>
    %cst_12 = arith.constant 6.28318548 : f32
    %68 = vector.broadcast %cst_12 : f32 to vector<64x32xf32>
    %69 = arith.mulf %68, %67 : vector<64x32xf32>
    %70 = vector.broadcast %34 : vector<1x32xf32> to vector<64x32xf32>
    %71 = arith.divf %69, %70 : vector<64x32xf32>
    %72 = math.cos %71 : vector<64x32xf32>
    %cst_13 = arith.constant 1.000000e+00 : f32
    %73 = vector.broadcast %cst_13 : f32 to vector<64x32xf32>
    %74 = arith.addf %73, %72 : vector<64x32xf32>
    %cst_14 = arith.constant 5.000000e-01 : f32
    %75 = vector.broadcast %cst_14 : f32 to vector<64x32xf32>
    %76 = arith.mulf %75, %74 : vector<64x32xf32>
    %cst_15 = arith.constant 0.000000e+00 : f32
    %cst_16 = arith.constant 1.000000e+00 : f32
    %77 = vector.broadcast %cst_15 : f32 to vector<64x32xf32>
    %78 = arith.maximumf %77, %76 : vector<64x32xf32>
    %79 = vector.broadcast %cst_16 : f32 to vector<64x32xf32>
    %80 = arith.minimumf %79, %78 : vector<64x32xf32>
    %c0_17 = arith.constant 0 : index
    %c0_18 = arith.constant 0 : index
    %81 = vector.load %arg5[%c0_17, %c0_18] : memref<32x161xf32, #tpu.memory_space<vmem>>, vector<32x161xf32>
    %c0_19 = arith.constant 0 : index
    %c0_20 = arith.constant 0 : index
    %82 = vector.load %arg6[%c0_19, %c0_20] : memref<32x64xf32, #tpu.memory_space<vmem>>, vector<32x64xf32>
    %83 = vector.extract_strided_slice %82 {offsets = [0, 0], sizes = [32, 32], strides = [1, 1]} : vector<32x64xf32> to vector<32x32xf32>
    %84 = vector.extract_strided_slice %82 {offsets = [0, 32], sizes = [32, 32], strides = [1, 1]} : vector<32x64xf32> to vector<32x32xf32>
    %c0_21 = arith.constant 0 : index
    %c0_22 = arith.constant 0 : index
    %85 = vector.load %arg10[%c0_21, %c0_22] : memref<8x32xf32, #tpu.memory_space<vmem>>, vector<8x32xf32>
    %c0_23 = arith.constant 0 : index
    %c0_24 = arith.constant 0 : index
    %86 = vector.load %arg11[%c0_23, %c0_24] : memref<8x32xf32, #tpu.memory_space<vmem>>, vector<8x32xf32>
    %c0_25 = arith.constant 0 : index
    %c0_26 = arith.constant 0 : index
    %87 = vector.load %arg12[%c0_25, %c0_26] : memref<8x32xf32, #tpu.memory_space<vmem>>, vector<8x32xf32>
    %88 = vector.extract_strided_slice %41 {offsets = [0, 0], sizes = [8, 161], strides = [1, 1]} : vector<64x161xf32> to vector<8x161xf32>
    %cst_27 = arith.constant dense<0.000000e+00> : vector<8x161xf32>
    %89 = tpu.matmul %85, %81, %cst_27 {dimension_numbers = #tpu.dot_dimension_numbers<[1], [0], [0], [1], [0, 0, 1, 1], [], []>} : vector<8x32xf32>, vector<32x161xf32>, vector<8x161xf32> -> vector<8x161xf32>
    %90 = vector.extract_strided_slice %88 {offsets = [0, 160], sizes = [8, 1], strides = [1, 1]} : vector<8x161xf32> to vector<8x1xf32>
    %91 = vector.extract_strided_slice %89 {offsets = [0, 160], sizes = [8, 1], strides = [1, 1]} : vector<8x161xf32> to vector<8x1xf32>
    %92 = arith.addf %90, %91 : vector<8x1xf32>
    %93 = vector.broadcast %31 : vector<1x1xf32> to vector<8x1xf32>
    %94 = arith.addf %92, %93 : vector<8x1xf32>
    %95 = arith.negf %94 : vector<8x1xf32>
    %96 = math.exp %95 : vector<8x1xf32>
    %cst_28 = arith.constant 1.000000e+00 : f32
    %97 = vector.broadcast %cst_28 : f32 to vector<8x1xf32>
    %98 = arith.addf %97, %96 : vector<8x1xf32>
    %99 = arith.divf %97, %98 : vector<8x1xf32>
    %100 = vector.extract_strided_slice %88 {offsets = [0, 0], sizes = [8, 128], strides = [1, 1]} : vector<8x161xf32> to vector<8x128xf32>
    %101 = vector.broadcast %99 : vector<8x1xf32> to vector<8x128xf32>
    %102 = arith.mulf %101, %100 : vector<8x128xf32>
    %103 = vector.extract_strided_slice %89 {offsets = [0, 0], sizes = [8, 128], strides = [1, 1]} : vector<8x161xf32> to vector<8x128xf32>
    %104 = arith.addf %102, %103 : vector<8x128xf32>
    %105 = vector.extract_strided_slice %47 {offsets = [0, 0], sizes = [8, 128], strides = [1, 1]} : vector<64x128xf32> to vector<8x128xf32>
    %106 = arith.addf %104, %105 : vector<8x128xf32>
    %107 = arith.negf %106 : vector<8x128xf32>
    %108 = math.exp %107 : vector<8x128xf32>
    %cst_29 = arith.constant 1.000000e+00 : f32
    %109 = vector.broadcast %cst_29 : f32 to vector<8x128xf32>
    %110 = arith.addf %109, %108 : vector<8x128xf32>
    %111 = arith.divf %109, %110 : vector<8x128xf32>
    %112 = math.tanh %106 : vector<8x128xf32>
    %113 = vector.extract_strided_slice %111 {offsets = [0, 0], sizes = [8, 32], strides = [1, 1]} : vector<8x128xf32> to vector<8x32xf32>
    %114 = vector.extract_strided_slice %111 {offsets = [0, 32], sizes = [8, 32], strides = [1, 1]} : vector<8x128xf32> to vector<8x32xf32>
    %115 = vector.extract_strided_slice %112 {offsets = [0, 64], sizes = [8, 32], strides = [1, 1]} : vector<8x128xf32> to vector<8x32xf32>
    %116 = vector.extract_strided_slice %111 {offsets = [0, 96], sizes = [8, 32], strides = [1, 1]} : vector<8x128xf32> to vector<8x32xf32>
    %117 = arith.mulf %114, %86 : vector<8x32xf32>
    %118 = arith.mulf %113, %115 : vector<8x32xf32>
    %119 = arith.addf %117, %118 : vector<8x32xf32>
    %120 = vector.extract_strided_slice %88 {offsets = [0, 128], sizes = [8, 32], strides = [1, 1]} : vector<8x161xf32> to vector<8x32xf32>
    %121 = vector.extract_strided_slice %89 {offsets = [0, 128], sizes = [8, 32], strides = [1, 1]} : vector<8x161xf32> to vector<8x32xf32>
    %122 = arith.addf %120, %121 : vector<8x32xf32>
    %123 = arith.addf %122, %6 : vector<8x32xf32>
    %124 = math.tanh %123 : vector<8x32xf32>
    %cst_30 = arith.constant dense<0.000000e+00> : vector<8x32xf32>
    %125 = tpu.matmul %119, %83, %cst_30 {dimension_numbers = #tpu.dot_dimension_numbers<[1], [0], [0], [1], [0, 0, 1, 1], [], []>} : vector<8x32xf32>, vector<32x32xf32>, vector<8x32xf32> -> vector<8x32xf32>
    %126 = arith.addf %125, %9 : vector<8x32xf32>
    %127 = arith.negf %126 : vector<8x32xf32>
    %128 = math.exp %127 : vector<8x32xf32>
    %cst_31 = arith.constant 1.000000e+00 : f32
    %129 = vector.broadcast %cst_31 : f32 to vector<8x32xf32>
    %130 = arith.addf %129, %128 : vector<8x32xf32>
    %131 = arith.divf %129, %130 : vector<8x32xf32>
    %132 = arith.mulf %131, %87 : vector<8x32xf32>
    %cst_32 = arith.constant 1.000000e+00 : f32
    %133 = vector.broadcast %cst_32 : f32 to vector<8x32xf32>
    %134 = arith.subf %133, %131 : vector<8x32xf32>
    %135 = arith.mulf %134, %124 : vector<8x32xf32>
    %136 = arith.addf %132, %135 : vector<8x32xf32>
    %cst_33 = arith.constant dense<0.000000e+00> : vector<8xf32>
    %137 = vector.multi_reduction <add>, %119, %cst_33 [1] : vector<8x32xf32> to vector<8xf32>
    %138 = vector.shape_cast %137 : vector<8xf32> to vector<8x1xf32>
    %cst_34 = arith.constant 3.200000e+01 : f32
    %139 = vector.broadcast %cst_34 : f32 to vector<8x1xf32>
    %140 = arith.divf %138, %139 : vector<8x1xf32>
    %141 = vector.broadcast %140 : vector<8x1xf32> to vector<8x32xf32>
    %142 = arith.subf %119, %141 : vector<8x32xf32>
    %143 = arith.mulf %142, %142 : vector<8x32xf32>
    %cst_35 = arith.constant dense<0.000000e+00> : vector<8xf32>
    %144 = vector.multi_reduction <add>, %143, %cst_35 [1] : vector<8x32xf32> to vector<8xf32>
    %145 = vector.shape_cast %144 : vector<8xf32> to vector<8x1xf32>
    %cst_36 = arith.constant 3.200000e+01 : f32
    %146 = vector.broadcast %cst_36 : f32 to vector<8x1xf32>
    %147 = arith.divf %145, %146 : vector<8x1xf32>
    %cst_37 = arith.constant 9.99999974E-6 : f32
    %148 = vector.broadcast %cst_37 : f32 to vector<8x1xf32>
    %149 = arith.addf %147, %148 : vector<8x1xf32>
    %150 = math.rsqrt %149 : vector<8x1xf32>
    %151 = vector.broadcast %150 : vector<8x1xf32> to vector<8x32xf32>
    %152 = arith.mulf %142, %151 : vector<8x32xf32>
    %153 = arith.mulf %152, %15 : vector<8x32xf32>
    %154 = arith.addf %153, %18 : vector<8x32xf32>
    %cst_38 = arith.constant dense<0.000000e+00> : vector<8xf32>
    %155 = vector.multi_reduction <add>, %136, %cst_38 [1] : vector<8x32xf32> to vector<8xf32>
    %156 = vector.shape_cast %155 : vector<8xf32> to vector<8x1xf32>
    %cst_39 = arith.constant 3.200000e+01 : f32
    %157 = vector.broadcast %cst_39 : f32 to vector<8x1xf32>
    %158 = arith.divf %156, %157 : vector<8x1xf32>
    %159 = vector.broadcast %158 : vector<8x1xf32> to vector<8x32xf32>
    %160 = arith.subf %136, %159 : vector<8x32xf32>
    %161 = arith.mulf %160, %160 : vector<8x32xf32>
    %cst_40 = arith.constant dense<0.000000e+00> : vector<8xf32>
    %162 = vector.multi_reduction <add>, %161, %cst_40 [1] : vector<8x32xf32> to vector<8xf32>
    %163 = vector.shape_cast %162 : vector<8xf32> to vector<8x1xf32>
    %cst_41 = arith.constant 3.200000e+01 : f32
    %164 = vector.broadcast %cst_41 : f32 to vector<8x1xf32>
    %165 = arith.divf %163, %164 : vector<8x1xf32>
    %cst_42 = arith.constant 9.99999974E-6 : f32
    %166 = vector.broadcast %cst_42 : f32 to vector<8x1xf32>
    %167 = arith.addf %165, %166 : vector<8x1xf32>
    %168 = math.rsqrt %167 : vector<8x1xf32>
    %169 = vector.broadcast %168 : vector<8x1xf32> to vector<8x32xf32>
    %170 = arith.mulf %160, %169 : vector<8x32xf32>
    %171 = arith.mulf %170, %21 : vector<8x32xf32>
    %172 = arith.addf %171, %24 : vector<8x32xf32>
    %173 = vector.extract_strided_slice %80 {offsets = [0, 0], sizes = [8, 32], strides = [1, 1]} : vector<64x32xf32> to vector<8x32xf32>
    %cst_43 = arith.constant dense<0.000000e+00> : vector<8x32xf32>
    %174 = tpu.matmul %172, %84, %cst_43 {dimension_numbers = #tpu.dot_dimension_numbers<[1], [0], [0], [1], [0, 0, 1, 1], [], []>} : vector<8x32xf32>, vector<32x32xf32>, vector<8x32xf32> -> vector<8x32xf32>
    %175 = arith.addf %174, %12 : vector<8x32xf32>
    %176 = arith.negf %175 : vector<8x32xf32>
    %177 = math.exp %176 : vector<8x32xf32>
    %cst_44 = arith.constant 1.000000e+00 : f32
    %178 = vector.broadcast %cst_44 : f32 to vector<8x32xf32>
    %179 = arith.addf %178, %177 : vector<8x32xf32>
    %180 = arith.divf %178, %179 : vector<8x32xf32>
    %181 = math.tanh %154 : vector<8x32xf32>
    %182 = arith.mulf %116, %181 : vector<8x32xf32>
    %183 = arith.mulf %173, %182 : vector<8x32xf32>
    %cst_45 = arith.constant 1.000000e+00 : f32
    %184 = vector.broadcast %cst_45 : f32 to vector<8x32xf32>
    %185 = arith.subf %184, %173 : vector<8x32xf32>
    %186 = arith.mulf %185, %85 : vector<8x32xf32>
    %187 = arith.addf %183, %186 : vector<8x32xf32>
    %188 = arith.mulf %180, %187 : vector<8x32xf32>
    %cst_46 = arith.constant 1.000000e+00 : f32
    %189 = vector.broadcast %cst_46 : f32 to vector<8x32xf32>
    %190 = arith.subf %189, %180 : vector<8x32xf32>
    %191 = math.tanh %172 : vector<8x32xf32>
    %192 = arith.mulf %190, %191 : vector<8x32xf32>
    %193 = arith.addf %188, %192 : vector<8x32xf32>
    %cst_47 = arith.constant dense<0.000000e+00> : vector<8xf32>
    %194 = vector.multi_reduction <add>, %193, %cst_47 [1] : vector<8x32xf32> to vector<8xf32>
    %195 = vector.shape_cast %194 : vector<8xf32> to vector<8x1xf32>
    %cst_48 = arith.constant 3.200000e+01 : f32
    %196 = vector.broadcast %cst_48 : f32 to vector<8x1xf32>
    %197 = arith.divf %195, %196 : vector<8x1xf32>
    %198 = vector.broadcast %197 : vector<8x1xf32> to vector<8x32xf32>
    %199 = arith.subf %193, %198 : vector<8x32xf32>
    %200 = arith.mulf %199, %199 : vector<8x32xf32>
    %cst_49 = arith.constant dense<0.000000e+00> : vector<8xf32>
    %201 = vector.multi_reduction <add>, %200, %cst_49 [1] : vector<8x32xf32> to vector<8xf32>
    %202 = vector.shape_cast %201 : vector<8xf32> to vector<8x1xf32>
    %cst_50 = arith.constant 3.200000e+01 : f32
    %203 = vector.broadcast %cst_50 : f32 to vector<8x1xf32>
    %204 = arith.divf %202, %203 : vector<8x1xf32>
    %cst_51 = arith.constant 9.99999974E-6 : f32
    %205 = vector.broadcast %cst_51 : f32 to vector<8x1xf32>
    %206 = arith.addf %204, %205 : vector<8x1xf32>
    %207 = math.rsqrt %206 : vector<8x1xf32>
    %208 = vector.broadcast %207 : vector<8x1xf32> to vector<8x32xf32>
    %209 = arith.mulf %199, %208 : vector<8x32xf32>
    %210 = arith.mulf %209, %27 : vector<8x32xf32>
    %211 = arith.addf %210, %30 : vector<8x32xf32>
    %c0_52 = arith.constant 0 : index
    %c0_53 = arith.constant 0 : index
    %c0_54 = arith.constant 0 : index
    %212 = vector.load %arg9[%c0_52, %c0_53, %c0_54] : memref<8x8x128xf32, #tpu.memory_space<vmem>>, vector<1x8x32xf32>
    %213 = vector.shape_cast %212 : vector<1x8x32xf32> to vector<8x32xf32>
    %214 = vector.shape_cast %211 : vector<8x32xf32> to vector<1x8x32xf32>
    tpu.vector_store %arg9[%c0_52, %c0_53, %c0_54], %214 {strides = array<i32>} : memref<8x8x128xf32, #tpu.memory_space<vmem>>, vector<1x8x32xf32>,
    %c0_55 = arith.constant 0 : index
    %c0_56 = arith.constant 0 : index
    %c32 = arith.constant 32 : index
    %215 = vector.load %arg9[%c0_55, %c0_56, %c32] : memref<8x8x128xf32, #tpu.memory_space<vmem>>, vector<1x8x32xf32>
    %216 = vector.shape_cast %215 : vector<1x8x32xf32> to vector<8x32xf32>
    %217 = vector.shape_cast %154 : vector<8x32xf32> to vector<1x8x32xf32>
    tpu.vector_store %arg9[%c0_55, %c0_56, %c32], %217 {strides = array<i32>} : memref<8x8x128xf32, #tpu.memory_space<vmem>>, vector<1x8x32xf32>,
    %c0_57 = arith.constant 0 : index
    %c0_58 = arith.constant 0 : index
    %c64 = arith.constant 64 : index
    %218 = vector.load %arg9[%c0_57, %c0_58, %c64] : memref<8x8x128xf32, #tpu.memory_space<vmem>>, vector<1x8x32xf32>
    %219 = vector.shape_cast %218 : vector<1x8x32xf32> to vector<8x32xf32>
    %220 = vector.shape_cast %172 : vector<8x32xf32> to vector<1x8x32xf32>
    tpu.vector_store %arg9[%c0_57, %c0_58, %c64], %220 {strides = array<i32>} : memref<8x8x128xf32, #tpu.memory_space<vmem>>, vector<1x8x32xf32>,
    %221 = vector.extract_strided_slice %41 {offsets = [8, 0], sizes = [8, 161], strides = [1, 1]} : vector<64x161xf32> to vector<8x161xf32>
    %cst_59 = arith.constant dense<0.000000e+00> : vector<8x161xf32>
    %222 = tpu.matmul %211, %81, %cst_59 {dimension_numbers = #tpu.dot_dimension_numbers<[1], [0], [0], [1], [0, 0, 1, 1], [], []>} : vector<8x32xf32>, vector<32x161xf32>, vector<8x161xf32> -> vector<8x161xf32>
    %223 = vector.extract_strided_slice %221 {offsets = [0, 160], sizes = [8, 1], strides = [1, 1]} : vector<8x161xf32> to vector<8x1xf32>
    %224 = vector.extract_strided_slice %222 {offsets = [0, 160], sizes = [8, 1], strides = [1, 1]} : vector<8x161xf32> to vector<8x1xf32>
    %225 = arith.addf %223, %224 : vector<8x1xf32>
    %226 = vector.broadcast %31 : vector<1x1xf32> to vector<8x1xf32>
    %227 = arith.addf %225, %226 : vector<8x1xf32>
    %228 = arith.negf %227 : vector<8x1xf32>
    %229 = math.exp %228 : vector<8x1xf32>
    %cst_60 = arith.constant 1.000000e+00 : f32
    %230 = vector.broadcast %cst_60 : f32 to vector<8x1xf32>
    %231 = arith.addf %230, %229 : vector<8x1xf32>
    %232 = arith.divf %230, %231 : vector<8x1xf32>
    %233 = vector.extract_strided_slice %221 {offsets = [0, 0], sizes = [8, 128], strides = [1, 1]} : vector<8x161xf32> to vector<8x128xf32>
    %234 = vector.broadcast %232 : vector<8x1xf32> to vector<8x128xf32>
    %235 = arith.mulf %234, %233 : vector<8x128xf32>
    %236 = vector.extract_strided_slice %222 {offsets = [0, 0], sizes = [8, 128], strides = [1, 1]} : vector<8x161xf32> to vector<8x128xf32>
    %237 = arith.addf %235, %236 : vector<8x128xf32>
    %238 = vector.extract_strided_slice %47 {offsets = [8, 0], sizes = [8, 128], strides = [1, 1]} : vector<64x128xf32> to vector<8x128xf32>
    %239 = arith.addf %237, %238 : vector<8x128xf32>
    %240 = arith.negf %239 : vector<8x128xf32>
    %241 = math.exp %240 : vector<8x128xf32>
    %cst_61 = arith.constant 1.000000e+00 : f32
    %242 = vector.broadcast %cst_61 : f32 to vector<8x128xf32>
    %243 = arith.addf %242, %241 : vector<8x128xf32>
    %244 = arith.divf %242, %243 : vector<8x128xf32>
    %245 = math.tanh %239 : vector<8x128xf32>
    %246 = vector.extract_strided_slice %244 {offsets = [0, 0], sizes = [8, 32], strides = [1, 1]} : vector<8x128xf32> to vector<8x32xf32>
    %247 = vector.extract_strided_slice %244 {offsets = [0, 32], sizes = [8, 32], strides = [1, 1]} : vector<8x128xf32> to vector<8x32xf32>
    %248 = vector.extract_strided_slice %245 {offsets = [0, 64], sizes = [8, 32], strides = [1, 1]} : vector<8x128xf32> to vector<8x32xf32>
    %249 = vector.extract_strided_slice %244 {offsets = [0, 96], sizes = [8, 32], strides = [1, 1]} : vector<8x128xf32> to vector<8x32xf32>
    %250 = arith.mulf %247, %154 : vector<8x32xf32>
    %251 = arith.mulf %246, %248 : vector<8x32xf32>
    %252 = arith.addf %250, %251 : vector<8x32xf32>
    %253 = vector.extract_strided_slice %221 {offsets = [0, 128], sizes = [8, 32], strides = [1, 1]} : vector<8x161xf32> to vector<8x32xf32>
    %254 = vector.extract_strided_slice %222 {offsets = [0, 128], sizes = [8, 32], strides = [1, 1]} : vector<8x161xf32> to vector<8x32xf32>
    %255 = arith.addf %253, %254 : vector<8x32xf32>
    %256 = arith.addf %255, %6 : vector<8x32xf32>
    %257 = math.tanh %256 : vector<8x32xf32>
    %cst_62 = arith.constant dense<0.000000e+00> : vector<8x32xf32>
    %258 = tpu.matmul %252, %83, %cst_62 {dimension_numbers = #tpu.dot_dimension_numbers<[1], [0], [0], [1], [0, 0, 1, 1], [], []>} : vector<8x32xf32>, vector<32x32xf32>, vector<8x32xf32> -> vector<8x32xf32>
    %259 = arith.addf %258, %9 : vector<8x32xf32>
    %260 = arith.negf %259 : vector<8x32xf32>
    %261 = math.exp %260 : vector<8x32xf32>
    %cst_63 = arith.constant 1.000000e+00 : f32
    %262 = vector.broadcast %cst_63 : f32 to vector<8x32xf32>
    %263 = arith.addf %262, %261 : vector<8x32xf32>
    %264 = arith.divf %262, %263 : vector<8x32xf32>
    %265 = arith.mulf %264, %172 : vector<8x32xf32>
    %cst_64 = arith.constant 1.000000e+00 : f32
    %266 = vector.broadcast %cst_64 : f32 to vector<8x32xf32>
    %267 = arith.subf %266, %264 : vector<8x32xf32>
    %268 = arith.mulf %267, %257 : vector<8x32xf32>
    %269 = arith.addf %265, %268 : vector<8x32xf32>
    %cst_65 = arith.constant dense<0.000000e+00> : vector<8xf32>
    %270 = vector.multi_reduction <add>, %252, %cst_65 [1] : vector<8x32xf32> to vector<8xf32>
    %271 = vector.shape_cast %270 : vector<8xf32> to vector<8x1xf32>
    %cst_66 = arith.constant 3.200000e+01 : f32
    %272 = vector.broadcast %cst_66 : f32 to vector<8x1xf32>
    %273 = arith.divf %271, %272 : vector<8x1xf32>
    %274 = vector.broadcast %273 : vector<8x1xf32> to vector<8x32xf32>
    %275 = arith.subf %252, %274 : vector<8x32xf32>
    %276 = arith.mulf %275, %275 : vector<8x32xf32>
    %cst_67 = arith.constant dense<0.000000e+00> : vector<8xf32>
    %277 = vector.multi_reduction <add>, %276, %cst_67 [1] : vector<8x32xf32> to vector<8xf32>
    %278 = vector.shape_cast %277 : vector<8xf32> to vector<8x1xf32>
    %cst_68 = arith.constant 3.200000e+01 : f32
    %279 = vector.broadcast %cst_68 : f32 to vector<8x1xf32>
    %280 = arith.divf %278, %279 : vector<8x1xf32>
    %cst_69 = arith.constant 9.99999974E-6 : f32
    %281 = vector.broadcast %cst_69 : f32 to vector<8x1xf32>
    %282 = arith.addf %280, %281 : vector<8x1xf32>
    %283 = math.rsqrt %282 : vector<8x1xf32>
    %284 = vector.broadcast %283 : vector<8x1xf32> to vector<8x32xf32>
    %285 = arith.mulf %275, %284 : vector<8x32xf32>
    %286 = arith.mulf %285, %15 : vector<8x32xf32>
    %287 = arith.addf %286, %18 : vector<8x32xf32>
    %cst_70 = arith.constant dense<0.000000e+00> : vector<8xf32>
    %288 = vector.multi_reduction <add>, %269, %cst_70 [1] : vector<8x32xf32> to vector<8xf32>
    %289 = vector.shape_cast %288 : vector<8xf32> to vector<8x1xf32>
    %cst_71 = arith.constant 3.200000e+01 : f32
    %290 = vector.broadcast %cst_71 : f32 to vector<8x1xf32>
    %291 = arith.divf %289, %290 : vector<8x1xf32>
    %292 = vector.broadcast %291 : vector<8x1xf32> to vector<8x32xf32>
    %293 = arith.subf %269, %292 : vector<8x32xf32>
    %294 = arith.mulf %293, %293 : vector<8x32xf32>
    %cst_72 = arith.constant dense<0.000000e+00> : vector<8xf32>
    %295 = vector.multi_reduction <add>, %294, %cst_72 [1] : vector<8x32xf32> to vector<8xf32>
    %296 = vector.shape_cast %295 : vector<8xf32> to vector<8x1xf32>
    %cst_73 = arith.constant 3.200000e+01 : f32
    %297 = vector.broadcast %cst_73 : f32 to vector<8x1xf32>
    %298 = arith.divf %296, %297 : vector<8x1xf32>
    %cst_74 = arith.constant 9.99999974E-6 : f32
    %299 = vector.broadcast %cst_74 : f32 to vector<8x1xf32>
    %300 = arith.addf %298, %299 : vector<8x1xf32>
    %301 = math.rsqrt %300 : vector<8x1xf32>
    %302 = vector.broadcast %301 : vector<8x1xf32> to vector<8x32xf32>
    %303 = arith.mulf %293, %302 : vector<8x32xf32>
    %304 = arith.mulf %303, %21 : vector<8x32xf32>
    %305 = arith.addf %304, %24 : vector<8x32xf32>
    %306 = vector.extract_strided_slice %80 {offsets = [8, 0], sizes = [8, 32], strides = [1, 1]} : vector<64x32xf32> to vector<8x32xf32>
    %cst_75 = arith.constant dense<0.000000e+00> : vector<8x32xf32>
    %307 = tpu.matmul %305, %84, %cst_75 {dimension_numbers = #tpu.dot_dimension_numbers<[1], [0], [0], [1], [0, 0, 1, 1], [], []>} : vector<8x32xf32>, vector<32x32xf32>, vector<8x32xf32> -> vector<8x32xf32>
    %308 = arith.addf %307, %12 : vector<8x32xf32>
    %309 = arith.negf %308 : vector<8x32xf32>
    %310 = math.exp %309 : vector<8x32xf32>
    %cst_76 = arith.constant 1.000000e+00 : f32
    %311 = vector.broadcast %cst_76 : f32 to vector<8x32xf32>
    %312 = arith.addf %311, %310 : vector<8x32xf32>
    %313 = arith.divf %311, %312 : vector<8x32xf32>
    %314 = math.tanh %287 : vector<8x32xf32>
    %315 = arith.mulf %249, %314 : vector<8x32xf32>
    %316 = arith.mulf %306, %315 : vector<8x32xf32>
    %cst_77 = arith.constant 1.000000e+00 : f32
    %317 = vector.broadcast %cst_77 : f32 to vector<8x32xf32>
    %318 = arith.subf %317, %306 : vector<8x32xf32>
    %319 = arith.mulf %318, %211 : vector<8x32xf32>
    %320 = arith.addf %316, %319 : vector<8x32xf32>
    %321 = arith.mulf %313, %320 : vector<8x32xf32>
    %cst_78 = arith.constant 1.000000e+00 : f32
    %322 = vector.broadcast %cst_78 : f32 to vector<8x32xf32>
    %323 = arith.subf %322, %313 : vector<8x32xf32>
    %324 = math.tanh %305 : vector<8x32xf32>
    %325 = arith.mulf %323, %324 : vector<8x32xf32>
    %326 = arith.addf %321, %325 : vector<8x32xf32>
    %cst_79 = arith.constant dense<0.000000e+00> : vector<8xf32>
    %327 = vector.multi_reduction <add>, %326, %cst_79 [1] : vector<8x32xf32> to vector<8xf32>
    %328 = vector.shape_cast %327 : vector<8xf32> to vector<8x1xf32>
    %cst_80 = arith.constant 3.200000e+01 : f32
    %329 = vector.broadcast %cst_80 : f32 to vector<8x1xf32>
    %330 = arith.divf %328, %329 : vector<8x1xf32>
    %331 = vector.broadcast %330 : vector<8x1xf32> to vector<8x32xf32>
    %332 = arith.subf %326, %331 : vector<8x32xf32>
    %333 = arith.mulf %332, %332 : vector<8x32xf32>
    %cst_81 = arith.constant dense<0.000000e+00> : vector<8xf32>
    %334 = vector.multi_reduction <add>, %333, %cst_81 [1] : vector<8x32xf32> to vector<8xf32>
    %335 = vector.shape_cast %334 : vector<8xf32> to vector<8x1xf32>
    %cst_82 = arith.constant 3.200000e+01 : f32
    %336 = vector.broadcast %cst_82 : f32 to vector<8x1xf32>
    %337 = arith.divf %335, %336 : vector<8x1xf32>
    %cst_83 = arith.constant 9.99999974E-6 : f32
    %338 = vector.broadcast %cst_83 : f32 to vector<8x1xf32>
    %339 = arith.addf %337, %338 : vector<8x1xf32>
    %340 = math.rsqrt %339 : vector<8x1xf32>
    %341 = vector.broadcast %340 : vector<8x1xf32> to vector<8x32xf32>
    %342 = arith.mulf %332, %341 : vector<8x32xf32>
    %343 = arith.mulf %342, %27 : vector<8x32xf32>
    %344 = arith.addf %343, %30 : vector<8x32xf32>
    %c1 = arith.constant 1 : index
    %c0_84 = arith.constant 0 : index
    %c0_85 = arith.constant 0 : index
    %345 = vector.load %arg9[%c1, %c0_84, %c0_85] : memref<8x8x128xf32, #tpu.memory_space<vmem>>, vector<1x8x32xf32>
    %346 = vector.shape_cast %345 : vector<1x8x32xf32> to vector<8x32xf32>
    %347 = vector.shape_cast %344 : vector<8x32xf32> to vector<1x8x32xf32>
    tpu.vector_store %arg9[%c1, %c0_84, %c0_85], %347 {strides = array<i32>} : memref<8x8x128xf32, #tpu.memory_space<vmem>>, vector<1x8x32xf32>,
    %c1_86 = arith.constant 1 : index
    %c0_87 = arith.constant 0 : index
    %c32_88 = arith.constant 32 : index
    %348 = vector.load %arg9[%c1_86, %c0_87, %c32_88] : memref<8x8x128xf32, #tpu.memory_space<vmem>>, vector<1x8x32xf32>
    %349 = vector.shape_cast %348 : vector<1x8x32xf32> to vector<8x32xf32>
    %350 = vector.shape_cast %287 : vector<8x32xf32> to vector<1x8x32xf32>
    tpu.vector_store %arg9[%c1_86, %c0_87, %c32_88], %350 {strides = array<i32>} : memref<8x8x128xf32, #tpu.memory_space<vmem>>, vector<1x8x32xf32>,
    %c1_89 = arith.constant 1 : index
    %c0_90 = arith.constant 0 : index
    %c64_91 = arith.constant 64 : index
    %351 = vector.load %arg9[%c1_89, %c0_90, %c64_91] : memref<8x8x128xf32, #tpu.memory_space<vmem>>, vector<1x8x32xf32>
    %352 = vector.shape_cast %351 : vector<1x8x32xf32> to vector<8x32xf32>
    %353 = vector.shape_cast %305 : vector<8x32xf32> to vector<1x8x32xf32>
    tpu.vector_store %arg9[%c1_89, %c0_90, %c64_91], %353 {strides = array<i32>} : memref<8x8x128xf32, #tpu.memory_space<vmem>>, vector<1x8x32xf32>,
    %354 = vector.extract_strided_slice %41 {offsets = [16, 0], sizes = [8, 161], strides = [1, 1]} : vector<64x161xf32> to vector<8x161xf32>
    %cst_92 = arith.constant dense<0.000000e+00> : vector<8x161xf32>
    %355 = tpu.matmul %344, %81, %cst_92 {dimension_numbers = #tpu.dot_dimension_numbers<[1], [0], [0], [1], [0, 0, 1, 1], [], []>} : vector<8x32xf32>, vector<32x161xf32>, vector<8x161xf32> -> vector<8x161xf32>
    %356 = vector.extract_strided_slice %354 {offsets = [0, 160], sizes = [8, 1], strides = [1, 1]} : vector<8x161xf32> to vector<8x1xf32>
    %357 = vector.extract_strided_slice %355 {offsets = [0, 160], sizes = [8, 1], strides = [1, 1]} : vector<8x161xf32> to vector<8x1xf32>
    %358 = arith.addf %356, %357 : vector<8x1xf32>
    %359 = vector.broadcast %31 : vector<1x1xf32> to vector<8x1xf32>
    %360 = arith.addf %358, %359 : vector<8x1xf32>
    %361 = arith.negf %360 : vector<8x1xf32>
    %362 = math.exp %361 : vector<8x1xf32>
    %cst_93 = arith.constant 1.000000e+00 : f32
    %363 = vector.broadcast %cst_93 : f32 to vector<8x1xf32>
    %364 = arith.addf %363, %362 : vector<8x1xf32>
    %365 = arith.divf %363, %364 : vector<8x1xf32>
    %366 = vector.extract_strided_slice %354 {offsets = [0, 0], sizes = [8, 128], strides = [1, 1]} : vector<8x161xf32> to vector<8x128xf32>
    %367 = vector.broadcast %365 : vector<8x1xf32> to vector<8x128xf32>
    %368 = arith.mulf %367, %366 : vector<8x128xf32>
    %369 = vector.extract_strided_slice %355 {offsets = [0, 0], sizes = [8, 128], strides = [1, 1]} : vector<8x161xf32> to vector<8x128xf32>
    %370 = arith.addf %368, %369 : vector<8x128xf32>
    %371 = vector.extract_strided_slice %47 {offsets = [16, 0], sizes = [8, 128], strides = [1, 1]} : vector<64x128xf32> to vector<8x128xf32>
    %372 = arith.addf %370, %371 : vector<8x128xf32>
    %373 = arith.negf %372 : vector<8x128xf32>
    %374 = math.exp %373 : vector<8x128xf32>
    %cst_94 = arith.constant 1.000000e+00 : f32
    %375 = vector.broadcast %cst_94 : f32 to vector<8x128xf32>
    %376 = arith.addf %375, %374 : vector<8x128xf32>
    %377 = arith.divf %375, %376 : vector<8x128xf32>
    %378 = math.tanh %372 : vector<8x128xf32>
    %379 = vector.extract_strided_slice %377 {offsets = [0, 0], sizes = [8, 32], strides = [1, 1]} : vector<8x128xf32> to vector<8x32xf32>
    %380 = vector.extract_strided_slice %377 {offsets = [0, 32], sizes = [8, 32], strides = [1, 1]} : vector<8x128xf32> to vector<8x32xf32>
    %381 = vector.extract_strided_slice %378 {offsets = [0, 64], sizes = [8, 32], strides = [1, 1]} : vector<8x128xf32> to vector<8x32xf32>
    %382 = vector.extract_strided_slice %377 {offsets = [0, 96], sizes = [8, 32], strides = [1, 1]} : vector<8x128xf32> to vector<8x32xf32>
    %383 = arith.mulf %380, %287 : vector<8x32xf32>
    %384 = arith.mulf %379, %381 : vector<8x32xf32>
    %385 = arith.addf %383, %384 : vector<8x32xf32>
    %386 = vector.extract_strided_slice %354 {offsets = [0, 128], sizes = [8, 32], strides = [1, 1]} : vector<8x161xf32> to vector<8x32xf32>
    %387 = vector.extract_strided_slice %355 {offsets = [0, 128], sizes = [8, 32], strides = [1, 1]} : vector<8x161xf32> to vector<8x32xf32>
    %388 = arith.addf %386, %387 : vector<8x32xf32>
    %389 = arith.addf %388, %6 : vector<8x32xf32>
    %390 = math.tanh %389 : vector<8x32xf32>
    %cst_95 = arith.constant dense<0.000000e+00> : vector<8x32xf32>
    %391 = tpu.matmul %385, %83, %cst_95 {dimension_numbers = #tpu.dot_dimension_numbers<[1], [0], [0], [1], [0, 0, 1, 1], [], []>} : vector<8x32xf32>, vector<32x32xf32>, vector<8x32xf32> -> vector<8x32xf32>
    %392 = arith.addf %391, %9 : vector<8x32xf32>
    %393 = arith.negf %392 : vector<8x32xf32>
    %394 = math.exp %393 : vector<8x32xf32>
    %cst_96 = arith.constant 1.000000e+00 : f32
    %395 = vector.broadcast %cst_96 : f32 to vector<8x32xf32>
    %396 = arith.addf %395, %394 : vector<8x32xf32>
    %397 = arith.divf %395, %396 : vector<8x32xf32>
    %398 = arith.mulf %397, %305 : vector<8x32xf32>
    %cst_97 = arith.constant 1.000000e+00 : f32
    %399 = vector.broadcast %cst_97 : f32 to vector<8x32xf32>
    %400 = arith.subf %399, %397 : vector<8x32xf32>
    %401 = arith.mulf %400, %390 : vector<8x32xf32>
    %402 = arith.addf %398, %401 : vector<8x32xf32>
    %cst_98 = arith.constant dense<0.000000e+00> : vector<8xf32>
    %403 = vector.multi_reduction <add>, %385, %cst_98 [1] : vector<8x32xf32> to vector<8xf32>
    %404 = vector.shape_cast %403 : vector<8xf32> to vector<8x1xf32>
    %cst_99 = arith.constant 3.200000e+01 : f32
    %405 = vector.broadcast %cst_99 : f32 to vector<8x1xf32>
    %406 = arith.divf %404, %405 : vector<8x1xf32>
    %407 = vector.broadcast %406 : vector<8x1xf32> to vector<8x32xf32>
    %408 = arith.subf %385, %407 : vector<8x32xf32>
    %409 = arith.mulf %408, %408 : vector<8x32xf32>
    %cst_100 = arith.constant dense<0.000000e+00> : vector<8xf32>
    %410 = vector.multi_reduction <add>, %409, %cst_100 [1] : vector<8x32xf32> to vector<8xf32>
    %411 = vector.shape_cast %410 : vector<8xf32> to vector<8x1xf32>
    %cst_101 = arith.constant 3.200000e+01 : f32
    %412 = vector.broadcast %cst_101 : f32 to vector<8x1xf32>
    %413 = arith.divf %411, %412 : vector<8x1xf32>
    %cst_102 = arith.constant 9.99999974E-6 : f32
    %414 = vector.broadcast %cst_102 : f32 to vector<8x1xf32>
    %415 = arith.addf %413, %414 : vector<8x1xf32>
    %416 = math.rsqrt %415 : vector<8x1xf32>
    %417 = vector.broadcast %416 : vector<8x1xf32> to vector<8x32xf32>
    %418 = arith.mulf %408, %417 : vector<8x32xf32>
    %419 = arith.mulf %418, %15 : vector<8x32xf32>
    %420 = arith.addf %419, %18 : vector<8x32xf32>
    %cst_103 = arith.constant dense<0.000000e+00> : vector<8xf32>
    %421 = vector.multi_reduction <add>, %402, %cst_103 [1] : vector<8x32xf32> to vector<8xf32>
    %422 = vector.shape_cast %421 : vector<8xf32> to vector<8x1xf32>
    %cst_104 = arith.constant 3.200000e+01 : f32
    %423 = vector.broadcast %cst_104 : f32 to vector<8x1xf32>
    %424 = arith.divf %422, %423 : vector<8x1xf32>
    %425 = vector.broadcast %424 : vector<8x1xf32> to vector<8x32xf32>
    %426 = arith.subf %402, %425 : vector<8x32xf32>
    %427 = arith.mulf %426, %426 : vector<8x32xf32>
    %cst_105 = arith.constant dense<0.000000e+00> : vector<8xf32>
    %428 = vector.multi_reduction <add>, %427, %cst_105 [1] : vector<8x32xf32> to vector<8xf32>
    %429 = vector.shape_cast %428 : vector<8xf32> to vector<8x1xf32>
    %cst_106 = arith.constant 3.200000e+01 : f32
    %430 = vector.broadcast %cst_106 : f32 to vector<8x1xf32>
    %431 = arith.divf %429, %430 : vector<8x1xf32>
    %cst_107 = arith.constant 9.99999974E-6 : f32
    %432 = vector.broadcast %cst_107 : f32 to vector<8x1xf32>
    %433 = arith.addf %431, %432 : vector<8x1xf32>
    %434 = math.rsqrt %433 : vector<8x1xf32>
    %435 = vector.broadcast %434 : vector<8x1xf32> to vector<8x32xf32>
    %436 = arith.mulf %426, %435 : vector<8x32xf32>
    %437 = arith.mulf %436, %21 : vector<8x32xf32>
    %438 = arith.addf %437, %24 : vector<8x32xf32>
    %439 = vector.extract_strided_slice %80 {offsets = [16, 0], sizes = [8, 32], strides = [1, 1]} : vector<64x32xf32> to vector<8x32xf32>
    %cst_108 = arith.constant dense<0.000000e+00> : vector<8x32xf32>
    %440 = tpu.matmul %438, %84, %cst_108 {dimension_numbers = #tpu.dot_dimension_numbers<[1], [0], [0], [1], [0, 0, 1, 1], [], []>} : vector<8x32xf32>, vector<32x32xf32>, vector<8x32xf32> -> vector<8x32xf32>
    %441 = arith.addf %440, %12 : vector<8x32xf32>
    %442 = arith.negf %441 : vector<8x32xf32>
    %443 = math.exp %442 : vector<8x32xf32>
    %cst_109 = arith.constant 1.000000e+00 : f32
    %444 = vector.broadcast %cst_109 : f32 to vector<8x32xf32>
    %445 = arith.addf %444, %443 : vector<8x32xf32>
    %446 = arith.divf %444, %445 : vector<8x32xf32>
    %447 = math.tanh %420 : vector<8x32xf32>
    %448 = arith.mulf %382, %447 : vector<8x32xf32>
    %449 = arith.mulf %439, %448 : vector<8x32xf32>
    %cst_110 = arith.constant 1.000000e+00 : f32
    %450 = vector.broadcast %cst_110 : f32 to vector<8x32xf32>
    %451 = arith.subf %450, %439 : vector<8x32xf32>
    %452 = arith.mulf %451, %344 : vector<8x32xf32>
    %453 = arith.addf %449, %452 : vector<8x32xf32>
    %454 = arith.mulf %446, %453 : vector<8x32xf32>
    %cst_111 = arith.constant 1.000000e+00 : f32
    %455 = vector.broadcast %cst_111 : f32 to vector<8x32xf32>
    %456 = arith.subf %455, %446 : vector<8x32xf32>
    %457 = math.tanh %438 : vector<8x32xf32>
    %458 = arith.mulf %456, %457 : vector<8x32xf32>
    %459 = arith.addf %454, %458 : vector<8x32xf32>
    %cst_112 = arith.constant dense<0.000000e+00> : vector<8xf32>
    %460 = vector.multi_reduction <add>, %459, %cst_112 [1] : vector<8x32xf32> to vector<8xf32>
    %461 = vector.shape_cast %460 : vector<8xf32> to vector<8x1xf32>
    %cst_113 = arith.constant 3.200000e+01 : f32
    %462 = vector.broadcast %cst_113 : f32 to vector<8x1xf32>
    %463 = arith.divf %461, %462 : vector<8x1xf32>
    %464 = vector.broadcast %463 : vector<8x1xf32> to vector<8x32xf32>
    %465 = arith.subf %459, %464 : vector<8x32xf32>
    %466 = arith.mulf %465, %465 : vector<8x32xf32>
    %cst_114 = arith.constant dense<0.000000e+00> : vector<8xf32>
    %467 = vector.multi_reduction <add>, %466, %cst_114 [1] : vector<8x32xf32> to vector<8xf32>
    %468 = vector.shape_cast %467 : vector<8xf32> to vector<8x1xf32>
    %cst_115 = arith.constant 3.200000e+01 : f32
    %469 = vector.broadcast %cst_115 : f32 to vector<8x1xf32>
    %470 = arith.divf %468, %469 : vector<8x1xf32>
    %cst_116 = arith.constant 9.99999974E-6 : f32
    %471 = vector.broadcast %cst_116 : f32 to vector<8x1xf32>
    %472 = arith.addf %470, %471 : vector<8x1xf32>
    %473 = math.rsqrt %472 : vector<8x1xf32>
    %474 = vector.broadcast %473 : vector<8x1xf32> to vector<8x32xf32>
    %475 = arith.mulf %465, %474 : vector<8x32xf32>
    %476 = arith.mulf %475, %27 : vector<8x32xf32>
    %477 = arith.addf %476, %30 : vector<8x32xf32>
    %c2 = arith.constant 2 : index
    %c0_117 = arith.constant 0 : index
    %c0_118 = arith.constant 0 : index
    %478 = vector.load %arg9[%c2, %c0_117, %c0_118] : memref<8x8x128xf32, #tpu.memory_space<vmem>>, vector<1x8x32xf32>
    %479 = vector.shape_cast %478 : vector<1x8x32xf32> to vector<8x32xf32>
    %480 = vector.shape_cast %477 : vector<8x32xf32> to vector<1x8x32xf32>
    tpu.vector_store %arg9[%c2, %c0_117, %c0_118], %480 {strides = array<i32>} : memref<8x8x128xf32, #tpu.memory_space<vmem>>, vector<1x8x32xf32>,
    %c2_119 = arith.constant 2 : index
    %c0_120 = arith.constant 0 : index
    %c32_121 = arith.constant 32 : index
    %481 = vector.load %arg9[%c2_119, %c0_120, %c32_121] : memref<8x8x128xf32, #tpu.memory_space<vmem>>, vector<1x8x32xf32>
    %482 = vector.shape_cast %481 : vector<1x8x32xf32> to vector<8x32xf32>
    %483 = vector.shape_cast %420 : vector<8x32xf32> to vector<1x8x32xf32>
    tpu.vector_store %arg9[%c2_119, %c0_120, %c32_121], %483 {strides = array<i32>} : memref<8x8x128xf32, #tpu.memory_space<vmem>>, vector<1x8x32xf32>,
    %c2_122 = arith.constant 2 : index
    %c0_123 = arith.constant 0 : index
    %c64_124 = arith.constant 64 : index
    %484 = vector.load %arg9[%c2_122, %c0_123, %c64_124] : memref<8x8x128xf32, #tpu.memory_space<vmem>>, vector<1x8x32xf32>
    %485 = vector.shape_cast %484 : vector<1x8x32xf32> to vector<8x32xf32>
    %486 = vector.shape_cast %438 : vector<8x32xf32> to vector<1x8x32xf32>
    tpu.vector_store %arg9[%c2_122, %c0_123, %c64_124], %486 {strides = array<i32>} : memref<8x8x128xf32, #tpu.memory_space<vmem>>, vector<1x8x32xf32>,
    %487 = vector.extract_strided_slice %41 {offsets = [24, 0], sizes = [8, 161], strides = [1, 1]} : vector<64x161xf32> to vector<8x161xf32>
    %cst_125 = arith.constant dense<0.000000e+00> : vector<8x161xf32>
    %488 = tpu.matmul %477, %81, %cst_125 {dimension_numbers = #tpu.dot_dimension_numbers<[1], [0], [0], [1], [0, 0, 1, 1], [], []>} : vector<8x32xf32>, vector<32x161xf32>, vector<8x161xf32> -> vector<8x161xf32>
    %489 = vector.extract_strided_slice %487 {offsets = [0, 160], sizes = [8, 1], strides = [1, 1]} : vector<8x161xf32> to vector<8x1xf32>
    %490 = vector.extract_strided_slice %488 {offsets = [0, 160], sizes = [8, 1], strides = [1, 1]} : vector<8x161xf32> to vector<8x1xf32>
    %491 = arith.addf %489, %490 : vector<8x1xf32>
    %492 = vector.broadcast %31 : vector<1x1xf32> to vector<8x1xf32>
    %493 = arith.addf %491, %492 : vector<8x1xf32>
    %494 = arith.negf %493 : vector<8x1xf32>
    %495 = math.exp %494 : vector<8x1xf32>
    %cst_126 = arith.constant 1.000000e+00 : f32
    %496 = vector.broadcast %cst_126 : f32 to vector<8x1xf32>
    %497 = arith.addf %496, %495 : vector<8x1xf32>
    %498 = arith.divf %496, %497 : vector<8x1xf32>
    %499 = vector.extract_strided_slice %487 {offsets = [0, 0], sizes = [8, 128], strides = [1, 1]} : vector<8x161xf32> to vector<8x128xf32>
    %500 = vector.broadcast %498 : vector<8x1xf32> to vector<8x128xf32>
    %501 = arith.mulf %500, %499 : vector<8x128xf32>
    %502 = vector.extract_strided_slice %488 {offsets = [0, 0], sizes = [8, 128], strides = [1, 1]} : vector<8x161xf32> to vector<8x128xf32>
    %503 = arith.addf %501, %502 : vector<8x128xf32>
    %504 = vector.extract_strided_slice %47 {offsets = [24, 0], sizes = [8, 128], strides = [1, 1]} : vector<64x128xf32> to vector<8x128xf32>
    %505 = arith.addf %503, %504 : vector<8x128xf32>
    %506 = arith.negf %505 : vector<8x128xf32>
    %507 = math.exp %506 : vector<8x128xf32>
    %cst_127 = arith.constant 1.000000e+00 : f32
    %508 = vector.broadcast %cst_127 : f32 to vector<8x128xf32>
    %509 = arith.addf %508, %507 : vector<8x128xf32>
    %510 = arith.divf %508, %509 : vector<8x128xf32>
    %511 = math.tanh %505 : vector<8x128xf32>
    %512 = vector.extract_strided_slice %510 {offsets = [0, 0], sizes = [8, 32], strides = [1, 1]} : vector<8x128xf32> to vector<8x32xf32>
    %513 = vector.extract_strided_slice %510 {offsets = [0, 32], sizes = [8, 32], strides = [1, 1]} : vector<8x128xf32> to vector<8x32xf32>
    %514 = vector.extract_strided_slice %511 {offsets = [0, 64], sizes = [8, 32], strides = [1, 1]} : vector<8x128xf32> to vector<8x32xf32>
    %515 = vector.extract_strided_slice %510 {offsets = [0, 96], sizes = [8, 32], strides = [1, 1]} : vector<8x128xf32> to vector<8x32xf32>
    %516 = arith.mulf %513, %420 : vector<8x32xf32>
    %517 = arith.mulf %512, %514 : vector<8x32xf32>
    %518 = arith.addf %516, %517 : vector<8x32xf32>
    %519 = vector.extract_strided_slice %487 {offsets = [0, 128], sizes = [8, 32], strides = [1, 1]} : vector<8x161xf32> to vector<8x32xf32>
    %520 = vector.extract_strided_slice %488 {offsets = [0, 128], sizes = [8, 32], strides = [1, 1]} : vector<8x161xf32> to vector<8x32xf32>
    %521 = arith.addf %519, %520 : vector<8x32xf32>
    %522 = arith.addf %521, %6 : vector<8x32xf32>
    %523 = math.tanh %522 : vector<8x32xf32>
    %cst_128 = arith.constant dense<0.000000e+00> : vector<8x32xf32>
    %524 = tpu.matmul %518, %83, %cst_128 {dimension_numbers = #tpu.dot_dimension_numbers<[1], [0], [0], [1], [0, 0, 1, 1], [], []>} : vector<8x32xf32>, vector<32x32xf32>, vector<8x32xf32> -> vector<8x32xf32>
    %525 = arith.addf %524, %9 : vector<8x32xf32>
    %526 = arith.negf %525 : vector<8x32xf32>
    %527 = math.exp %526 : vector<8x32xf32>
    %cst_129 = arith.constant 1.000000e+00 : f32
    %528 = vector.broadcast %cst_129 : f32 to vector<8x32xf32>
    %529 = arith.addf %528, %527 : vector<8x32xf32>
    %530 = arith.divf %528, %529 : vector<8x32xf32>
    %531 = arith.mulf %530, %438 : vector<8x32xf32>
    %cst_130 = arith.constant 1.000000e+00 : f32
    %532 = vector.broadcast %cst_130 : f32 to vector<8x32xf32>
    %533 = arith.subf %532, %530 : vector<8x32xf32>
    %534 = arith.mulf %533, %523 : vector<8x32xf32>
    %535 = arith.addf %531, %534 : vector<8x32xf32>
    %cst_131 = arith.constant dense<0.000000e+00> : vector<8xf32>
    %536 = vector.multi_reduction <add>, %518, %cst_131 [1] : vector<8x32xf32> to vector<8xf32>
    %537 = vector.shape_cast %536 : vector<8xf32> to vector<8x1xf32>
    %cst_132 = arith.constant 3.200000e+01 : f32
    %538 = vector.broadcast %cst_132 : f32 to vector<8x1xf32>
    %539 = arith.divf %537, %538 : vector<8x1xf32>
    %540 = vector.broadcast %539 : vector<8x1xf32> to vector<8x32xf32>
    %541 = arith.subf %518, %540 : vector<8x32xf32>
    %542 = arith.mulf %541, %541 : vector<8x32xf32>
    %cst_133 = arith.constant dense<0.000000e+00> : vector<8xf32>
    %543 = vector.multi_reduction <add>, %542, %cst_133 [1] : vector<8x32xf32> to vector<8xf32>
    %544 = vector.shape_cast %543 : vector<8xf32> to vector<8x1xf32>
    %cst_134 = arith.constant 3.200000e+01 : f32
    %545 = vector.broadcast %cst_134 : f32 to vector<8x1xf32>
    %546 = arith.divf %544, %545 : vector<8x1xf32>
    %cst_135 = arith.constant 9.99999974E-6 : f32
    %547 = vector.broadcast %cst_135 : f32 to vector<8x1xf32>
    %548 = arith.addf %546, %547 : vector<8x1xf32>
    %549 = math.rsqrt %548 : vector<8x1xf32>
    %550 = vector.broadcast %549 : vector<8x1xf32> to vector<8x32xf32>
    %551 = arith.mulf %541, %550 : vector<8x32xf32>
    %552 = arith.mulf %551, %15 : vector<8x32xf32>
    %553 = arith.addf %552, %18 : vector<8x32xf32>
    %cst_136 = arith.constant dense<0.000000e+00> : vector<8xf32>
    %554 = vector.multi_reduction <add>, %535, %cst_136 [1] : vector<8x32xf32> to vector<8xf32>
    %555 = vector.shape_cast %554 : vector<8xf32> to vector<8x1xf32>
    %cst_137 = arith.constant 3.200000e+01 : f32
    %556 = vector.broadcast %cst_137 : f32 to vector<8x1xf32>
    %557 = arith.divf %555, %556 : vector<8x1xf32>
    %558 = vector.broadcast %557 : vector<8x1xf32> to vector<8x32xf32>
    %559 = arith.subf %535, %558 : vector<8x32xf32>
    %560 = arith.mulf %559, %559 : vector<8x32xf32>
    %cst_138 = arith.constant dense<0.000000e+00> : vector<8xf32>
    %561 = vector.multi_reduction <add>, %560, %cst_138 [1] : vector<8x32xf32> to vector<8xf32>
    %562 = vector.shape_cast %561 : vector<8xf32> to vector<8x1xf32>
    %cst_139 = arith.constant 3.200000e+01 : f32
    %563 = vector.broadcast %cst_139 : f32 to vector<8x1xf32>
    %564 = arith.divf %562, %563 : vector<8x1xf32>
    %cst_140 = arith.constant 9.99999974E-6 : f32
    %565 = vector.broadcast %cst_140 : f32 to vector<8x1xf32>
    %566 = arith.addf %564, %565 : vector<8x1xf32>
    %567 = math.rsqrt %566 : vector<8x1xf32>
    %568 = vector.broadcast %567 : vector<8x1xf32> to vector<8x32xf32>
    %569 = arith.mulf %559, %568 : vector<8x32xf32>
    %570 = arith.mulf %569, %21 : vector<8x32xf32>
    %571 = arith.addf %570, %24 : vector<8x32xf32>
    %572 = vector.extract_strided_slice %80 {offsets = [24, 0], sizes = [8, 32], strides = [1, 1]} : vector<64x32xf32> to vector<8x32xf32>
    %cst_141 = arith.constant dense<0.000000e+00> : vector<8x32xf32>
    %573 = tpu.matmul %571, %84, %cst_141 {dimension_numbers = #tpu.dot_dimension_numbers<[1], [0], [0], [1], [0, 0, 1, 1], [], []>} : vector<8x32xf32>, vector<32x32xf32>, vector<8x32xf32> -> vector<8x32xf32>
    %574 = arith.addf %573, %12 : vector<8x32xf32>
    %575 = arith.negf %574 : vector<8x32xf32>
    %576 = math.exp %575 : vector<8x32xf32>
    %cst_142 = arith.constant 1.000000e+00 : f32
    %577 = vector.broadcast %cst_142 : f32 to vector<8x32xf32>
    %578 = arith.addf %577, %576 : vector<8x32xf32>
    %579 = arith.divf %577, %578 : vector<8x32xf32>
    %580 = math.tanh %553 : vector<8x32xf32>
    %581 = arith.mulf %515, %580 : vector<8x32xf32>
    %582 = arith.mulf %572, %581 : vector<8x32xf32>
    %cst_143 = arith.constant 1.000000e+00 : f32
    %583 = vector.broadcast %cst_143 : f32 to vector<8x32xf32>
    %584 = arith.subf %583, %572 : vector<8x32xf32>
    %585 = arith.mulf %584, %477 : vector<8x32xf32>
    %586 = arith.addf %582, %585 : vector<8x32xf32>
    %587 = arith.mulf %579, %586 : vector<8x32xf32>
    %cst_144 = arith.constant 1.000000e+00 : f32
    %588 = vector.broadcast %cst_144 : f32 to vector<8x32xf32>
    %589 = arith.subf %588, %579 : vector<8x32xf32>
    %590 = math.tanh %571 : vector<8x32xf32>
    %591 = arith.mulf %589, %590 : vector<8x32xf32>
    %592 = arith.addf %587, %591 : vector<8x32xf32>
    %cst_145 = arith.constant dense<0.000000e+00> : vector<8xf32>
    %593 = vector.multi_reduction <add>, %592, %cst_145 [1] : vector<8x32xf32> to vector<8xf32>
    %594 = vector.shape_cast %593 : vector<8xf32> to vector<8x1xf32>
    %cst_146 = arith.constant 3.200000e+01 : f32
    %595 = vector.broadcast %cst_146 : f32 to vector<8x1xf32>
    %596 = arith.divf %594, %595 : vector<8x1xf32>
    %597 = vector.broadcast %596 : vector<8x1xf32> to vector<8x32xf32>
    %598 = arith.subf %592, %597 : vector<8x32xf32>
    %599 = arith.mulf %598, %598 : vector<8x32xf32>
    %cst_147 = arith.constant dense<0.000000e+00> : vector<8xf32>
    %600 = vector.multi_reduction <add>, %599, %cst_147 [1] : vector<8x32xf32> to vector<8xf32>
    %601 = vector.shape_cast %600 : vector<8xf32> to vector<8x1xf32>
    %cst_148 = arith.constant 3.200000e+01 : f32
    %602 = vector.broadcast %cst_148 : f32 to vector<8x1xf32>
    %603 = arith.divf %601, %602 : vector<8x1xf32>
    %cst_149 = arith.constant 9.99999974E-6 : f32
    %604 = vector.broadcast %cst_149 : f32 to vector<8x1xf32>
    %605 = arith.addf %603, %604 : vector<8x1xf32>
    %606 = math.rsqrt %605 : vector<8x1xf32>
    %607 = vector.broadcast %606 : vector<8x1xf32> to vector<8x32xf32>
    %608 = arith.mulf %598, %607 : vector<8x32xf32>
    %609 = arith.mulf %608, %27 : vector<8x32xf32>
    %610 = arith.addf %609, %30 : vector<8x32xf32>
    %c3 = arith.constant 3 : index
    %c0_150 = arith.constant 0 : index
    %c0_151 = arith.constant 0 : index
    %611 = vector.load %arg9[%c3, %c0_150, %c0_151] : memref<8x8x128xf32, #tpu.memory_space<vmem>>, vector<1x8x32xf32>
    %612 = vector.shape_cast %611 : vector<1x8x32xf32> to vector<8x32xf32>
    %613 = vector.shape_cast %610 : vector<8x32xf32> to vector<1x8x32xf32>
    tpu.vector_store %arg9[%c3, %c0_150, %c0_151], %613 {strides = array<i32>} : memref<8x8x128xf32, #tpu.memory_space<vmem>>, vector<1x8x32xf32>,
    %c3_152 = arith.constant 3 : index
    %c0_153 = arith.constant 0 : index
    %c32_154 = arith.constant 32 : index
    %614 = vector.load %arg9[%c3_152, %c0_153, %c32_154] : memref<8x8x128xf32, #tpu.memory_space<vmem>>, vector<1x8x32xf32>
    %615 = vector.shape_cast %614 : vector<1x8x32xf32> to vector<8x32xf32>
    %616 = vector.shape_cast %553 : vector<8x32xf32> to vector<1x8x32xf32>
    tpu.vector_store %arg9[%c3_152, %c0_153, %c32_154], %616 {strides = array<i32>} : memref<8x8x128xf32, #tpu.memory_space<vmem>>, vector<1x8x32xf32>,
    %c3_155 = arith.constant 3 : index
    %c0_156 = arith.constant 0 : index
    %c64_157 = arith.constant 64 : index
    %617 = vector.load %arg9[%c3_155, %c0_156, %c64_157] : memref<8x8x128xf32, #tpu.memory_space<vmem>>, vector<1x8x32xf32>
    %618 = vector.shape_cast %617 : vector<1x8x32xf32> to vector<8x32xf32>
    %619 = vector.shape_cast %571 : vector<8x32xf32> to vector<1x8x32xf32>
    tpu.vector_store %arg9[%c3_155, %c0_156, %c64_157], %619 {strides = array<i32>} : memref<8x8x128xf32, #tpu.memory_space<vmem>>, vector<1x8x32xf32>,
    %620 = vector.extract_strided_slice %41 {offsets = [32, 0], sizes = [8, 161], strides = [1, 1]} : vector<64x161xf32> to vector<8x161xf32>
    %cst_158 = arith.constant dense<0.000000e+00> : vector<8x161xf32>
    %621 = tpu.matmul %610, %81, %cst_158 {dimension_numbers = #tpu.dot_dimension_numbers<[1], [0], [0], [1], [0, 0, 1, 1], [], []>} : vector<8x32xf32>, vector<32x161xf32>, vector<8x161xf32> -> vector<8x161xf32>
    %622 = vector.extract_strided_slice %620 {offsets = [0, 160], sizes = [8, 1], strides = [1, 1]} : vector<8x161xf32> to vector<8x1xf32>
    %623 = vector.extract_strided_slice %621 {offsets = [0, 160], sizes = [8, 1], strides = [1, 1]} : vector<8x161xf32> to vector<8x1xf32>
    %624 = arith.addf %622, %623 : vector<8x1xf32>
    %625 = vector.broadcast %31 : vector<1x1xf32> to vector<8x1xf32>
    %626 = arith.addf %624, %625 : vector<8x1xf32>
    %627 = arith.negf %626 : vector<8x1xf32>
    %628 = math.exp %627 : vector<8x1xf32>
    %cst_159 = arith.constant 1.000000e+00 : f32
    %629 = vector.broadcast %cst_159 : f32 to vector<8x1xf32>
    %630 = arith.addf %629, %628 : vector<8x1xf32>
    %631 = arith.divf %629, %630 : vector<8x1xf32>
    %632 = vector.extract_strided_slice %620 {offsets = [0, 0], sizes = [8, 128], strides = [1, 1]} : vector<8x161xf32> to vector<8x128xf32>
    %633 = vector.broadcast %631 : vector<8x1xf32> to vector<8x128xf32>
    %634 = arith.mulf %633, %632 : vector<8x128xf32>
    %635 = vector.extract_strided_slice %621 {offsets = [0, 0], sizes = [8, 128], strides = [1, 1]} : vector<8x161xf32> to vector<8x128xf32>
    %636 = arith.addf %634, %635 : vector<8x128xf32>
    %637 = vector.extract_strided_slice %47 {offsets = [32, 0], sizes = [8, 128], strides = [1, 1]} : vector<64x128xf32> to vector<8x128xf32>
    %638 = arith.addf %636, %637 : vector<8x128xf32>
    %639 = arith.negf %638 : vector<8x128xf32>
    %640 = math.exp %639 : vector<8x128xf32>
    %cst_160 = arith.constant 1.000000e+00 : f32
    %641 = vector.broadcast %cst_160 : f32 to vector<8x128xf32>
    %642 = arith.addf %641, %640 : vector<8x128xf32>
    %643 = arith.divf %641, %642 : vector<8x128xf32>
    %644 = math.tanh %638 : vector<8x128xf32>
    %645 = vector.extract_strided_slice %643 {offsets = [0, 0], sizes = [8, 32], strides = [1, 1]} : vector<8x128xf32> to vector<8x32xf32>
    %646 = vector.extract_strided_slice %643 {offsets = [0, 32], sizes = [8, 32], strides = [1, 1]} : vector<8x128xf32> to vector<8x32xf32>
    %647 = vector.extract_strided_slice %644 {offsets = [0, 64], sizes = [8, 32], strides = [1, 1]} : vector<8x128xf32> to vector<8x32xf32>
    %648 = vector.extract_strided_slice %643 {offsets = [0, 96], sizes = [8, 32], strides = [1, 1]} : vector<8x128xf32> to vector<8x32xf32>
    %649 = arith.mulf %646, %553 : vector<8x32xf32>
    %650 = arith.mulf %645, %647 : vector<8x32xf32>
    %651 = arith.addf %649, %650 : vector<8x32xf32>
    %652 = vector.extract_strided_slice %620 {offsets = [0, 128], sizes = [8, 32], strides = [1, 1]} : vector<8x161xf32> to vector<8x32xf32>
    %653 = vector.extract_strided_slice %621 {offsets = [0, 128], sizes = [8, 32], strides = [1, 1]} : vector<8x161xf32> to vector<8x32xf32>
    %654 = arith.addf %652, %653 : vector<8x32xf32>
    %655 = arith.addf %654, %6 : vector<8x32xf32>
    %656 = math.tanh %655 : vector<8x32xf32>
    %cst_161 = arith.constant dense<0.000000e+00> : vector<8x32xf32>
    %657 = tpu.matmul %651, %83, %cst_161 {dimension_numbers = #tpu.dot_dimension_numbers<[1], [0], [0], [1], [0, 0, 1, 1], [], []>} : vector<8x32xf32>, vector<32x32xf32>, vector<8x32xf32> -> vector<8x32xf32>
    %658 = arith.addf %657, %9 : vector<8x32xf32>
    %659 = arith.negf %658 : vector<8x32xf32>
    %660 = math.exp %659 : vector<8x32xf32>
    %cst_162 = arith.constant 1.000000e+00 : f32
    %661 = vector.broadcast %cst_162 : f32 to vector<8x32xf32>
    %662 = arith.addf %661, %660 : vector<8x32xf32>
    %663 = arith.divf %661, %662 : vector<8x32xf32>
    %664 = arith.mulf %663, %571 : vector<8x32xf32>
    %cst_163 = arith.constant 1.000000e+00 : f32
    %665 = vector.broadcast %cst_163 : f32 to vector<8x32xf32>
    %666 = arith.subf %665, %663 : vector<8x32xf32>
    %667 = arith.mulf %666, %656 : vector<8x32xf32>
    %668 = arith.addf %664, %667 : vector<8x32xf32>
    %cst_164 = arith.constant dense<0.000000e+00> : vector<8xf32>
    %669 = vector.multi_reduction <add>, %651, %cst_164 [1] : vector<8x32xf32> to vector<8xf32>
    %670 = vector.shape_cast %669 : vector<8xf32> to vector<8x1xf32>
    %cst_165 = arith.constant 3.200000e+01 : f32
    %671 = vector.broadcast %cst_165 : f32 to vector<8x1xf32>
    %672 = arith.divf %670, %671 : vector<8x1xf32>
    %673 = vector.broadcast %672 : vector<8x1xf32> to vector<8x32xf32>
    %674 = arith.subf %651, %673 : vector<8x32xf32>
    %675 = arith.mulf %674, %674 : vector<8x32xf32>
    %cst_166 = arith.constant dense<0.000000e+00> : vector<8xf32>
    %676 = vector.multi_reduction <add>, %675, %cst_166 [1] : vector<8x32xf32> to vector<8xf32>
    %677 = vector.shape_cast %676 : vector<8xf32> to vector<8x1xf32>
    %cst_167 = arith.constant 3.200000e+01 : f32
    %678 = vector.broadcast %cst_167 : f32 to vector<8x1xf32>
    %679 = arith.divf %677, %678 : vector<8x1xf32>
    %cst_168 = arith.constant 9.99999974E-6 : f32
    %680 = vector.broadcast %cst_168 : f32 to vector<8x1xf32>
    %681 = arith.addf %679, %680 : vector<8x1xf32>
    %682 = math.rsqrt %681 : vector<8x1xf32>
    %683 = vector.broadcast %682 : vector<8x1xf32> to vector<8x32xf32>
    %684 = arith.mulf %674, %683 : vector<8x32xf32>
    %685 = arith.mulf %684, %15 : vector<8x32xf32>
    %686 = arith.addf %685, %18 : vector<8x32xf32>
    %cst_169 = arith.constant dense<0.000000e+00> : vector<8xf32>
    %687 = vector.multi_reduction <add>, %668, %cst_169 [1] : vector<8x32xf32> to vector<8xf32>
    %688 = vector.shape_cast %687 : vector<8xf32> to vector<8x1xf32>
    %cst_170 = arith.constant 3.200000e+01 : f32
    %689 = vector.broadcast %cst_170 : f32 to vector<8x1xf32>
    %690 = arith.divf %688, %689 : vector<8x1xf32>
    %691 = vector.broadcast %690 : vector<8x1xf32> to vector<8x32xf32>
    %692 = arith.subf %668, %691 : vector<8x32xf32>
    %693 = arith.mulf %692, %692 : vector<8x32xf32>
    %cst_171 = arith.constant dense<0.000000e+00> : vector<8xf32>
    %694 = vector.multi_reduction <add>, %693, %cst_171 [1] : vector<8x32xf32> to vector<8xf32>
    %695 = vector.shape_cast %694 : vector<8xf32> to vector<8x1xf32>
    %cst_172 = arith.constant 3.200000e+01 : f32
    %696 = vector.broadcast %cst_172 : f32 to vector<8x1xf32>
    %697 = arith.divf %695, %696 : vector<8x1xf32>
    %cst_173 = arith.constant 9.99999974E-6 : f32
    %698 = vector.broadcast %cst_173 : f32 to vector<8x1xf32>
    %699 = arith.addf %697, %698 : vector<8x1xf32>
    %700 = math.rsqrt %699 : vector<8x1xf32>
    %701 = vector.broadcast %700 : vector<8x1xf32> to vector<8x32xf32>
    %702 = arith.mulf %692, %701 : vector<8x32xf32>
    %703 = arith.mulf %702, %21 : vector<8x32xf32>
    %704 = arith.addf %703, %24 : vector<8x32xf32>
    %705 = vector.extract_strided_slice %80 {offsets = [32, 0], sizes = [8, 32], strides = [1, 1]} : vector<64x32xf32> to vector<8x32xf32>
    %cst_174 = arith.constant dense<0.000000e+00> : vector<8x32xf32>
    %706 = tpu.matmul %704, %84, %cst_174 {dimension_numbers = #tpu.dot_dimension_numbers<[1], [0], [0], [1], [0, 0, 1, 1], [], []>} : vector<8x32xf32>, vector<32x32xf32>, vector<8x32xf32> -> vector<8x32xf32>
    %707 = arith.addf %706, %12 : vector<8x32xf32>
    %708 = arith.negf %707 : vector<8x32xf32>
    %709 = math.exp %708 : vector<8x32xf32>
    %cst_175 = arith.constant 1.000000e+00 : f32
    %710 = vector.broadcast %cst_175 : f32 to vector<8x32xf32>
    %711 = arith.addf %710, %709 : vector<8x32xf32>
    %712 = arith.divf %710, %711 : vector<8x32xf32>
    %713 = math.tanh %686 : vector<8x32xf32>
    %714 = arith.mulf %648, %713 : vector<8x32xf32>
    %715 = arith.mulf %705, %714 : vector<8x32xf32>
    %cst_176 = arith.constant 1.000000e+00 : f32
    %716 = vector.broadcast %cst_176 : f32 to vector<8x32xf32>
    %717 = arith.subf %716, %705 : vector<8x32xf32>
    %718 = arith.mulf %717, %610 : vector<8x32xf32>
    %719 = arith.addf %715, %718 : vector<8x32xf32>
    %720 = arith.mulf %712, %719 : vector<8x32xf32>
    %cst_177 = arith.constant 1.000000e+00 : f32
    %721 = vector.broadcast %cst_177 : f32 to vector<8x32xf32>
    %722 = arith.subf %721, %712 : vector<8x32xf32>
    %723 = math.tanh %704 : vector<8x32xf32>
    %724 = arith.mulf %722, %723 : vector<8x32xf32>
    %725 = arith.addf %720, %724 : vector<8x32xf32>
    %cst_178 = arith.constant dense<0.000000e+00> : vector<8xf32>
    %726 = vector.multi_reduction <add>, %725, %cst_178 [1] : vector<8x32xf32> to vector<8xf32>
    %727 = vector.shape_cast %726 : vector<8xf32> to vector<8x1xf32>
    %cst_179 = arith.constant 3.200000e+01 : f32
    %728 = vector.broadcast %cst_179 : f32 to vector<8x1xf32>
    %729 = arith.divf %727, %728 : vector<8x1xf32>
    %730 = vector.broadcast %729 : vector<8x1xf32> to vector<8x32xf32>
    %731 = arith.subf %725, %730 : vector<8x32xf32>
    %732 = arith.mulf %731, %731 : vector<8x32xf32>
    %cst_180 = arith.constant dense<0.000000e+00> : vector<8xf32>
    %733 = vector.multi_reduction <add>, %732, %cst_180 [1] : vector<8x32xf32> to vector<8xf32>
    %734 = vector.shape_cast %733 : vector<8xf32> to vector<8x1xf32>
    %cst_181 = arith.constant 3.200000e+01 : f32
    %735 = vector.broadcast %cst_181 : f32 to vector<8x1xf32>
    %736 = arith.divf %734, %735 : vector<8x1xf32>
    %cst_182 = arith.constant 9.99999974E-6 : f32
    %737 = vector.broadcast %cst_182 : f32 to vector<8x1xf32>
    %738 = arith.addf %736, %737 : vector<8x1xf32>
    %739 = math.rsqrt %738 : vector<8x1xf32>
    %740 = vector.broadcast %739 : vector<8x1xf32> to vector<8x32xf32>
    %741 = arith.mulf %731, %740 : vector<8x32xf32>
    %742 = arith.mulf %741, %27 : vector<8x32xf32>
    %743 = arith.addf %742, %30 : vector<8x32xf32>
    %c4 = arith.constant 4 : index
    %c0_183 = arith.constant 0 : index
    %c0_184 = arith.constant 0 : index
    %744 = vector.load %arg9[%c4, %c0_183, %c0_184] : memref<8x8x128xf32, #tpu.memory_space<vmem>>, vector<1x8x32xf32>
    %745 = vector.shape_cast %744 : vector<1x8x32xf32> to vector<8x32xf32>
    %746 = vector.shape_cast %743 : vector<8x32xf32> to vector<1x8x32xf32>
    tpu.vector_store %arg9[%c4, %c0_183, %c0_184], %746 {strides = array<i32>} : memref<8x8x128xf32, #tpu.memory_space<vmem>>, vector<1x8x32xf32>,
    %c4_185 = arith.constant 4 : index
    %c0_186 = arith.constant 0 : index
    %c32_187 = arith.constant 32 : index
    %747 = vector.load %arg9[%c4_185, %c0_186, %c32_187] : memref<8x8x128xf32, #tpu.memory_space<vmem>>, vector<1x8x32xf32>
    %748 = vector.shape_cast %747 : vector<1x8x32xf32> to vector<8x32xf32>
    %749 = vector.shape_cast %686 : vector<8x32xf32> to vector<1x8x32xf32>
    tpu.vector_store %arg9[%c4_185, %c0_186, %c32_187], %749 {strides = array<i32>} : memref<8x8x128xf32, #tpu.memory_space<vmem>>, vector<1x8x32xf32>,
    %c4_188 = arith.constant 4 : index
    %c0_189 = arith.constant 0 : index
    %c64_190 = arith.constant 64 : index
    %750 = vector.load %arg9[%c4_188, %c0_189, %c64_190] : memref<8x8x128xf32, #tpu.memory_space<vmem>>, vector<1x8x32xf32>
    %751 = vector.shape_cast %750 : vector<1x8x32xf32> to vector<8x32xf32>
    %752 = vector.shape_cast %704 : vector<8x32xf32> to vector<1x8x32xf32>
    tpu.vector_store %arg9[%c4_188, %c0_189, %c64_190], %752 {strides = array<i32>} : memref<8x8x128xf32, #tpu.memory_space<vmem>>, vector<1x8x32xf32>,
    %753 = vector.extract_strided_slice %41 {offsets = [40, 0], sizes = [8, 161], strides = [1, 1]} : vector<64x161xf32> to vector<8x161xf32>
    %cst_191 = arith.constant dense<0.000000e+00> : vector<8x161xf32>
    %754 = tpu.matmul %743, %81, %cst_191 {dimension_numbers = #tpu.dot_dimension_numbers<[1], [0], [0], [1], [0, 0, 1, 1], [], []>} : vector<8x32xf32>, vector<32x161xf32>, vector<8x161xf32> -> vector<8x161xf32>
    %755 = vector.extract_strided_slice %753 {offsets = [0, 160], sizes = [8, 1], strides = [1, 1]} : vector<8x161xf32> to vector<8x1xf32>
    %756 = vector.extract_strided_slice %754 {offsets = [0, 160], sizes = [8, 1], strides = [1, 1]} : vector<8x161xf32> to vector<8x1xf32>
    %757 = arith.addf %755, %756 : vector<8x1xf32>
    %758 = vector.broadcast %31 : vector<1x1xf32> to vector<8x1xf32>
    %759 = arith.addf %757, %758 : vector<8x1xf32>
    %760 = arith.negf %759 : vector<8x1xf32>
    %761 = math.exp %760 : vector<8x1xf32>
    %cst_192 = arith.constant 1.000000e+00 : f32
    %762 = vector.broadcast %cst_192 : f32 to vector<8x1xf32>
    %763 = arith.addf %762, %761 : vector<8x1xf32>
    %764 = arith.divf %762, %763 : vector<8x1xf32>
    %765 = vector.extract_strided_slice %753 {offsets = [0, 0], sizes = [8, 128], strides = [1, 1]} : vector<8x161xf32> to vector<8x128xf32>
    %766 = vector.broadcast %764 : vector<8x1xf32> to vector<8x128xf32>
    %767 = arith.mulf %766, %765 : vector<8x128xf32>
    %768 = vector.extract_strided_slice %754 {offsets = [0, 0], sizes = [8, 128], strides = [1, 1]} : vector<8x161xf32> to vector<8x128xf32>
    %769 = arith.addf %767, %768 : vector<8x128xf32>
    %770 = vector.extract_strided_slice %47 {offsets = [40, 0], sizes = [8, 128], strides = [1, 1]} : vector<64x128xf32> to vector<8x128xf32>
    %771 = arith.addf %769, %770 : vector<8x128xf32>
    %772 = arith.negf %771 : vector<8x128xf32>
    %773 = math.exp %772 : vector<8x128xf32>
    %cst_193 = arith.constant 1.000000e+00 : f32
    %774 = vector.broadcast %cst_193 : f32 to vector<8x128xf32>
    %775 = arith.addf %774, %773 : vector<8x128xf32>
    %776 = arith.divf %774, %775 : vector<8x128xf32>
    %777 = math.tanh %771 : vector<8x128xf32>
    %778 = vector.extract_strided_slice %776 {offsets = [0, 0], sizes = [8, 32], strides = [1, 1]} : vector<8x128xf32> to vector<8x32xf32>
    %779 = vector.extract_strided_slice %776 {offsets = [0, 32], sizes = [8, 32], strides = [1, 1]} : vector<8x128xf32> to vector<8x32xf32>
    %780 = vector.extract_strided_slice %777 {offsets = [0, 64], sizes = [8, 32], strides = [1, 1]} : vector<8x128xf32> to vector<8x32xf32>
    %781 = vector.extract_strided_slice %776 {offsets = [0, 96], sizes = [8, 32], strides = [1, 1]} : vector<8x128xf32> to vector<8x32xf32>
    %782 = arith.mulf %779, %686 : vector<8x32xf32>
    %783 = arith.mulf %778, %780 : vector<8x32xf32>
    %784 = arith.addf %782, %783 : vector<8x32xf32>
    %785 = vector.extract_strided_slice %753 {offsets = [0, 128], sizes = [8, 32], strides = [1, 1]} : vector<8x161xf32> to vector<8x32xf32>
    %786 = vector.extract_strided_slice %754 {offsets = [0, 128], sizes = [8, 32], strides = [1, 1]} : vector<8x161xf32> to vector<8x32xf32>
    %787 = arith.addf %785, %786 : vector<8x32xf32>
    %788 = arith.addf %787, %6 : vector<8x32xf32>
    %789 = math.tanh %788 : vector<8x32xf32>
    %cst_194 = arith.constant dense<0.000000e+00> : vector<8x32xf32>
    %790 = tpu.matmul %784, %83, %cst_194 {dimension_numbers = #tpu.dot_dimension_numbers<[1], [0], [0], [1], [0, 0, 1, 1], [], []>} : vector<8x32xf32>, vector<32x32xf32>, vector<8x32xf32> -> vector<8x32xf32>
    %791 = arith.addf %790, %9 : vector<8x32xf32>
    %792 = arith.negf %791 : vector<8x32xf32>
    %793 = math.exp %792 : vector<8x32xf32>
    %cst_195 = arith.constant 1.000000e+00 : f32
    %794 = vector.broadcast %cst_195 : f32 to vector<8x32xf32>
    %795 = arith.addf %794, %793 : vector<8x32xf32>
    %796 = arith.divf %794, %795 : vector<8x32xf32>
    %797 = arith.mulf %796, %704 : vector<8x32xf32>
    %cst_196 = arith.constant 1.000000e+00 : f32
    %798 = vector.broadcast %cst_196 : f32 to vector<8x32xf32>
    %799 = arith.subf %798, %796 : vector<8x32xf32>
    %800 = arith.mulf %799, %789 : vector<8x32xf32>
    %801 = arith.addf %797, %800 : vector<8x32xf32>
    %cst_197 = arith.constant dense<0.000000e+00> : vector<8xf32>
    %802 = vector.multi_reduction <add>, %784, %cst_197 [1] : vector<8x32xf32> to vector<8xf32>
    %803 = vector.shape_cast %802 : vector<8xf32> to vector<8x1xf32>
    %cst_198 = arith.constant 3.200000e+01 : f32
    %804 = vector.broadcast %cst_198 : f32 to vector<8x1xf32>
    %805 = arith.divf %803, %804 : vector<8x1xf32>
    %806 = vector.broadcast %805 : vector<8x1xf32> to vector<8x32xf32>
    %807 = arith.subf %784, %806 : vector<8x32xf32>
    %808 = arith.mulf %807, %807 : vector<8x32xf32>
    %cst_199 = arith.constant dense<0.000000e+00> : vector<8xf32>
    %809 = vector.multi_reduction <add>, %808, %cst_199 [1] : vector<8x32xf32> to vector<8xf32>
    %810 = vector.shape_cast %809 : vector<8xf32> to vector<8x1xf32>
    %cst_200 = arith.constant 3.200000e+01 : f32
    %811 = vector.broadcast %cst_200 : f32 to vector<8x1xf32>
    %812 = arith.divf %810, %811 : vector<8x1xf32>
    %cst_201 = arith.constant 9.99999974E-6 : f32
    %813 = vector.broadcast %cst_201 : f32 to vector<8x1xf32>
    %814 = arith.addf %812, %813 : vector<8x1xf32>
    %815 = math.rsqrt %814 : vector<8x1xf32>
    %816 = vector.broadcast %815 : vector<8x1xf32> to vector<8x32xf32>
    %817 = arith.mulf %807, %816 : vector<8x32xf32>
    %818 = arith.mulf %817, %15 : vector<8x32xf32>
    %819 = arith.addf %818, %18 : vector<8x32xf32>
    %cst_202 = arith.constant dense<0.000000e+00> : vector<8xf32>
    %820 = vector.multi_reduction <add>, %801, %cst_202 [1] : vector<8x32xf32> to vector<8xf32>
    %821 = vector.shape_cast %820 : vector<8xf32> to vector<8x1xf32>
    %cst_203 = arith.constant 3.200000e+01 : f32
    %822 = vector.broadcast %cst_203 : f32 to vector<8x1xf32>
    %823 = arith.divf %821, %822 : vector<8x1xf32>
    %824 = vector.broadcast %823 : vector<8x1xf32> to vector<8x32xf32>
    %825 = arith.subf %801, %824 : vector<8x32xf32>
    %826 = arith.mulf %825, %825 : vector<8x32xf32>
    %cst_204 = arith.constant dense<0.000000e+00> : vector<8xf32>
    %827 = vector.multi_reduction <add>, %826, %cst_204 [1] : vector<8x32xf32> to vector<8xf32>
    %828 = vector.shape_cast %827 : vector<8xf32> to vector<8x1xf32>
    %cst_205 = arith.constant 3.200000e+01 : f32
    %829 = vector.broadcast %cst_205 : f32 to vector<8x1xf32>
    %830 = arith.divf %828, %829 : vector<8x1xf32>
    %cst_206 = arith.constant 9.99999974E-6 : f32
    %831 = vector.broadcast %cst_206 : f32 to vector<8x1xf32>
    %832 = arith.addf %830, %831 : vector<8x1xf32>
    %833 = math.rsqrt %832 : vector<8x1xf32>
    %834 = vector.broadcast %833 : vector<8x1xf32> to vector<8x32xf32>
    %835 = arith.mulf %825, %834 : vector<8x32xf32>
    %836 = arith.mulf %835, %21 : vector<8x32xf32>
    %837 = arith.addf %836, %24 : vector<8x32xf32>
    %838 = vector.extract_strided_slice %80 {offsets = [40, 0], sizes = [8, 32], strides = [1, 1]} : vector<64x32xf32> to vector<8x32xf32>
    %cst_207 = arith.constant dense<0.000000e+00> : vector<8x32xf32>
    %839 = tpu.matmul %837, %84, %cst_207 {dimension_numbers = #tpu.dot_dimension_numbers<[1], [0], [0], [1], [0, 0, 1, 1], [], []>} : vector<8x32xf32>, vector<32x32xf32>, vector<8x32xf32> -> vector<8x32xf32>
    %840 = arith.addf %839, %12 : vector<8x32xf32>
    %841 = arith.negf %840 : vector<8x32xf32>
    %842 = math.exp %841 : vector<8x32xf32>
    %cst_208 = arith.constant 1.000000e+00 : f32
    %843 = vector.broadcast %cst_208 : f32 to vector<8x32xf32>
    %844 = arith.addf %843, %842 : vector<8x32xf32>
    %845 = arith.divf %843, %844 : vector<8x32xf32>
    %846 = math.tanh %819 : vector<8x32xf32>
    %847 = arith.mulf %781, %846 : vector<8x32xf32>
    %848 = arith.mulf %838, %847 : vector<8x32xf32>
    %cst_209 = arith.constant 1.000000e+00 : f32
    %849 = vector.broadcast %cst_209 : f32 to vector<8x32xf32>
    %850 = arith.subf %849, %838 : vector<8x32xf32>
    %851 = arith.mulf %850, %743 : vector<8x32xf32>
    %852 = arith.addf %848, %851 : vector<8x32xf32>
    %853 = arith.mulf %845, %852 : vector<8x32xf32>
    %cst_210 = arith.constant 1.000000e+00 : f32
    %854 = vector.broadcast %cst_210 : f32 to vector<8x32xf32>
    %855 = arith.subf %854, %845 : vector<8x32xf32>
    %856 = math.tanh %837 : vector<8x32xf32>
    %857 = arith.mulf %855, %856 : vector<8x32xf32>
    %858 = arith.addf %853, %857 : vector<8x32xf32>
    %cst_211 = arith.constant dense<0.000000e+00> : vector<8xf32>
    %859 = vector.multi_reduction <add>, %858, %cst_211 [1] : vector<8x32xf32> to vector<8xf32>
    %860 = vector.shape_cast %859 : vector<8xf32> to vector<8x1xf32>
    %cst_212 = arith.constant 3.200000e+01 : f32
    %861 = vector.broadcast %cst_212 : f32 to vector<8x1xf32>
    %862 = arith.divf %860, %861 : vector<8x1xf32>
    %863 = vector.broadcast %862 : vector<8x1xf32> to vector<8x32xf32>
    %864 = arith.subf %858, %863 : vector<8x32xf32>
    %865 = arith.mulf %864, %864 : vector<8x32xf32>
    %cst_213 = arith.constant dense<0.000000e+00> : vector<8xf32>
    %866 = vector.multi_reduction <add>, %865, %cst_213 [1] : vector<8x32xf32> to vector<8xf32>
    %867 = vector.shape_cast %866 : vector<8xf32> to vector<8x1xf32>
    %cst_214 = arith.constant 3.200000e+01 : f32
    %868 = vector.broadcast %cst_214 : f32 to vector<8x1xf32>
    %869 = arith.divf %867, %868 : vector<8x1xf32>
    %cst_215 = arith.constant 9.99999974E-6 : f32
    %870 = vector.broadcast %cst_215 : f32 to vector<8x1xf32>
    %871 = arith.addf %869, %870 : vector<8x1xf32>
    %872 = math.rsqrt %871 : vector<8x1xf32>
    %873 = vector.broadcast %872 : vector<8x1xf32> to vector<8x32xf32>
    %874 = arith.mulf %864, %873 : vector<8x32xf32>
    %875 = arith.mulf %874, %27 : vector<8x32xf32>
    %876 = arith.addf %875, %30 : vector<8x32xf32>
    %c5 = arith.constant 5 : index
    %c0_216 = arith.constant 0 : index
    %c0_217 = arith.constant 0 : index
    %877 = vector.load %arg9[%c5, %c0_216, %c0_217] : memref<8x8x128xf32, #tpu.memory_space<vmem>>, vector<1x8x32xf32>
    %878 = vector.shape_cast %877 : vector<1x8x32xf32> to vector<8x32xf32>
    %879 = vector.shape_cast %876 : vector<8x32xf32> to vector<1x8x32xf32>
    tpu.vector_store %arg9[%c5, %c0_216, %c0_217], %879 {strides = array<i32>} : memref<8x8x128xf32, #tpu.memory_space<vmem>>, vector<1x8x32xf32>,
    %c5_218 = arith.constant 5 : index
    %c0_219 = arith.constant 0 : index
    %c32_220 = arith.constant 32 : index
    %880 = vector.load %arg9[%c5_218, %c0_219, %c32_220] : memref<8x8x128xf32, #tpu.memory_space<vmem>>, vector<1x8x32xf32>
    %881 = vector.shape_cast %880 : vector<1x8x32xf32> to vector<8x32xf32>
    %882 = vector.shape_cast %819 : vector<8x32xf32> to vector<1x8x32xf32>
    tpu.vector_store %arg9[%c5_218, %c0_219, %c32_220], %882 {strides = array<i32>} : memref<8x8x128xf32, #tpu.memory_space<vmem>>, vector<1x8x32xf32>,
    %c5_221 = arith.constant 5 : index
    %c0_222 = arith.constant 0 : index
    %c64_223 = arith.constant 64 : index
    %883 = vector.load %arg9[%c5_221, %c0_222, %c64_223] : memref<8x8x128xf32, #tpu.memory_space<vmem>>, vector<1x8x32xf32>
    %884 = vector.shape_cast %883 : vector<1x8x32xf32> to vector<8x32xf32>
    %885 = vector.shape_cast %837 : vector<8x32xf32> to vector<1x8x32xf32>
    tpu.vector_store %arg9[%c5_221, %c0_222, %c64_223], %885 {strides = array<i32>} : memref<8x8x128xf32, #tpu.memory_space<vmem>>, vector<1x8x32xf32>,
    %886 = vector.extract_strided_slice %41 {offsets = [48, 0], sizes = [8, 161], strides = [1, 1]} : vector<64x161xf32> to vector<8x161xf32>
    %cst_224 = arith.constant dense<0.000000e+00> : vector<8x161xf32>
    %887 = tpu.matmul %876, %81, %cst_224 {dimension_numbers = #tpu.dot_dimension_numbers<[1], [0], [0], [1], [0, 0, 1, 1], [], []>} : vector<8x32xf32>, vector<32x161xf32>, vector<8x161xf32> -> vector<8x161xf32>
    %888 = vector.extract_strided_slice %886 {offsets = [0, 160], sizes = [8, 1], strides = [1, 1]} : vector<8x161xf32> to vector<8x1xf32>
    %889 = vector.extract_strided_slice %887 {offsets = [0, 160], sizes = [8, 1], strides = [1, 1]} : vector<8x161xf32> to vector<8x1xf32>
    %890 = arith.addf %888, %889 : vector<8x1xf32>
    %891 = vector.broadcast %31 : vector<1x1xf32> to vector<8x1xf32>
    %892 = arith.addf %890, %891 : vector<8x1xf32>
    %893 = arith.negf %892 : vector<8x1xf32>
    %894 = math.exp %893 : vector<8x1xf32>
    %cst_225 = arith.constant 1.000000e+00 : f32
    %895 = vector.broadcast %cst_225 : f32 to vector<8x1xf32>
    %896 = arith.addf %895, %894 : vector<8x1xf32>
    %897 = arith.divf %895, %896 : vector<8x1xf32>
    %898 = vector.extract_strided_slice %886 {offsets = [0, 0], sizes = [8, 128], strides = [1, 1]} : vector<8x161xf32> to vector<8x128xf32>
    %899 = vector.broadcast %897 : vector<8x1xf32> to vector<8x128xf32>
    %900 = arith.mulf %899, %898 : vector<8x128xf32>
    %901 = vector.extract_strided_slice %887 {offsets = [0, 0], sizes = [8, 128], strides = [1, 1]} : vector<8x161xf32> to vector<8x128xf32>
    %902 = arith.addf %900, %901 : vector<8x128xf32>
    %903 = vector.extract_strided_slice %47 {offsets = [48, 0], sizes = [8, 128], strides = [1, 1]} : vector<64x128xf32> to vector<8x128xf32>
    %904 = arith.addf %902, %903 : vector<8x128xf32>
    %905 = arith.negf %904 : vector<8x128xf32>
    %906 = math.exp %905 : vector<8x128xf32>
    %cst_226 = arith.constant 1.000000e+00 : f32
    %907 = vector.broadcast %cst_226 : f32 to vector<8x128xf32>
    %908 = arith.addf %907, %906 : vector<8x128xf32>
    %909 = arith.divf %907, %908 : vector<8x128xf32>
    %910 = math.tanh %904 : vector<8x128xf32>
    %911 = vector.extract_strided_slice %909 {offsets = [0, 0], sizes = [8, 32], strides = [1, 1]} : vector<8x128xf32> to vector<8x32xf32>
    %912 = vector.extract_strided_slice %909 {offsets = [0, 32], sizes = [8, 32], strides = [1, 1]} : vector<8x128xf32> to vector<8x32xf32>
    %913 = vector.extract_strided_slice %910 {offsets = [0, 64], sizes = [8, 32], strides = [1, 1]} : vector<8x128xf32> to vector<8x32xf32>
    %914 = vector.extract_strided_slice %909 {offsets = [0, 96], sizes = [8, 32], strides = [1, 1]} : vector<8x128xf32> to vector<8x32xf32>
    %915 = arith.mulf %912, %819 : vector<8x32xf32>
    %916 = arith.mulf %911, %913 : vector<8x32xf32>
    %917 = arith.addf %915, %916 : vector<8x32xf32>
    %918 = vector.extract_strided_slice %886 {offsets = [0, 128], sizes = [8, 32], strides = [1, 1]} : vector<8x161xf32> to vector<8x32xf32>
    %919 = vector.extract_strided_slice %887 {offsets = [0, 128], sizes = [8, 32], strides = [1, 1]} : vector<8x161xf32> to vector<8x32xf32>
    %920 = arith.addf %918, %919 : vector<8x32xf32>
    %921 = arith.addf %920, %6 : vector<8x32xf32>
    %922 = math.tanh %921 : vector<8x32xf32>
    %cst_227 = arith.constant dense<0.000000e+00> : vector<8x32xf32>
    %923 = tpu.matmul %917, %83, %cst_227 {dimension_numbers = #tpu.dot_dimension_numbers<[1], [0], [0], [1], [0, 0, 1, 1], [], []>} : vector<8x32xf32>, vector<32x32xf32>, vector<8x32xf32> -> vector<8x32xf32>
    %924 = arith.addf %923, %9 : vector<8x32xf32>
    %925 = arith.negf %924 : vector<8x32xf32>
    %926 = math.exp %925 : vector<8x32xf32>
    %cst_228 = arith.constant 1.000000e+00 : f32
    %927 = vector.broadcast %cst_228 : f32 to vector<8x32xf32>
    %928 = arith.addf %927, %926 : vector<8x32xf32>
    %929 = arith.divf %927, %928 : vector<8x32xf32>
    %930 = arith.mulf %929, %837 : vector<8x32xf32>
    %cst_229 = arith.constant 1.000000e+00 : f32
    %931 = vector.broadcast %cst_229 : f32 to vector<8x32xf32>
    %932 = arith.subf %931, %929 : vector<8x32xf32>
    %933 = arith.mulf %932, %922 : vector<8x32xf32>
    %934 = arith.addf %930, %933 : vector<8x32xf32>
    %cst_230 = arith.constant dense<0.000000e+00> : vector<8xf32>
    %935 = vector.multi_reduction <add>, %917, %cst_230 [1] : vector<8x32xf32> to vector<8xf32>
    %936 = vector.shape_cast %935 : vector<8xf32> to vector<8x1xf32>
    %cst_231 = arith.constant 3.200000e+01 : f32
    %937 = vector.broadcast %cst_231 : f32 to vector<8x1xf32>
    %938 = arith.divf %936, %937 : vector<8x1xf32>
    %939 = vector.broadcast %938 : vector<8x1xf32> to vector<8x32xf32>
    %940 = arith.subf %917, %939 : vector<8x32xf32>
    %941 = arith.mulf %940, %940 : vector<8x32xf32>
    %cst_232 = arith.constant dense<0.000000e+00> : vector<8xf32>
    %942 = vector.multi_reduction <add>, %941, %cst_232 [1] : vector<8x32xf32> to vector<8xf32>
    %943 = vector.shape_cast %942 : vector<8xf32> to vector<8x1xf32>
    %cst_233 = arith.constant 3.200000e+01 : f32
    %944 = vector.broadcast %cst_233 : f32 to vector<8x1xf32>
    %945 = arith.divf %943, %944 : vector<8x1xf32>
    %cst_234 = arith.constant 9.99999974E-6 : f32
    %946 = vector.broadcast %cst_234 : f32 to vector<8x1xf32>
    %947 = arith.addf %945, %946 : vector<8x1xf32>
    %948 = math.rsqrt %947 : vector<8x1xf32>
    %949 = vector.broadcast %948 : vector<8x1xf32> to vector<8x32xf32>
    %950 = arith.mulf %940, %949 : vector<8x32xf32>
    %951 = arith.mulf %950, %15 : vector<8x32xf32>
    %952 = arith.addf %951, %18 : vector<8x32xf32>
    %cst_235 = arith.constant dense<0.000000e+00> : vector<8xf32>
    %953 = vector.multi_reduction <add>, %934, %cst_235 [1] : vector<8x32xf32> to vector<8xf32>
    %954 = vector.shape_cast %953 : vector<8xf32> to vector<8x1xf32>
    %cst_236 = arith.constant 3.200000e+01 : f32
    %955 = vector.broadcast %cst_236 : f32 to vector<8x1xf32>
    %956 = arith.divf %954, %955 : vector<8x1xf32>
    %957 = vector.broadcast %956 : vector<8x1xf32> to vector<8x32xf32>
    %958 = arith.subf %934, %957 : vector<8x32xf32>
    %959 = arith.mulf %958, %958 : vector<8x32xf32>
    %cst_237 = arith.constant dense<0.000000e+00> : vector<8xf32>
    %960 = vector.multi_reduction <add>, %959, %cst_237 [1] : vector<8x32xf32> to vector<8xf32>
    %961 = vector.shape_cast %960 : vector<8xf32> to vector<8x1xf32>
    %cst_238 = arith.constant 3.200000e+01 : f32
    %962 = vector.broadcast %cst_238 : f32 to vector<8x1xf32>
    %963 = arith.divf %961, %962 : vector<8x1xf32>
    %cst_239 = arith.constant 9.99999974E-6 : f32
    %964 = vector.broadcast %cst_239 : f32 to vector<8x1xf32>
    %965 = arith.addf %963, %964 : vector<8x1xf32>
    %966 = math.rsqrt %965 : vector<8x1xf32>
    %967 = vector.broadcast %966 : vector<8x1xf32> to vector<8x32xf32>
    %968 = arith.mulf %958, %967 : vector<8x32xf32>
    %969 = arith.mulf %968, %21 : vector<8x32xf32>
    %970 = arith.addf %969, %24 : vector<8x32xf32>
    %971 = vector.extract_strided_slice %80 {offsets = [48, 0], sizes = [8, 32], strides = [1, 1]} : vector<64x32xf32> to vector<8x32xf32>
    %cst_240 = arith.constant dense<0.000000e+00> : vector<8x32xf32>
    %972 = tpu.matmul %970, %84, %cst_240 {dimension_numbers = #tpu.dot_dimension_numbers<[1], [0], [0], [1], [0, 0, 1, 1], [], []>} : vector<8x32xf32>, vector<32x32xf32>, vector<8x32xf32> -> vector<8x32xf32>
    %973 = arith.addf %972, %12 : vector<8x32xf32>
    %974 = arith.negf %973 : vector<8x32xf32>
    %975 = math.exp %974 : vector<8x32xf32>
    %cst_241 = arith.constant 1.000000e+00 : f32
    %976 = vector.broadcast %cst_241 : f32 to vector<8x32xf32>
    %977 = arith.addf %976, %975 : vector<8x32xf32>
    %978 = arith.divf %976, %977 : vector<8x32xf32>
    %979 = math.tanh %952 : vector<8x32xf32>
    %980 = arith.mulf %914, %979 : vector<8x32xf32>
    %981 = arith.mulf %971, %980 : vector<8x32xf32>
    %cst_242 = arith.constant 1.000000e+00 : f32
    %982 = vector.broadcast %cst_242 : f32 to vector<8x32xf32>
    %983 = arith.subf %982, %971 : vector<8x32xf32>
    %984 = arith.mulf %983, %876 : vector<8x32xf32>
    %985 = arith.addf %981, %984 : vector<8x32xf32>
    %986 = arith.mulf %978, %985 : vector<8x32xf32>
    %cst_243 = arith.constant 1.000000e+00 : f32
    %987 = vector.broadcast %cst_243 : f32 to vector<8x32xf32>
    %988 = arith.subf %987, %978 : vector<8x32xf32>
    %989 = math.tanh %970 : vector<8x32xf32>
    %990 = arith.mulf %988, %989 : vector<8x32xf32>
    %991 = arith.addf %986, %990 : vector<8x32xf32>
    %cst_244 = arith.constant dense<0.000000e+00> : vector<8xf32>
    %992 = vector.multi_reduction <add>, %991, %cst_244 [1] : vector<8x32xf32> to vector<8xf32>
    %993 = vector.shape_cast %992 : vector<8xf32> to vector<8x1xf32>
    %cst_245 = arith.constant 3.200000e+01 : f32
    %994 = vector.broadcast %cst_245 : f32 to vector<8x1xf32>
    %995 = arith.divf %993, %994 : vector<8x1xf32>
    %996 = vector.broadcast %995 : vector<8x1xf32> to vector<8x32xf32>
    %997 = arith.subf %991, %996 : vector<8x32xf32>
    %998 = arith.mulf %997, %997 : vector<8x32xf32>
    %cst_246 = arith.constant dense<0.000000e+00> : vector<8xf32>
    %999 = vector.multi_reduction <add>, %998, %cst_246 [1] : vector<8x32xf32> to vector<8xf32>
    %1000 = vector.shape_cast %999 : vector<8xf32> to vector<8x1xf32>
    %cst_247 = arith.constant 3.200000e+01 : f32
    %1001 = vector.broadcast %cst_247 : f32 to vector<8x1xf32>
    %1002 = arith.divf %1000, %1001 : vector<8x1xf32>
    %cst_248 = arith.constant 9.99999974E-6 : f32
    %1003 = vector.broadcast %cst_248 : f32 to vector<8x1xf32>
    %1004 = arith.addf %1002, %1003 : vector<8x1xf32>
    %1005 = math.rsqrt %1004 : vector<8x1xf32>
    %1006 = vector.broadcast %1005 : vector<8x1xf32> to vector<8x32xf32>
    %1007 = arith.mulf %997, %1006 : vector<8x32xf32>
    %1008 = arith.mulf %1007, %27 : vector<8x32xf32>
    %1009 = arith.addf %1008, %30 : vector<8x32xf32>
    %c6 = arith.constant 6 : index
    %c0_249 = arith.constant 0 : index
    %c0_250 = arith.constant 0 : index
    %1010 = vector.load %arg9[%c6, %c0_249, %c0_250] : memref<8x8x128xf32, #tpu.memory_space<vmem>>, vector<1x8x32xf32>
    %1011 = vector.shape_cast %1010 : vector<1x8x32xf32> to vector<8x32xf32>
    %1012 = vector.shape_cast %1009 : vector<8x32xf32> to vector<1x8x32xf32>
    tpu.vector_store %arg9[%c6, %c0_249, %c0_250], %1012 {strides = array<i32>} : memref<8x8x128xf32, #tpu.memory_space<vmem>>, vector<1x8x32xf32>,
    %c6_251 = arith.constant 6 : index
    %c0_252 = arith.constant 0 : index
    %c32_253 = arith.constant 32 : index
    %1013 = vector.load %arg9[%c6_251, %c0_252, %c32_253] : memref<8x8x128xf32, #tpu.memory_space<vmem>>, vector<1x8x32xf32>
    %1014 = vector.shape_cast %1013 : vector<1x8x32xf32> to vector<8x32xf32>
    %1015 = vector.shape_cast %952 : vector<8x32xf32> to vector<1x8x32xf32>
    tpu.vector_store %arg9[%c6_251, %c0_252, %c32_253], %1015 {strides = array<i32>} : memref<8x8x128xf32, #tpu.memory_space<vmem>>, vector<1x8x32xf32>,
    %c6_254 = arith.constant 6 : index
    %c0_255 = arith.constant 0 : index
    %c64_256 = arith.constant 64 : index
    %1016 = vector.load %arg9[%c6_254, %c0_255, %c64_256] : memref<8x8x128xf32, #tpu.memory_space<vmem>>, vector<1x8x32xf32>
    %1017 = vector.shape_cast %1016 : vector<1x8x32xf32> to vector<8x32xf32>
    %1018 = vector.shape_cast %970 : vector<8x32xf32> to vector<1x8x32xf32>
    tpu.vector_store %arg9[%c6_254, %c0_255, %c64_256], %1018 {strides = array<i32>} : memref<8x8x128xf32, #tpu.memory_space<vmem>>, vector<1x8x32xf32>,
    %1019 = vector.extract_strided_slice %41 {offsets = [56, 0], sizes = [8, 161], strides = [1, 1]} : vector<64x161xf32> to vector<8x161xf32>
    %cst_257 = arith.constant dense<0.000000e+00> : vector<8x161xf32>
    %1020 = tpu.matmul %1009, %81, %cst_257 {dimension_numbers = #tpu.dot_dimension_numbers<[1], [0], [0], [1], [0, 0, 1, 1], [], []>} : vector<8x32xf32>, vector<32x161xf32>, vector<8x161xf32> -> vector<8x161xf32>
    %1021 = vector.extract_strided_slice %1019 {offsets = [0, 160], sizes = [8, 1], strides = [1, 1]} : vector<8x161xf32> to vector<8x1xf32>
    %1022 = vector.extract_strided_slice %1020 {offsets = [0, 160], sizes = [8, 1], strides = [1, 1]} : vector<8x161xf32> to vector<8x1xf32>
    %1023 = arith.addf %1021, %1022 : vector<8x1xf32>
    %1024 = vector.broadcast %31 : vector<1x1xf32> to vector<8x1xf32>
    %1025 = arith.addf %1023, %1024 : vector<8x1xf32>
    %1026 = arith.negf %1025 : vector<8x1xf32>
    %1027 = math.exp %1026 : vector<8x1xf32>
    %cst_258 = arith.constant 1.000000e+00 : f32
    %1028 = vector.broadcast %cst_258 : f32 to vector<8x1xf32>
    %1029 = arith.addf %1028, %1027 : vector<8x1xf32>
    %1030 = arith.divf %1028, %1029 : vector<8x1xf32>
    %1031 = vector.extract_strided_slice %1019 {offsets = [0, 0], sizes = [8, 128], strides = [1, 1]} : vector<8x161xf32> to vector<8x128xf32>
    %1032 = vector.broadcast %1030 : vector<8x1xf32> to vector<8x128xf32>
    %1033 = arith.mulf %1032, %1031 : vector<8x128xf32>
    %1034 = vector.extract_strided_slice %1020 {offsets = [0, 0], sizes = [8, 128], strides = [1, 1]} : vector<8x161xf32> to vector<8x128xf32>
    %1035 = arith.addf %1033, %1034 : vector<8x128xf32>
    %1036 = vector.extract_strided_slice %47 {offsets = [56, 0], sizes = [8, 128], strides = [1, 1]} : vector<64x128xf32> to vector<8x128xf32>
    %1037 = arith.addf %1035, %1036 : vector<8x128xf32>
    %1038 = arith.negf %1037 : vector<8x128xf32>
    %1039 = math.exp %1038 : vector<8x128xf32>
    %cst_259 = arith.constant 1.000000e+00 : f32
    %1040 = vector.broadcast %cst_259 : f32 to vector<8x128xf32>
    %1041 = arith.addf %1040, %1039 : vector<8x128xf32>
    %1042 = arith.divf %1040, %1041 : vector<8x128xf32>
    %1043 = math.tanh %1037 : vector<8x128xf32>
    %1044 = vector.extract_strided_slice %1042 {offsets = [0, 0], sizes = [8, 32], strides = [1, 1]} : vector<8x128xf32> to vector<8x32xf32>
    %1045 = vector.extract_strided_slice %1042 {offsets = [0, 32], sizes = [8, 32], strides = [1, 1]} : vector<8x128xf32> to vector<8x32xf32>
    %1046 = vector.extract_strided_slice %1043 {offsets = [0, 64], sizes = [8, 32], strides = [1, 1]} : vector<8x128xf32> to vector<8x32xf32>
    %1047 = vector.extract_strided_slice %1042 {offsets = [0, 96], sizes = [8, 32], strides = [1, 1]} : vector<8x128xf32> to vector<8x32xf32>
    %1048 = arith.mulf %1045, %952 : vector<8x32xf32>
    %1049 = arith.mulf %1044, %1046 : vector<8x32xf32>
    %1050 = arith.addf %1048, %1049 : vector<8x32xf32>
    %1051 = vector.extract_strided_slice %1019 {offsets = [0, 128], sizes = [8, 32], strides = [1, 1]} : vector<8x161xf32> to vector<8x32xf32>
    %1052 = vector.extract_strided_slice %1020 {offsets = [0, 128], sizes = [8, 32], strides = [1, 1]} : vector<8x161xf32> to vector<8x32xf32>
    %1053 = arith.addf %1051, %1052 : vector<8x32xf32>
    %1054 = arith.addf %1053, %6 : vector<8x32xf32>
    %1055 = math.tanh %1054 : vector<8x32xf32>
    %cst_260 = arith.constant dense<0.000000e+00> : vector<8x32xf32>
    %1056 = tpu.matmul %1050, %83, %cst_260 {dimension_numbers = #tpu.dot_dimension_numbers<[1], [0], [0], [1], [0, 0, 1, 1], [], []>} : vector<8x32xf32>, vector<32x32xf32>, vector<8x32xf32> -> vector<8x32xf32>
    %1057 = arith.addf %1056, %9 : vector<8x32xf32>
    %1058 = arith.negf %1057 : vector<8x32xf32>
    %1059 = math.exp %1058 : vector<8x32xf32>
    %cst_261 = arith.constant 1.000000e+00 : f32
    %1060 = vector.broadcast %cst_261 : f32 to vector<8x32xf32>
    %1061 = arith.addf %1060, %1059 : vector<8x32xf32>
    %1062 = arith.divf %1060, %1061 : vector<8x32xf32>
    %1063 = arith.mulf %1062, %970 : vector<8x32xf32>
    %cst_262 = arith.constant 1.000000e+00 : f32
    %1064 = vector.broadcast %cst_262 : f32 to vector<8x32xf32>
    %1065 = arith.subf %1064, %1062 : vector<8x32xf32>
    %1066 = arith.mulf %1065, %1055 : vector<8x32xf32>
    %1067 = arith.addf %1063, %1066 : vector<8x32xf32>
    %cst_263 = arith.constant dense<0.000000e+00> : vector<8xf32>
    %1068 = vector.multi_reduction <add>, %1050, %cst_263 [1] : vector<8x32xf32> to vector<8xf32>
    %1069 = vector.shape_cast %1068 : vector<8xf32> to vector<8x1xf32>
    %cst_264 = arith.constant 3.200000e+01 : f32
    %1070 = vector.broadcast %cst_264 : f32 to vector<8x1xf32>
    %1071 = arith.divf %1069, %1070 : vector<8x1xf32>
    %1072 = vector.broadcast %1071 : vector<8x1xf32> to vector<8x32xf32>
    %1073 = arith.subf %1050, %1072 : vector<8x32xf32>
    %1074 = arith.mulf %1073, %1073 : vector<8x32xf32>
    %cst_265 = arith.constant dense<0.000000e+00> : vector<8xf32>
    %1075 = vector.multi_reduction <add>, %1074, %cst_265 [1] : vector<8x32xf32> to vector<8xf32>
    %1076 = vector.shape_cast %1075 : vector<8xf32> to vector<8x1xf32>
    %cst_266 = arith.constant 3.200000e+01 : f32
    %1077 = vector.broadcast %cst_266 : f32 to vector<8x1xf32>
    %1078 = arith.divf %1076, %1077 : vector<8x1xf32>
    %cst_267 = arith.constant 9.99999974E-6 : f32
    %1079 = vector.broadcast %cst_267 : f32 to vector<8x1xf32>
    %1080 = arith.addf %1078, %1079 : vector<8x1xf32>
    %1081 = math.rsqrt %1080 : vector<8x1xf32>
    %1082 = vector.broadcast %1081 : vector<8x1xf32> to vector<8x32xf32>
    %1083 = arith.mulf %1073, %1082 : vector<8x32xf32>
    %1084 = arith.mulf %1083, %15 : vector<8x32xf32>
    %1085 = arith.addf %1084, %18 : vector<8x32xf32>
    %cst_268 = arith.constant dense<0.000000e+00> : vector<8xf32>
    %1086 = vector.multi_reduction <add>, %1067, %cst_268 [1] : vector<8x32xf32> to vector<8xf32>
    %1087 = vector.shape_cast %1086 : vector<8xf32> to vector<8x1xf32>
    %cst_269 = arith.constant 3.200000e+01 : f32
    %1088 = vector.broadcast %cst_269 : f32 to vector<8x1xf32>
    %1089 = arith.divf %1087, %1088 : vector<8x1xf32>
    %1090 = vector.broadcast %1089 : vector<8x1xf32> to vector<8x32xf32>
    %1091 = arith.subf %1067, %1090 : vector<8x32xf32>
    %1092 = arith.mulf %1091, %1091 : vector<8x32xf32>
    %cst_270 = arith.constant dense<0.000000e+00> : vector<8xf32>
    %1093 = vector.multi_reduction <add>, %1092, %cst_270 [1] : vector<8x32xf32> to vector<8xf32>
    %1094 = vector.shape_cast %1093 : vector<8xf32> to vector<8x1xf32>
    %cst_271 = arith.constant 3.200000e+01 : f32
    %1095 = vector.broadcast %cst_271 : f32 to vector<8x1xf32>
    %1096 = arith.divf %1094, %1095 : vector<8x1xf32>
    %cst_272 = arith.constant 9.99999974E-6 : f32
    %1097 = vector.broadcast %cst_272 : f32 to vector<8x1xf32>
    %1098 = arith.addf %1096, %1097 : vector<8x1xf32>
    %1099 = math.rsqrt %1098 : vector<8x1xf32>
    %1100 = vector.broadcast %1099 : vector<8x1xf32> to vector<8x32xf32>
    %1101 = arith.mulf %1091, %1100 : vector<8x32xf32>
    %1102 = arith.mulf %1101, %21 : vector<8x32xf32>
    %1103 = arith.addf %1102, %24 : vector<8x32xf32>
    %1104 = vector.extract_strided_slice %80 {offsets = [56, 0], sizes = [8, 32], strides = [1, 1]} : vector<64x32xf32> to vector<8x32xf32>
    %cst_273 = arith.constant dense<0.000000e+00> : vector<8x32xf32>
    %1105 = tpu.matmul %1103, %84, %cst_273 {dimension_numbers = #tpu.dot_dimension_numbers<[1], [0], [0], [1], [0, 0, 1, 1], [], []>} : vector<8x32xf32>, vector<32x32xf32>, vector<8x32xf32> -> vector<8x32xf32>
    %1106 = arith.addf %1105, %12 : vector<8x32xf32>
    %1107 = arith.negf %1106 : vector<8x32xf32>
    %1108 = math.exp %1107 : vector<8x32xf32>
    %cst_274 = arith.constant 1.000000e+00 : f32
    %1109 = vector.broadcast %cst_274 : f32 to vector<8x32xf32>
    %1110 = arith.addf %1109, %1108 : vector<8x32xf32>
    %1111 = arith.divf %1109, %1110 : vector<8x32xf32>
    %1112 = math.tanh %1085 : vector<8x32xf32>
    %1113 = arith.mulf %1047, %1112 : vector<8x32xf32>
    %1114 = arith.mulf %1104, %1113 : vector<8x32xf32>
    %cst_275 = arith.constant 1.000000e+00 : f32
    %1115 = vector.broadcast %cst_275 : f32 to vector<8x32xf32>
    %1116 = arith.subf %1115, %1104 : vector<8x32xf32>
    %1117 = arith.mulf %1116, %1009 : vector<8x32xf32>
    %1118 = arith.addf %1114, %1117 : vector<8x32xf32>
    %1119 = arith.mulf %1111, %1118 : vector<8x32xf32>
    %cst_276 = arith.constant 1.000000e+00 : f32
    %1120 = vector.broadcast %cst_276 : f32 to vector<8x32xf32>
    %1121 = arith.subf %1120, %1111 : vector<8x32xf32>
    %1122 = math.tanh %1103 : vector<8x32xf32>
    %1123 = arith.mulf %1121, %1122 : vector<8x32xf32>
    %1124 = arith.addf %1119, %1123 : vector<8x32xf32>
    %cst_277 = arith.constant dense<0.000000e+00> : vector<8xf32>
    %1125 = vector.multi_reduction <add>, %1124, %cst_277 [1] : vector<8x32xf32> to vector<8xf32>
    %1126 = vector.shape_cast %1125 : vector<8xf32> to vector<8x1xf32>
    %cst_278 = arith.constant 3.200000e+01 : f32
    %1127 = vector.broadcast %cst_278 : f32 to vector<8x1xf32>
    %1128 = arith.divf %1126, %1127 : vector<8x1xf32>
    %1129 = vector.broadcast %1128 : vector<8x1xf32> to vector<8x32xf32>
    %1130 = arith.subf %1124, %1129 : vector<8x32xf32>
    %1131 = arith.mulf %1130, %1130 : vector<8x32xf32>
    %cst_279 = arith.constant dense<0.000000e+00> : vector<8xf32>
    %1132 = vector.multi_reduction <add>, %1131, %cst_279 [1] : vector<8x32xf32> to vector<8xf32>
    %1133 = vector.shape_cast %1132 : vector<8xf32> to vector<8x1xf32>
    %cst_280 = arith.constant 3.200000e+01 : f32
    %1134 = vector.broadcast %cst_280 : f32 to vector<8x1xf32>
    %1135 = arith.divf %1133, %1134 : vector<8x1xf32>
    %cst_281 = arith.constant 9.99999974E-6 : f32
    %1136 = vector.broadcast %cst_281 : f32 to vector<8x1xf32>
    %1137 = arith.addf %1135, %1136 : vector<8x1xf32>
    %1138 = math.rsqrt %1137 : vector<8x1xf32>
    %1139 = vector.broadcast %1138 : vector<8x1xf32> to vector<8x32xf32>
    %1140 = arith.mulf %1130, %1139 : vector<8x32xf32>
    %1141 = arith.mulf %1140, %27 : vector<8x32xf32>
    %1142 = arith.addf %1141, %30 : vector<8x32xf32>
    %c7 = arith.constant 7 : index
    %c0_282 = arith.constant 0 : index
    %c0_283 = arith.constant 0 : index
    %1143 = vector.load %arg9[%c7, %c0_282, %c0_283] : memref<8x8x128xf32, #tpu.memory_space<vmem>>, vector<1x8x32xf32>
    %1144 = vector.shape_cast %1143 : vector<1x8x32xf32> to vector<8x32xf32>
    %1145 = vector.shape_cast %1142 : vector<8x32xf32> to vector<1x8x32xf32>
    tpu.vector_store %arg9[%c7, %c0_282, %c0_283], %1145 {strides = array<i32>} : memref<8x8x128xf32, #tpu.memory_space<vmem>>, vector<1x8x32xf32>,
    %c7_284 = arith.constant 7 : index
    %c0_285 = arith.constant 0 : index
    %c32_286 = arith.constant 32 : index
    %1146 = vector.load %arg9[%c7_284, %c0_285, %c32_286] : memref<8x8x128xf32, #tpu.memory_space<vmem>>, vector<1x8x32xf32>
    %1147 = vector.shape_cast %1146 : vector<1x8x32xf32> to vector<8x32xf32>
    %1148 = vector.shape_cast %1085 : vector<8x32xf32> to vector<1x8x32xf32>
    tpu.vector_store %arg9[%c7_284, %c0_285, %c32_286], %1148 {strides = array<i32>} : memref<8x8x128xf32, #tpu.memory_space<vmem>>, vector<1x8x32xf32>,
    %c7_287 = arith.constant 7 : index
    %c0_288 = arith.constant 0 : index
    %c64_289 = arith.constant 64 : index
    %1149 = vector.load %arg9[%c7_287, %c0_288, %c64_289] : memref<8x8x128xf32, #tpu.memory_space<vmem>>, vector<1x8x32xf32>
    %1150 = vector.shape_cast %1149 : vector<1x8x32xf32> to vector<8x32xf32>
    %1151 = vector.shape_cast %1103 : vector<8x32xf32> to vector<1x8x32xf32>
    tpu.vector_store %arg9[%c7_287, %c0_288, %c64_289], %1151 {strides = array<i32>} : memref<8x8x128xf32, #tpu.memory_space<vmem>>, vector<1x8x32xf32>,
    %cst_290 = arith.constant 0.000000e+00 : f32
    %1152 = vector.broadcast %cst_290 : f32 to vector<8x8x32xf32>
    %c0_291 = arith.constant 0 : index
    %c0_292 = arith.constant 0 : index
    %c96 = arith.constant 96 : index
    %1153 = vector.load %arg9[%c0_291, %c0_292, %c96] : memref<8x8x128xf32, #tpu.memory_space<vmem>>, vector<8x8x32xf32>
    tpu.vector_store %arg9[%c0_291, %c0_292, %c96], %1152 {strides = array<i32>} : memref<8x8x128xf32, #tpu.memory_space<vmem>>, vector<8x8x32xf32>,
    %c0_293 = arith.constant 0 : index
    %c0_294 = arith.constant 0 : index
    %1154 = vector.load %arg10[%c0_293, %c0_294] : memref<8x32xf32, #tpu.memory_space<vmem>>, vector<8x32xf32>
    tpu.vector_store %arg10[%c0_293, %c0_294], %1142 {strides = array<i32>} : memref<8x32xf32, #tpu.memory_space<vmem>>, vector<8x32xf32>,
    %c0_295 = arith.constant 0 : index
    %c0_296 = arith.constant 0 : index
    %1155 = vector.load %arg11[%c0_295, %c0_296] : memref<8x32xf32, #tpu.memory_space<vmem>>, vector<8x32xf32>
    tpu.vector_store %arg11[%c0_295, %c0_296], %1085 {strides = array<i32>} : memref<8x32xf32, #tpu.memory_space<vmem>>, vector<8x32xf32>,
    %c0_297 = arith.constant 0 : index
    %c0_298 = arith.constant 0 : index
    %1156 = vector.load %arg12[%c0_297, %c0_298] : memref<8x32xf32, #tpu.memory_space<vmem>>, vector<8x32xf32>
    tpu.vector_store %arg12[%c0_297, %c0_298], %1103 {strides = array<i32>} : memref<8x32xf32, #tpu.memory_space<vmem>>, vector<8x32xf32>,
    return
  }
  func.func @transform_0(%arg0: i32, %arg1: i32) -> (i32, i32, i32) {
    %c0_i32 = arith.constant 0 : i32
    %c0_i32_0 = arith.constant 0 : i32
    return %arg1, %arg0, %c0_i32 : i32, i32, i32
  }
  func.func @transform_1(%arg0: i32, %arg1: i32) -> (i32, i32) {
    %c0_i32 = arith.constant 0 : i32
    %c0_i32_0 = arith.constant 0 : i32
    return %arg0, %c0_i32 : i32, i32
  }
  func.func @transform_2(%arg0: i32, %arg1: i32) -> (i32, i32) {
    %c0_i32 = arith.constant 0 : i32
    %c0_i32_0 = arith.constant 0 : i32
    %c0_i32_1 = arith.constant 0 : i32
    return %c0_i32, %c0_i32_0 : i32, i32
  }
  func.func @transform_3(%arg0: i32, %arg1: i32) -> (i32, i32) {
    %c0_i32 = arith.constant 0 : i32
    %c0_i32_0 = arith.constant 0 : i32
    %c0_i32_1 = arith.constant 0 : i32
    return %c0_i32, %c0_i32_0 : i32, i32
  }
  func.func @transform_4(%arg0: i32, %arg1: i32) -> (i32, i32) {
    %c0_i32 = arith.constant 0 : i32
    %c0_i32_0 = arith.constant 0 : i32
    %c0_i32_1 = arith.constant 0 : i32
    return %c0_i32, %c0_i32_0 : i32, i32
  }
  func.func @transform_5(%arg0: i32, %arg1: i32) -> (i32, i32) {
    %c0_i32 = arith.constant 0 : i32
    %c0_i32_0 = arith.constant 0 : i32
    %c0_i32_1 = arith.constant 0 : i32
    return %c0_i32, %c0_i32_0 : i32, i32
  }
  func.func @transform_6(%arg0: i32, %arg1: i32) -> (i32, i32) {
    %c0_i32 = arith.constant 0 : i32
    %c0_i32_0 = arith.constant 0 : i32
    %c0_i32_1 = arith.constant 0 : i32
    return %c0_i32, %c0_i32_0 : i32, i32
  }
  func.func @transform_7(%arg0: i32, %arg1: i32) -> (i32, i32, i32) {
    %c0_i32 = arith.constant 0 : i32
    %c0_i32_0 = arith.constant 0 : i32
    return %arg1, %arg0, %c0_i32 : i32, i32, i32
  }
}

</mosaic_0001>

<bundles_post_ra>
// kernel: tpu_custom_call.1
= control target key start
LH: loop header
LB: loop body
LE: loop exit
PB: predicated region body
PF: predicated region fallthrough
CT: control target
= control target key end

     0   :  { %s7799_s0 = inlined_call_operand.hbm [shape: f32[16,16,17], index: 0, kind: input, shape index: {}]   ;;  %s7800_s1 = inlined_call_operand.hbm [shape: f32[16,96], index: 1, kind: input, shape index: {}]   ;;  %s7801_s2 = inlined_call_operand.hbm [shape: f32[17,161], index: 2, kind: input, shape index: {}]   ;;  %s7802_s3 = inlined_call_operand.hbm [shape: f32[32,161], index: 3, kind: input, shape index: {}]   ;;  %s7803_s4 = inlined_call_operand.hbm [shape: f32[32,64], index: 4, kind: input, shape index: {}]   ;;  %s7804_s5 = inlined_call_operand.vmem [shape: f32[2,128], index: 5, kind: input, shape index: {}]   ;;  %s7805_s6 = inlined_call_operand.hbm [shape: f32[16,32], index: 6, kind: input, shape index: {}]   ;;  %s7806_s7 = inlined_call_operand.hbm [shape: f32[16,16,128], index: 7, kind: output, shape index: {}]  }
   0x1   :  { %7862 = sst [smem:[#allocation45_spill]] %s7801_s2 }
   0x2   :  { %7863 = sst [smem:[#allocation46_spill]] %s7802_s3 }
   0x3   :  { %7864 = sst [smem:[#allocation47_spill]] %s7803_s4 }
   0x4   :  { %7865 = sst [smem:[#allocation48_spill]] %s7804_s5 }
   0x5   :  { %7866 = sst [smem:[#allocation49_spill]] %s7805_s6 }
   0x6   :  { %7867 = sst [smem:[#allocation50_spill]] %s7806_s7 }
   0x7   :  { %12 = vsyncpa [#allocation6], 0 }
   0x8   :  { %14 = vsyncpa [#allocation6 + $0x1], 0 }
   0x9   :  { %15 = vsyncpa [#allocation9], 0 }
   0xa   :  { %17 = vsyncpa [#allocation9 + $0x1], 0 }
   0xb   :  { %18 = vsyncpa [#allocation12], 0 }
   0xc   :  { %19 = vsyncpa [#allocation15], 0 }
   0xd   :  { %20 = vsyncpa [#allocation7], 0 }
   0xe   :  { %22 = vsyncpa [#allocation7 + $0x1], 0  ;;  %s6069_s24 = smov 0   ;;  %s6071_s25 = smov 0  }
   0xf   :  { %s6073_s26 = smov 0   ;;  %s6075_s27 = smov 0  }
  0x10   :  { %s6077_s28 = smov 0   ;;  %s6079_s29 = smov 0  }
  0x11   :  { %s6081_s30 = smov 0   ;;  %s6083_s8 = smov 0  }
  0x12   :  { %s6085_s9 = smov 0   ;;  %s6087_s10 = smov 0  }
  0x13   :  { %s6089_s11 = smov 0  }
  0x14 LB: > { %7868 = sst [smem:[#allocation23_spill]] %s5969_s27  ;;  %s6125_s12 = sadd.s32 4294967295, %s5997_s11   ;;  %s5997_s11 = sphi %s6089_s11, %s28_s11   ;;  %s5993_s10 = sphi %s6087_s10, %s7977_s10   ;;  %s5989_s9 = sphi %s6085_s9, %s7976_s9   ;;  %s5985_s8 = sphi %s6083_s8, %s7975_s8   ;;  %s5981_s30 = sphi %s6081_s30, %s7974_s30   ;;  %s5977_s29 = sphi %s6079_s29, %s7973_s29   ;;  %s5973_s28 = sphi %s6077_s28, %s7972_s28   ;;  %s5969_s27 = sphi %s6075_s27, %s7971_s27   ;;  %s5965_s26 = sphi %s6073_s26, %s7970_s26   ;;  %s5961_s25 = sphi %s6071_s25, %s7969_s25   ;;  %s5957_s24 = sphi %s6069_s24, %s7968_s24  }
  0x15   : > { %7869 = sst [smem:[#allocation24_spill]] %s5985_s8  ;;  %s4771_s13 = sadd.s32 4294967294, %s5997_s11  }
  0x16   : > { %p62_p0 = scmp.ne.s32.totalorder %s5973_s28, %s5969_s27  ;;  %p7809_p1 = scmp.eq.s32.totalorder %s6125_s12, 0 }
  0x17   : > { %p225_p3 = scmp.eq.s32.totalorder %s4771_s13, 3  ;;  %p4772_p5 = scmp.ge.s32.totalorder %s5997_s11, 1 }
  0x18   : > { %p6134_p4 = por %p7809_p1, %p62_p0  ;;  %p232_p7 = scmp.lt.s32.totalorder %s5997_s11, 5 }
  0x19   : > { %p6139_p6 = por %p225_p3, %p62_p0  ;;  %s5999_s17 = smov [#allocation10]  }
  0x1a   : > { %p6144_p8 = pnand %p4772_p5, %p232_p7  ;;  %s244_s18 = sshll.u32 %s5999_s17, 4  ;;  %s245_s18 = int_to_ptr.vmem [resolvable:$true] %s244_s18 }
  0x1b   : > { %s7871_s15 = scalar_select %p6139_p6, 1, 0 }
  0x1c   : > { %p5230_p9 = pneg %p6144_p8  ;;  %s6000_s20 = smov [#allocation11]  }
  0x1d   : > { %7872 = sst [smem:[#allocation25_spill]] %s7871_s15  ;;  %s257_s21 = sshll.u32 %s6000_s20, 4  ;;  %s258_s21 = int_to_ptr.vmem [resolvable:$true] %s257_s21 }
  0x1e   : > { %p6152_p10 = pnand %p5230_p9, %p7809_p1  ;;  %s6001_s22 = smov [#allocation13]  }
  0x1f   : > { %s270_s23 = sshll.u32 %s6001_s22, 4  ;;  %s5712_s13 = scalar_lea.vmem %s245_s18, 768  ;;  %s271_s23 = int_to_ptr.vmem [resolvable:$true] %s270_s23 }
  0x20   : > { %p5703_p11 = pneg %p6152_p10  ;;  %p5713_p12 = scmp.ne.s32.totalorder %s245_s18, %s5712_s13 }
  0x21   : > { %p5720_p3 = scmp.lt.s32.totalorder %s245_s18, %s245_s18  ;;  %p5721_p5 = scmp.lt.s32.totalorder %s5712_s13, %s5712_s13 }
  0x22   : > { %p5715_p13 = pnand %p5713_p12, %p5703_p11 }
  0x23   : > { %p5722_p7 = por %p5721_p5, %p5720_p3 }
  0x24   : > { %p5716_p0 = pneg %p5715_p13 }
  0x26   : > { %p5723_p9 = pnand %p5722_p7, %p5716_p0 }
  0x28   : > { %5726 = shalt.err (!%p5723_p9)
}
  0x29   : > { %s7811_s17 = smov 256   ;;  %s6003_s20 = smov 16  }
  0x2a   : > { %s7875_s2 = sld [smem:[#allocation45_spill]]  ;;  %s5738_s27 = scalar_lea.vmem %s258_s21, 1024 }
  0x2b   : > { %p5739_p1 = scmp.ne.s32.totalorder %s258_s21, %s5738_s27  ;;  %p5746_p3 = scmp.lt.s32.totalorder %s258_s21, %s258_s21 }
  0x2c   : > { %p5747_p0 = scmp.lt.s32.totalorder %s5738_s27, %s5738_s27 }
  0x2d   : > { %p5741_p12 = pnand %p5739_p1, %p5703_p11 }
  0x2e   : > { %p5748_p5 = por %p5747_p0, %p5746_p3 }
  0x2f   : > { %p5742_p13 = pneg %p5741_p12 }
  0x30   : > { %5233 = dma.hbm_to_vmem [thread:$0]  (!%p6152_p10), %s7875_s2, 768, %s245_s18, [#allocation9], %s7811_s17, %s7811_s17, %s6003_s20  }
  0x31   : > { %p5749_p7 = pnand %p5748_p5, %p5742_p13 }
  0x33   : > { %5752 = shalt.err (!%p5749_p7)
}
  0x34   : > { %s7876_s3 = sld [smem:[#allocation46_spill]]  ;;  %s5764_s15 = scalar_lea.vmem %s271_s23, 512 }
  0x35   : > { %p5765_p9 = scmp.ne.s32.totalorder %s271_s23, %s5764_s15  ;;  %p5772_p2 = scmp.lt.s32.totalorder %s271_s23, %s271_s23 }
  0x36   : > { %p5773_p3 = scmp.lt.s32.totalorder %s5764_s15, %s5764_s15 }
  0x37   : > { %p5767_p1 = pnand %p5765_p9, %p5703_p11 }
  0x38   : > { %p5774_p13 = por %p5773_p3, %p5772_p2 }
  0x39   : > { %p5768_p12 = pneg %p5767_p1 }
  0x3a   : > { %5236 = dma.hbm_to_vmem [thread:$0]  (!%p6152_p10), %s7876_s3, 1024, %s258_s21, [#allocation12], %s7811_s17, %s7811_s17, %s6003_s20  }
  0x3b   : > { %p5775_p0 = pnand %p5774_p13, %p5768_p12 }
  0x3d   : > { %5778 = shalt.err (!%p5775_p0)
}
  0x3e   : > { %s7812_s27 = smov 128   ;;  %s7813_s18 = smov 8  }
  0x3f   : > { %s7877_s4 = sld [smem:[#allocation47_spill]]  ;;  %s6006_s20 = smov [#allocation14]  }
  0x40   : > { %s286_s22 = sshll.u32 %s6006_s20, 4  ;;  %s287_s22 = int_to_ptr.vmem [resolvable:$true] %s286_s22 }
  0x41   : > { %s5790_s13 = scalar_lea.vmem %s287_s22, 256  ;;  %p5798_p9 = scmp.lt.s32.totalorder %s287_s22, %s287_s22 }
  0x42   : > { %p5791_p5 = scmp.ne.s32.totalorder %s287_s22, %s5790_s13  ;;  %p5799_p1 = scmp.lt.s32.totalorder %s5790_s13, %s5790_s13 }
  0x44   : > { %p5793_p2 = pnand %p5791_p5, %p5703_p11  ;;  %p5800_p12 = por %p5799_p1, %p5798_p9 }
  0x45   : > { %5239 = dma.hbm_to_vmem [thread:$0]  (!%p6152_p10), %s7877_s4, 512, %s271_s23, [#allocation12], %s7812_s27, %s7812_s27, %s7813_s18  }
  0x46   : > { %p5794_p7 = pneg %p5793_p2 }
  0x48   : > { %p5801_p3 = pnand %p5800_p12, %p5794_p7 }
  0x4a   : > { %5804 = shalt.err (!%p5801_p3)
}
  0x4b   : > { %s7878_s6 = sld [smem:[#allocation49_spill]]  ;;  %s37_s19 = sadd.s32 1, %s5989_s9 }
  0x4c   : > { %s40_s7 = sadd.s32 1, %s5993_s10  ;;  %p38_p11 = scmp.ge.s32.totalorder %s37_s19, 2 }
  0x4d   : > { %s49_s21 = sadd.s32 1, %s5977_s29  ;;  %p56_p13 = scmp.ne.s32.totalorder %s5977_s29, %s5973_s28 }
  0x4e   : > { %p7818_p0 = scmp.eq.s32.totalorder %s5997_s11, 0  ;;  %s7979_s19 = smov (%p38_p11, %s37_s19), 0 }
  0x4f   : > { %7879 = sst [smem:[#allocation26_spill]] %s7979_s19  ;;  %s7981_s7 = smov (!%p38_p11, %s40_s7), %s5993_s10 }
  0x50   : > { %s44_s20 = ssub.s32 %s5989_s9, %s7979_s19  ;;  %p6213_p5 = por %p7818_p0, %p56_p13 }
  0x51   : > { %5242 = dma.hbm_to_vmem [thread:$0]  (!%p6152_p10), %s7878_s6, 256, %s287_s22, [#allocation15], %s7812_s27, %s7812_s27, %s7813_s18  }
  0x52   : > { %p42_p10 = scmp.ge.s32.totalorder %s7981_s7, 2  ;;  %p7881_p2 = scmp.eq.s32.totalorder %s6125_s12, 3 }
  0x53   : > { %p5258_p9 = scmp.lt.s32.totalorder %s5997_s11, 4  ;;  %s300_s23 = sand.u32 1, %s5977_s29  }
  0x54   : > { %p6219_p7 = por %p7881_p2, %p56_p13  ;;  %s7983_s7 = smov (%p42_p10, %s7981_s7), 0 }
  0x55   : > { %7884 = sst [smem:[#allocation28_spill]] %s7983_s7  ;;  %s4778_s15 = sshll.u32 %s300_s23, 6 }
  0x56   : > { %s7882_s22 = scalar_select %p6219_p7, 1, 0 }
  0x57   : > { %s6229_s17 = ssub.s32 %s5993_s10, %s7983_s7  ;;  %s4918_s18 = sshll.u32 %s5989_s9, 4 }
  0x58   : > { %7883 = sst [smem:[#allocation27_spill]] %s7882_s22  ;;  %s46_s27 = sor.u32 %s6229_s17, %s44_s20 }
  0x59   : > { %p47_p1 = scmp.eq.s32.totalorder %s46_s27, 0  ;;  %s310_s2 = sadd.s32 %s5993_s10, %s4918_s18 }
  0x5a   : > { %s4781_s3 = sshll.u32 %s310_s2, 7  ;;  %s304_s4 = scalar_lea.vmem [#allocation5], %s4778_s15 }
  0x5b   : > { %s313_s6 = sshll.u32 %s304_s4, 4  ;;  %s312_s5 = scalar_lea.hbm %s7799_s0, %s4781_s3  ;;  %s314_s6 = int_to_ptr.vmem [resolvable:$true] %s313_s6 }
  0x5c   : > { %s6235_s19 = scalar_select %p47_p1, %s5977_s29, %s49_s21  }
  0x5d   : > { %p6244_p12 = pnand %p5258_p9, %p6213_p5  ;;  %s301_s20 = scalar_lea.sflag [#allocation6], %s300_s23 }
  0x5e   : > { %s5818_s2 = scalar_lea.vmem %s314_s6, 1024  ;;  %s6007_s4 = smov [#allocation5]  }
  0x5f   : > { %p5807_p3 = pneg %p6244_p12  ;;  %p5819_p11 = scmp.ne.s32.totalorder %s314_s6, %s5818_s2 }
  0x60   : > { %s5823_s27 = sshll.u32 %s6007_s4, 4  ;;  %s5824_s27 = int_to_ptr.vmem [resolvable:$false] %s5823_s27 }
  0x61   : > { %p5821_p13 = pnand %p5819_p11, %p5807_p3  ;;  %s5825_s8 = scalar_lea.vmem %s5824_s27, 2048 }
  0x62   : > { %p5826_p2 = scmp.lt.s32.totalorder %s314_s6, %s5824_s27  ;;  %p5827_p1 = scmp.lt.s32.totalorder %s5825_s8, %s5818_s2 }
  0x63   : > { %p5822_p10 = pneg %p5821_p13 }
  0x64   : > { %p5828_p0 = por %p5827_p1, %p5826_p2 }
  0x66   : > { %p5829_p6 = pnand %p5828_p0, %p5822_p10 }
  0x68   : > { %5832 = shalt.err (!%p5829_p6)
}
  0x69   : > { %s7886_s3 = smov 8   ;;  %s7887_s18 = smov 128  }
  0x6a   : > { %s7888_s21 = smov 256   ;;  %p73_p6 = scmp.eq.s32.totalorder %s6229_s17, 0 }
  0x6b   : > { %5246 = dma.hbm_to_vmem [thread:$0]  (!%p6244_p12), %s312_s5, 1024, %s314_s6, %s301_s20, %s7888_s21, %s7887_s18, %s7886_s3  }
  0x6c   : > { %s75_s13 = sadd.s32 1, %s5965_s26  ;;  %p82_p0 = scmp.ne.s32.totalorder %s5965_s26, %s5961_s25 }
  0x6d   : > { %p88_p5 = scmp.ne.s32.totalorder %s5961_s25, %s5957_s24  ;;  %p7889_p3 = scmp.eq.s32.totalorder %s5997_s11, 0 }
  0x6e   : > { %s6262_s7 = scalar_select %p73_p6, %s5965_s26, %s75_s13  }
  0x6f   : > { %p84_p11 = por %p82_p0, %p7889_p3  ;;  %p7890_p13 = scmp.eq.s32.totalorder %s6125_s12, 0 }
  0x70   : > { %s323_s23 = sand.u32 1, %s5997_s11   ;;  %s325_s15 = sand.u32 1, %s5965_s26  }
  0x71   : > { %p6268_p10 = por %p88_p5, %p7890_p13  ;;  %s4782_s2 = sshll.u32 %s325_s15, 3 }
  0x72   : > { %s4783_s4 = sshll.u32 %s5993_s10, 7  ;;  %s327_s17 = scalar_lea.vmem [#allocation8], %s4782_s2 }
  0x73   : > { %s332_s6 = scalar_lea.hbm %s7800_s1, %s4783_s4  ;;  %s334_s20 = sshll.u32 %s327_s17, 4  ;;  %s335_s20 = int_to_ptr.vmem [resolvable:$true] %s334_s20 }
  0x74   : > { %p6280_p12 = pnand %p5258_p9, %p84_p11  ;;  %s324_s8 = scalar_lea.sflag [#allocation9], %s323_s23 }
  0x75   : > { %s5846_s3 = scalar_lea.vmem %s335_s20, 128  ;;  %s6008_s18 = smov [#allocation8]  }
  0x76   : > { %p5835_p2 = pneg %p6280_p12  ;;  %p5847_p1 = scmp.ne.s32.totalorder %s335_s20, %s5846_s3 }
  0x77   : > { %s5851_s21 = sshll.u32 %s6008_s18, 4  ;;  %s5852_s21 = int_to_ptr.vmem [resolvable:$false] %s5851_s21 }
  0x78   : > { %p5849_p6 = pnand %p5847_p1, %p5835_p2  ;;  %s5853_s13 = scalar_lea.vmem %s5852_s21, 256 }
  0x79   : > { %p5854_p5 = scmp.lt.s32.totalorder %s335_s20, %s5852_s21  ;;  %p5855_p3 = scmp.lt.s32.totalorder %s5853_s13, %s5846_s3 }
  0x7a   : > { %p5850_p0 = pneg %p5849_p6 }
  0x7b   : > { %p5856_p13 = por %p5855_p3, %p5854_p5 }
  0x7d   : > { %p5857_p7 = pnand %p5856_p13, %p5850_p0 }
  0x7f   : > { %5860 = shalt.err (!%p5857_p7)
}
  0x80   : > { %5249 = dma.hbm_to_vmem [thread:$0]  (!%p6280_p12), %s332_s6, 128, %s335_s20, %s324_s8  }
  0x81   : > { %343 = sbr.rel (%p6144_p8) target bundleno = 16072 (0x3ec8), region = 48 }
  0x86   : > { %s6291_s23 = sand.u32 1, %s5973_s28  }
  0x87   : > { %s4785_s15 = sshll.u32 %s6291_s23, 6  ;;  %s346_s2 = scalar_lea.sflag [#allocation6], %s6291_s23 }
  0x88   : > { %s6295_s4 = scalar_lea.vmem [#allocation5], %s4785_s15 }
  0x89   : > { %5932 = dma.done.wait (%p6134_p4), %s346_s2, 1024  }
  0x8a   : > { %5934 = vsyncadd (%p6134_p4), %s346_s2, 4294966272  ;;  %s354_s16 = sand.u32 1, %s6125_s12   ;;  %s356_s27 = sand.u32 1, %s5961_s25  }
  0x8b   : > { %s4786_s5 = sshll.u32 %s356_s27, 3  ;;  %s355_s6 = scalar_lea.sflag [#allocation9], %s354_s16 }
  0x8c   : > { %s358_s17 = scalar_lea.vmem [#allocation8], %s4786_s5 }
  0x8d   : > { %5936 = dma.done.wait (%p6268_p10), %s355_s6, 128  }
  0x8e   : > { %5938 = vsyncadd (%p6268_p10), %s355_s6, 4294967168  ;;  %p7893_p8 = scmp.eq.s32.totalorder %s6125_s12, 0 }
  0x90   : > { %5940 = dma.done.wait (%p7893_p8), [#allocation9], 768   ;;  %p7894_p7 = pmov %p7893_p8 }
  0x92   : > { %5942 = vsyncadd (%p7894_p7), [#allocation9], 4294966528  ;;  %p7895_p4 = pmov %p7894_p7 }
  0x94   : > { %5944 = dma.done.wait (%p7895_p4), [#allocation12], 1536   ;;  %p7896_p9 = pmov %p7895_p4 }
  0x95   : > { %p7897_p11 = pmov %p7895_p4 }
  0x96   : > { %5946 = vsyncadd (%p7896_p9), [#allocation12], 4294965760 }
  0x97   : > { %5948 = dma.done.wait (%p7897_p11), [#allocation15], 256   ;;  %p7898_p12 = pmov %p7895_p4 }
  0x98   : > { %s6319_s14 = scalar_lea.vmem [#allocation16], %s4785_s15  ;;  %p4792_p10 = scmp.ne.s32.totalorder %s5981_s30, 0 }
  0x99   : > { %5950 = vsyncadd (%p7898_p12), [#allocation15], 4294967040  ;;  %s6009_s22 = smov (!%p4792_p10), 96   ;;  %s6010_s20 = smov (!%p4792_p10), 64  }
  0x9a   : > { %415 = sbr.rel (%p4792_p10) target bundleno = 280 (0x118), region = 76 }
  0x9f   : > { %v416_v0 = vld [vmem:[%s358_s17] sm:$0xff]  ;;  %vm417_vm0 = vcmask 261120  }
  0xa0   : > { %420 = vrot.lane.b32.xlu0 %v416_v0, %s6009_s22  ;;  %418 = vst.msk [vmem:[#allocation2] sm:$0xff] %vm417_vm0, %v416_v0 }
  0xa4   : > { %424 = vrot.lane.b32.xlu0 %v416_v0, %s6010_s20 }
 0x112   : > { %v421_v1 = vpop.permute.xlu0 %420 }
 0x113   : > { %423 = vst.msk [vmem:[#allocation3] sm:$0xff] %vm417_vm0, %v421_v1 }
 0x116   : > { %v425_v2 = vpop.permute.xlu0 %424 }
 0x117   : > { %427 = vst.msk [vmem:[#allocation4] sm:$0xff] %vm417_vm0, %v425_v2 }
 0x118 PF: > { %v480_v3 = vld [vmem:[#allocation10 + $0x28] sm:$0x1]  ;;  %vm506_vm1 = vcmask 1040384   ;;  %v479_v5 = vld [vmem:[#allocation10 + $0x20] sm:$0x1]  ;;  %v430_v6 = vlaneseq  ;;  %v478_v8 = vld [vmem:[#allocation10 + $0x18] sm:$0xff] }
 0x119   : > { %v6322_v4 = vld [vmem:[#allocation11 + $0x38] sm:$0xff]  ;;  %4793 = vmatprep.subr.msk.mxu0 %vm506_vm1, %v480_v3  ;;  %v6325_v7 = vld [vmem:[#allocation11 + $0x30] sm:$0xff]  ;;  %v6327_v9 = vld [vmem:[#allocation11 + $0x28] sm:$0xff]  ;;  %vm481_vm2 = vcmask 138240   ;;  %v7825_v22 = vmov 0.0   ;;  %vm1750_vm3 = vcmask 261120  }
 0x11a   : > { %1778 = vmatprep.subr.mxu1 %v6322_v4  ;;  %4794 = vmatpush1.msk.msra.mxu0 %vm506_vm1, %v479_v5  ;;  %v477_v10 = vld [vmem:[#allocation10 + $0x10] sm:$0xff]  ;;  %v476_v12 = vld [vmem:[#allocation10 + $0x8] sm:$0xff]  ;;  %v6332_v13 = vshrl.u32 %v430_v6, 7  ;;  %v475_v15 = vld [vmem:[#allocation10] sm:$0xff]  ;;  %s6012_s12 = smov 32   ;;  %v6013_v33 = vmov 16  }
 0x11b   : > { %1779 = vmatpush1.msra.mxu1 %v6325_v7  ;;  %v6330_v11 = vld [vmem:[#allocation11 + $0x20] sm:$0xff]  ;;  %541 = vmatprep.subr.mxu0 %v478_v8  ;;  %v6335_v14 = vld [vmem:[#allocation11 + $0x18] sm:$0xff]  ;;  %v6338_v16 = vld [vmem:[#allocation11 + $0x10] sm:$0xff]  ;;  %v7820_v34 = vmov 32   ;;  %s7899_s3 = sld [smem:[#allocation48_spill]]  ;;  %s6015_s18 = smov 64  }
 0x11c   : > { %1780 = vmatprep.subr.mxu1 %v6327_v9  ;;  %542 = vmatpush1.msra.mxu0 %v477_v10  ;;  %v467_v17 = vld [vmem:[%s6295_s4] sm:$0xff]  ;;  %v6342_v18 = vsub.s32 0, %v6332_v13  ;;  %v6345_v19 = vld [vmem:[#allocation11 + $0x8] sm:$0xff]  ;;  %v6348_v21 = vsub.s32 4, %v6332_v13  ;;  %v6354_v24 = vsub.s32 1, %v6332_v13  ;;  %v7827_v25 = vsub.s32 2, %v6332_v13 }
 0x11d   : > { %1781 = vmatpush1.msra.mxu1 %v6330_v11  ;;  %543 = vmatprep.subr.mxu0 %v476_v12  ;;  %v429_v20 = vld [vmem:[#allocation14 + $0x8] sm:$0xff]  ;;  %v6351_v23 = vld [vmem:[#allocation11] sm:$0xff]  ;;  %v464_v28 = vsub.s32 3, %v6332_v13  ;;  %v1748_v57 = vld [vmem:[#allocation3] sm:$0xff]  ;;  %vm6016_vm4 = vmmov 0   ;;  %s6017_s21 = smov 96  }
 0x11e   : > { %1782 = vmatprep.subr.mxu1 %v6335_v14  ;;  %544 = vmatpush1.msra.mxu0 %v475_v15  ;;  %v6358_v26 = vrot.slane %v429_v20, %v6342_v18  ;;  %v6362_v27 = vld [vmem:[#allocation2] sm:$0xff]  ;;  %v1829_v29 = vrot.slane %v429_v20, %v6348_v21  ;;  %v6369_v30 = vrot.slane %v429_v20, %v6354_v24  ;;  %v6409_v61 = vld [vmem:[#allocation13 + $0x18] sm:$0xff]  ;;  %v6411_v62 = vld [vmem:[#allocation13 + $0x10] sm:$0xff]  ;;  %s7959_s13 = sld [smem:[#allocation24_spill]]  ;;  %s4919_s15 = sshll.u32 %s5981_s30, 4 }
 0x11f   : > { %577 = vmatprep.mubr.f32.mxu0 %v7825_v22  ;;  %1783 = vmatpush1.msra.mxu1 %v6338_v16  ;;  %v6373_v31 = vrot.slane %v429_v20, %v7827_v25  ;;  %v6379_v32 = vrot.slane %v429_v20, %v464_v28  ;;  %v6417_v63 = vld [vmem:[#allocation13 + $0x8] sm:$0xff]  ;;  %v6423_v0 = vld [vmem:[#allocation13] sm:$0xff]  ;;  %s4621_s16 = sshll.u32 %s6319_s14, 4  ;;  %s7961_s6 = sld [smem:[#allocation50_spill]]  ;;  %s7721_s16 = int_to_ptr.vmem [resolvable:$true] %s4621_s16 }
 0x120   : > { %4795 = vmatmul.mubr.msk.f32.vlgmr.msra.gmra.mxu0 %vm481_vm2, %v467_v17  ;;  %1784 = vmatprep.subr.mxu1 %v6345_v19  ;;  %s4606_s22 = scalar_lea.sflag [#allocation7], %s6291_s23  ;;  %s5861_s20 = scalar_lea.vmem %s7721_s16, 1024 }
 0x121   : > { %1818 = vmatprep.mubr.f32.mxu1 %v7825_v22  ;;  %1785 = vmatpush1.msra.mxu1 %v6351_v23  ;;  %v466_v46 = vld [vmem:[%s7899_s3] sm:$0x3]  ;;  %p5862_p2 = scmp.ne.s32.totalorder %s7721_s16, %s5861_s20 }
 0x122   : > { %1831 = vrot.lane.b32.xlu0 %v1829_v29, %s6012_s12  ;;  %4835 = vmatmul.mubr.msk.f32.vlgmr.msra.gmra.mxu1 %vm1750_vm3, %v6362_v27  ;;  %v6397_v47 = vrot.slane %v466_v46, %v6342_v18  ;;  %v6402_v49 = vrot.slane %v466_v46, %v6354_v24 }
 0x123   : > { %5379 = vset.pattern.permute.xlu0 %v6013_v33  ;;  %5000 = vmatprep.subr.mxu1 %v7825_v22 }
 0x124   : > { %583 = vmatprep.mubr.f32.mxu0 %v7825_v22  ;;  %5022 = vmatprep.subr.mxu0 %v7825_v22  ;;  %s4618_s2 = sadd.s32 %s7959_s13, %s4919_s15 }
 0x125   : > { %5380 = vset.pattern.permute.xlu1 %v7820_v34  ;;  %5001 = vmatpush3.msra.mxu1 %v6409_v61  ;;  %s4915_s27 = sshll.u32 %s4618_s2, 7 }
 0x126   : > { %627 = vperm.xlu0 %5379, %v467_v17   ;;  %5008 = vmatprep.mubr.msk.f32.mxu1 %vm6016_vm4, %v7825_v22  ;;  %v6451_v17 = vld [vmem:[#allocation14] sm:$0xff]  ;;  %s7729_s17 = scalar_lea.hbm %s7961_s6, %s4915_s27 }
 0x127   : > { %5002 = vmatprep.subr.mxu1 %v7825_v22  ;;  %5023 = vmatpush3.msra.mxu0 %v6409_v61  ;;  %v6455_v20 = vrot.slane %v6451_v17, %v6354_v24  ;;  %v1749_v24 = vld [vmem:[#allocation4] sm:$0xff]  ;;  %vm810_vm6 = vcmp.lt.f32.partialorder %v6451_v17, 0.0 }
 0x128   : > { %5003 = vmatpush3.msra.mxu1 %v6411_v62  ;;  %5024 = vmatprep.subr.mxu0 %v7825_v22 }
 0x129   : > { %5004 = vmatprep.subr.mxu1 %v7825_v22  ;;  %5025 = vmatpush3.msra.mxu0 %v6411_v62 }
 0x12a   : > { %5005 = vmatpush3.msra.mxu1 %v6417_v63  ;;  %5026 = vmatprep.subr.mxu0 %v7825_v22 }
 0x12b   : > { %5006 = vmatprep.subr.mxu1 %v7825_v22  ;;  %5027 = vmatpush3.msra.mxu0 %v6417_v63 }
 0x12c   : > { %5007 = vmatpush3.msra.mxu1 %v6423_v0  ;;  %5028 = vmatprep.subr.mxu0 %v7825_v22 }
 0x12d   : > { %5011 = vmatprep.subr.mxu1 %v7825_v22  ;;  %5029 = vmatpush3.msra.mxu0 %v6423_v0 }
 0x12e   : > { %2516 = vmatprep.subr.mxu0 %v6322_v4 }
 0x194   : > { %v6387_v37 = vpop.permute.xlu0 %1831 }
 0x1a1   : > { %v6399_v48 = vpop.permute.xlu0 %627 }
 0x1a2   : > { %v662_v50 = vmul.f32 %v6397_v47, %v6399_v48 }
 0x1a4   : > { %v674_v52 = vadd.f32 %v6402_v49, %v662_v50 }
 0x1e0   : > { %v579_v35 = vpop.f32.mrf.mxu0 }
 0x1e2   : > { %v1820_v36 = vpop.f32.mrf.mxu1  ;;  %v581_v38 = vpop.f32.mrf.mxu0 }
 0x1e4   : > { %v1822_v39 = vpop.f32.mrf.mxu1 }
 0x1e5   : > { %v6389_v40 = vadd.f32 %v1822_v39, %v581_v38  ;;  %v6460_v38 = vrot.slane %v6451_v17, %v6342_v18 }
 0x1e7   : > { %v1834_v41 = vadd.f32 %v6387_v37, %v6389_v40 }
 0x1e9   : > { %v4836_v42 = vmul.f32 -1.442695, %v1834_v41  ;;  %v1871_v41 = vadd.f32 %v6389_v40, %v6460_v38 }
 0x1eb   : > { %5382 = vpow2.f32 %v4836_v42 }
 0x1f8   : > { %v5383_v43 = vpop.eup %5382 }
 0x1f9   : > { %v1838_v44 = vadd.f32 1.0, %v5383_v43 }
 0x1fb   : > { %5384 = vrcp.f32 %v1838_v44 }
 0x208   : > { %v5385_v45 = vpop.eup %5384 }
 0x209   : > { %1843 = vperm.xlu1 %5380, %v5385_v45  }
 0x284   : > { %v1844_v51 = vpop.permute.xlu1 %1843 }
 0x285   : > { %v1846_v53 = vmul.f32 %v1844_v51, %v579_v35 }
 0x287   : > { %v1847_v54 = vadd.f32 %v1846_v53, %v1820_v36 }
 0x289   : > { %v1848_v55 = vadd.f32 %v1847_v54, %v674_v52 }
 0x28b   : > { %5386 = vtanh.f32 %v1848_v55  ;;  %v4837_v58 = vmul.f32 -1.442695, %v1848_v55 }
 0x28d   : > { %5388 = vpow2.f32 %v4837_v58 }
 0x298   : > { %v5387_v56 = vpop.eup %5386 }
 0x299   : > { %1862 = vrot.lane.b32.xlu1 %v5387_v56, %s6015_s18 }
 0x29a   : > { %v5389_v59 = vpop.eup %5388 }
 0x29b   : > { %v1852_v60 = vadd.f32 1.0, %v5389_v59 }
 0x29d   : > { %1857 = vrot.lane.b32.xlu1 %v1748_v57, %s6012_s12  ;;  %5390 = vrcp.f32 %v1852_v60  ;;  %v444_v60 = vsub.s32 6, %v6332_v13 }
 0x2aa   : > { %v6432_v1 = vpop.eup %5390 }
 0x30b   : > { %v1863_v2 = vpop.permute.xlu1 %1862 }
 0x30c   : > { %v1865_v3 = vmul.f32 %v6432_v1, %v1863_v2  ;;  %v448_v2 = vsub.s32 7, %v6332_v13 }
 0x30e   : > { %1867 = vrot.lane.b32.xlu0 %v1865_v3, %s6012_s12  ;;  %v445_v3 = vrot.slane %v6451_v17, %v444_v60 }
 0x30f   : > { %v1858_v5 = vpop.permute.xlu1 %1857 }
 0x310   : > { %v1860_v6 = vmul.f32 %v6432_v1, %v1858_v5  ;;  %v449_v5 = vrot.slane %v6451_v17, %v448_v2 }
 0x380   : > { %v1868_v8 = vpop.permute.xlu0 %1867 }
 0x381   : > { %v1870_v10 = vadd.f32 %v1868_v8, %v1860_v6 }
 0x383   : > { %1874 = vrot.lane.b32.xlu1 %v1870_v10, %s6017_s21 }
 0x3f5   : > { %v1875_v12 = vpop.permute.xlu1 %1874 }
 0x3f6   : > { %5009 = vmatmul.mubr.msk.f32.vlgmr.msra.gmra.mxu1 %vm1750_vm3, %v1875_v12  ;;  %v1959_v15 = vsel %vm1750_vm3, %v1875_v12, 0.0 }
 0x3f7   : > { %1960 = vadd.xlane.f32.xlu1 %v1959_v15  ;;  %5019 = vmatprep.mubr.msk.f32.mxu1 %vm6016_vm4, %v7825_v22 }
 0x408   : > { %2010 = vrot.lane.b32.xlu1 %v6411_v62, %s6017_s21 }
 0x40c   : > { %2008 = vrot.lane.b32.xlu1 %v6417_v63, %s6017_s21 }
 0x410   : > { %2006 = vrot.lane.b32.xlu1 %v6423_v0, %s6017_s21 }
 0x414   : > { %1978 = vrot.lane.b32.xlu1 %v445_v3, %s6012_s12 }
 0x418   : > { %1983 = vrot.lane.b32.xlu1 %v449_v5, %s6012_s12 }
 0x480   : > { %v1961_v40 = vpop.xlane.xlu1 %1960 }
 0x481   : > { %v1963_v57 = vmul.f32 0.03125, %v1961_v40 }
 0x483   : > { %v1964_v58 = vsub.f32 %v1870_v10, %v1963_v57 }
 0x484   : > { %v6475_v6 = vpop.permute.xlu1 %2010 }
 0x485   : > { %v1965_v59 = vmul.f32 %v1964_v58, %v1964_v58 }
 0x488   : > { %v6477_v12 = vpop.permute.xlu1 %2008 }
 0x4b6   : > { %v1944_v29 = vpop.f32.mrf.mxu1 }
 0x4b7   : > { %v1945_v33 = vadd.f32 %v1944_v29, %v6455_v20 }
 0x4b8   : > { %v5010_v35 = vpop.f32.mrf.mxu1 }
 0x4b9   : > { %v4839_v36 = vmul.f32 -1.442695, %v1945_v33  ;;  %v6485_v35 = vpop.permute.xlu1 %2006 }
 0x4bb   : > { %5392 = vpow2.f32 %v4839_v36 }
 0x4c8   : > { %v5393_v39 = vpop.eup %5392 }
 0x4c9   : > { %v1951_v42 = vadd.f32 1.0, %v5393_v39 }
 0x4cb   : > { %5394 = vrcp.f32 %v1951_v42 }
 0x4cc   : > { %5396 = vtanh.f32 %v1871_v41 }
 0x4d8   : > { %v5395_v43 = vpop.eup %5394 }
 0x4d9   : > { %v1955_v44 = vsub.f32 1.0, %v5395_v43  ;;  %v5397_v45 = vpop.eup %5396  ;;  %v1954_v46 = vmul.f32 %v5395_v43, %v1749_v24 }
 0x4db   : > { %v1956_v50 = vmul.f32 %v5397_v45, %v1955_v44  ;;  %v6509_v45 = vrot.slane %v6451_v17, %v6348_v21 }
 0x4dd   : > { %v1957_v51 = vadd.f32 %v1956_v50, %v1954_v46  ;;  %7901 = vst [vmem:[#allocation30_spill] sm:$0xff] %v6509_v45  ;;  %v6512_v46 = vand.u32 2147483647, %v6509_v45  ;;  %v6515_v50 = vpop.permute.xlu1 %1978 }
 0x4df   : > { %v1987_v52 = vsel %vm1750_vm3, %v1957_v51, 0.0 }
 0x4e0   : > { %1988 = vadd.xlane.f32.xlu0 %v1987_v52 }
 0x569   : > { %v1989_v53 = vpop.xlane.xlu0 %1988 }
 0x56a   : > { %v1990_v18 = vmul.f32 0.03125, %v1989_v53 }
 0x56c   : > { %v1991_v54 = vsub.f32 %v1957_v51, %v1990_v18  ;;  %v6520_v51 = vrot.slane %v6451_v17, %v464_v28  ;;  %v6522_v18 = vpop.permute.xlu1 %1983 }
 0x56e   : > { %v1992_v55 = vmul.f32 %v1991_v54, %v1991_v54 }
 0x570   : > { %v1993_v56 = vsel %vm1750_vm3, %v1992_v55, 0.0 }
 0x571   : > { %1994 = vadd.xlane.f32.xlu0 %v1993_v56 }
 0x587   : > { %2012 = vrot.lane.b32.xlu0 %v6409_v61, %s6017_s21 }
 0x58b   : > { %1967 = vrot.lane.b32.xlu0 %v1965_v59, %s6017_s21 }
 0x5fa   : > { %v1995_v8 = vpop.xlane.xlu0 %1994 }
 0x5fb   : > { %v1996_v10 = vmul.f32 0.03125, %v1995_v8  ;;  %v6018_v8 = vmov 0  }
 0x5fd   : > { %v1997_v15 = vadd.f32 1e-05, %v1996_v10  ;;  %v811_v10 = vsel %vm810_vm6, 1, %v6018_v8  ;;  %v7821_v8 = vmov 920167782  }
 0x5fe   : > { %v6479_v29 = vpop.permute.xlu0 %2012 }
 0x5ff   : > { %5398 = vrsqrt.f32 %v1997_v15  ;;  %5012 = vmatpush3.msra.mxu1 %v6479_v29  ;;  %v868_v15 = vsub.s32 5, %v6332_v13 }
 0x600   : > { %5013 = vmatprep.subr.mxu1 %v7825_v22 }
 0x601   : > { %5014 = vmatpush3.msra.mxu1 %v6475_v6 }
 0x602   : > { %v1968_v33 = vpop.permute.xlu0 %1967  ;;  %5015 = vmatprep.subr.mxu1 %v7825_v22 }
 0x603   : > { %v1970_v36 = vsel %vm1750_vm3, %v1968_v33, 0.0  ;;  %5016 = vmatpush3.msra.mxu1 %v6477_v12  ;;  %v815_v33 = vrot.slane %v811_v10, %v6348_v21 }
 0x604   : > { %1971 = vadd.xlane.f32.xlu0 %v1970_v36  ;;  %5017 = vmatprep.subr.mxu1 %v7825_v22 }
 0x605   : > { %5018 = vmatpush3.msra.mxu1 %v6485_v35  ;;  %vm6541_vm7 = vcmp.eq.s32.totalorder %v815_v33, 1 }
 0x606   : > { %2166 = vmatprep.subr.mxu1 %v6322_v4 }
 0x60c   : > { %v5399_v39 = vpop.eup %5398 }
 0x60d   : > { %v1999_v41 = vmul.f32 %v5399_v39, %v1991_v54  ;;  %v686_v54 = vsub.f32 %v6399_v48, %v6520_v51  ;;  %v7902_v39 = vmov 0 }
 0x60e   : > { %v7903_v39 = vsel %vm6541_vm7, 4294967295, %v7902_v39 }
 0x60f   : > { %v2000_v42 = vmul.f32 %v1999_v41, %v6358_v26  ;;  %v698_v40 = vand.u32 2147483647, %v686_v54  ;;  %v708_v5 = vand.u32 2147483648, %v686_v54  ;;  %7904 = vst [vmem:[#allocation31_spill] sm:$0xff] %v7903_v39  ;;  %v869_v41 = vrot.slane %v6451_v17, %v868_v15 }
 0x611   : > { %v6494_v43 = vadd.f32 %v2000_v42, %v6369_v30 }
 0x613   : > { %7900 = vst [vmem:[#allocation29_spill] sm:$0xff] %v6494_v43  ;;  %5020 = vmatmul.mubr.msk.f32.vlgmr.msra.gmra.mxu1 %vm1750_vm3, %v6494_v43 }
 0x614   : > { %2167 = vmatpush1.msra.mxu1 %v6325_v7  ;;  %2206 = vmatprep.mubr.f32.mxu1 %v7825_v22 }
 0x615   : > { %2168 = vmatprep.subr.mxu1 %v6327_v9 }
 0x616   : > { %2169 = vmatpush1.msra.mxu1 %v6330_v11 }
 0x617   : > { %2170 = vmatprep.subr.mxu1 %v6335_v14 }
 0x618   : > { %2171 = vmatpush1.msra.mxu1 %v6338_v16 }
 0x619   : > { %2172 = vmatprep.subr.mxu1 %v6345_v19 }
 0x61a   : > { %2173 = vmatpush1.msra.mxu1 %v6351_v23 }
 0x61b   : > { %5033 = vmatprep.subr.mxu1 %v7825_v22 }
 0x68d   : > { %v1972_v4 = vpop.xlane.xlu0 %1971 }
 0x68e   : > { %v1973_v24 = vmul.f32 0.03125, %v1972_v4 }
 0x690   : > { %v1974_v44 = vadd.f32 1e-05, %v1973_v24 }
 0x692   : > { %5400 = vrsqrt.f32 %v1974_v44 }
 0x693   : > { %5402 = vrcp.f32 %v6512_v46 }
 0x69f   : > { %v5401_v52 = vpop.eup %5400 }
 0x6a0   : > { %v1976_v53 = vmul.f32 %v5401_v52, %v1964_v58  ;;  %v6531_v57 = vpop.eup %5402 }
 0x6a1   : > { %v701_v28 = vmul.f32 %v6531_v57, %v698_v40 }
 0x6a2   : > { %v1981_v55 = vmul.f32 %v6515_v50, %v1976_v53 }
 0x6a3   : > { %v702_v59 = vfloor.f32 %v701_v28 }
 0x6a4   : > { %v6528_v56 = vadd.f32 %v6522_v18, %v1981_v55 }
 0x6a5   : > { %v703_v58 = vmul.f32 %v702_v59, %v6512_v46 }
 0x6a6   : > { %5404 = vtanh.f32 %v6528_v56 }
 0x6a7   : > { %v704_v2 = vsub.f32 %v698_v40, %v703_v58  ;;  %5406 = vrcp.f32 %v6509_v45 }
 0x6a8   : > { %5408 = vrcp.f32 %v869_v41  ;;  %v7823_v41 = vmov 1326507024  }
 0x6a9   : > { %vm705_vm5 = vcmp.eq.f32.partialorder %v704_v2, %v6512_v46 }
 0x6aa   : > { %v706_v48 = vsel %vm705_vm5, 0.0, %v704_v2 }
 0x6ab   : > { %v707_v3 = vand.u32 2147483647, %v706_v48 }
 0x6ad   : > { %v709_v36 = vor.u32 %v708_v5, %v707_v3  ;;  %v7838_v3 = vmov 2102212464  }
 0x6af   : > { %vm802_vm8 = vcmp.lt.f32.partialorder %v709_v36, 0.0  ;;  %vm794_vm9 = vcmp.ne.f32.partialorder %v709_v36, 0.0  ;;  %v833_v42 = vadd.f32 %v709_v36, %v6509_v45 }
 0x6b0   : > { %vm817_vm10 = vmxor %vm802_vm8, %vm6541_vm7 }
 0x6b1   : > { %vm825_vm11 = vmand %vm817_vm10, %vm794_vm9 }
 0x6b2   : > { %v841_v21 = vsel %vm825_vm11, %v833_v42, %v709_v36 }
 0x6b3   : > { %v5405_v60 = vpop.eup %5404 }
 0x6b4   : > { %2099 = vrot.lane.b32.xlu1 %v5405_v60, %s6015_s18  ;;  %v6549_v4 = vpop.eup %5406 }
 0x6b5   : > { %7905 = vst [vmem:[#allocation32_spill] sm:$0xff] %v6549_v4  ;;  %v850_v44 = vmul.f32 %v6549_v4, %v841_v21  ;;  %v6554_v54 = vpop.eup %5408  ;;  %v7828_v21 = vmov 683565275  }
 0x6b6   : > { %7906 = vst [vmem:[#allocation33_spill] sm:$0xff] %v6554_v54 }
 0x6b7   : > { %v858_v53 = vmul.f32 6.2831855, %v850_v44 }
 0x6b9   : > { %v6557_v55 = vmul.f32 %v6554_v54, %v858_v53 }
 0x6bb   : > { %v882_v40 = vand.u32 2139095040, %v6557_v55  ;;  %v879_v15 = vand.u32 2147483647, %v6557_v55  ;;  %vm881_vm6 = vcmp.lt.s32.totalorder %v6557_v55, 0 }
 0x6bd   : > { %v883_v28 = vshrl.u32 %v882_v40, 23  ;;  %vm880_vm8 = vcmp.le.f32.partialorder %v879_v15, 0.7853982 }
 0x6bf   : > { %v4803_v59 = vadd.s32 4294967169, %v883_v28  ;;  %v7836_v28 = vmov 2131351028  }
 0x6c1   : > { %v889_v58 = vadd.s32 1, %v4803_v59 }
 0x6c3   : > { %vm890_vm12 = vcmp.gt.s32.totalorder %v889_v58, 0 }
 0x6c4   : > { %v891_v60 = vsel %vm890_vm12, %v889_v58, 0  ;;  %vm971_vm12 = vweird.f32 %v6557_v55 }
 0x6c5   : > { %v893_v2 = vand.u32 31, %v891_v60  ;;  %v892_v33 = vshrl.u32 %v891_v60, 5 }
 0x6c7   : > { %v894_v48 = vsub.s32 32, %v893_v2  ;;  %v905_v5 = vshll.u32 %v7838_v3, %v893_v2  ;;  %v908_v36 = vshll.u32 %v7821_v8, %v893_v2  ;;  %v896_v44 = vshll.u32 %v7828_v21, %v893_v2 }
 0x6c8   : > { %v902_v58 = vshll.u32 %v7836_v28, %v893_v2  ;;  %vm914_vm13 = vcmp.lt.s32.totalorder %v892_v33, 4  ;;  %vm911_vm14 = vcmp.lt.s32.totalorder %v892_v33, 1  ;;  %vm913_vm15 = vcmp.lt.s32.totalorder %v892_v33, 3 }
 0x6c9   : > { %v906_v10 = vshrl.u32 %v7821_v8, %v894_v48  ;;  %v909_v42 = vshrl.u32 %v7823_v41, %v894_v48  ;;  %v900_v59 = vshrl.u32 %v7836_v28, %v894_v48  ;;  %v903_v60 = vshrl.u32 %v7838_v3, %v894_v48 }
 0x6ca   : > { %v886_v8 = vand.u32 8388607, %v879_v15  ;;  %vm912_vm0 = vcmp.lt.s32.totalorder %v892_v33, 2 }
 0x6cb   : > { %v907_v34 = vor.u32 %v906_v10, %v905_v5  ;;  %v910_v41 = vor.u32 %v909_v42, %v908_v36  ;;  %v904_v21 = vor.u32 %v903_v60, %v902_v58 }
 0x6cc   : > { %v887_v54 = vor.u32 8388608, %v886_v8  ;;  %v7907_v8 = vmov 683565275  }
 0x6cd   : > { %v924_v4 = vsel %vm914_vm13, %v910_v41, 1326507024  ;;  %v895_v58 = vshrl.u32 %v7907_v8, %v894_v48  ;;  %v916_v28 = vsel %vm914_vm13, %v904_v21, 2102212464 }
 0x6ce   : > { %v925_v36 = vsel %vm913_vm15, %v907_v34, %v924_v4  ;;  %v927_v42 = vshll.u32 %v887_v54, 8 }
 0x6d3   : > { %v6551_v24 = vpop.f32.mrf.mxu1 }
 0x6d5   : > { %v5021_v52 = vpop.f32.mrf.mxu1 }
 0x6d6   : > { %v7830_v52 = vmov 2475754826  }
 0x6d7   : > { %v897_v53 = vshrl.u32 %v7830_v52, %v894_v48  ;;  %v899_v40 = vshll.u32 %v7830_v52, %v893_v2  ;;  %v920_v52 = vsel %vm914_vm13, %v907_v34, 920167782  ;;  %vm2132_vm13 = vcmask 523520  }
 0x6d8   : > { %v921_v5 = vsel %vm913_vm15, %v904_v21, %v920_v52 }
 0x6d9   : > { %v898_v22 = vor.u32 %v897_v53, %v896_v44  ;;  %v901_v25 = vor.u32 %v900_v59, %v899_v40 }
 0x6db   : > { %v919_v2 = vsel %vm911_vm14, %v898_v22, %v901_v25  ;;  %v923_v10 = vsel %vm911_vm14, %v901_v25, %v904_v21  ;;  %v915_v52 = vsel %vm911_vm14, %v895_v58, %v898_v22  ;;  %v917_v3 = vsel %vm913_vm15, %v901_v25, %v916_v28 }
 0x6dc   : > { %v922_v44 = vsel %vm912_vm0, %v919_v2, %v921_v5  ;;  %v926_v53 = vsel %vm912_vm0, %v923_v10, %v925_v36  ;;  %v918_v34 = vsel %vm912_vm0, %v915_v52, %v917_v3 }
 0x6dd   : > { %v6581_v40 = vmul.u32.u64.low %v927_v42, %v922_v44  ;;  %v6582_v59 = vmul.u32.u64.high %v927_v42, %v922_v44, %v6581_v40  ;;  %v6585_v41 = vmul.u32.u64.low %v927_v42, %v926_v53  ;;  %v6586_v60 = vmul.u32.u64.high %v927_v42, %v926_v53, %v6585_v41 }
 0x6de   : > { %v934_v54 = vmul.u32 %v927_v42, %v918_v34 }
 0x6df   : > { %v937_v4 = vadd.s32 1, %v6582_v59  ;;  %vm936_vm1 = vc.u32 %v6586_v60, %v6581_v40  ;;  %v935_v42 = vadd.s32 %v6581_v40, %v6586_v60  ;;  %v7908_v40 = vsub.s32 2, %v6332_v13 }
 0x6e1   : > { %v938_v2 = vsel %vm936_vm1, %v937_v4, %v6582_v59  ;;  %v6605_v60 = vrot.slane %v6451_v17, %v7908_v40 }
 0x6e2   : > { %v939_v5 = vadd.s32 %v938_v2, %v934_v54 }
 0x6e4   : > { %v940_v48 = vadd.s32 536870912, %v939_v5 }
 0x6e6   : > { %v941_v36 = vshrl.u32 %v940_v48, 30 }
 0x6e8   : > { %v942_v22 = vshll.u32 %v941_v36, 30 }
 0x6ea   : > { %v943_v21 = vsub.s32 %v939_v5, %v942_v22 }
 0x6ec   : > { %v945_v25 = vsub.s32 0, %v943_v21 }
 0x6ee   : > { %v4804_v33 = vmin.u32 %v945_v25, %v943_v21  ;;  %v2088_v25 = vadd.f32 %v6551_v24, %v6605_v60 }
 0x6f0   : > { %v947_v3 = vclz %v4804_v33 }
 0x6f2   : > { %v4805_v28 = vadd.s32 4294967294, %v947_v3  ;;  %v4841_v3 = vmul.f32 -1.442695, %v2088_v25 }
 0x6f4   : > { %vm4806_vm5 = vcmp.lt.s32.totalorder %v4805_v28, 0 }
 0x6f5   : > { %v950_v53 = vsel %vm4806_vm5, 0, %v4805_v28 }
 0x6f6   : > { %v955_v58 = vsub.s32 4294967266, %v950_v53  ;;  %v951_v59 = vsub.s32 32, %v950_v53  ;;  %v952_v52 = vshll.u32 %v943_v21, %v950_v53  ;;  %v965_v21 = vsub.s32 4, %v941_v36 }
 0x6f8   : > { %v956_v41 = vadd.s32 127, %v955_v58  ;;  %v953_v34 = vshrl.u32 %v935_v42, %v951_v59  ;;  %v966_v33 = vsel %vm881_vm6, %v965_v21, %v941_v36 }
 0x6f9   : > { %v968_v28 = vsel %vm880_vm8, 0, %v966_v33 }
 0x6fa   : > { %v957_v4 = vshll.u32 %v956_v41, 23  ;;  %v954_v54 = vor.u32 %v953_v34, %v952_v52  ;;  %v972_v15 = vand.u32 3, %v968_v28  ;;  %v468_v28 = vld [vmem:[%s6295_s4 + $0x8] sm:$0xff] }
 0x6fb   : > { %4796 = vmatmul.mubr.msk.f32.gmra.mxu0 %vm481_vm2, %v468_v28 }
 0x6fc   : > { %v961_v48 = vcvt.s32.f32 %v954_v54  ;;  %vm974_vm9 = vcmp.eq.s32.totalorder %v972_v15, 0  ;;  %vm977_vm10 = vcmp.eq.s32.totalorder %v972_v15, 2  ;;  %vm973_vm11 = vcmp.lt.s32.totalorder %v972_v15, 2 }
 0x726   : > { %v2100_v10 = vpop.permute.xlu1 %2099 }
 0x727   : > { %v2102_v44 = vmul.f32 %v6432_v1, %v2100_v10  ;;  %v958_v1 = vor.u32 4788187, %v957_v4 }
 0x729   : > { %2104 = vrot.lane.b32.xlu1 %v2102_v44, %s6012_s12  ;;  %v959_v2 = vand.u32 2147483647, %v958_v1 }
 0x72b   : > { %v962_v10 = vmul.f32 %v961_v48, %v959_v2 }
 0x72d   : > { %v963_v5 = vxor.u32 2147483648, %v962_v10 }
 0x72f   : > { %v964_v44 = vsel %vm881_vm6, %v963_v5, %v962_v10 }
 0x730   : > { %v967_v22 = vsel %vm880_vm8, %v6557_v55, %v964_v44 }
 0x731   : > { %5410 = vcosq.f32 %v967_v22 }
 0x732   : > { %5412 = vsinq.f32 %v967_v22 }
 0x733   : > { %5414 = vpow2.f32 %v4841_v3 }
 0x73e   : > { %v5411_v53 = vpop.eup %5410 }
 0x73f   : > { %v5413_v58 = vpop.eup %5412  ;;  %v978_v59 = vxor.u32 2147483648, %v5411_v53 }
 0x740   : > { %v975_v42 = vxor.u32 2147483648, %v5413_v58  ;;  %v5415_v52 = vpop.eup %5414 }
 0x741   : > { %v979_v41 = vsel %vm977_vm10, %v978_v59, %v5413_v58  ;;  %v2094_v24 = vadd.f32 1.0, %v5415_v52 }
 0x742   : > { %v976_v13 = vsel %vm974_vm9, %v5411_v53, %v975_v42  ;;  %v7909_v53 = vmov 0.0  }
 0x743   : > { %v980_v17 = vsel %vm973_vm11, %v976_v13, %v979_v41  ;;  %5416 = vrcp.f32 %v2094_v24  ;;  %589 = vmatprep.mubr.f32.mxu0 %v7909_v53 }
 0x744   : > { %v981_v34 = vsel %vm971_vm12, nan, %v980_v17  ;;  %5418 = vtanh.f32 %v6494_v43 }
 0x745   : > { %v1703_v36 = vadd.f32 1.0, %v981_v34 }
 0x747   : > { %v1711_v4 = vmul.f32 0.5, %v1703_v36 }
 0x749   : > { %v1719_v54 = vmax.f32 %v1711_v4, 0.0 }
 0x74b   : > { %v1727_v1 = vmin.f32 %v1719_v54, 1.0 }
 0x74d   : > { %v2108_v2 = vsub.f32 1.0, %v1727_v1 }
 0x74f   : > { %v2109_v5 = vmul.f32 %v2108_v2, %v6362_v27 }
 0x750   : > { %v5417_v48 = vpop.eup %5416 }
 0x751   : > { %v2112_v22 = vsub.f32 1.0, %v5417_v48  ;;  %v5419_v40 = vpop.eup %5418 }
 0x753   : > { %v2114_v25 = vmul.f32 %v5419_v40, %v2112_v22 }
 0x79b   : > { %v2105_v10 = vpop.permute.xlu1 %2104 }
 0x79c   : > { %v2107_v44 = vmul.f32 %v2105_v10, %v1727_v1 }
 0x79e   : > { %v2110_v55 = vadd.f32 %v2109_v5, %v2107_v44 }
 0x7a0   : > { %v2111_v21 = vmul.f32 %v5417_v48, %v2110_v55 }
 0x7a2   : > { %v2115_v33 = vadd.f32 %v2114_v25, %v2111_v21 }
 0x7a4   : > { %v2116_v3 = vsel %vm1750_vm3, %v2115_v33, 0.0 }
 0x7a5   : > { %2117 = vadd.xlane.f32.xlu1 %v2116_v3 }
 0x7bb   : > { %v585_v4 = vpop.f32.mrf.mxu0 }
 0x7bd   : > { %v587_v1 = vpop.f32.mrf.mxu0 }
 0x82e   : > { %v2118_v58 = vpop.xlane.xlu1 %2117 }
 0x82f   : > { %v2119_v15 = vmul.f32 0.03125, %v2118_v58 }
 0x831   : > { %v2120_v42 = vsub.f32 %v2115_v33, %v2119_v15 }
 0x833   : > { %v2121_v27 = vmul.f32 %v2120_v42, %v2120_v42 }
 0x835   : > { %v2122_v59 = vsel %vm1750_vm3, %v2121_v27, 0.0 }
 0x836   : > { %2123 = vadd.xlane.f32.xlu0 %v2122_v59 }
 0x84c   : > { %631 = vperm.xlu0 %5379, %v468_v28  }
 0x8bf   : > { %v2124_v13 = vpop.xlane.xlu0 %2123 }
 0x8c0   : > { %v2125_v41 = vmul.f32 0.03125, %v2124_v13  ;;  %v6650_v13 = vld [vmem:[%s6295_s4 + $0x10] sm:$0xff] }
 0x8c1   : > { %4797 = vmatmul.mubr.msk.f32.gmra.mxu0 %vm481_vm2, %v6650_v13 }
 0x8c2   : > { %v2126_v17 = vadd.f32 1e-05, %v2125_v41  ;;  %595 = vmatprep.mubr.f32.mxu0 %v7909_v53  ;;  %v470_v41 = vld [vmem:[%s6295_s4 + $0x18] sm:$0xff] }
 0x8c4   : > { %5420 = vrsqrt.f32 %v2126_v17  ;;  %v471_v17 = vld [vmem:[%s6295_s4 + $0x20] sm:$0xff] }
 0x8c5   : > { %4798 = vmatmul.mubr.msk.f32.gmra.mxu0 %vm481_vm2, %v470_v41 }
 0x8c6   : > { %601 = vmatprep.mubr.f32.mxu0 %v7909_v53 }
 0x8c7   : > { %v6643_v40 = vpop.permute.xlu0 %631 }
 0x8c8   : > { %v663_v21 = vmul.f32 %v6397_v47, %v6643_v40 }
 0x8c9   : > { %4799 = vmatmul.mubr.msk.f32.gmra.mxu0 %vm481_vm2, %v471_v17 }
 0x8ca   : > { %v675_v3 = vadd.f32 %v6402_v49, %v663_v21  ;;  %607 = vmatprep.mubr.f32.mxu0 %v7909_v53 }
 0x8d1   : > { %v5421_v52 = vpop.eup %5420 }
 0x8d2   : > { %v2128_v34 = vmul.f32 %v5421_v52, %v2120_v42 }
 0x8d4   : > { %v2129_v24 = vmul.f32 %v2128_v34, %v6373_v31 }
 0x8d6   : > { %v6619_v36 = vadd.f32 %v2129_v24, %v6379_v32 }
 0x8d8   : > { %4842 = vmatmul.mubr.msk.f32.vlgmr.msra.gmra.mxu1 %vm1750_vm3, %v6619_v36  ;;  %2131 = vst.msk [vmem:[%s6319_s14] sm:$0xff] %vm1750_vm3, %v6619_v36 }
 0x8d9   : > { %5034 = vmatpush3.msra.mxu1 %v6479_v29  ;;  %5041 = vmatprep.mubr.msk.f32.mxu1 %vm6016_vm4, %v7909_v53  ;;  %2133 = vst.msk [vmem:[%s6319_s14] sm:$0xff] %vm2132_vm13, %v6528_v56 }
 0x8da   : > { %5035 = vmatprep.subr.mxu1 %v7909_v53 }
 0x8db   : > { %5036 = vmatpush3.msra.mxu1 %v6475_v6 }
 0x8dc   : > { %5037 = vmatprep.subr.mxu1 %v7909_v53 }
 0x8dd   : > { %5038 = vmatpush3.msra.mxu1 %v6477_v12 }
 0x8de   : > { %5039 = vmatprep.subr.mxu1 %v7909_v53 }
 0x8df   : > { %5040 = vmatpush3.msra.mxu1 %v6485_v35 }
 0x8e0   : > { %5044 = vmatprep.subr.mxu1 %v7909_v53 }
 0x998   : > { %v2208_v54 = vpop.f32.mrf.mxu1 }
 0x99a   : > { %v2210_v2 = vpop.f32.mrf.mxu1 }
 0x99b   : > { %v6639_v48 = vadd.f32 %v2210_v2, %v587_v1  ;;  %v474_v1 = vld [vmem:[%s6295_s4 + $0x38] sm:$0xff] }
 0x99d   : > { %v2214_v10 = vadd.f32 %v6639_v48, %v6387_v37 }
 0x99f   : > { %v4843_v5 = vmul.f32 -1.442695, %v2214_v10 }
 0x9a1   : > { %5422 = vpow2.f32 %v4843_v5 }
 0x9ae   : > { %v5423_v44 = vpop.eup %5422 }
 0x9af   : > { %v2218_v22 = vadd.f32 1.0, %v5423_v44 }
 0x9b1   : > { %5424 = vrcp.f32 %v2218_v22 }
 0x9be   : > { %v5425_v55 = vpop.eup %5424 }
 0x9bf   : > { %2223 = vperm.xlu1 %5380, %v5425_v55  }
 0xa3a   : > { %v2224_v25 = vpop.permute.xlu1 %2223 }
 0xa3b   : > { %v2226_v33 = vmul.f32 %v2224_v25, %v585_v4  ;;  %v472_v4 = vld [vmem:[%s6295_s4 + $0x28] sm:$0xff] }
 0xa3c   : > { %4800 = vmatmul.mubr.msk.f32.gmra.mxu0 %vm481_vm2, %v472_v4 }
 0xa3d   : > { %v2227_v28 = vadd.f32 %v2226_v33, %v2208_v54  ;;  %613 = vmatprep.mubr.f32.mxu0 %v7909_v53  ;;  %v473_v54 = vld [vmem:[%s6295_s4 + $0x30] sm:$0xff] }
 0xa3f   : > { %v2228_v58 = vadd.f32 %v2227_v28, %v675_v3 }
 0xa40   : > { %4801 = vmatmul.mubr.msk.f32.gmra.mxu0 %vm481_vm2, %v473_v54 }
 0xa41   : > { %5426 = vtanh.f32 %v2228_v58  ;;  %v4844_v42 = vmul.f32 -1.442695, %v2228_v58  ;;  %619 = vmatprep.mubr.f32.mxu0 %v7909_v53 }
 0xa43   : > { %5428 = vpow2.f32 %v4844_v42 }
 0xa44   : > { %4802 = vmatmul.mubr.msk.f32.gmra.mxu0 %vm481_vm2, %v474_v1 }
 0xa45   : > { %5030 = vmatprep.mubr.msk.f32.mxu0 %vm6016_vm4, %v7909_v53 }
 0xa4e   : > { %v5427_v15 = vpop.eup %5426 }
 0xa4f   : > { %2238 = vrot.lane.b32.xlu0 %v5427_v15, %s6015_s18 }
 0xa50   : > { %v5429_v27 = vpop.eup %5428 }
 0xa51   : > { %v2232_v59 = vadd.f32 1.0, %v5429_v27  ;;  %v2247_v27 = vadd.f32 %v6639_v48, %v6460_v38 }
 0xa53   : > { %5430 = vrcp.f32 %v2232_v59 }
 0xa60   : > { %v6659_v52 = vpop.eup %5430 }
 0xa61   : > { %v2236_v2 = vmul.f32 %v6659_v52, %v6528_v56  ;;  %v6689_v56 = vpop.f32.mrf.mxu0 }
 0xa63   : > { %v6691_v55 = vpop.f32.mrf.mxu0 }
 0xac1   : > { %v2239_v34 = vpop.permute.xlu0 %2238 }
 0xac2   : > { %v2241_v24 = vmul.f32 %v6659_v52, %v2239_v34 }
 0xac4   : > { %2243 = vrot.lane.b32.xlu0 %v2241_v24, %s6012_s12 }
 0xb36   : > { %v2244_v10 = vpop.permute.xlu0 %2243 }
 0xb37   : > { %v2246_v5 = vadd.f32 %v2244_v10, %v2236_v2 }
 0xb39   : > { %2250 = vrot.lane.b32.xlu0 %v2246_v5, %s6017_s21 }
 0xbab   : > { %v2251_v44 = vpop.permute.xlu0 %2250 }
 0xbac   : > { %5031 = vmatmul.mubr.msk.f32.vlgmr.msra.gmra.mxu0 %vm1750_vm3, %v2251_v44  ;;  %v2335_v22 = vsel %vm1750_vm3, %v2251_v44, 0.0 }
 0xbad   : > { %2336 = vadd.xlane.f32.xlu1 %v2335_v22  ;;  %2517 = vmatpush1.msra.mxu0 %v6325_v7  ;;  %v6693_v7 = vpop.f32.mrf.mxu0 }
 0xbae   : > { %2518 = vmatprep.subr.mxu0 %v6327_v9  ;;  %2556 = vmatprep.mubr.f32.mxu0 %v7909_v53  ;;  %7910 = vst [vmem:[#allocation34_spill] sm:$0xff] %v6693_v7 }
 0xbaf   : > { %2519 = vmatpush1.msra.mxu0 %v6330_v11  ;;  %v6695_v9 = vpop.f32.mrf.mxu0 }
 0xbb0   : > { %2520 = vmatprep.subr.mxu0 %v6335_v14 }
 0xbb1   : > { %2521 = vmatpush1.msra.mxu0 %v6338_v16  ;;  %v6697_v21 = vpop.f32.mrf.mxu0 }
 0xbb2   : > { %2522 = vmatprep.subr.mxu0 %v6345_v19  ;;  %7911 = vst [vmem:[#allocation35_spill] sm:$0xff] %v6697_v21 }
 0xbb3   : > { %2523 = vmatpush1.msra.mxu0 %v6351_v23  ;;  %v6699_v11 = vpop.f32.mrf.mxu0 }
 0xbb4   : > { %5055 = vmatprep.subr.mxu0 %v7909_v53  ;;  %7912 = vst [vmem:[#allocation36_spill] sm:$0xff] %v6699_v11 }
 0xbb5   : > { %v6701_v14 = vpop.f32.mrf.mxu0 }
 0xbb6   : > { %7913 = vst [vmem:[#allocation37_spill] sm:$0xff] %v6701_v14 }
 0xbb7   : > { %v6703_v16 = vpop.f32.mrf.mxu0 }
 0xbb8   : > { %7914 = vst [vmem:[#allocation38_spill] sm:$0xff] %v6703_v16 }
 0xbb9   : > { %v6705_v19 = vpop.f32.mrf.mxu0 }
 0xbba   : > { %7915 = vst [vmem:[#allocation39_spill] sm:$0xff] %v6705_v19 }
 0xbbb   : > { %v6707_v23 = vpop.f32.mrf.mxu0 }
 0xbbc   : > { %7916 = vst [vmem:[#allocation40_spill] sm:$0xff] %v6707_v23 }
 0xbbd   : > { %v6709_v25 = vpop.f32.mrf.mxu0 }
 0xbbe   : > { %7917 = vst [vmem:[#allocation41_spill] sm:$0xff] %v6709_v25 }
 0xbbf   : > { %v6711_v33 = vpop.f32.mrf.mxu0 }
 0xbc0   : > { %7918 = vst [vmem:[#allocation42_spill] sm:$0xff] %v6711_v33 }
 0xc36   : > { %v2337_v48 = vpop.xlane.xlu1 %2336 }
 0xc6c   : > { %v2320_v3 = vpop.f32.mrf.mxu0 }
 0xc6d   : > { %v2321_v28 = vadd.f32 %v2320_v3, %v6455_v20 }
 0xc6e   : > { %v5032_v58 = vpop.f32.mrf.mxu0 }
 0xc6f   : > { %v4846_v15 = vmul.f32 -1.442695, %v2321_v28  ;;  %v2338_v28 = vmul.f32 0.03125, %v2337_v48 }
 0xc71   : > { %5432 = vpow2.f32 %v4846_v15  ;;  %v2339_v58 = vsub.f32 %v2246_v5, %v2338_v28  ;;  %v6736_v5 = vld [vmem:[#allocation11 + $0x38] sm:$0xff] }
 0xc73   : > { %v2340_v15 = vmul.f32 %v2339_v58, %v2339_v58 }
 0xc7e   : > { %v5433_v42 = vpop.eup %5432 }
 0xc7f   : > { %v2327_v59 = vadd.f32 1.0, %v5433_v42 }
 0xc81   : > { %5434 = vrcp.f32 %v2327_v59 }
 0xc82   : > { %5436 = vtanh.f32 %v2247_v27 }
 0xc8e   : > { %v5435_v41 = vpop.eup %5434 }
 0xc8f   : > { %v2331_v17 = vsub.f32 1.0, %v5435_v41  ;;  %v5437_v34 = vpop.eup %5436  ;;  %v2330_v24 = vmul.f32 %v5435_v41, %v6494_v43 }
 0xc91   : > { %v2332_v4 = vmul.f32 %v5437_v34, %v2331_v17 }
 0xc93   : > { %v2333_v54 = vadd.f32 %v2332_v4, %v2330_v24 }
 0xc95   : > { %v2354_v1 = vsel %vm1750_vm3, %v2333_v54, 0.0 }
 0xc96   : > { %2355 = vadd.xlane.f32.xlu0 %v2354_v1 }
 0xd1f   : > { %v2356_v2 = vpop.xlane.xlu0 %2355 }
 0xd20   : > { %v2357_v10 = vmul.f32 0.03125, %v2356_v2 }
 0xd22   : > { %v2358_v44 = vsub.f32 %v2333_v54, %v2357_v10 }
 0xd24   : > { %v2359_v22 = vmul.f32 %v2358_v44, %v2358_v44 }
 0xd26   : > { %v2360_v3 = vsel %vm1750_vm3, %v2359_v22, 0.0 }
 0xd27   : > { %2361 = vadd.xlane.f32.xlu0 %v2360_v3 }
 0xd3d   : > { %2342 = vrot.lane.b32.xlu0 %v2340_v15, %s6017_s21 }
 0xdb0   : > { %v2362_v42 = vpop.xlane.xlu0 %2361 }
 0xdb1   : > { %v2363_v27 = vmul.f32 0.03125, %v2362_v42 }
 0xdb3   : > { %v2364_v59 = vadd.f32 1e-05, %v2363_v27 }
 0xdb4   : > { %v2343_v41 = vpop.permute.xlu0 %2342 }
 0xdb5   : > { %5438 = vrsqrt.f32 %v2364_v59  ;;  %v2345_v17 = vsel %vm1750_vm3, %v2343_v41, 0.0 }
 0xdb6   : > { %2346 = vadd.xlane.f32.xlu1 %v2345_v17 }
 0xdc2   : > { %v5439_v34 = vpop.eup %5438 }
 0xdc3   : > { %v2366_v24 = vmul.f32 %v5439_v34, %v2358_v44  ;;  %v7920_v34 = vld [vmem:[#allocation32_spill] sm:$0xff] }
 0xdc5   : > { %v2367_v4 = vmul.f32 %v2366_v24, %v6358_v26 }
 0xdc7   : > { %v6723_v54 = vadd.f32 %v2367_v4, %v6369_v30 }
 0xdc9   : > { %7919 = vst [vmem:[#allocation43_spill] sm:$0xff] %v6723_v54  ;;  %5042 = vmatmul.mubr.msk.f32.vlgmr.msra.gmra.mxu1 %vm1750_vm3, %v6723_v54 }
 0xdca   : > { %5045 = vmatpush3.msra.mxu1 %v6409_v61  ;;  %5052 = vmatprep.mubr.msk.f32.mxu1 %vm6016_vm4, %v7909_v53 }
 0xdcb   : > { %5046 = vmatprep.subr.mxu1 %v7909_v53 }
 0xdcc   : > { %5047 = vmatpush3.msra.mxu1 %v6411_v62  ;;  %v687_v62 = vsub.f32 %v6643_v40, %v6520_v51 }
 0xdcd   : > { %5048 = vmatprep.subr.mxu1 %v7909_v53 }
 0xdce   : > { %5049 = vmatpush3.msra.mxu1 %v6417_v63  ;;  %v710_v3 = vand.u32 2147483647, %v687_v62  ;;  %v720_v27 = vand.u32 2147483648, %v687_v62 }
 0xdcf   : > { %5050 = vmatprep.subr.mxu1 %v7909_v53 }
 0xdd0   : > { %5051 = vmatpush3.msra.mxu1 %v6423_v0  ;;  %v713_v0 = vmul.f32 %v6531_v57, %v710_v3 }
 0xdd1   : > { %2866 = vmatprep.subr.mxu1 %v6736_v5 }
 0xdd2   : > { %v714_v48 = vfloor.f32 %v713_v0 }
 0xdd4   : > { %v715_v28 = vmul.f32 %v714_v48, %v6512_v46 }
 0xe3f   : > { %v2347_v61 = vpop.xlane.xlu1 %2346 }
 0xe40   : > { %v2348_v1 = vmul.f32 0.03125, %v2347_v61 }
 0xe42   : > { %v2349_v2 = vadd.f32 1e-05, %v2348_v1 }
 0xe44   : > { %5440 = vrsqrt.f32 %v2349_v2  ;;  %v7921_v2 = vld [vmem:[#allocation33_spill] sm:$0xff] }
 0xe51   : > { %v5441_v10 = vpop.eup %5440 }
 0xe52   : > { %v2351_v44 = vmul.f32 %v5441_v10, %v2339_v58  ;;  %v716_v58 = vsub.f32 %v710_v3, %v715_v28 }
 0xe54   : > { %v2352_v22 = vmul.f32 %v2351_v44, %v6515_v50  ;;  %vm717_vm2 = vcmp.eq.f32.partialorder %v716_v58, %v6512_v46 }
 0xe55   : > { %v718_v40 = vsel %vm717_vm2, 0.0, %v716_v58 }
 0xe56   : > { %v6743_v63 = vadd.f32 %v2352_v22, %v6522_v18  ;;  %v719_v42 = vand.u32 2147483647, %v718_v40  ;;  %v7923_v40 = vmov 1326507024  }
 0xe58   : > { %5442 = vtanh.f32 %v6743_v63  ;;  %v721_v59 = vor.u32 %v720_v27, %v719_v42 }
 0xe5a   : > { %vm803_vm14 = vcmp.lt.f32.partialorder %v721_v59, 0.0  ;;  %vm795_vm15 = vcmp.ne.f32.partialorder %v721_v59, 0.0  ;;  %v834_v41 = vadd.f32 %v721_v59, %v6509_v45 }
 0xe5b   : > { %vm818_vm0 = vmxor %vm803_vm14, %vm6541_vm7 }
 0xe5c   : > { %vm826_vm1 = vmand %vm818_vm0, %vm795_vm15 }
 0xe5d   : > { %v842_v17 = vsel %vm826_vm1, %v834_v41, %v721_v59  ;;  %v7924_v41 = vmov 2102212464  }
 0xe5e   : > { %v851_v24 = vmul.f32 %v7920_v34, %v842_v17 }
 0xe60   : > { %v859_v61 = vmul.f32 6.2831855, %v851_v24  ;;  %v7925_v24 = vmov 2475754826  }
 0xe62   : > { %v6757_v10 = vmul.f32 %v7921_v2, %v859_v61 }
 0xe64   : > { %v985_v44 = vand.u32 2139095040, %v6757_v10  ;;  %v7841_v27 = vand.u32 2147483647, %v6757_v10  ;;  %vm984_vm2 = vcmp.lt.s32.totalorder %v6757_v10, 0 }
 0xe65   : > { %v5443_v15 = vpop.eup %5442 }
 0xe66   : > { %2450 = vrot.lane.b32.xlu1 %v5443_v15, %s6015_s18  ;;  %v986_v62 = vshrl.u32 %v985_v44, 23  ;;  %v7922_v15 = vmov 920167782  }
 0xe68   : > { %v4807_v22 = vadd.s32 4294967169, %v986_v62 }
 0xe6a   : > { %v992_v3 = vadd.s32 1, %v4807_v22 }
 0xe6c   : > { %vm993_vm5 = vcmp.gt.s32.totalorder %v992_v3, 0 }
 0xe6d   : > { %v994_v0 = vsel %vm993_vm5, %v992_v3, 0  ;;  %vm1074_vm5 = vweird.f32 %v6757_v10 }
 0xe6e   : > { %v996_v48 = vand.u32 31, %v994_v0  ;;  %v995_v59 = vshrl.u32 %v994_v0, 5  ;;  %v989_v0 = vand.u32 8388607, %v7841_v27 }
 0xe70   : > { %v997_v28 = vsub.s32 32, %v996_v48  ;;  %v1008_v17 = vshll.u32 %v7924_v41, %v996_v48  ;;  %v1011_v62 = vshll.u32 %v7922_v15, %v996_v48  ;;  %v999_v3 = vshll.u32 %v7907_v8, %v996_v48 }
 0xe71   : > { %v1002_v25 = vshll.u32 %v7925_v24, %v996_v48  ;;  %vm1017_vm6 = vcmp.lt.s32.totalorder %v995_v59, 4  ;;  %vm1014_vm8 = vcmp.lt.s32.totalorder %v995_v59, 1  ;;  %vm1016_vm9 = vcmp.lt.s32.totalorder %v995_v59, 3 }
 0xe72   : > { %v1009_v58 = vshrl.u32 %v7922_v15, %v997_v28  ;;  %v1012_v42 = vshrl.u32 %v7923_v40, %v997_v28  ;;  %v1000_v61 = vshrl.u32 %v7925_v24, %v997_v28  ;;  %v1006_v44 = vshrl.u32 %v7924_v41, %v997_v28 }
 0xe73   : > { %vm1015_vm10 = vcmp.lt.s32.totalorder %v995_v59, 2 }
 0xe74   : > { %v1010_v22 = vor.u32 %v1009_v58, %v1008_v17  ;;  %v1013_v19 = vor.u32 %v1012_v42, %v1011_v62  ;;  %v1001_v23 = vor.u32 %v1000_v61, %v999_v3  ;;  %v990_v58 = vor.u32 8388608, %v989_v0 }
 0xe75   : > { %v998_v0 = vshrl.u32 %v7907_v8, %v997_v28 }
 0xe76   : > { %v1023_v21 = vsel %vm1017_vm6, %v1010_v22, 920167782  ;;  %v1027_v11 = vsel %vm1017_vm6, %v1013_v19, 1326507024 }
 0xe77   : > { %v1028_v42 = vsel %vm1016_vm9, %v1010_v22, %v1027_v11 }
 0xe89   : > { %v6754_v4 = vpop.f32.mrf.mxu1 }
 0xe8b   : > { %v5043_v1 = vpop.f32.mrf.mxu1 }
 0xe8c   : > { %v7926_v1 = vmov 2131351028  }
 0xe8d   : > { %v1003_v43 = vshrl.u32 %v7926_v1, %v997_v28  ;;  %v1005_v33 = vshll.u32 %v7926_v1, %v996_v48 }
 0xe8f   : > { %v1004_v14 = vor.u32 %v1003_v43, %v1002_v25  ;;  %v1007_v16 = vor.u32 %v1006_v44, %v1005_v33  ;;  %v1030_v25 = vshll.u32 %v990_v58, 8 }
 0xe91   : > { %v1022_v17 = vsel %vm1014_vm8, %v1001_v23, %v1004_v14  ;;  %v1024_v7 = vsel %vm1016_vm9, %v1007_v16, %v1023_v21  ;;  %v1026_v48 = vsel %vm1014_vm8, %v1004_v14, %v1007_v16  ;;  %v1019_v3 = vsel %vm1017_vm6, %v1007_v16, 2102212464 }
 0xe92   : > { %v1025_v61 = vsel %vm1015_vm10, %v1022_v17, %v1024_v7  ;;  %v1029_v43 = vsel %vm1015_vm10, %v1026_v48, %v1028_v42  ;;  %v1018_v21 = vsel %vm1014_vm8, %v998_v0, %v1001_v23  ;;  %v1020_v27 = vsel %vm1016_vm9, %v1004_v14, %v1019_v3 }
 0xe93   : > { %v6779_v33 = vmul.u32.u64.low %v1030_v25, %v1025_v61  ;;  %v6780_v44 = vmul.u32.u64.high %v1030_v25, %v1025_v61, %v6779_v33  ;;  %v6782_v62 = vmul.u32.u64.low %v1030_v25, %v1029_v43  ;;  %v6783_v19 = vmul.u32.u64.high %v1030_v25, %v1029_v43, %v6782_v62 }
 0xe94   : > { %v1021_v7 = vsel %vm1015_vm10, %v1018_v21, %v1020_v27 }
 0xe95   : > { %v1040_v11 = vadd.s32 1, %v6780_v44  ;;  %vm1039_vm11 = vc.u32 %v6783_v19, %v6779_v33  ;;  %v1037_v58 = vmul.u32 %v1030_v25, %v1021_v7  ;;  %v1038_v25 = vadd.s32 %v6779_v33, %v6783_v19 }
 0xe96   : > { %v2439_v33 = vadd.f32 %v6754_v4, %v6605_v60 }
 0xe97   : > { %v1041_v22 = vsel %vm1039_vm11, %v1040_v11, %v6780_v44 }
 0xe98   : > { %v1042_v17 = vadd.s32 %v1041_v22, %v1037_v58 }
 0xe9a   : > { %v1043_v48 = vadd.s32 536870912, %v1042_v17 }
 0xe9c   : > { %v1044_v61 = vshrl.u32 %v1043_v48, 30 }
 0xe9e   : > { %v1045_v28 = vshll.u32 %v1044_v61, 30  ;;  %v1068_v19 = vsub.s32 4, %v1044_v61 }
 0xea0   : > { %v1046_v23 = vsub.s32 %v1042_v17, %v1045_v28  ;;  %v7927_v28 = vand.u32 2147483647, %v6757_v10 }
 0xea2   : > { %v1048_v59 = vsub.s32 0, %v1046_v23  ;;  %vm983_vm14 = vcmp.le.f32.partialorder %v7927_v28, 0.7853982 }
 0xea4   : > { %v4808_v14 = vmin.u32 %v1048_v59, %v1046_v23 }
 0xea6   : > { %v1050_v43 = vclz %v4808_v14  ;;  %v1069_v14 = vsel %vm984_vm2, %v1068_v19, %v1044_v61 }
 0xea8   : > { %v4809_v62 = vadd.s32 4294967294, %v1050_v43 }
 0xeaa   : > { %vm4810_vm12 = vcmp.lt.s32.totalorder %v4809_v62, 0 }
 0xeab   : > { %v1053_v3 = vsel %vm4810_vm12, 0, %v4809_v62  ;;  %v1071_v62 = vsel %vm983_vm14, 0, %v1069_v14 }
 0xeac   : > { %v1058_v27 = vsub.s32 4294967266, %v1053_v3  ;;  %v1054_v44 = vsub.s32 32, %v1053_v3  ;;  %v1055_v7 = vshll.u32 %v1046_v23, %v1053_v3  ;;  %v4848_v23 = vmul.f32 -1.442695, %v2439_v33 }
 0xeae   : > { %v1059_v0 = vadd.s32 127, %v1058_v27  ;;  %v1056_v11 = vshrl.u32 %v1038_v25, %v1054_v44  ;;  %v1075_v27 = vand.u32 3, %v1071_v62 }
 0xeb0   : > { %v1060_v21 = vshll.u32 %v1059_v0, 23  ;;  %vm1077_vm15 = vcmp.eq.s32.totalorder %v1075_v27, 0  ;;  %vm1080_vm0 = vcmp.eq.s32.totalorder %v1075_v27, 2  ;;  %vm1076_vm1 = vcmp.lt.s32.totalorder %v1075_v27, 2 }
 0xeb2   : > { %v1061_v22 = vor.u32 4788187, %v1060_v21 }
 0xeb4   : > { %v1062_v58 = vand.u32 2147483647, %v1061_v22 }
 0xed8   : > { %v2451_v42 = vpop.permute.xlu1 %2450 }
 0xed9   : > { %v2453_v16 = vmul.f32 %v6659_v52, %v2451_v42  ;;  %v1057_v52 = vor.u32 %v1056_v11, %v1055_v7 }
 0xedb   : > { %2455 = vrot.lane.b32.xlu0 %v2453_v16, %s6012_s12  ;;  %v1064_v48 = vcvt.s32.f32 %v1057_v52 }
 0xedd   : > { %v1065_v42 = vmul.f32 %v1064_v48, %v1062_v58 }
 0xedf   : > { %v1066_v17 = vxor.u32 2147483648, %v1065_v42 }
 0xee1   : > { %v1067_v16 = vsel %vm984_vm2, %v1066_v17, %v1065_v42 }
 0xee2   : > { %v1070_v59 = vsel %vm983_vm14, %v6757_v10, %v1067_v16 }
 0xee3   : > { %5444 = vcosq.f32 %v1070_v59 }
 0xee4   : > { %5446 = vsinq.f32 %v1070_v59 }
 0xee5   : > { %5448 = vpow2.f32 %v4848_v23 }
 0xef0   : > { %v5445_v43 = vpop.eup %5444 }
 0xef1   : > { %v5447_v3 = vpop.eup %5446  ;;  %v1081_v44 = vxor.u32 2147483648, %v5445_v43 }
 0xef2   : > { %v1078_v0 = vxor.u32 2147483648, %v5447_v3  ;;  %v5449_v7 = vpop.eup %5448 }
 0xef3   : > { %v1082_v21 = vsel %vm1080_vm0, %v1081_v44, %v5447_v3  ;;  %v2445_v22 = vadd.f32 1.0, %v5449_v7 }
 0xef4   : > { %v1079_v25 = vsel %vm1077_vm15, %v5445_v43, %v1078_v0 }
 0xef5   : > { %v1083_v11 = vsel %vm1076_vm1, %v1079_v25, %v1082_v21  ;;  %5450 = vrcp.f32 %v2445_v22 }
 0xef6   : > { %v1084_v4 = vsel %vm1074_vm5, nan, %v1083_v11  ;;  %5452 = vtanh.f32 %v6723_v54 }
 0xef7   : > { %v1704_v52 = vadd.f32 1.0, %v1084_v4 }
 0xef9   : > { %v1712_v61 = vmul.f32 0.5, %v1704_v52 }
 0xefb   : > { %v1720_v58 = vmax.f32 %v1712_v61, 0.0 }
 0xefd   : > { %v1728_v48 = vmin.f32 %v1720_v58, 1.0 }
 0xeff   : > { %v2459_v42 = vsub.f32 1.0, %v1728_v48 }
 0xf01   : > { %v2460_v59 = vmul.f32 %v2459_v42, %v6619_v36 }
 0xf02   : > { %v5451_v17 = vpop.eup %5450 }
 0xf03   : > { %v2463_v33 = vsub.f32 1.0, %v5451_v17  ;;  %v5453_v23 = vpop.eup %5452 }
 0xf05   : > { %v2465_v14 = vmul.f32 %v5453_v23, %v2463_v33 }
 0xf4d   : > { %v2456_v16 = vpop.permute.xlu0 %2455 }
 0xf4e   : > { %v2458_v28 = vmul.f32 %v2456_v16, %v1728_v48 }
 0xf50   : > { %v2461_v19 = vadd.f32 %v2460_v59, %v2458_v28 }
 0xf52   : > { %v2462_v10 = vmul.f32 %v5451_v17, %v2461_v19 }
 0xf54   : > { %v2466_v43 = vadd.f32 %v2465_v14, %v2462_v10 }
 0xf56   : > { %v2467_v62 = vsel %vm1750_vm3, %v2466_v43, 0.0 }
 0xf57   : > { %2468 = vadd.xlane.f32.xlu1 %v2467_v62 }
 0xfe0   : > { %v2469_v3 = vpop.xlane.xlu1 %2468 }
 0xfe1   : > { %v2470_v27 = vmul.f32 0.03125, %v2469_v3 }
 0xfe3   : > { %v2471_v0 = vsub.f32 %v2466_v43, %v2470_v27 }
 0xfe5   : > { %v2472_v44 = vmul.f32 %v2471_v0, %v2471_v0 }
 0xfe7   : > { %v2473_v25 = vsel %vm1750_vm3, %v2472_v44, 0.0 }
 0xfe8   : > { %2474 = vadd.xlane.f32.xlu0 %v2473_v25 }
 0xffe   : > { %635 = vperm.xlu0 %5379, %v6650_v13  }
0x1071   : > { %v2475_v36 = vpop.xlane.xlu0 %2474 }
0x1072   : > { %v2476_v21 = vmul.f32 0.03125, %v2475_v36 }
0x1074   : > { %v2477_v11 = vadd.f32 1e-05, %v2476_v21 }
0x1076   : > { %5454 = vrsqrt.f32 %v2477_v11 }
0x1079   : > { %v6831_v59 = vpop.permute.xlu0 %635 }
0x107a   : > { %v664_v33 = vmul.f32 %v6397_v47, %v6831_v59 }
0x107c   : > { %v676_v10 = vadd.f32 %v6402_v49, %v664_v33 }
0x1083   : > { %v5455_v7 = vpop.eup %5454 }
0x1084   : > { %v2479_v4 = vmul.f32 %v5455_v7, %v2471_v0 }
0x1086   : > { %v2480_v22 = vmul.f32 %v2479_v4, %v6373_v31  ;;  %v6847_v4 = vld [vmem:[#allocation11 + $0x30] sm:$0xff] }
0x1088   : > { %v6809_v52 = vadd.f32 %v2480_v22, %v6379_v32  ;;  %v6850_v22 = vld [vmem:[#allocation11 + $0x28] sm:$0xff] }
0x108a   : > { %4852 = vmatmul.mubr.msk.f32.vlgmr.msra.gmra.mxu0 %vm1750_vm3, %v6809_v52  ;;  %4849 = vst.msk [vmem:[%s6319_s14 + $0x8] sm:$0xff] %vm1750_vm3, %v6809_v52 }
0x108b   : > { %5056 = vmatpush3.msra.mxu0 %v6479_v29  ;;  %5063 = vmatprep.mubr.msk.f32.mxu0 %vm6016_vm4, %v7909_v53  ;;  %4850 = vst.msk [vmem:[%s6319_s14 + $0x8] sm:$0xff] %vm2132_vm13, %v6743_v63 }
0x108c   : > { %5057 = vmatprep.subr.mxu0 %v7909_v53 }
0x108d   : > { %5058 = vmatpush3.msra.mxu0 %v6475_v6 }
0x108e   : > { %5059 = vmatprep.subr.mxu0 %v7909_v53 }
0x108f   : > { %5060 = vmatpush3.msra.mxu0 %v6477_v12 }
0x1090   : > { %5061 = vmatprep.subr.mxu0 %v7909_v53 }
0x1091   : > { %5062 = vmatpush3.msra.mxu0 %v6485_v35 }
0x1092   : > { %5066 = vmatprep.subr.mxu0 %v7909_v53 }
0x114a   : > { %v2558_v13 = vpop.f32.mrf.mxu0 }
0x114c   : > { %v2560_v61 = vpop.f32.mrf.mxu0 }
0x114d   : > { %v2563_v58 = vadd.f32 %v2560_v61, %v6691_v55  ;;  %v6860_v61 = vld [vmem:[#allocation11 + $0x10] sm:$0xff] }
0x114f   : > { %v2564_v48 = vadd.f32 %v2563_v58, %v6387_v37 }
0x1151   : > { %v4853_v42 = vmul.f32 -1.442695, %v2564_v48  ;;  %v6863_v48 = vld [vmem:[#allocation11 + $0x8] sm:$0xff] }
0x1153   : > { %5456 = vpow2.f32 %v4853_v42  ;;  %v6866_v42 = vld [vmem:[#allocation11] sm:$0xff] }
0x1160   : > { %v5457_v17 = vpop.eup %5456 }
0x1161   : > { %v2568_v16 = vadd.f32 1.0, %v5457_v17 }
0x1163   : > { %5458 = vrcp.f32 %v2568_v16 }
0x1170   : > { %v5459_v28 = vpop.eup %5458 }
0x1171   : > { %2573 = vperm.xlu1 %5380, %v5459_v28  }
0x11ec   : > { %v2574_v19 = vpop.permute.xlu1 %2573 }
0x11ed   : > { %v2576_v23 = vmul.f32 %v2574_v19, %v6689_v56 }
0x11ef   : > { %v2577_v55 = vadd.f32 %v2576_v23, %v2558_v13  ;;  %v6857_v13 = vld [vmem:[#allocation11 + $0x18] sm:$0xff]  ;;  %v2597_v23 = vadd.f32 %v2563_v58, %v6460_v38 }
0x11f1   : > { %v2578_v14 = vadd.f32 %v2577_v55, %v676_v10 }
0x11f3   : > { %5460 = vtanh.f32 %v2578_v14  ;;  %v4854_v62 = vmul.f32 -1.442695, %v2578_v14 }
0x11f5   : > { %5462 = vpow2.f32 %v4854_v62 }
0x1200   : > { %v5461_v43 = vpop.eup %5460 }
0x1201   : > { %2588 = vrot.lane.b32.xlu1 %v5461_v43, %s6015_s18 }
0x1202   : > { %v5463_v3 = vpop.eup %5462 }
0x1203   : > { %v2582_v27 = vadd.f32 1.0, %v5463_v3 }
0x1205   : > { %5464 = vrcp.f32 %v2582_v27 }
0x1212   : > { %v6838_v0 = vpop.eup %5464 }
0x1213   : > { %v2586_v56 = vmul.f32 %v6838_v0, %v6743_v63  ;;  %v6854_v63 = vld [vmem:[#allocation11 + $0x20] sm:$0xff] }
0x1273   : > { %v2589_v44 = vpop.permute.xlu1 %2588 }
0x1274   : > { %v2591_v25 = vmul.f32 %v6838_v0, %v2589_v44 }
0x1276   : > { %2593 = vrot.lane.b32.xlu0 %v2591_v25, %s6012_s12 }
0x12e8   : > { %v2594_v36 = vpop.permute.xlu0 %2593 }
0x12e9   : > { %v2596_v21 = vadd.f32 %v2594_v36, %v2586_v56 }
0x12eb   : > { %2600 = vrot.lane.b32.xlu1 %v2596_v21, %s6017_s21 }
0x135d   : > { %v2601_v11 = vpop.permute.xlu1 %2600 }
0x135e   : > { %5053 = vmatmul.mubr.msk.f32.vlgmr.msra.gmra.mxu1 %vm1750_vm3, %v2601_v11  ;;  %v2685_v7 = vsel %vm1750_vm3, %v2601_v11, 0.0 }
0x135f   : > { %2686 = vadd.xlane.f32.xlu1 %v2685_v7  ;;  %2867 = vmatpush1.msra.mxu1 %v6847_v4 }
0x1360   : > { %2868 = vmatprep.subr.mxu1 %v6850_v22  ;;  %2906 = vmatprep.mubr.f32.mxu1 %v7909_v53 }
0x1361   : > { %2869 = vmatpush1.msra.mxu1 %v6854_v63 }
0x1362   : > { %2870 = vmatprep.subr.mxu1 %v6857_v13 }
0x1363   : > { %2871 = vmatpush1.msra.mxu1 %v6860_v61 }
0x1364   : > { %2872 = vmatprep.subr.mxu1 %v6863_v48 }
0x1365   : > { %2873 = vmatpush1.msra.mxu1 %v6866_v42 }
0x1366   : > { %5077 = vmatprep.subr.mxu1 %v7909_v53 }
0x13e8   : > { %v2687_v58 = vpop.xlane.xlu1 %2686 }
0x141e   : > { %v2670_v17 = vpop.f32.mrf.mxu1 }
0x141f   : > { %v2671_v16 = vadd.f32 %v2670_v17, %v6455_v20  ;;  %v2688_v17 = vmul.f32 0.03125, %v2687_v58 }
0x1420   : > { %v5054_v28 = vpop.f32.mrf.mxu1 }
0x1421   : > { %v4856_v33 = vmul.f32 -1.442695, %v2671_v16  ;;  %v2689_v16 = vsub.f32 %v2596_v21, %v2688_v17  ;;  %v6883_v21 = vld [vmem:[#allocation13 + $0x18] sm:$0xff]  ;;  %v688_v17 = vsub.f32 %v6831_v59, %v6520_v51 }
0x1423   : > { %5466 = vpow2.f32 %v4856_v33  ;;  %v2690_v28 = vmul.f32 %v2689_v16, %v2689_v16 }
0x1430   : > { %v5467_v19 = vpop.eup %5466 }
0x1431   : > { %v2677_v10 = vadd.f32 1.0, %v5467_v19 }
0x1433   : > { %5468 = vrcp.f32 %v2677_v10 }
0x1434   : > { %5470 = vtanh.f32 %v2597_v23 }
0x1440   : > { %v5469_v55 = vpop.eup %5468 }
0x1441   : > { %v2681_v14 = vsub.f32 1.0, %v5469_v55  ;;  %v5471_v43 = vpop.eup %5470  ;;  %v2680_v62 = vmul.f32 %v5469_v55, %v6723_v54 }
0x1443   : > { %v2682_v3 = vmul.f32 %v5471_v43, %v2681_v14 }
0x1445   : > { %v2683_v27 = vadd.f32 %v2682_v3, %v2680_v62 }
0x1447   : > { %v2704_v44 = vsel %vm1750_vm3, %v2683_v27, 0.0 }
0x1448   : > { %2705 = vadd.xlane.f32.xlu0 %v2704_v44  ;;  %v6893_v44 = vld [vmem:[#allocation13 + $0x8] sm:$0xff] }
0x14d1   : > { %v2706_v25 = vpop.xlane.xlu0 %2705 }
0x14d2   : > { %v2707_v56 = vmul.f32 0.03125, %v2706_v25  ;;  %v6897_v25 = vld [vmem:[#allocation13] sm:$0xff] }
0x14d4   : > { %v2708_v36 = vsub.f32 %v2683_v27, %v2707_v56  ;;  %v6889_v27 = vld [vmem:[#allocation13 + $0x10] sm:$0xff] }
0x14d6   : > { %v2709_v11 = vmul.f32 %v2708_v36, %v2708_v36 }
0x14d8   : > { %v2710_v7 = vsel %vm1750_vm3, %v2709_v11, 0.0 }
0x14d9   : > { %2711 = vadd.xlane.f32.xlu0 %v2710_v7 }
0x14ef   : > { %2692 = vrot.lane.b32.xlu0 %v2690_v28, %s6017_s21 }
0x1562   : > { %v2712_v33 = vpop.xlane.xlu0 %2711 }
0x1563   : > { %v2713_v19 = vmul.f32 0.03125, %v2712_v33 }
0x1565   : > { %v2714_v23 = vadd.f32 1e-05, %v2713_v19  ;;  %v722_v19 = vand.u32 2147483647, %v688_v17 }
0x1566   : > { %v2693_v10 = vpop.permute.xlu0 %2692 }
0x1567   : > { %5472 = vrsqrt.f32 %v2714_v23  ;;  %v2695_v55 = vsel %vm1750_vm3, %v2693_v10, 0.0  ;;  %v725_v23 = vmul.f32 %v6531_v57, %v722_v19 }
0x1568   : > { %2696 = vadd.xlane.f32.xlu1 %v2695_v55 }
0x1574   : > { %v5473_v14 = vpop.eup %5472 }
0x1575   : > { %v2716_v43 = vmul.f32 %v5473_v14, %v2708_v36 }
0x1577   : > { %v2717_v62 = vmul.f32 %v2716_v43, %v6358_v26  ;;  %v732_v43 = vand.u32 2147483648, %v688_v17 }
0x1579   : > { %v6879_v3 = vadd.f32 %v2717_v62, %v6369_v30 }
0x157b   : > { %7928 = vst [vmem:[#allocation44_spill] sm:$0xff] %v6879_v3  ;;  %5064 = vmatmul.mubr.msk.f32.vlgmr.msra.gmra.mxu0 %vm1750_vm3, %v6879_v3 }
0x157c   : > { %5067 = vmatpush3.msra.mxu0 %v6883_v21  ;;  %5074 = vmatprep.mubr.msk.f32.mxu0 %vm6016_vm4, %v7909_v53 }
0x157d   : > { %5068 = vmatprep.subr.mxu0 %v7909_v53 }
0x157e   : > { %5069 = vmatpush3.msra.mxu0 %v6889_v27 }
0x157f   : > { %5070 = vmatprep.subr.mxu0 %v7909_v53 }
0x1580   : > { %5071 = vmatpush3.msra.mxu0 %v6893_v44 }
0x1581   : > { %5072 = vmatprep.subr.mxu0 %v7909_v53 }
0x1582   : > { %5073 = vmatpush3.msra.mxu0 %v6897_v25 }
0x1583   : > { %3216 = vmatprep.subr.mxu0 %v6736_v5  ;;  %v726_v5 = vfloor.f32 %v725_v23 }
0x1585   : > { %v727_v10 = vmul.f32 %v726_v5, %v6512_v46 }
0x15f1   : > { %v2697_v56 = vpop.xlane.xlu1 %2696 }
0x15f2   : > { %v2698_v36 = vmul.f32 0.03125, %v2697_v56 }
0x15f4   : > { %v2699_v11 = vadd.f32 1e-05, %v2698_v36 }
0x15f6   : > { %5474 = vrsqrt.f32 %v2699_v11 }
0x1603   : > { %v5475_v7 = vpop.eup %5474 }
0x1604   : > { %v2701_v58 = vmul.f32 %v5475_v7, %v2689_v16  ;;  %v728_v16 = vsub.f32 %v722_v19, %v727_v10 }
0x1606   : > { %v2702_v28 = vmul.f32 %v2701_v58, %v6515_v50  ;;  %vm729_vm6 = vcmp.eq.f32.partialorder %v728_v16, %v6512_v46 }
0x1607   : > { %v730_v59 = vsel %vm729_vm6, 0.0, %v728_v16 }
0x1608   : > { %v6905_v33 = vadd.f32 %v2702_v28, %v6522_v18  ;;  %v731_v14 = vand.u32 2147483647, %v730_v59 }
0x160a   : > { %5476 = vtanh.f32 %v6905_v33  ;;  %v733_v62 = vor.u32 %v732_v43, %v731_v14 }
0x160c   : > { %vm804_vm8 = vcmp.lt.f32.partialorder %v733_v62, 0.0  ;;  %vm796_vm9 = vcmp.ne.f32.partialorder %v733_v62, 0.0  ;;  %v835_v56 = vadd.f32 %v733_v62, %v6509_v45 }
0x160d   : > { %vm819_vm10 = vmxor %vm804_vm8, %vm6541_vm7 }
0x160e   : > { %vm827_vm11 = vmand %vm819_vm10, %vm796_vm9 }
0x160f   : > { %v843_v36 = vsel %vm827_vm11, %v835_v56, %v733_v62 }
0x1610   : > { %v852_v11 = vmul.f32 %v7920_v34, %v843_v36 }
0x1612   : > { %v860_v58 = vmul.f32 6.2831855, %v852_v11 }
0x1614   : > { %v6919_v19 = vmul.f32 %v7921_v2, %v860_v58 }
0x1616   : > { %v1088_v17 = vand.u32 2139095040, %v6919_v19  ;;  %v7852_v62 = vand.u32 2147483647, %v6919_v19  ;;  %vm1087_vm6 = vcmp.lt.s32.totalorder %v6919_v19, 0 }
0x1617   : > { %v5477_v55 = vpop.eup %5476 }
0x1618   : > { %2800 = vrot.lane.b32.xlu1 %v5477_v55, %s6015_s18  ;;  %v1089_v23 = vshrl.u32 %v1088_v17, 23 }
0x161a   : > { %v4811_v5 = vadd.s32 4294967169, %v1089_v23 }
0x161c   : > { %v1095_v10 = vadd.s32 1, %v4811_v5 }
0x161e   : > { %vm1096_vm12 = vcmp.gt.s32.totalorder %v1095_v10, 0 }
0x161f   : > { %v1097_v55 = vsel %vm1096_vm12, %v1095_v10, 0  ;;  %vm1177_vm12 = vweird.f32 %v6919_v19 }
0x1620   : > { %v1099_v16 = vand.u32 31, %v1097_v55  ;;  %v1098_v56 = vshrl.u32 %v1097_v55, 5  ;;  %v1092_v55 = vand.u32 8388607, %v7852_v62 }
0x1622   : > { %v1100_v59 = vsub.s32 32, %v1099_v16  ;;  %v1111_v36 = vshll.u32 %v7924_v41, %v1099_v16  ;;  %v1114_v17 = vshll.u32 %v7922_v15, %v1099_v16  ;;  %v1102_v5 = vshll.u32 %v7907_v8, %v1099_v16 }
0x1623   : > { %v1105_v10 = vshll.u32 %v7925_v24, %v1099_v16  ;;  %v1108_v54 = vshll.u32 %v7926_v1, %v1099_v16  ;;  %vm1120_vm2 = vcmp.lt.s32.totalorder %v1098_v56, 4  ;;  %vm1117_vm14 = vcmp.lt.s32.totalorder %v1098_v56, 1 }
0x1624   : > { %v1112_v14 = vshrl.u32 %v7922_v15, %v1100_v59  ;;  %v1115_v43 = vshrl.u32 %v7923_v40, %v1100_v59  ;;  %v1103_v11 = vshrl.u32 %v7925_v24, %v1100_v59  ;;  %v1106_v58 = vshrl.u32 %v7926_v1, %v1100_v59 }
0x1625   : > { %vm1119_vm15 = vcmp.lt.s32.totalorder %v1098_v56, 3  ;;  %vm1118_vm0 = vcmp.lt.s32.totalorder %v1098_v56, 2 }
0x1626   : > { %v1113_v23 = vor.u32 %v1112_v14, %v1111_v36  ;;  %v1116_v40 = vor.u32 %v1115_v43, %v1114_v17  ;;  %v1104_v2 = vor.u32 %v1103_v11, %v1102_v5  ;;  %v1107_v34 = vor.u32 %v1106_v58, %v1105_v10 }
0x1627   : > { %v1093_v14 = vor.u32 8388608, %v1092_v55  ;;  %v1101_v55 = vshrl.u32 %v7907_v8, %v1100_v59 }
0x1628   : > { %v1126_v39 = vsel %vm1120_vm2, %v1113_v23, 920167782  ;;  %v1125_v36 = vsel %vm1117_vm14, %v1104_v2, %v1107_v34 }
0x163b   : > { %v6916_v7 = vpop.f32.mrf.mxu0 }
0x163d   : > { %v5065_v28 = vpop.f32.mrf.mxu0 }
0x163e   : > { %v1109_v28 = vshrl.u32 %v7924_v41, %v1100_v59  ;;  %v1130_v41 = vsel %vm1120_vm2, %v1116_v40, 1326507024 }
0x163f   : > { %v1131_v43 = vsel %vm1119_vm15, %v1113_v23, %v1130_v41 }
0x1640   : > { %v1110_v45 = vor.u32 %v1109_v28, %v1108_v54  ;;  %v1133_v54 = vshll.u32 %v1093_v14, 8 }
0x1642   : > { %v1127_v24 = vsel %vm1119_vm15, %v1110_v45, %v1126_v39  ;;  %v1129_v16 = vsel %vm1117_vm14, %v1107_v34, %v1110_v45  ;;  %v1122_v10 = vsel %vm1120_vm2, %v1110_v45, 2102212464  ;;  %v1121_v39 = vsel %vm1117_vm14, %v1101_v55, %v1104_v2 }
0x1643   : > { %v1128_v11 = vsel %vm1118_vm0, %v1125_v36, %v1127_v24  ;;  %v1132_v58 = vsel %vm1118_vm0, %v1129_v16, %v1131_v43  ;;  %v1123_v62 = vsel %vm1119_vm15, %v1107_v34, %v1122_v10 }
0x1644   : > { %v6941_v28 = vmul.u32.u64.low %v1133_v54, %v1128_v11  ;;  %v6942_v17 = vmul.u32.u64.high %v1133_v54, %v1128_v11, %v6941_v28  ;;  %v6944_v5 = vmul.u32.u64.low %v1133_v54, %v1132_v58  ;;  %v6945_v40 = vmul.u32.u64.high %v1133_v54, %v1132_v58, %v6944_v5 }
0x1645   : > { %v1124_v24 = vsel %vm1118_vm0, %v1121_v39, %v1123_v62 }
0x1646   : > { %v1143_v41 = vadd.s32 1, %v6942_v17  ;;  %vm1142_vm1 = vc.u32 %v6945_v40, %v6941_v28  ;;  %v1140_v14 = vmul.u32 %v1133_v54, %v1124_v24  ;;  %v1141_v54 = vadd.s32 %v6941_v28, %v6945_v40 }
0x1647   : > { %v2789_v28 = vadd.f32 %v6916_v7, %v6605_v60 }
0x1648   : > { %v1144_v23 = vsel %vm1142_vm1, %v1143_v41, %v6942_v17 }
0x1649   : > { %v1145_v36 = vadd.s32 %v1144_v23, %v1140_v14 }
0x164b   : > { %v1146_v16 = vadd.s32 536870912, %v1145_v36 }
0x164d   : > { %v1147_v11 = vshrl.u32 %v1146_v16, 30 }
0x164f   : > { %v1148_v59 = vshll.u32 %v1147_v11, 30  ;;  %v1171_v40 = vsub.s32 4, %v1147_v11 }
0x1651   : > { %v1149_v2 = vsub.s32 %v1145_v36, %v1148_v59  ;;  %v7929_v59 = vand.u32 2147483647, %v6919_v19 }
0x1653   : > { %v1151_v56 = vsub.s32 0, %v1149_v2  ;;  %vm1086_vm8 = vcmp.le.f32.partialorder %v7929_v59, 0.7853982 }
0x1655   : > { %v4812_v34 = vmin.u32 %v1151_v56, %v1149_v2 }
0x1657   : > { %v1153_v58 = vclz %v4812_v34  ;;  %v1172_v34 = vsel %vm1087_vm6, %v1171_v40, %v1147_v11 }
0x1659   : > { %v4813_v5 = vadd.s32 4294967294, %v1153_v58 }
0x165b   : > { %vm4814_vm5 = vcmp.lt.s32.totalorder %v4813_v5, 0 }
0x165c   : > { %v1156_v10 = vsel %vm4814_vm5, 0, %v4813_v5  ;;  %v1174_v5 = vsel %vm1086_vm8, 0, %v1172_v34 }
0x165d   : > { %v1161_v62 = vsub.s32 4294967266, %v1156_v10  ;;  %v1157_v17 = vsub.s32 32, %v1156_v10  ;;  %v1158_v24 = vshll.u32 %v1149_v2, %v1156_v10  ;;  %v4858_v2 = vmul.f32 -1.442695, %v2789_v28 }
0x165f   : > { %v1162_v55 = vadd.s32 127, %v1161_v62  ;;  %v1159_v41 = vshrl.u32 %v1141_v54, %v1157_v17  ;;  %v1178_v62 = vand.u32 3, %v1174_v5 }
0x1661   : > { %v1163_v39 = vshll.u32 %v1162_v55, 23  ;;  %vm1180_vm9 = vcmp.eq.s32.totalorder %v1178_v62, 0  ;;  %vm1183_vm10 = vcmp.eq.s32.totalorder %v1178_v62, 2  ;;  %vm1179_vm11 = vcmp.lt.s32.totalorder %v1178_v62, 2 }
0x1663   : > { %v1164_v23 = vor.u32 4788187, %v1163_v39 }
0x1665   : > { %v1165_v14 = vand.u32 2147483647, %v1164_v23 }
0x168a   : > { %v2801_v43 = vpop.permute.xlu1 %2800 }
0x168b   : > { %v2803_v45 = vmul.f32 %v6838_v0, %v2801_v43  ;;  %v1160_v0 = vor.u32 %v1159_v41, %v1158_v24 }
0x168d   : > { %2805 = vrot.lane.b32.xlu0 %v2803_v45, %s6012_s12  ;;  %v1167_v16 = vcvt.s32.f32 %v1160_v0 }
0x168f   : > { %v1168_v43 = vmul.f32 %v1167_v16, %v1165_v14 }
0x1691   : > { %v1169_v36 = vxor.u32 2147483648, %v1168_v43 }
0x1693   : > { %v1170_v45 = vsel %vm1087_vm6, %v1169_v36, %v1168_v43 }
0x1694   : > { %v1173_v56 = vsel %vm1086_vm8, %v6919_v19, %v1170_v45 }
0x1695   : > { %5478 = vcosq.f32 %v1173_v56 }
0x1696   : > { %5480 = vsinq.f32 %v1173_v56 }
0x1697   : > { %5482 = vpow2.f32 %v4858_v2 }
0x16a2   : > { %v5479_v58 = vpop.eup %5478 }
0x16a3   : > { %v5481_v10 = vpop.eup %5480  ;;  %v1184_v17 = vxor.u32 2147483648, %v5479_v58 }
0x16a4   : > { %v1181_v55 = vxor.u32 2147483648, %v5481_v10  ;;  %v5483_v24 = vpop.eup %5482 }
0x16a5   : > { %v1185_v39 = vsel %vm1183_vm10, %v1184_v17, %v5481_v10  ;;  %v2795_v23 = vadd.f32 1.0, %v5483_v24 }
0x16a6   : > { %v1182_v54 = vsel %vm1180_vm9, %v5479_v58, %v1181_v55 }
0x16a7   : > { %v1186_v41 = vsel %vm1179_vm11, %v1182_v54, %v1185_v39  ;;  %5484 = vrcp.f32 %v2795_v23  ;;  %v5672_v39 = vld [vmem:[%s6295_s4 + $0x18] sm:$0xff] }
0x16a8   : > { %v1187_v7 = vsel %vm1177_vm12, nan, %v1186_v41  ;;  %5486 = vtanh.f32 %v6879_v3 }
0x16a9   : > { %v1705_v0 = vadd.f32 1.0, %v1187_v7 }
0x16ab   : > { %v1713_v11 = vmul.f32 0.5, %v1705_v0 }
0x16ad   : > { %v1721_v14 = vmax.f32 %v1713_v11, 0.0 }
0x16af   : > { %v1729_v16 = vmin.f32 %v1721_v14, 1.0 }
0x16b1   : > { %v2809_v43 = vsub.f32 1.0, %v1729_v16 }
0x16b3   : > { %v2810_v56 = vmul.f32 %v2809_v43, %v6809_v52 }
0x16b4   : > { %v5485_v36 = vpop.eup %5484 }
0x16b5   : > { %v2813_v28 = vsub.f32 1.0, %v5485_v36  ;;  %v5487_v19 = vpop.eup %5486 }
0x16b7   : > { %v2815_v34 = vmul.f32 %v5487_v19, %v2813_v28 }
0x16ff   : > { %v2806_v45 = vpop.permute.xlu0 %2805 }
0x1700   : > { %v2808_v59 = vmul.f32 %v2806_v45, %v1729_v16 }
0x1702   : > { %v2811_v40 = vadd.f32 %v2810_v56, %v2808_v59 }
0x1704   : > { %v2812_v2 = vmul.f32 %v5485_v36, %v2811_v40 }
0x1706   : > { %v2816_v58 = vadd.f32 %v2815_v34, %v2812_v2  ;;  %v7930_v34 = vld [vmem:[#allocation34_spill] sm:$0xff] }
0x1708   : > { %v2817_v5 = vsel %vm1750_vm3, %v2816_v58, 0.0 }
0x1709   : > { %2818 = vadd.xlane.f32.xlu1 %v2817_v5 }
0x1792   : > { %v2819_v10 = vpop.xlane.xlu1 %2818 }
0x1793   : > { %v2820_v62 = vmul.f32 0.03125, %v2819_v10 }
0x1795   : > { %v2821_v55 = vsub.f32 %v2816_v58, %v2820_v62 }
0x1797   : > { %v2822_v17 = vmul.f32 %v2821_v55, %v2821_v55 }
0x1799   : > { %v2823_v54 = vsel %vm1750_vm3, %v2822_v17, 0.0 }
0x179a   : > { %2824 = vadd.xlane.f32.xlu0 %v2823_v54 }
0x17b0   : > { %639 = vperm.xlu0 %5379, %v5672_v39  }
0x1823   : > { %v2825_v52 = vpop.xlane.xlu0 %2824 }
0x1824   : > { %v2826_v41 = vmul.f32 0.03125, %v2825_v52 }
0x1826   : > { %v2827_v24 = vadd.f32 1e-05, %v2826_v41 }
0x1828   : > { %5488 = vrsqrt.f32 %v2827_v24 }
0x182b   : > { %v6993_v40 = vpop.permute.xlu0 %639 }
0x182c   : > { %v665_v19 = vmul.f32 %v6397_v47, %v6993_v40 }
0x182e   : > { %v677_v5 = vadd.f32 %v6402_v49, %v665_v19 }
0x1835   : > { %v5489_v7 = vpop.eup %5488 }
0x1836   : > { %v2829_v23 = vmul.f32 %v5489_v7, %v2821_v55 }
0x1838   : > { %v2830_v0 = vmul.f32 %v2829_v23, %v6373_v31 }
0x183a   : > { %v6971_v11 = vadd.f32 %v2830_v0, %v6379_v32 }
0x183c   : > { %4862 = vmatmul.mubr.msk.f32.vlgmr.msra.gmra.mxu1 %vm1750_vm3, %v6971_v11  ;;  %4859 = vst.msk [vmem:[%s6319_s14 + $0x10] sm:$0xff] %vm1750_vm3, %v6971_v11 }
0x183d   : > { %5078 = vmatpush3.msra.mxu1 %v6479_v29  ;;  %5085 = vmatprep.mubr.msk.f32.mxu1 %vm6016_vm4, %v7909_v53  ;;  %4860 = vst.msk [vmem:[%s6319_s14 + $0x10] sm:$0xff] %vm2132_vm13, %v6905_v33 }
0x183e   : > { %5079 = vmatprep.subr.mxu1 %v7909_v53 }
0x183f   : > { %5080 = vmatpush3.msra.mxu1 %v6475_v6 }
0x1840   : > { %5081 = vmatprep.subr.mxu1 %v7909_v53 }
0x1841   : > { %5082 = vmatpush3.msra.mxu1 %v6477_v12 }
0x1842   : > { %5083 = vmatprep.subr.mxu1 %v7909_v53 }
0x1843   : > { %5084 = vmatpush3.msra.mxu1 %v6485_v35 }
0x1844   : > { %5088 = vmatprep.subr.mxu1 %v7909_v53 }
0x18fc   : > { %v2908_v14 = vpop.f32.mrf.mxu1 }
0x18fe   : > { %v2910_v16 = vpop.f32.mrf.mxu1 }
0x18ff   : > { %v2913_v43 = vadd.f32 %v2910_v16, %v6695_v9 }
0x1901   : > { %v2914_v36 = vadd.f32 %v2913_v43, %v6387_v37 }
0x1903   : > { %v4863_v45 = vmul.f32 -1.442695, %v2914_v36 }
0x1905   : > { %5490 = vpow2.f32 %v4863_v45  ;;  %v2947_v45 = vadd.f32 %v2913_v43, %v6460_v38 }
0x1912   : > { %v5491_v59 = vpop.eup %5490 }
0x1913   : > { %v2918_v56 = vadd.f32 1.0, %v5491_v59 }
0x1915   : > { %5492 = vrcp.f32 %v2918_v56 }
0x1922   : > { %v5493_v28 = vpop.eup %5492 }
0x1923   : > { %2923 = vperm.xlu1 %5380, %v5493_v28  }
0x199e   : > { %v2924_v2 = vpop.permute.xlu1 %2923 }
0x199f   : > { %v2926_v58 = vmul.f32 %v2924_v2, %v7930_v34 }
0x19a1   : > { %v2927_v9 = vadd.f32 %v2926_v58, %v2908_v14 }
0x19a3   : > { %v2928_v10 = vadd.f32 %v2927_v9, %v677_v5 }
0x19a5   : > { %5494 = vtanh.f32 %v2928_v10  ;;  %v4864_v55 = vmul.f32 -1.442695, %v2928_v10 }
0x19a7   : > { %5496 = vpow2.f32 %v4864_v55 }
0x19b2   : > { %v5495_v62 = vpop.eup %5494 }
0x19b3   : > { %2938 = vrot.lane.b32.xlu1 %v5495_v62, %s6015_s18 }
0x19b4   : > { %v5497_v17 = vpop.eup %5496 }
0x19b5   : > { %v2932_v54 = vadd.f32 1.0, %v5497_v17 }
0x19b7   : > { %5498 = vrcp.f32 %v2932_v54 }
0x19c4   : > { %v7000_v39 = vpop.eup %5498 }
0x19c5   : > { %v2936_v24 = vmul.f32 %v7000_v39, %v6905_v33 }
0x1a25   : > { %v2939_v52 = vpop.permute.xlu1 %2938 }
0x1a26   : > { %v2941_v41 = vmul.f32 %v7000_v39, %v2939_v52 }
0x1a28   : > { %2943 = vrot.lane.b32.xlu0 %v2941_v41, %s6012_s12 }
0x1a9a   : > { %v2944_v7 = vpop.permute.xlu0 %2943 }
0x1a9b   : > { %v2946_v23 = vadd.f32 %v2944_v7, %v2936_v24 }
0x1a9d   : > { %2950 = vrot.lane.b32.xlu1 %v2946_v23, %s6017_s21 }
0x1b0f   : > { %v2951_v0 = vpop.permute.xlu1 %2950 }
0x1b10   : > { %5075 = vmatmul.mubr.msk.f32.vlgmr.msra.gmra.mxu0 %vm1750_vm3, %v2951_v0  ;;  %v3035_v14 = vsel %vm1750_vm3, %v2951_v0, 0.0 }
0x1b11   : > { %3036 = vadd.xlane.f32.xlu1 %v3035_v14  ;;  %3217 = vmatpush1.msra.mxu0 %v6847_v4 }
0x1b12   : > { %3218 = vmatprep.subr.mxu0 %v6850_v22  ;;  %3256 = vmatprep.mubr.f32.mxu0 %v7909_v53 }
0x1b13   : > { %3219 = vmatpush1.msra.mxu0 %v6854_v63 }
0x1b14   : > { %3220 = vmatprep.subr.mxu0 %v6857_v13 }
0x1b15   : > { %3221 = vmatpush1.msra.mxu0 %v6860_v61 }
0x1b16   : > { %3222 = vmatprep.subr.mxu0 %v6863_v48 }
0x1b17   : > { %3223 = vmatpush1.msra.mxu0 %v6866_v42 }
0x1b18   : > { %5099 = vmatprep.subr.mxu0 %v7909_v53 }
0x1b9a   : > { %v3037_v43 = vpop.xlane.xlu1 %3036 }
0x1b9b   : > { %v3038_v9 = vmul.f32 0.03125, %v3037_v43 }
0x1b9d   : > { %v3039_v10 = vsub.f32 %v2946_v23, %v3038_v9  ;;  %v7040_v23 = vld [vmem:[#allocation11 + $0x38] sm:$0xff] }
0x1b9f   : > { %v3040_v62 = vmul.f32 %v3039_v10, %v3039_v10 }
0x1bd0   : > { %v3020_v33 = vpop.f32.mrf.mxu0 }
0x1bd1   : > { %v3021_v16 = vadd.f32 %v3020_v33, %v6455_v20 }
0x1bd2   : > { %v5076_v4 = vpop.f32.mrf.mxu0 }
0x1bd3   : > { %v4866_v36 = vmul.f32 -1.442695, %v3021_v16 }
0x1bd5   : > { %5500 = vpow2.f32 %v4866_v36 }
0x1be2   : > { %v5501_v22 = vpop.eup %5500 }
0x1be3   : > { %v3027_v63 = vadd.f32 1.0, %v5501_v22 }
0x1be5   : > { %5502 = vrcp.f32 %v3027_v63 }
0x1be6   : > { %5504 = vtanh.f32 %v2947_v45 }
0x1bf2   : > { %v5503_v13 = vpop.eup %5502 }
0x1bf3   : > { %v3031_v61 = vsub.f32 1.0, %v5503_v13  ;;  %v5505_v59 = vpop.eup %5504  ;;  %v3030_v48 = vmul.f32 %v5503_v13, %v6879_v3 }
0x1bf5   : > { %v3032_v42 = vmul.f32 %v5505_v59, %v3031_v61 }
0x1bf7   : > { %v3033_v56 = vadd.f32 %v3032_v42, %v3030_v48 }
0x1bf9   : > { %v3054_v28 = vsel %vm1750_vm3, %v3033_v56, 0.0 }
0x1bfa   : > { %3055 = vadd.xlane.f32.xlu0 %v3054_v28 }
0x1c83   : > { %v3056_v19 = vpop.xlane.xlu0 %3055 }
0x1c84   : > { %v3057_v2 = vmul.f32 0.03125, %v3056_v19  ;;  %v7933_v19 = vld [vmem:[#allocation30_spill] sm:$0xff] }
0x1c86   : > { %v3058_v34 = vsub.f32 %v3033_v56, %v3057_v2 }
0x1c88   : > { %v3059_v58 = vmul.f32 %v3058_v34, %v3058_v34 }
0x1c8a   : > { %v3060_v5 = vsel %vm1750_vm3, %v3059_v58, 0.0  ;;  %v7934_v58 = vld [vmem:[#allocation32_spill] sm:$0xff] }
0x1c8b   : > { %3061 = vadd.xlane.f32.xlu0 %v3060_v5 }
0x1ca1   : > { %3042 = vrot.lane.b32.xlu0 %v3040_v62, %s6017_s21  ;;  %v7935_v62 = vld [vmem:[#allocation33_spill] sm:$0xff] }
0x1d14   : > { %v3062_v55 = vpop.xlane.xlu0 %3061 }
0x1d15   : > { %v3063_v17 = vmul.f32 0.03125, %v3062_v55 }
0x1d17   : > { %v3064_v54 = vadd.f32 1e-05, %v3063_v17 }
0x1d18   : > { %v3043_v52 = vpop.permute.xlu0 %3042 }
0x1d19   : > { %5506 = vrsqrt.f32 %v3064_v54  ;;  %v3045_v41 = vsel %vm1750_vm3, %v3043_v52, 0.0 }
0x1d1a   : > { %3046 = vadd.xlane.f32.xlu1 %v3045_v41 }
0x1d26   : > { %v5507_v24 = vpop.eup %5506 }
0x1d27   : > { %v3066_v7 = vmul.f32 %v5507_v24, %v3058_v34 }
0x1d29   : > { %v3067_v0 = vmul.f32 %v3066_v7, %v6358_v26 }
0x1d2b   : > { %v7027_v14 = vadd.f32 %v3067_v0, %v6369_v30 }
0x1d2d   : > { %7931 = vst [vmem:[#allocation34_spill] sm:$0xff] %v7027_v14  ;;  %5086 = vmatmul.mubr.msk.f32.vlgmr.msra.gmra.mxu1 %vm1750_vm3, %v7027_v14 }
0x1d2e   : > { %5089 = vmatpush3.msra.mxu1 %v6883_v21  ;;  %5096 = vmatprep.mubr.msk.f32.mxu1 %vm6016_vm4, %v7909_v53 }
0x1d2f   : > { %5090 = vmatprep.subr.mxu1 %v7909_v53 }
0x1d30   : > { %5091 = vmatpush3.msra.mxu1 %v6889_v27  ;;  %v689_v27 = vsub.f32 %v6993_v40, %v6520_v51 }
0x1d31   : > { %5092 = vmatprep.subr.mxu1 %v7909_v53 }
0x1d32   : > { %5093 = vmatpush3.msra.mxu1 %v6893_v44  ;;  %v734_v45 = vand.u32 2147483647, %v689_v27  ;;  %v744_v42 = vand.u32 2147483648, %v689_v27  ;;  %v7937_v27 = vmov 2102212464  }
0x1d33   : > { %5094 = vmatprep.subr.mxu1 %v7909_v53 }
0x1d34   : > { %5095 = vmatpush3.msra.mxu1 %v6897_v25  ;;  %v737_v25 = vmul.f32 %v6531_v57, %v734_v45 }
0x1d35   : > { %3566 = vmatprep.subr.mxu1 %v7040_v23 }
0x1d36   : > { %v738_v63 = vfloor.f32 %v737_v25 }
0x1d38   : > { %v739_v13 = vmul.f32 %v738_v63, %v6512_v46 }
0x1d3a   : > { %v740_v59 = vsub.f32 %v734_v45, %v739_v13  ;;  %v7938_v45 = vmov 2475754826  }
0x1d3c   : > { %vm741_vm2 = vcmp.eq.f32.partialorder %v740_v59, %v6512_v46 }
0x1d3d   : > { %v742_v40 = vsel %vm741_vm2, 0.0, %v740_v59 }
0x1d3e   : > { %v743_v48 = vand.u32 2147483647, %v742_v40 }
0x1d40   : > { %v745_v56 = vor.u32 %v744_v42, %v743_v48 }
0x1d42   : > { %vm805_vm14 = vcmp.lt.f32.partialorder %v745_v56, 0.0  ;;  %vm797_vm15 = vcmp.ne.f32.partialorder %v745_v56, 0.0  ;;  %v836_v2 = vadd.f32 %v745_v56, %v7933_v19 }
0x1d43   : > { %vm820_vm0 = vmxor %vm805_vm14, %vm6541_vm7 }
0x1d44   : > { %vm828_vm1 = vmand %vm820_vm0, %vm797_vm15 }
0x1d45   : > { %v844_v34 = vsel %vm828_vm1, %v836_v2, %v745_v56 }
0x1d46   : > { %v853_v5 = vmul.f32 %v7934_v58, %v844_v34 }
0x1d48   : > { %v861_v9 = vmul.f32 6.2831855, %v853_v5 }
0x1d4a   : > { %v7061_v55 = vmul.f32 %v7935_v62, %v861_v9 }
0x1d4c   : > { %v1191_v17 = vand.u32 2139095040, %v7061_v55  ;;  %vm1190_vm2 = vcmp.lt.s32.totalorder %v7061_v55, 0 }
0x1d4e   : > { %v1192_v54 = vshrl.u32 %v1191_v17, 23 }
0x1d50   : > { %v4815_v52 = vadd.s32 4294967169, %v1192_v54 }
0x1d52   : > { %v1198_v41 = vadd.s32 1, %v4815_v52 }
0x1d54   : > { %vm1199_vm5 = vcmp.gt.s32.totalorder %v1198_v41, 0 }
0x1d55   : > { %v1200_v24 = vsel %vm1199_vm5, %v1198_v41, 0  ;;  %vm1280_vm5 = vweird.f32 %v7061_v55 }
0x1d56   : > { %v1202_v7 = vand.u32 31, %v1200_v24 }
0x1d58   : > { %v1203_v0 = vsub.s32 32, %v1202_v7  ;;  %v1205_v40 = vshll.u32 %v7907_v8, %v1202_v7  ;;  %v1208_v48 = vshll.u32 %v7938_v45, %v1202_v7  ;;  %v1211_v42 = vshll.u32 %v7926_v1, %v1202_v7 }
0x1d5a   : > { %v1206_v25 = vshrl.u32 %v7938_v45, %v1203_v0  ;;  %v1209_v63 = vshrl.u32 %v7926_v1, %v1203_v0  ;;  %v1212_v13 = vshrl.u32 %v7937_v27, %v1203_v0 }
0x1d5c   : > { %v1207_v34 = vor.u32 %v1206_v25, %v1205_v40  ;;  %v1210_v5 = vor.u32 %v1209_v63, %v1208_v48  ;;  %v1213_v9 = vor.u32 %v1212_v13, %v1211_v42  ;;  %v1204_v48 = vshrl.u32 %v7907_v8, %v1203_v0 }
0x1da3   : > { %v3047_v21 = vpop.xlane.xlu1 %3046 }
0x1da4   : > { %v3048_v33 = vmul.f32 0.03125, %v3047_v21  ;;  %v1215_v21 = vshrl.u32 %v7922_v15, %v1203_v0 }
0x1da6   : > { %v3049_v16 = vadd.f32 1e-05, %v3048_v33  ;;  %v7936_v33 = vmov 1326507024  }
0x1da8   : > { %5508 = vrsqrt.f32 %v3049_v16  ;;  %v1218_v16 = vshrl.u32 %v7936_v33, %v1203_v0 }
0x1db5   : > { %v5509_v4 = vpop.eup %5508 }
0x1db6   : > { %v3051_v36 = vmul.f32 %v5509_v4, %v3039_v10  ;;  %v1188_v4 = vand.u32 2147483647, %v7061_v55 }
0x1db8   : > { %v3052_v22 = vmul.f32 %v3051_v36, %v6515_v50  ;;  %v1201_v36 = vshrl.u32 %v1200_v24, 5  ;;  %v1195_v2 = vand.u32 8388607, %v1188_v4  ;;  %vm1189_vm14 = vcmp.le.f32.partialorder %v1188_v4, 0.7853982 }
0x1dba   : > { %v7047_v44 = vadd.f32 %v3052_v22, %v6522_v18  ;;  %v1214_v22 = vshll.u32 %v7937_v27, %v1202_v7  ;;  %vm1223_vm6 = vcmp.lt.s32.totalorder %v1201_v36, 4  ;;  %vm1220_vm8 = vcmp.lt.s32.totalorder %v1201_v36, 1 }
0x1dbb   : > { %vm1222_vm9 = vcmp.lt.s32.totalorder %v1201_v36, 3  ;;  %v1196_v54 = vor.u32 8388608, %v1195_v2  ;;  %v1228_v52 = vsel %vm1220_vm8, %v1207_v34, %v1210_v5  ;;  %v1232_v24 = vsel %vm1220_vm8, %v1210_v5, %v1213_v9 }
0x1dbc   : > { %5510 = vtanh.f32 %v7047_v44  ;;  %v1216_v59 = vor.u32 %v1215_v21, %v1214_v22  ;;  %vm1221_vm10 = vcmp.lt.s32.totalorder %v1201_v36, 2  ;;  %v1225_v40 = vsel %vm1223_vm6, %v1213_v9, 2102212464 }
0x1dbd   : > { %v1236_v22 = vshll.u32 %v1196_v54, 8  ;;  %v1224_v42 = vsel %vm1220_vm8, %v1204_v48, %v1207_v34 }
0x1dc9   : > { %v5511_v61 = vpop.eup %5510 }
0x1dca   : > { %3150 = vrot.lane.b32.xlu1 %v5511_v61, %s6015_s18  ;;  %v1217_v61 = vshll.u32 %v7922_v15, %v1202_v7 }
0x1dcc   : > { %v1219_v56 = vor.u32 %v1218_v16, %v1217_v61 }
0x1dce   : > { %v1233_v17 = vsel %vm1223_vm6, %v1219_v56, 1326507024  ;;  %v1226_v56 = vsel %vm1222_vm9, %v1210_v5, %v1225_v40 }
0x1dcf   : > { %v1234_v7 = vsel %vm1222_vm9, %v1216_v59, %v1233_v17  ;;  %v1227_v2 = vsel %vm1221_vm10, %v1224_v42, %v1226_v56 }
0x1dd0   : > { %v1235_v16 = vsel %vm1221_vm10, %v1232_v24, %v1234_v7  ;;  %v1243_v17 = vmul.u32 %v1236_v22, %v1227_v2 }
0x1dd1   : > { %v7086_v13 = vmul.u32.u64.low %v1236_v22, %v1235_v16  ;;  %v7087_v61 = vmul.u32.u64.high %v1236_v22, %v1235_v16, %v7086_v13 }
0x1ded   : > { %v7058_v43 = vpop.f32.mrf.mxu1 }
0x1def   : > { %v5087_v10 = vpop.f32.mrf.mxu1 }
0x1df0   : > { %v1229_v10 = vsel %vm1223_vm6, %v1216_v59, 920167782 }
0x1df1   : > { %v1230_v41 = vsel %vm1222_vm9, %v1213_v9, %v1229_v10 }
0x1df2   : > { %v1231_v21 = vsel %vm1221_vm10, %v1228_v52, %v1230_v41 }
0x1df3   : > { %v7083_v25 = vmul.u32.u64.low %v1236_v22, %v1231_v21  ;;  %v7084_v63 = vmul.u32.u64.high %v1236_v22, %v1231_v21, %v7083_v25 }
0x1df5   : > { %v1246_v59 = vadd.s32 1, %v7084_v63  ;;  %vm1245_vm11 = vc.u32 %v7087_v61, %v7083_v25  ;;  %v1244_v22 = vadd.s32 %v7083_v25, %v7087_v61  ;;  %v3139_v25 = vadd.f32 %v7058_v43, %v6605_v60 }
0x1df7   : > { %v1247_v10 = vsel %vm1245_vm11, %v1246_v59, %v7084_v63 }
0x1df8   : > { %v1248_v54 = vadd.s32 %v1247_v10, %v1243_v17 }
0x1dfa   : > { %v1249_v52 = vadd.s32 536870912, %v1248_v54 }
0x1dfc   : > { %v1250_v24 = vshrl.u32 %v1249_v52, 30 }
0x1dfe   : > { %v1251_v0 = vshll.u32 %v1250_v24, 30  ;;  %v1274_v61 = vsub.s32 4, %v1250_v24 }
0x1e00   : > { %v1252_v34 = vsub.s32 %v1248_v54, %v1251_v0  ;;  %v1275_v0 = vsel %vm1190_vm2, %v1274_v61, %v1250_v24 }
0x1e02   : > { %v1254_v36 = vsub.s32 0, %v1252_v34 }
0x1e04   : > { %v4816_v5 = vmin.u32 %v1254_v36, %v1252_v34  ;;  %v1277_v36 = vsel %vm1189_vm14, 0, %v1275_v0 }
0x1e06   : > { %v1256_v7 = vclz %v4816_v5 }
0x1e08   : > { %v4817_v21 = vadd.s32 4294967294, %v1256_v7  ;;  %v1281_v7 = vand.u32 3, %v1277_v36 }
0x1e0a   : > { %vm4818_vm12 = vcmp.lt.s32.totalorder %v4817_v21, 0  ;;  %vm1283_vm15 = vcmp.eq.s32.totalorder %v1281_v7, 0  ;;  %vm1286_vm0 = vcmp.eq.s32.totalorder %v1281_v7, 2  ;;  %vm1282_vm1 = vcmp.lt.s32.totalorder %v1281_v7, 2 }
0x1e0b   : > { %v1259_v16 = vsel %vm4818_vm12, 0, %v4817_v21 }
0x1e0c   : > { %v1264_v13 = vsub.s32 4294967266, %v1259_v16  ;;  %v1260_v63 = vsub.s32 32, %v1259_v16  ;;  %v1261_v56 = vshll.u32 %v1252_v34, %v1259_v16 }
0x1e0e   : > { %v1265_v40 = vadd.s32 127, %v1264_v13  ;;  %v1262_v42 = vshrl.u32 %v1244_v22, %v1260_v63 }
0x1e10   : > { %v1266_v48 = vshll.u32 %v1265_v40, 23 }
0x1e12   : > { %v1267_v59 = vor.u32 4788187, %v1266_v48 }
0x1e14   : > { %v1268_v2 = vand.u32 2147483647, %v1267_v59 }
0x1e3c   : > { %v3151_v41 = vpop.permute.xlu1 %3150 }
0x1e3d   : > { %v3153_v9 = vmul.f32 %v7000_v39, %v3151_v41  ;;  %v1263_v39 = vor.u32 %v1262_v42, %v1261_v56 }
0x1e3f   : > { %3155 = vrot.lane.b32.xlu0 %v3153_v9, %s6012_s12  ;;  %v1270_v10 = vcvt.s32.f32 %v1263_v39  ;;  %v4868_v9 = vmul.f32 -1.442695, %v3139_v25 }
0x1e41   : > { %v1271_v17 = vmul.f32 %v1270_v10, %v1268_v2 }
0x1e43   : > { %v1272_v54 = vxor.u32 2147483648, %v1271_v17 }
0x1e45   : > { %v1273_v52 = vsel %vm1190_vm2, %v1272_v54, %v1271_v17 }
0x1e46   : > { %v1276_v41 = vsel %vm1189_vm14, %v7061_v55, %v1273_v52 }
0x1e47   : > { %5512 = vcosq.f32 %v1276_v41 }
0x1e48   : > { %5514 = vsinq.f32 %v1276_v41 }
0x1e49   : > { %5516 = vpow2.f32 %v4868_v9 }
0x1e54   : > { %v5513_v34 = vpop.eup %5512 }
0x1e55   : > { %v5515_v5 = vpop.eup %5514  ;;  %v1287_v16 = vxor.u32 2147483648, %v5513_v34 }
0x1e56   : > { %v1284_v21 = vxor.u32 2147483648, %v5515_v5  ;;  %v5517_v63 = vpop.eup %5516 }
0x1e57   : > { %v1288_v13 = vsel %vm1286_vm0, %v1287_v16, %v5515_v5  ;;  %v3145_v22 = vadd.f32 1.0, %v5517_v63 }
0x1e58   : > { %v1285_v4 = vsel %vm1283_vm15, %v5513_v34, %v1284_v21  ;;  %v5674_v21 = vld [vmem:[%s6295_s4 + $0x20] sm:$0xff] }
0x1e59   : > { %v1289_v40 = vsel %vm1282_vm1, %v1285_v4, %v1288_v13  ;;  %5518 = vrcp.f32 %v3145_v22 }
0x1e5a   : > { %v1290_v43 = vsel %vm1280_vm5, nan, %v1289_v40  ;;  %5520 = vtanh.f32 %v7027_v14 }
0x1e5b   : > { %v1706_v48 = vadd.f32 1.0, %v1290_v43 }
0x1e5d   : > { %v1714_v24 = vmul.f32 0.5, %v1706_v48 }
0x1e5f   : > { %v1722_v42 = vmax.f32 %v1714_v24, 0.0  ;;  %v7939_v24 = vld [vmem:[#allocation36_spill] sm:$0xff] }
0x1e61   : > { %v1730_v56 = vmin.f32 %v1722_v42, 1.0 }
0x1e63   : > { %v3159_v59 = vsub.f32 1.0, %v1730_v56 }
0x1e65   : > { %v3160_v17 = vmul.f32 %v3159_v59, %v6971_v11 }
0x1e66   : > { %v5519_v39 = vpop.eup %5518 }
0x1e67   : > { %v3163_v54 = vsub.f32 1.0, %v5519_v39  ;;  %v5521_v55 = vpop.eup %5520 }
0x1e69   : > { %v3165_v25 = vmul.f32 %v5521_v55, %v3163_v54  ;;  %v7940_v55 = vld [vmem:[#allocation35_spill] sm:$0xff] }
0x1eb1   : > { %v3156_v2 = vpop.permute.xlu0 %3155 }
0x1eb2   : > { %v3158_v10 = vmul.f32 %v3156_v2, %v1730_v56 }
0x1eb4   : > { %v3161_v52 = vadd.f32 %v3160_v17, %v3158_v10 }
0x1eb6   : > { %v3162_v41 = vmul.f32 %v5519_v39, %v3161_v52 }
0x1eb8   : > { %v3166_v61 = vadd.f32 %v3165_v25, %v3162_v41 }
0x1eba   : > { %v3167_v9 = vsel %vm1750_vm3, %v3166_v61, 0.0 }
0x1ebb   : > { %3168 = vadd.xlane.f32.xlu1 %v3167_v9 }
0x1f44   : > { %v3169_v0 = vpop.xlane.xlu1 %3168 }
0x1f45   : > { %v3170_v34 = vmul.f32 0.03125, %v3169_v0 }
0x1f47   : > { %v3171_v36 = vsub.f32 %v3166_v61, %v3170_v34 }
0x1f49   : > { %v3172_v5 = vmul.f32 %v3171_v36, %v3171_v36 }
0x1f4b   : > { %v3173_v7 = vsel %vm1750_vm3, %v3172_v5, 0.0 }
0x1f4c   : > { %3174 = vadd.xlane.f32.xlu0 %v3173_v7 }
0x1f62   : > { %643 = vperm.xlu0 %5379, %v5674_v21  }
0x1fd5   : > { %v3175_v11 = vpop.xlane.xlu0 %3174 }
0x1fd6   : > { %v3176_v16 = vmul.f32 0.03125, %v3175_v11 }
0x1fd8   : > { %v3177_v4 = vadd.f32 1e-05, %v3176_v16 }
0x1fda   : > { %5522 = vrsqrt.f32 %v3177_v4 }
0x1fdd   : > { %v7135_v17 = vpop.permute.xlu0 %643 }
0x1fde   : > { %v666_v54 = vmul.f32 %v6397_v47, %v7135_v17 }
0x1fe0   : > { %v678_v25 = vadd.f32 %v6402_v49, %v666_v54 }
0x1fe7   : > { %v5523_v13 = vpop.eup %5522 }
0x1fe8   : > { %v3179_v40 = vmul.f32 %v5523_v13, %v3171_v36 }
0x1fea   : > { %v3180_v63 = vmul.f32 %v3179_v40, %v6373_v31 }
0x1fec   : > { %v7113_v43 = vadd.f32 %v3180_v63, %v6379_v32 }
0x1fee   : > { %4872 = vmatmul.mubr.msk.f32.vlgmr.msra.gmra.mxu0 %vm1750_vm3, %v7113_v43  ;;  %4869 = vst.msk [vmem:[%s6319_s14 + $0x18] sm:$0xff] %vm1750_vm3, %v7113_v43 }
0x1fef   : > { %5100 = vmatpush3.msra.mxu0 %v6479_v29  ;;  %5107 = vmatprep.mubr.msk.f32.mxu0 %vm6016_vm4, %v7909_v53  ;;  %4870 = vst.msk [vmem:[%s6319_s14 + $0x18] sm:$0xff] %vm2132_vm13, %v7047_v44 }
0x1ff0   : > { %5101 = vmatprep.subr.mxu0 %v7909_v53 }
0x1ff1   : > { %5102 = vmatpush3.msra.mxu0 %v6475_v6 }
0x1ff2   : > { %5103 = vmatprep.subr.mxu0 %v7909_v53 }
0x1ff3   : > { %5104 = vmatpush3.msra.mxu0 %v6477_v12 }
0x1ff4   : > { %5105 = vmatprep.subr.mxu0 %v7909_v53 }
0x1ff5   : > { %5106 = vmatpush3.msra.mxu0 %v6485_v35 }
0x1ff6   : > { %5110 = vmatprep.subr.mxu0 %v7909_v53 }
0x20ae   : > { %v3258_v22 = vpop.f32.mrf.mxu0 }
0x20b0   : > { %v3260_v48 = vpop.f32.mrf.mxu0 }
0x20b1   : > { %v3263_v42 = vadd.f32 %v3260_v48, %v7939_v24  ;;  %v7154_v48 = vld [vmem:[#allocation11 + $0x28] sm:$0xff]  ;;  %v7161_v24 = vld [vmem:[#allocation11 + $0x18] sm:$0xff] }
0x20b3   : > { %v3264_v56 = vadd.f32 %v3263_v42, %v6387_v37 }
0x20b5   : > { %v4873_v59 = vmul.f32 -1.442695, %v3264_v56  ;;  %v7164_v56 = vld [vmem:[#allocation11 + $0x10] sm:$0xff] }
0x20b7   : > { %5524 = vpow2.f32 %v4873_v59  ;;  %v7167_v59 = vld [vmem:[#allocation11 + $0x8] sm:$0xff] }
0x20c4   : > { %v5525_v39 = vpop.eup %5524 }
0x20c5   : > { %v3268_v2 = vadd.f32 1.0, %v5525_v39  ;;  %v7170_v39 = vld [vmem:[#allocation11] sm:$0xff] }
0x20c7   : > { %5526 = vrcp.f32 %v3268_v2 }
0x20d4   : > { %v5527_v10 = vpop.eup %5526 }
0x20d5   : > { %3273 = vperm.xlu1 %5380, %v5527_v10  }
0x2150   : > { %v3274_v52 = vpop.permute.xlu1 %3273 }
0x2151   : > { %v3276_v41 = vmul.f32 %v3274_v52, %v7940_v55 }
0x2153   : > { %v3277_v61 = vadd.f32 %v3276_v41, %v3258_v22  ;;  %v7151_v22 = vld [vmem:[#allocation11 + $0x30] sm:$0xff]  ;;  %v3297_v41 = vadd.f32 %v3263_v42, %v6460_v38 }
0x2155   : > { %v3278_v9 = vadd.f32 %v3277_v61, %v678_v25 }
0x2157   : > { %5528 = vtanh.f32 %v3278_v9  ;;  %v4874_v34 = vmul.f32 -1.442695, %v3278_v9 }
0x2159   : > { %5530 = vpow2.f32 %v4874_v34 }
0x2164   : > { %v5529_v0 = vpop.eup %5528 }
0x2165   : > { %3288 = vrot.lane.b32.xlu1 %v5529_v0, %s6015_s18 }
0x2166   : > { %v5531_v36 = vpop.eup %5530 }
0x2167   : > { %v3282_v5 = vadd.f32 1.0, %v5531_v36 }
0x2169   : > { %5532 = vrcp.f32 %v3282_v5 }
0x2176   : > { %v7142_v7 = vpop.eup %5532 }
0x2177   : > { %v3286_v16 = vmul.f32 %v7142_v7, %v7047_v44  ;;  %v7158_v44 = vld [vmem:[#allocation11 + $0x20] sm:$0xff] }
0x21d7   : > { %v3289_v21 = vpop.permute.xlu1 %3288 }
0x21d8   : > { %v3291_v11 = vmul.f32 %v7142_v7, %v3289_v21 }
0x21da   : > { %3293 = vrot.lane.b32.xlu0 %v3291_v11, %s6012_s12 }
0x224c   : > { %v3294_v4 = vpop.permute.xlu0 %3293 }
0x224d   : > { %v3296_v13 = vadd.f32 %v3294_v4, %v3286_v16 }
0x224f   : > { %3300 = vrot.lane.b32.xlu1 %v3296_v13, %s6017_s21 }
0x22c1   : > { %v3301_v40 = vpop.permute.xlu1 %3300 }
0x22c2   : > { %5097 = vmatmul.mubr.msk.f32.vlgmr.msra.gmra.mxu1 %vm1750_vm3, %v3301_v40  ;;  %v3385_v63 = vsel %vm1750_vm3, %v3301_v40, 0.0 }
0x22c3   : > { %3386 = vadd.xlane.f32.xlu1 %v3385_v63  ;;  %3567 = vmatpush1.msra.mxu1 %v7151_v22 }
0x22c4   : > { %3568 = vmatprep.subr.mxu1 %v7154_v48  ;;  %3606 = vmatprep.mubr.f32.mxu1 %v7909_v53 }
0x22c5   : > { %3569 = vmatpush1.msra.mxu1 %v7158_v44 }
0x22c6   : > { %3570 = vmatprep.subr.mxu1 %v7161_v24 }
0x22c7   : > { %3571 = vmatpush1.msra.mxu1 %v7164_v56 }
0x22c8   : > { %3572 = vmatprep.subr.mxu1 %v7167_v59 }
0x22c9   : > { %3573 = vmatpush1.msra.mxu1 %v7170_v39 }
0x22ca   : > { %5121 = vmatprep.subr.mxu1 %v7909_v53 }
0x234c   : > { %v3387_v42 = vpop.xlane.xlu1 %3386 }
0x2382   : > { %v3370_v2 = vpop.f32.mrf.mxu1 }
0x2383   : > { %v3371_v10 = vadd.f32 %v3370_v2, %v6455_v20  ;;  %v3388_v2 = vmul.f32 0.03125, %v3387_v42 }
0x2384   : > { %v5098_v54 = vpop.f32.mrf.mxu1 }
0x2385   : > { %v4876_v52 = vmul.f32 -1.442695, %v3371_v10  ;;  %v3389_v10 = vsub.f32 %v3296_v13, %v3388_v2  ;;  %v7187_v13 = vld [vmem:[#allocation13 + $0x18] sm:$0xff]  ;;  %v690_v2 = vsub.f32 %v7135_v17, %v6520_v51 }
0x2387   : > { %5534 = vpow2.f32 %v4876_v52  ;;  %v3390_v54 = vmul.f32 %v3389_v10, %v3389_v10 }
0x2394   : > { %v5535_v55 = vpop.eup %5534 }
0x2395   : > { %v3377_v25 = vadd.f32 1.0, %v5535_v55 }
0x2397   : > { %5536 = vrcp.f32 %v3377_v25 }
0x2398   : > { %5538 = vtanh.f32 %v3297_v41 }
0x23a4   : > { %v5537_v61 = vpop.eup %5536 }
0x23a5   : > { %v3381_v9 = vsub.f32 1.0, %v5537_v61  ;;  %v5539_v0 = vpop.eup %5538  ;;  %v3380_v34 = vmul.f32 %v5537_v61, %v7027_v14 }
0x23a7   : > { %v3382_v36 = vmul.f32 %v5539_v0, %v3381_v9 }
0x23a9   : > { %v3383_v5 = vadd.f32 %v3382_v36, %v3380_v34 }
0x23ab   : > { %v3404_v21 = vsel %vm1750_vm3, %v3383_v5, 0.0 }
0x23ac   : > { %3405 = vadd.xlane.f32.xlu0 %v3404_v21  ;;  %v7197_v21 = vld [vmem:[#allocation13 + $0x8] sm:$0xff] }
0x2435   : > { %v3406_v11 = vpop.xlane.xlu0 %3405 }
0x2436   : > { %v3407_v16 = vmul.f32 0.03125, %v3406_v11  ;;  %v7201_v11 = vld [vmem:[#allocation13] sm:$0xff] }
0x2438   : > { %v3408_v4 = vsub.f32 %v3383_v5, %v3407_v16  ;;  %v7193_v5 = vld [vmem:[#allocation13 + $0x10] sm:$0xff] }
0x243a   : > { %v3409_v40 = vmul.f32 %v3408_v4, %v3408_v4 }
0x243c   : > { %v3410_v63 = vsel %vm1750_vm3, %v3409_v40, 0.0 }
0x243d   : > { %3411 = vadd.xlane.f32.xlu0 %v3410_v63 }
0x2453   : > { %3392 = vrot.lane.b32.xlu0 %v3390_v54, %s6017_s21 }
0x24c6   : > { %v3412_v52 = vpop.xlane.xlu0 %3411 }
0x24c7   : > { %v3413_v55 = vmul.f32 0.03125, %v3412_v52 }
0x24c9   : > { %v3414_v41 = vadd.f32 1e-05, %v3413_v55  ;;  %v746_v55 = vand.u32 2147483647, %v690_v2 }
0x24ca   : > { %v3393_v25 = vpop.permute.xlu0 %3392 }
0x24cb   : > { %5540 = vrsqrt.f32 %v3414_v41  ;;  %v3395_v61 = vsel %vm1750_vm3, %v3393_v25, 0.0  ;;  %v749_v41 = vmul.f32 %v6531_v57, %v746_v55 }
0x24cc   : > { %3396 = vadd.xlane.f32.xlu1 %v3395_v61 }
0x24d8   : > { %v5541_v9 = vpop.eup %5540 }
0x24d9   : > { %v3416_v0 = vmul.f32 %v5541_v9, %v3408_v4 }
0x24db   : > { %v3417_v34 = vmul.f32 %v3416_v0, %v6358_v26  ;;  %v756_v0 = vand.u32 2147483648, %v690_v2 }
0x24dd   : > { %v7183_v36 = vadd.f32 %v3417_v34, %v6369_v30 }
0x24df   : > { %5108 = vmatmul.mubr.msk.f32.vlgmr.msra.gmra.mxu0 %vm1750_vm3, %v7183_v36 }
0x24e0   : > { %5111 = vmatpush3.msra.mxu0 %v7187_v13  ;;  %5118 = vmatprep.mubr.msk.f32.mxu0 %vm6016_vm4, %v7909_v53 }
0x24e1   : > { %5112 = vmatprep.subr.mxu0 %v7909_v53 }
0x24e2   : > { %5113 = vmatpush3.msra.mxu0 %v7193_v5 }
0x24e3   : > { %5114 = vmatprep.subr.mxu0 %v7909_v53 }
0x24e4   : > { %5115 = vmatpush3.msra.mxu0 %v7197_v21 }
0x24e5   : > { %5116 = vmatprep.subr.mxu0 %v7909_v53 }
0x24e6   : > { %5117 = vmatpush3.msra.mxu0 %v7201_v11 }
0x24e7   : > { %3916 = vmatprep.subr.mxu0 %v7040_v23  ;;  %v750_v23 = vfloor.f32 %v749_v41 }
0x24e9   : > { %v751_v25 = vmul.f32 %v750_v23, %v6512_v46 }
0x2555   : > { %v3397_v16 = vpop.xlane.xlu1 %3396 }
0x2556   : > { %v3398_v4 = vmul.f32 0.03125, %v3397_v16 }
0x2558   : > { %v3399_v40 = vadd.f32 1e-05, %v3398_v4 }
0x255a   : > { %5542 = vrsqrt.f32 %v3399_v40 }
0x2567   : > { %v5543_v63 = vpop.eup %5542 }
0x2568   : > { %v3401_v42 = vmul.f32 %v5543_v63, %v3389_v10  ;;  %v752_v10 = vsub.f32 %v746_v55, %v751_v25 }
0x256a   : > { %v3402_v54 = vmul.f32 %v3401_v42, %v6515_v50  ;;  %vm753_vm6 = vcmp.eq.f32.partialorder %v752_v10, %v6512_v46 }
0x256b   : > { %v754_v17 = vsel %vm753_vm6, 0.0, %v752_v10 }
0x256c   : > { %v7209_v52 = vadd.f32 %v3402_v54, %v6522_v18  ;;  %v755_v9 = vand.u32 2147483647, %v754_v17 }
0x256e   : > { %5544 = vtanh.f32 %v7209_v52  ;;  %v757_v34 = vor.u32 %v756_v0, %v755_v9 }
0x2570   : > { %vm806_vm8 = vcmp.lt.f32.partialorder %v757_v34, 0.0  ;;  %vm798_vm9 = vcmp.ne.f32.partialorder %v757_v34, 0.0  ;;  %v837_v16 = vadd.f32 %v757_v34, %v7933_v19 }
0x2571   : > { %vm821_vm10 = vmxor %vm806_vm8, %vm6541_vm7 }
0x2572   : > { %vm829_vm11 = vmand %vm821_vm10, %vm798_vm9 }
0x2573   : > { %v845_v4 = vsel %vm829_vm11, %v837_v16, %v757_v34 }
0x2574   : > { %v854_v40 = vmul.f32 %v7934_v58, %v845_v4 }
0x2576   : > { %v862_v42 = vmul.f32 6.2831855, %v854_v40 }
0x2578   : > { %v7223_v55 = vmul.f32 %v7935_v62, %v862_v42 }
0x257a   : > { %v1294_v2 = vand.u32 2139095040, %v7223_v55  ;;  %v7861_v34 = vand.u32 2147483647, %v7223_v55  ;;  %vm1293_vm6 = vcmp.lt.s32.totalorder %v7223_v55, 0 }
0x257b   : > { %v5545_v61 = vpop.eup %5544 }
0x257c   : > { %3500 = vrot.lane.b32.xlu1 %v5545_v61, %s6015_s18  ;;  %v1295_v41 = vshrl.u32 %v1294_v2, 23 }
0x257e   : > { %v4819_v23 = vadd.s32 4294967169, %v1295_v41 }
0x2580   : > { %v1301_v25 = vadd.s32 1, %v4819_v23 }
0x2582   : > { %vm1302_vm12 = vcmp.gt.s32.totalorder %v1301_v25, 0 }
0x2583   : > { %v1303_v61 = vsel %vm1302_vm12, %v1301_v25, 0  ;;  %vm1383_vm12 = vweird.f32 %v7223_v55 }
0x2584   : > { %v1305_v10 = vand.u32 31, %v1303_v61  ;;  %v1304_v16 = vshrl.u32 %v1303_v61, 5  ;;  %v1298_v61 = vand.u32 8388607, %v7861_v34 }
0x2586   : > { %v1306_v17 = vsub.s32 32, %v1305_v10  ;;  %v1317_v4 = vshll.u32 %v7937_v27, %v1305_v10  ;;  %v1320_v2 = vshll.u32 %v7922_v15, %v1305_v10  ;;  %v1308_v23 = vshll.u32 %v7907_v8, %v1305_v10 }
0x2587   : > { %v1311_v25 = vshll.u32 %v7938_v45, %v1305_v10  ;;  %v1314_v14 = vshll.u32 %v7926_v1, %v1305_v10  ;;  %vm1326_vm2 = vcmp.lt.s32.totalorder %v1304_v16, 4  ;;  %vm1323_vm14 = vcmp.lt.s32.totalorder %v1304_v16, 1 }
0x2588   : > { %v1318_v9 = vshrl.u32 %v7922_v15, %v1306_v17  ;;  %v1321_v0 = vshrl.u32 %v7936_v33, %v1306_v17  ;;  %v1309_v40 = vshrl.u32 %v7938_v45, %v1306_v17  ;;  %v1312_v42 = vshrl.u32 %v7926_v1, %v1306_v17 }
0x2589   : > { %vm1325_vm15 = vcmp.lt.s32.totalorder %v1304_v16, 3  ;;  %vm1324_vm0 = vcmp.lt.s32.totalorder %v1304_v16, 2 }
0x258a   : > { %v1319_v41 = vor.u32 %v1318_v9, %v1317_v4  ;;  %v1322_v3 = vor.u32 %v1321_v0, %v1320_v2  ;;  %v1310_v33 = vor.u32 %v1309_v40, %v1308_v23  ;;  %v1313_v62 = vor.u32 %v1312_v42, %v1311_v25 }
0x258b   : > { %v1299_v9 = vor.u32 8388608, %v1298_v61  ;;  %v1307_v61 = vshrl.u32 %v7907_v8, %v1306_v17 }
0x258c   : > { %v1332_v19 = vsel %vm1326_vm2, %v1319_v41, 920167782  ;;  %v1331_v4 = vsel %vm1323_vm14, %v1310_v33, %v1313_v62 }
0x259f   : > { %v7220_v63 = vpop.f32.mrf.mxu0 }
0x25a1   : > { %v5109_v54 = vpop.f32.mrf.mxu0 }
0x25a2   : > { %v1315_v54 = vshrl.u32 %v7937_v27, %v1306_v17  ;;  %v1336_v27 = vsel %vm1326_vm2, %v1322_v3, 1326507024 }
0x25a3   : > { %v1337_v0 = vsel %vm1325_vm15, %v1319_v41, %v1336_v27 }
0x25a4   : > { %v1316_v58 = vor.u32 %v1315_v54, %v1314_v14  ;;  %v1339_v14 = vshll.u32 %v1299_v9, 8 }
0x25a6   : > { %v1333_v45 = vsel %vm1325_vm15, %v1316_v58, %v1332_v19  ;;  %v1335_v10 = vsel %vm1323_vm14, %v1313_v62, %v1316_v58  ;;  %v1328_v25 = vsel %vm1326_vm2, %v1316_v58, 2102212464  ;;  %v1327_v19 = vsel %vm1323_vm14, %v1307_v61, %v1310_v33 }
0x25a7   : > { %v1334_v40 = vsel %vm1324_vm0, %v1331_v4, %v1333_v45  ;;  %v1338_v42 = vsel %vm1324_vm0, %v1335_v10, %v1337_v0  ;;  %v1329_v34 = vsel %vm1325_vm15, %v1313_v62, %v1328_v25 }
0x25a8   : > { %v7245_v54 = vmul.u32.u64.low %v1339_v14, %v1334_v40  ;;  %v7246_v2 = vmul.u32.u64.high %v1339_v14, %v1334_v40, %v7245_v54  ;;  %v7248_v23 = vmul.u32.u64.low %v1339_v14, %v1338_v42  ;;  %v7249_v3 = vmul.u32.u64.high %v1339_v14, %v1338_v42, %v7248_v23 }
0x25a9   : > { %v1330_v45 = vsel %vm1324_vm0, %v1327_v19, %v1329_v34 }
0x25aa   : > { %v1349_v27 = vadd.s32 1, %v7246_v2  ;;  %vm1348_vm1 = vc.u32 %v7249_v3, %v7245_v54  ;;  %v1346_v9 = vmul.u32 %v1339_v14, %v1330_v45  ;;  %v1347_v14 = vadd.s32 %v7245_v54, %v7249_v3 }
0x25ab   : > { %v3489_v54 = vadd.f32 %v7220_v63, %v6605_v60 }
0x25ac   : > { %v1350_v41 = vsel %vm1348_vm1, %v1349_v27, %v7246_v2 }
0x25ad   : > { %v1351_v4 = vadd.s32 %v1350_v41, %v1346_v9 }
0x25af   : > { %v1352_v10 = vadd.s32 536870912, %v1351_v4 }
0x25b1   : > { %v1353_v40 = vshrl.u32 %v1352_v10, 30 }
0x25b3   : > { %v1354_v17 = vshll.u32 %v1353_v40, 30  ;;  %v1377_v3 = vsub.s32 4, %v1353_v40 }
0x25b5   : > { %v1355_v33 = vsub.s32 %v1351_v4, %v1354_v17  ;;  %v7941_v17 = vand.u32 2147483647, %v7223_v55 }
0x25b7   : > { %v1357_v16 = vsub.s32 0, %v1355_v33  ;;  %vm1292_vm8 = vcmp.le.f32.partialorder %v7941_v17, 0.7853982 }
0x25b9   : > { %v4820_v62 = vmin.u32 %v1357_v16, %v1355_v33 }
0x25bb   : > { %v1359_v42 = vclz %v4820_v62  ;;  %v1378_v62 = vsel %vm1293_vm6, %v1377_v3, %v1353_v40 }
0x25bd   : > { %v4821_v23 = vadd.s32 4294967294, %v1359_v42 }
0x25bf   : > { %vm4822_vm5 = vcmp.lt.s32.totalorder %v4821_v23, 0 }
0x25c0   : > { %v1362_v25 = vsel %vm4822_vm5, 0, %v4821_v23  ;;  %v1380_v23 = vsel %vm1292_vm8, 0, %v1378_v62 }
0x25c1   : > { %v1367_v34 = vsub.s32 4294967266, %v1362_v25  ;;  %v1363_v2 = vsub.s32 32, %v1362_v25  ;;  %v1364_v45 = vshll.u32 %v1355_v33, %v1362_v25  ;;  %v4878_v33 = vmul.f32 -1.442695, %v3489_v54 }
0x25c3   : > { %v1368_v61 = vadd.s32 127, %v1367_v34  ;;  %v1365_v27 = vshrl.u32 %v1347_v14, %v1363_v2  ;;  %v1384_v34 = vand.u32 3, %v1380_v23 }
0x25c5   : > { %v1369_v19 = vshll.u32 %v1368_v61, 23  ;;  %vm1386_vm9 = vcmp.eq.s32.totalorder %v1384_v34, 0  ;;  %vm1389_vm10 = vcmp.eq.s32.totalorder %v1384_v34, 2  ;;  %vm1385_vm11 = vcmp.lt.s32.totalorder %v1384_v34, 2 }
0x25c7   : > { %v1370_v41 = vor.u32 4788187, %v1369_v19 }
0x25c9   : > { %v1371_v9 = vand.u32 2147483647, %v1370_v41 }
0x25ee   : > { %v3501_v0 = vpop.permute.xlu1 %3500 }
0x25ef   : > { %v3503_v58 = vmul.f32 %v7142_v7, %v3501_v0  ;;  %v1366_v7 = vor.u32 %v1365_v27, %v1364_v45 }
0x25f1   : > { %3505 = vrot.lane.b32.xlu0 %v3503_v58, %s6012_s12  ;;  %v1373_v10 = vcvt.s32.f32 %v1366_v7 }
0x25f3   : > { %v1374_v0 = vmul.f32 %v1373_v10, %v1371_v9 }
0x25f5   : > { %v1375_v4 = vxor.u32 2147483648, %v1374_v0 }
0x25f7   : > { %v1376_v58 = vsel %vm1293_vm6, %v1375_v4, %v1374_v0 }
0x25f8   : > { %v1379_v16 = vsel %vm1292_vm8, %v7223_v55, %v1376_v58 }
0x25f9   : > { %5546 = vcosq.f32 %v1379_v16 }
0x25fa   : > { %5548 = vsinq.f32 %v1379_v16 }
0x25fb   : > { %5550 = vpow2.f32 %v4878_v33 }
0x2606   : > { %v5547_v42 = vpop.eup %5546 }
0x2607   : > { %v5549_v25 = vpop.eup %5548  ;;  %v1390_v2 = vxor.u32 2147483648, %v5547_v42 }
0x2608   : > { %v1387_v61 = vxor.u32 2147483648, %v5549_v25  ;;  %v5551_v45 = vpop.eup %5550 }
0x2609   : > { %v1391_v19 = vsel %vm1389_vm10, %v1390_v2, %v5549_v25  ;;  %v3495_v41 = vadd.f32 1.0, %v5551_v45 }
0x260a   : > { %v1388_v14 = vsel %vm1386_vm9, %v5547_v42, %v1387_v61 }
0x260b   : > { %v1392_v27 = vsel %vm1385_vm11, %v1388_v14, %v1391_v19  ;;  %5552 = vrcp.f32 %v3495_v41  ;;  %v5686_v19 = vld [vmem:[%s6295_s4 + $0x28] sm:$0xff] }
0x260c   : > { %v1393_v63 = vsel %vm1383_vm12, nan, %v1392_v27  ;;  %5554 = vtanh.f32 %v7183_v36 }
0x260d   : > { %v1707_v7 = vadd.f32 1.0, %v1393_v63 }
0x260f   : > { %v1715_v40 = vmul.f32 0.5, %v1707_v7 }
0x2611   : > { %v1723_v9 = vmax.f32 %v1715_v40, 0.0 }
0x2613   : > { %v1731_v10 = vmin.f32 %v1723_v9, 1.0 }
0x2615   : > { %v3509_v0 = vsub.f32 1.0, %v1731_v10 }
0x2617   : > { %v3510_v16 = vmul.f32 %v3509_v0, %v7113_v43  ;;  %v7942_v0 = vld [vmem:[#allocation38_spill] sm:$0xff] }
0x2618   : > { %v5553_v4 = vpop.eup %5552 }
0x2619   : > { %v3513_v54 = vsub.f32 1.0, %v5553_v4  ;;  %v5555_v55 = vpop.eup %5554 }
0x261b   : > { %v3515_v62 = vmul.f32 %v5555_v55, %v3513_v54 }
0x2663   : > { %v3506_v58 = vpop.permute.xlu0 %3505 }
0x2664   : > { %v3508_v17 = vmul.f32 %v3506_v58, %v1731_v10 }
0x2666   : > { %v3511_v3 = vadd.f32 %v3510_v16, %v3508_v17 }
0x2668   : > { %v3512_v33 = vmul.f32 %v5553_v4, %v3511_v3 }
0x266a   : > { %v3516_v42 = vadd.f32 %v3515_v62, %v3512_v33 }
0x266c   : > { %v3517_v23 = vsel %vm1750_vm3, %v3516_v42, 0.0 }
0x266d   : > { %3518 = vadd.xlane.f32.xlu1 %v3517_v23 }
0x26f6   : > { %v3519_v25 = vpop.xlane.xlu1 %3518 }
0x26f7   : > { %v3520_v34 = vmul.f32 0.03125, %v3519_v25 }
0x26f9   : > { %v3521_v61 = vsub.f32 %v3516_v42, %v3520_v34  ;;  %v7943_v42 = vld [vmem:[#allocation37_spill] sm:$0xff] }
0x26fb   : > { %v3522_v2 = vmul.f32 %v3521_v61, %v3521_v61 }
0x26fd   : > { %v3523_v14 = vsel %vm1750_vm3, %v3522_v2, 0.0 }
0x26fe   : > { %3524 = vadd.xlane.f32.xlu0 %v3523_v14 }
0x2714   : > { %647 = vperm.xlu0 %5379, %v5686_v19  }
0x2787   : > { %v3525_v43 = vpop.xlane.xlu0 %3524 }
0x2788   : > { %v3526_v27 = vmul.f32 0.03125, %v3525_v43 }
0x278a   : > { %v3527_v45 = vadd.f32 1e-05, %v3526_v27 }
0x278c   : > { %5556 = vrsqrt.f32 %v3527_v45 }
0x278f   : > { %v7297_v55 = vpop.permute.xlu0 %647 }
0x2790   : > { %v667_v33 = vmul.f32 %v6397_v47, %v7297_v55 }
0x2792   : > { %v679_v25 = vadd.f32 %v6402_v49, %v667_v33 }
0x2799   : > { %v5557_v63 = vpop.eup %5556 }
0x279a   : > { %v3529_v41 = vmul.f32 %v5557_v63, %v3521_v61 }
0x279c   : > { %v3530_v7 = vmul.f32 %v3529_v41, %v6373_v31 }
0x279e   : > { %v7275_v40 = vadd.f32 %v3530_v7, %v6379_v32 }
0x27a0   : > { %4882 = vmatmul.mubr.msk.f32.vlgmr.msra.gmra.mxu1 %vm1750_vm3, %v7275_v40  ;;  %4879 = vst.msk [vmem:[%s6319_s14 + $0x20] sm:$0xff] %vm1750_vm3, %v7275_v40 }
0x27a1   : > { %5122 = vmatpush3.msra.mxu1 %v6479_v29  ;;  %5129 = vmatprep.mubr.msk.f32.mxu1 %vm6016_vm4, %v7909_v53  ;;  %4880 = vst.msk [vmem:[%s6319_s14 + $0x20] sm:$0xff] %vm2132_vm13, %v7209_v52 }
0x27a2   : > { %5123 = vmatprep.subr.mxu1 %v7909_v53 }
0x27a3   : > { %5124 = vmatpush3.msra.mxu1 %v6475_v6 }
0x27a4   : > { %5125 = vmatprep.subr.mxu1 %v7909_v53 }
0x27a5   : > { %5126 = vmatpush3.msra.mxu1 %v6477_v12 }
0x27a6   : > { %5127 = vmatprep.subr.mxu1 %v7909_v53 }
0x27a7   : > { %5128 = vmatpush3.msra.mxu1 %v6485_v35 }
0x27a8   : > { %5132 = vmatprep.subr.mxu1 %v7909_v53 }
0x2860   : > { %v3608_v9 = vpop.f32.mrf.mxu1 }
0x2862   : > { %v3610_v10 = vpop.f32.mrf.mxu1 }
0x2863   : > { %v3613_v4 = vadd.f32 %v3610_v10, %v7942_v0 }
0x2865   : > { %v3614_v58 = vadd.f32 %v3613_v4, %v6387_v37 }
0x2867   : > { %v4883_v17 = vmul.f32 -1.442695, %v3614_v58 }
0x2869   : > { %5558 = vpow2.f32 %v4883_v17 }
0x2876   : > { %v5559_v16 = vpop.eup %5558 }
0x2877   : > { %v3618_v54 = vadd.f32 1.0, %v5559_v16  ;;  %v3647_v16 = vadd.f32 %v3613_v4, %v6460_v38 }
0x2879   : > { %5560 = vrcp.f32 %v3618_v54 }
0x2886   : > { %v5561_v3 = vpop.eup %5560 }
0x2887   : > { %3623 = vperm.xlu1 %5380, %v5561_v3  }
0x2902   : > { %v3624_v62 = vpop.permute.xlu1 %3623 }
0x2903   : > { %v3626_v23 = vmul.f32 %v3624_v62, %v7943_v42 }
0x2905   : > { %v3627_v34 = vadd.f32 %v3626_v23, %v3608_v9 }
0x2907   : > { %v3628_v61 = vadd.f32 %v3627_v34, %v679_v25 }
0x2909   : > { %5562 = vtanh.f32 %v3628_v61  ;;  %v4884_v14 = vmul.f32 -1.442695, %v3628_v61 }
0x290b   : > { %5564 = vpow2.f32 %v4884_v14 }
0x2916   : > { %v5563_v2 = vpop.eup %5562 }
0x2917   : > { %3638 = vrot.lane.b32.xlu1 %v5563_v2, %s6015_s18 }
0x2918   : > { %v5565_v19 = vpop.eup %5564 }
0x2919   : > { %v3632_v43 = vadd.f32 1.0, %v5565_v19 }
0x291b   : > { %5566 = vrcp.f32 %v3632_v43 }
0x2928   : > { %v7304_v27 = vpop.eup %5566 }
0x2929   : > { %v3636_v41 = vmul.f32 %v7304_v27, %v7209_v52 }
0x2989   : > { %v3639_v45 = vpop.permute.xlu1 %3638 }
0x298a   : > { %v3641_v63 = vmul.f32 %v7304_v27, %v3639_v45 }
0x298c   : > { %3643 = vrot.lane.b32.xlu0 %v3641_v63, %s6012_s12 }
0x29fe   : > { %v3644_v7 = vpop.permute.xlu0 %3643 }
0x29ff   : > { %v3646_v9 = vadd.f32 %v3644_v7, %v3636_v41 }
0x2a01   : > { %3650 = vrot.lane.b32.xlu1 %v3646_v9, %s6017_s21 }
0x2a73   : > { %v3651_v10 = vpop.permute.xlu1 %3650 }
0x2a74   : > { %5119 = vmatmul.mubr.msk.f32.vlgmr.msra.gmra.mxu0 %vm1750_vm3, %v3651_v10  ;;  %v3735_v0 = vsel %vm1750_vm3, %v3651_v10, 0.0 }
0x2a75   : > { %3736 = vadd.xlane.f32.xlu1 %v3735_v0  ;;  %3917 = vmatpush1.msra.mxu0 %v7151_v22 }
0x2a76   : > { %3918 = vmatprep.subr.mxu0 %v7154_v48  ;;  %3956 = vmatprep.mubr.f32.mxu0 %v7909_v53 }
0x2a77   : > { %3919 = vmatpush1.msra.mxu0 %v7158_v44 }
0x2a78   : > { %3920 = vmatprep.subr.mxu0 %v7161_v24 }
0x2a79   : > { %3921 = vmatpush1.msra.mxu0 %v7164_v56 }
0x2a7a   : > { %3922 = vmatprep.subr.mxu0 %v7167_v59 }
0x2a7b   : > { %3923 = vmatpush1.msra.mxu0 %v7170_v39 }
0x2a7c   : > { %5143 = vmatprep.subr.mxu0 %v7909_v53 }
0x2afe   : > { %v3737_v4 = vpop.xlane.xlu1 %3736 }
0x2aff   : > { %v3738_v61 = vmul.f32 0.03125, %v3737_v4 }
0x2b01   : > { %v3739_v2 = vsub.f32 %v3646_v9, %v3738_v61  ;;  %v5687_v9 = vld [vmem:[#allocation11 + $0x38] sm:$0xff] }
0x2b03   : > { %v3740_v14 = vmul.f32 %v3739_v2, %v3739_v2 }
0x2b34   : > { %v3720_v52 = vpop.f32.mrf.mxu0 }
0x2b35   : > { %v3721_v58 = vadd.f32 %v3720_v52, %v6455_v20 }
0x2b36   : > { %v5120_v22 = vpop.f32.mrf.mxu0 }
0x2b37   : > { %v4886_v17 = vmul.f32 -1.442695, %v3721_v58 }
0x2b39   : > { %5568 = vpow2.f32 %v4886_v17 }
0x2b46   : > { %v5569_v48 = vpop.eup %5568 }
0x2b47   : > { %v3727_v44 = vadd.f32 1.0, %v5569_v48 }
0x2b49   : > { %5570 = vrcp.f32 %v3727_v44 }
0x2b4a   : > { %5572 = vtanh.f32 %v3647_v16  ;;  %v691_v16 = vsub.f32 %v7297_v55, %v6520_v51 }
0x2b56   : > { %v5571_v24 = vpop.eup %5570 }
0x2b57   : > { %v3731_v56 = vsub.f32 1.0, %v5571_v24  ;;  %v5573_v54 = vpop.eup %5572  ;;  %v3730_v59 = vmul.f32 %v5571_v24, %v7183_v36 }
0x2b59   : > { %v3732_v39 = vmul.f32 %v5573_v54, %v3731_v56 }
0x2b5b   : > { %v3733_v3 = vadd.f32 %v3732_v39, %v3730_v59 }
0x2b5d   : > { %v3754_v33 = vsel %vm1750_vm3, %v3733_v3, 0.0 }
0x2b5e   : > { %3755 = vadd.xlane.f32.xlu0 %v3754_v33 }
0x2be7   : > { %v3756_v62 = vpop.xlane.xlu0 %3755 }
0x2be8   : > { %v3757_v42 = vmul.f32 0.03125, %v3756_v62  ;;  %v7944_v62 = vld [vmem:[#allocation30_spill] sm:$0xff] }
0x2bea   : > { %v3758_v23 = vsub.f32 %v3733_v3, %v3757_v42  ;;  %v768_v3 = vand.u32 2147483648, %v691_v16 }
0x2bec   : > { %v3759_v25 = vmul.f32 %v3758_v23, %v3758_v23 }
0x2bee   : > { %v3760_v34 = vsel %vm1750_vm3, %v3759_v25, 0.0  ;;  %v7945_v25 = vld [vmem:[#allocation32_spill] sm:$0xff] }
0x2bef   : > { %3761 = vadd.xlane.f32.xlu0 %v3760_v34 }
0x2c05   : > { %3742 = vrot.lane.b32.xlu0 %v3740_v14, %s6017_s21  ;;  %v7946_v14 = vld [vmem:[#allocation33_spill] sm:$0xff] }
0x2c78   : > { %v3762_v19 = vpop.xlane.xlu0 %3761 }
0x2c79   : > { %v3763_v43 = vmul.f32 0.03125, %v3762_v19 }
0x2c7b   : > { %v3764_v45 = vadd.f32 1e-05, %v3763_v43 }
0x2c7c   : > { %v3743_v63 = vpop.permute.xlu0 %3742 }
0x2c7d   : > { %5574 = vrsqrt.f32 %v3764_v45  ;;  %v3745_v41 = vsel %vm1750_vm3, %v3743_v63, 0.0 }
0x2c7e   : > { %3746 = vadd.xlane.f32.xlu1 %v3745_v41 }
0x2c8a   : > { %v5575_v7 = vpop.eup %5574 }
0x2c8b   : > { %v3766_v10 = vmul.f32 %v5575_v7, %v3758_v23 }
0x2c8d   : > { %v3767_v0 = vmul.f32 %v3766_v10, %v6358_v26 }
0x2c8f   : > { %v7331_v52 = vadd.f32 %v3767_v0, %v6369_v30 }
0x2c91   : > { %5130 = vmatmul.mubr.msk.f32.vlgmr.msra.gmra.mxu1 %vm1750_vm3, %v7331_v52 }
0x2c92   : > { %5133 = vmatpush3.msra.mxu1 %v7187_v13  ;;  %5140 = vmatprep.mubr.msk.f32.mxu1 %vm6016_vm4, %v7909_v53 }
0x2c93   : > { %5134 = vmatprep.subr.mxu1 %v7909_v53 }
0x2c94   : > { %5135 = vmatpush3.msra.mxu1 %v7193_v5 }
0x2c95   : > { %5136 = vmatprep.subr.mxu1 %v7909_v53 }
0x2c96   : > { %5137 = vmatpush3.msra.mxu1 %v7197_v21  ;;  %v758_v21 = vand.u32 2147483647, %v691_v16 }
0x2c97   : > { %5138 = vmatprep.subr.mxu1 %v7909_v53 }
0x2c98   : > { %5139 = vmatpush3.msra.mxu1 %v7201_v11  ;;  %v761_v11 = vmul.f32 %v6531_v57, %v758_v21 }
0x2c99   : > { %4266 = vmatprep.subr.mxu1 %v5687_v9 }
0x2c9a   : > { %v762_v24 = vfloor.f32 %v761_v11 }
0x2c9c   : > { %v763_v56 = vmul.f32 %v762_v24, %v6512_v46 }
0x2c9e   : > { %v764_v59 = vsub.f32 %v758_v21, %v763_v56 }
0x2ca0   : > { %vm765_vm2 = vcmp.eq.f32.partialorder %v764_v59, %v6512_v46 }
0x2ca1   : > { %v766_v55 = vsel %vm765_vm2, 0.0, %v764_v59 }
0x2ca2   : > { %v767_v39 = vand.u32 2147483647, %v766_v55 }
0x2ca4   : > { %v769_v33 = vor.u32 %v768_v3, %v767_v39 }
0x2ca6   : > { %vm807_vm14 = vcmp.lt.f32.partialorder %v769_v33, 0.0  ;;  %vm799_vm15 = vcmp.ne.f32.partialorder %v769_v33, 0.0  ;;  %v838_v42 = vadd.f32 %v769_v33, %v7944_v62 }
0x2ca7   : > { %vm822_vm0 = vmxor %vm807_vm14, %vm6541_vm7 }
0x2ca8   : > { %vm830_vm1 = vmand %vm822_vm0, %vm799_vm15 }
0x2ca9   : > { %v846_v23 = vsel %vm830_vm1, %v838_v42, %v769_v33 }
0x2caa   : > { %v855_v34 = vmul.f32 %v7945_v25, %v846_v23 }
0x2cac   : > { %v863_v61 = vmul.f32 6.2831855, %v855_v34 }
0x2cae   : > { %v7362_v19 = vmul.f32 %v7946_v14, %v863_v61 }
0x2cb0   : > { %v1397_v43 = vand.u32 2139095040, %v7362_v19  ;;  %vm1396_vm2 = vcmp.lt.s32.totalorder %v7362_v19, 0 }
0x2cb2   : > { %v1398_v45 = vshrl.u32 %v1397_v43, 23 }
0x2cb4   : > { %v4823_v63 = vadd.s32 4294967169, %v1398_v45 }
0x2cb6   : > { %v1404_v41 = vadd.s32 1, %v4823_v63 }
0x2cb8   : > { %vm1405_vm5 = vcmp.gt.s32.totalorder %v1404_v41, 0 }
0x2cb9   : > { %v1406_v7 = vsel %vm1405_vm5, %v1404_v41, 0  ;;  %vm1486_vm5 = vweird.f32 %v7362_v19 }
0x2cba   : > { %v1408_v10 = vand.u32 31, %v1406_v7 }
0x2cbc   : > { %v1409_v0 = vsub.s32 32, %v1408_v10  ;;  %v1423_v56 = vshll.u32 %v7922_v15, %v1408_v10  ;;  %v1411_v59 = vshll.u32 %v7907_v8, %v1408_v10  ;;  %v1417_v39 = vshll.u32 %v7926_v1, %v1408_v10 }
0x2cbe   : > { %v1421_v9 = vshrl.u32 %v7922_v15, %v1409_v0  ;;  %v1415_v11 = vshrl.u32 %v7926_v1, %v1409_v0 }
0x2d07   : > { %v3747_v58 = vpop.xlane.xlu1 %3746 }
0x2d08   : > { %v3748_v22 = vmul.f32 0.03125, %v3747_v58  ;;  %v7947_v58 = vmov 1326507024  }
0x2d0a   : > { %v3749_v13 = vadd.f32 1e-05, %v3748_v22  ;;  %v1424_v22 = vshrl.u32 %v7947_v58, %v1409_v0 }
0x2d0c   : > { %5576 = vrsqrt.f32 %v3749_v13  ;;  %v1394_v13 = vand.u32 2147483647, %v7362_v19  ;;  %v1425_v3 = vor.u32 %v1424_v22, %v1423_v56 }
0x2d0e   : > { %v1401_v33 = vand.u32 8388607, %v1394_v13  ;;  %vm1395_vm14 = vcmp.le.f32.partialorder %v1394_v13, 0.7853982 }
0x2d10   : > { %v1402_v43 = vor.u32 8388608, %v1401_v33 }
0x2d12   : > { %v1442_v22 = vshll.u32 %v1402_v43, 8 }
0x2d19   : > { %v5577_v17 = vpop.eup %5576 }
0x2d1a   : > { %v3751_v48 = vmul.f32 %v5577_v17, %v3739_v2  ;;  %v1407_v17 = vshrl.u32 %v1406_v7, 5 }
0x2d1c   : > { %v3752_v5 = vmul.f32 %v3751_v48, %v6515_v50  ;;  %v7948_v48 = vmov 2102212464   ;;  %vm1429_vm6 = vcmp.lt.s32.totalorder %v1407_v17, 4  ;;  %vm1426_vm8 = vcmp.lt.s32.totalorder %v1407_v17, 1 }
0x2d1d   : > { %v1420_v16 = vshll.u32 %v7948_v48, %v1408_v10  ;;  %v1418_v24 = vshrl.u32 %v7948_v48, %v1409_v0  ;;  %vm1428_vm9 = vcmp.lt.s32.totalorder %v1407_v17, 3  ;;  %vm1427_vm10 = vcmp.lt.s32.totalorder %v1407_v17, 2 }
0x2d1e   : > { %v7348_v44 = vadd.f32 %v3752_v5, %v6522_v18  ;;  %v7949_v5 = vmov 2475754826  }
0x2d1f   : > { %v1412_v21 = vshrl.u32 %v7949_v5, %v1409_v0  ;;  %v1414_v55 = vshll.u32 %v7949_v5, %v1408_v10  ;;  %v1419_v34 = vor.u32 %v1418_v24, %v1417_v39 }
0x2d20   : > { %5578 = vtanh.f32 %v7348_v44 }
0x2d21   : > { %v1413_v42 = vor.u32 %v1412_v21, %v1411_v59  ;;  %v1416_v23 = vor.u32 %v1415_v11, %v1414_v55  ;;  %v1431_v56 = vsel %vm1429_vm6, %v1419_v34, 2102212464  ;;  %v1410_v59 = vshrl.u32 %v7907_v8, %v1409_v0 }
0x2d23   : > { %v1434_v45 = vsel %vm1426_vm8, %v1413_v42, %v1416_v23  ;;  %v1438_v41 = vsel %vm1426_vm8, %v1416_v23, %v1419_v34  ;;  %v1430_v55 = vsel %vm1426_vm8, %v1410_v59, %v1413_v42  ;;  %v1432_v39 = vsel %vm1428_vm9, %v1416_v23, %v1431_v56 }
0x2d2d   : > { %v5579_v54 = vpop.eup %5578 }
0x2d2e   : > { %3850 = vrot.lane.b32.xlu1 %v5579_v54, %s6015_s18  ;;  %v1422_v54 = vor.u32 %v1421_v9, %v1420_v16 }
0x2d30   : > { %v1435_v61 = vsel %vm1429_vm6, %v1422_v54, 920167782 }
0x2d31   : > { %v1436_v63 = vsel %vm1428_vm9, %v1419_v34, %v1435_v61 }
0x2d32   : > { %v1437_v10 = vsel %vm1427_vm10, %v1434_v45, %v1436_v63 }
0x2d33   : > { %v7384_v16 = vmul.u32.u64.low %v1442_v22, %v1437_v10  ;;  %v7385_v21 = vmul.u32.u64.high %v1442_v22, %v1437_v10, %v7384_v16 }
0x2d51   : > { %v7359_v4 = vpop.f32.mrf.mxu1 }
0x2d53   : > { %v5131_v2 = vpop.f32.mrf.mxu1 }
0x2d54   : > { %v1439_v2 = vsel %vm1429_vm6, %v1425_v3, 1326507024  ;;  %v1433_v3 = vsel %vm1427_vm10, %v1430_v55, %v1432_v39 }
0x2d55   : > { %v1440_v7 = vsel %vm1428_vm9, %v1422_v54, %v1439_v2  ;;  %v1452_v54 = vadd.s32 1, %v7385_v21  ;;  %v1449_v61 = vmul.u32 %v1442_v22, %v1433_v3 }
0x2d56   : > { %v1441_v9 = vsel %vm1427_vm10, %v1438_v41, %v1440_v7 }
0x2d57   : > { %v7387_v11 = vmul.u32.u64.low %v1442_v22, %v1441_v9  ;;  %v7388_v24 = vmul.u32.u64.high %v1442_v22, %v1441_v9, %v7387_v11 }
0x2d59   : > { %vm1451_vm11 = vc.u32 %v7388_v24, %v7384_v16  ;;  %v1450_v22 = vadd.s32 %v7384_v16, %v7388_v24  ;;  %v3839_v16 = vadd.f32 %v7359_v4, %v6605_v60 }
0x2d5a   : > { %v1453_v33 = vsel %vm1451_vm11, %v1452_v54, %v7385_v21 }
0x2d5b   : > { %v1454_v2 = vadd.s32 %v1453_v33, %v1449_v61 }
0x2d5d   : > { %v1455_v43 = vadd.s32 536870912, %v1454_v2 }
0x2d5f   : > { %v1456_v63 = vshrl.u32 %v1455_v43, 30 }
0x2d61   : > { %v1457_v0 = vshll.u32 %v1456_v63, 30  ;;  %v1480_v24 = vsub.s32 4, %v1456_v63 }
0x2d63   : > { %v1458_v42 = vsub.s32 %v1454_v2, %v1457_v0 }
0x2d65   : > { %v1460_v17 = vsub.s32 0, %v1458_v42 }
0x2d67   : > { %v4824_v23 = vmin.u32 %v1460_v17, %v1458_v42 }
0x2d69   : > { %v1462_v41 = vclz %v4824_v23 }
0x2d6b   : > { %v4825_v7 = vadd.s32 4294967294, %v1462_v41 }
0x2d6d   : > { %vm4826_vm12 = vcmp.lt.s32.totalorder %v4825_v7, 0 }
0x2d6e   : > { %v1465_v10 = vsel %vm4826_vm12, 0, %v4825_v7 }
0x2d6f   : > { %v1470_v9 = vsub.s32 4294967266, %v1465_v10  ;;  %v1466_v21 = vsub.s32 32, %v1465_v10  ;;  %v1467_v55 = vshll.u32 %v1458_v42, %v1465_v10 }
0x2d71   : > { %v1471_v11 = vadd.s32 127, %v1470_v9  ;;  %v1468_v59 = vshrl.u32 %v1450_v22, %v1466_v21 }
0x2d73   : > { %v1472_v56 = vshll.u32 %v1471_v11, 23 }
0x2d75   : > { %v1473_v39 = vor.u32 4788187, %v1472_v56 }
0x2d77   : > { %v1474_v54 = vand.u32 2147483647, %v1473_v39 }
0x2da0   : > { %v3851_v45 = vpop.permute.xlu1 %3850 }
0x2da1   : > { %v3853_v34 = vmul.f32 %v7304_v27, %v3851_v45  ;;  %v1469_v27 = vor.u32 %v1468_v59, %v1467_v55  ;;  %v4888_v45 = vmul.f32 -1.442695, %v3839_v16 }
0x2da3   : > { %3855 = vrot.lane.b32.xlu0 %v3853_v34, %s6012_s12  ;;  %v1476_v3 = vcvt.s32.f32 %v1469_v27  ;;  %v1481_v34 = vsel %vm1396_vm2, %v1480_v24, %v1456_v63 }
0x2da4   : > { %v1483_v42 = vsel %vm1395_vm14, 0, %v1481_v34 }
0x2da5   : > { %v1477_v33 = vmul.f32 %v1476_v3, %v1474_v54  ;;  %v1487_v23 = vand.u32 3, %v1483_v42 }
0x2da7   : > { %v1478_v61 = vxor.u32 2147483648, %v1477_v33  ;;  %vm1489_vm15 = vcmp.eq.s32.totalorder %v1487_v23, 0  ;;  %vm1492_vm0 = vcmp.eq.s32.totalorder %v1487_v23, 2  ;;  %vm1488_vm1 = vcmp.lt.s32.totalorder %v1487_v23, 2  ;;  %v5688_v23 = vld [vmem:[%s6295_s4 + $0x30] sm:$0xff] }
0x2da9   : > { %v1479_v2 = vsel %vm1396_vm2, %v1478_v61, %v1477_v33 }
0x2daa   : > { %v1482_v43 = vsel %vm1395_vm14, %v7362_v19, %v1479_v2 }
0x2dab   : > { %5580 = vcosq.f32 %v1482_v43 }
0x2dac   : > { %5582 = vsinq.f32 %v1482_v43 }
0x2dad   : > { %5584 = vpow2.f32 %v4888_v45 }
0x2db8   : > { %v5581_v0 = vpop.eup %5580 }
0x2db9   : > { %v5583_v17 = vpop.eup %5582  ;;  %v1493_v7 = vxor.u32 2147483648, %v5581_v0 }
0x2dba   : > { %v1490_v41 = vxor.u32 2147483648, %v5583_v17  ;;  %v5585_v11 = vpop.eup %5584 }
0x2dbb   : > { %v1494_v10 = vsel %vm1492_vm0, %v1493_v7, %v5583_v17  ;;  %v3845_v21 = vadd.f32 1.0, %v5585_v11 }
0x2dbc   : > { %v1491_v13 = vsel %vm1489_vm15, %v5581_v0, %v1490_v41 }
0x2dbd   : > { %v1495_v9 = vsel %vm1488_vm1, %v1491_v13, %v1494_v10  ;;  %5586 = vrcp.f32 %v3845_v21 }
0x2dbe   : > { %v1496_v4 = vsel %vm1486_vm5, nan, %v1495_v9  ;;  %5588 = vtanh.f32 %v7331_v52 }
0x2dbf   : > { %v1708_v22 = vadd.f32 1.0, %v1496_v4 }
0x2dc1   : > { %v1716_v63 = vmul.f32 0.5, %v1708_v22  ;;  %v7950_v22 = vld [vmem:[#allocation40_spill] sm:$0xff] }
0x2dc3   : > { %v1724_v56 = vmax.f32 %v1716_v63, 0.0 }
0x2dc5   : > { %v1732_v59 = vmin.f32 %v1724_v56, 1.0 }
0x2dc7   : > { %v3859_v55 = vsub.f32 1.0, %v1732_v59 }
0x2dc9   : > { %v3860_v3 = vmul.f32 %v3859_v55, %v7275_v40 }
0x2dca   : > { %v5587_v39 = vpop.eup %5586 }
0x2dcb   : > { %v3863_v33 = vsub.f32 1.0, %v5587_v39  ;;  %v5589_v19 = vpop.eup %5588 }
0x2dcd   : > { %v3865_v43 = vmul.f32 %v5589_v19, %v3863_v33 }
0x2e15   : > { %v3856_v27 = vpop.permute.xlu0 %3855 }
0x2e16   : > { %v3858_v54 = vmul.f32 %v3856_v27, %v1732_v59 }
0x2e18   : > { %v3861_v61 = vadd.f32 %v3860_v3, %v3858_v54 }
0x2e1a   : > { %v3862_v2 = vmul.f32 %v5587_v39, %v3861_v61  ;;  %v7951_v61 = vld [vmem:[#allocation39_spill] sm:$0xff] }
0x2e1c   : > { %v3866_v16 = vadd.f32 %v3865_v43, %v3862_v2 }
0x2e1e   : > { %v3867_v24 = vsel %vm1750_vm3, %v3866_v16, 0.0 }
0x2e1f   : > { %3868 = vadd.xlane.f32.xlu1 %v3867_v24 }
0x2ea8   : > { %v3869_v45 = vpop.xlane.xlu1 %3868 }
0x2ea9   : > { %v3870_v34 = vmul.f32 0.03125, %v3869_v45 }
0x2eab   : > { %v3871_v0 = vsub.f32 %v3866_v16, %v3870_v34 }
0x2ead   : > { %v3872_v42 = vmul.f32 %v3871_v0, %v3871_v0 }
0x2eaf   : > { %v3873_v17 = vsel %vm1750_vm3, %v3872_v42, 0.0 }
0x2eb0   : > { %3874 = vadd.xlane.f32.xlu0 %v3873_v17 }
0x2ec6   : > { %651 = vperm.xlu0 %5379, %v5688_v23  }
0x2f39   : > { %v3875_v40 = vpop.xlane.xlu0 %3874 }
0x2f3a   : > { %v3876_v41 = vmul.f32 0.03125, %v3875_v40 }
0x2f3c   : > { %v3877_v7 = vadd.f32 1e-05, %v3876_v41 }
0x2f3e   : > { %5590 = vrsqrt.f32 %v3877_v7 }
0x2f41   : > { %v7436_v54 = vpop.permute.xlu0 %651 }
0x2f42   : > { %v668_v3 = vmul.f32 %v6397_v47, %v7436_v54 }
0x2f44   : > { %v680_v2 = vadd.f32 %v6402_v49, %v668_v3 }
0x2f4b   : > { %v5591_v13 = vpop.eup %5590 }
0x2f4c   : > { %v3879_v10 = vmul.f32 %v5591_v13, %v3871_v0 }
0x2f4e   : > { %v3880_v9 = vmul.f32 %v3879_v10, %v6373_v31 }
0x2f50   : > { %v7414_v11 = vadd.f32 %v3880_v9, %v6379_v32  ;;  %v5689_v9 = vld [vmem:[#allocation11 + $0x30] sm:$0xff] }
0x2f52   : > { %4892 = vmatmul.mubr.msk.f32.vlgmr.msra.gmra.mxu0 %vm1750_vm3, %v7414_v11  ;;  %4889 = vst.msk [vmem:[%s6319_s14 + $0x28] sm:$0xff] %vm1750_vm3, %v7414_v11 }
0x2f53   : > { %5144 = vmatpush3.msra.mxu0 %v6479_v29  ;;  %5151 = vmatprep.mubr.msk.f32.mxu0 %vm6016_vm4, %v7909_v53  ;;  %4890 = vst.msk [vmem:[%s6319_s14 + $0x28] sm:$0xff] %vm2132_vm13, %v7348_v44 }
0x2f54   : > { %5145 = vmatprep.subr.mxu0 %v7909_v53 }
0x2f55   : > { %5146 = vmatpush3.msra.mxu0 %v6475_v6 }
0x2f56   : > { %5147 = vmatprep.subr.mxu0 %v7909_v53 }
0x2f57   : > { %5148 = vmatpush3.msra.mxu0 %v6477_v12 }
0x2f58   : > { %5149 = vmatprep.subr.mxu0 %v7909_v53 }
0x2f59   : > { %5150 = vmatpush3.msra.mxu0 %v6485_v35 }
0x2f5a   : > { %5154 = vmatprep.subr.mxu0 %v7909_v53 }
0x3012   : > { %v3958_v4 = vpop.f32.mrf.mxu0 }
0x3014   : > { %v3960_v21 = vpop.f32.mrf.mxu0 }
0x3015   : > { %v3963_v63 = vadd.f32 %v3960_v21, %v7950_v22  ;;  %v5691_v21 = vld [vmem:[#allocation11 + $0x20] sm:$0xff]  ;;  %v5692_v22 = vld [vmem:[#allocation11 + $0x18] sm:$0xff] }
0x3017   : > { %v3964_v56 = vadd.f32 %v3963_v63, %v6387_v37 }
0x3019   : > { %v4893_v59 = vmul.f32 -1.442695, %v3964_v56  ;;  %v5694_v56 = vld [vmem:[#allocation11 + $0x8] sm:$0xff] }
0x301b   : > { %5592 = vpow2.f32 %v4893_v59  ;;  %v5695_v59 = vld [vmem:[#allocation11] sm:$0xff] }
0x3028   : > { %v5593_v55 = vpop.eup %5592 }
0x3029   : > { %v3968_v39 = vadd.f32 1.0, %v5593_v55 }
0x302b   : > { %5594 = vrcp.f32 %v3968_v39 }
0x3038   : > { %v5595_v27 = vpop.eup %5594 }
0x3039   : > { %3973 = vperm.xlu1 %5380, %v5595_v27  }
0x30b4   : > { %v3974_v33 = vpop.permute.xlu1 %3973 }
0x30b5   : > { %v3976_v19 = vmul.f32 %v3974_v33, %v7951_v61  ;;  %v3997_v61 = vadd.f32 %v3963_v63, %v6460_v38 }
0x30b7   : > { %v3977_v43 = vadd.f32 %v3976_v19, %v3958_v4  ;;  %v5690_v4 = vld [vmem:[#allocation11 + $0x28] sm:$0xff] }
0x30b9   : > { %v3978_v16 = vadd.f32 %v3977_v43, %v680_v2 }
0x30bb   : > { %5596 = vtanh.f32 %v3978_v16  ;;  %v4894_v45 = vmul.f32 -1.442695, %v3978_v16 }
0x30bd   : > { %5598 = vpow2.f32 %v4894_v45 }
0x30c8   : > { %v5597_v24 = vpop.eup %5596 }
0x30c9   : > { %3988 = vrot.lane.b32.xlu1 %v5597_v24, %s6015_s18 }
0x30ca   : > { %v5599_v34 = vpop.eup %5598 }
0x30cb   : > { %v3982_v0 = vadd.f32 1.0, %v5599_v34 }
0x30cd   : > { %5600 = vrcp.f32 %v3982_v0 }
0x30da   : > { %v7443_v42 = vpop.eup %5600 }
0x30db   : > { %v3986_v40 = vmul.f32 %v7443_v42, %v7348_v44  ;;  %v5693_v44 = vld [vmem:[#allocation11 + $0x10] sm:$0xff] }
0x313b   : > { %v3989_v17 = vpop.permute.xlu1 %3988 }
0x313c   : > { %v3991_v23 = vmul.f32 %v7443_v42, %v3989_v17 }
0x313e   : > { %3993 = vrot.lane.b32.xlu0 %v3991_v23, %s6012_s12 }
0x31b0   : > { %v3994_v41 = vpop.permute.xlu0 %3993 }
0x31b1   : > { %v3996_v7 = vadd.f32 %v3994_v41, %v3986_v40 }
0x31b3   : > { %4000 = vrot.lane.b32.xlu1 %v3996_v7, %s6017_s21 }
0x3225   : > { %v4001_v13 = vpop.permute.xlu1 %4000 }
0x3226   : > { %5141 = vmatmul.mubr.msk.f32.vlgmr.msra.gmra.mxu1 %vm1750_vm3, %v4001_v13  ;;  %v4085_v10 = vsel %vm1750_vm3, %v4001_v13, 0.0 }
0x3227   : > { %4086 = vadd.xlane.f32.xlu1 %v4085_v10  ;;  %4267 = vmatpush1.msra.mxu1 %v5689_v9 }
0x3228   : > { %4268 = vmatprep.subr.mxu1 %v5690_v4  ;;  %4306 = vmatprep.mubr.f32.mxu1 %v7909_v53 }
0x3229   : > { %4269 = vmatpush1.msra.mxu1 %v5691_v21 }
0x322a   : > { %4270 = vmatprep.subr.mxu1 %v5692_v22 }
0x322b   : > { %4271 = vmatpush1.msra.mxu1 %v5693_v44 }
0x322c   : > { %4272 = vmatprep.subr.mxu1 %v5694_v56 }
0x322d   : > { %4273 = vmatpush1.msra.mxu1 %v5695_v59 }
0x322e   : > { %5165 = vmatprep.subr.mxu1 %v7909_v53 }
0x32b0   : > { %v4087_v63 = vpop.xlane.xlu1 %4086 }
0x32b1   : > { %v4088_v10 = vmul.f32 0.03125, %v4087_v63 }
0x32b3   : > { %v4089_v9 = vsub.f32 %v3996_v7, %v4088_v10  ;;  %v5696_v7 = vld [vmem:[#allocation13 + $0x18] sm:$0xff] }
0x32b5   : > { %v4090_v4 = vmul.f32 %v4089_v9, %v4089_v9 }
0x32e6   : > { %v4070_v55 = vpop.f32.mrf.mxu1 }
0x32e7   : > { %v4071_v39 = vadd.f32 %v4070_v55, %v6455_v20 }
0x32e8   : > { %v5142_v27 = vpop.f32.mrf.mxu1 }
0x32e9   : > { %v4896_v3 = vmul.f32 -1.442695, %v4071_v39 }
0x32eb   : > { %5602 = vpow2.f32 %v4896_v3 }
0x32f8   : > { %v5603_v33 = vpop.eup %5602 }
0x32f9   : > { %v4077_v19 = vadd.f32 1.0, %v5603_v33  ;;  %v5697_v33 = vld [vmem:[#allocation13 + $0x10] sm:$0xff] }
0x32fb   : > { %5604 = vrcp.f32 %v4077_v19  ;;  %v5699_v19 = vld [vmem:[#allocation13] sm:$0xff] }
0x32fc   : > { %5606 = vtanh.f32 %v3997_v61  ;;  %v5698_v61 = vld [vmem:[#allocation13 + $0x8] sm:$0xff] }
0x3308   : > { %v5605_v2 = vpop.eup %5604 }
0x3309   : > { %v4081_v43 = vsub.f32 1.0, %v5605_v2  ;;  %v5607_v16 = vpop.eup %5606  ;;  %v4080_v24 = vmul.f32 %v5605_v2, %v7331_v52 }
0x330b   : > { %v4082_v45 = vmul.f32 %v5607_v16, %v4081_v43 }
0x330d   : > { %v4083_v34 = vadd.f32 %v4082_v45, %v4080_v24 }
0x330f   : > { %v4104_v0 = vsel %vm1750_vm3, %v4083_v34, 0.0 }
0x3310   : > { %4105 = vadd.xlane.f32.xlu0 %v4104_v0 }
0x3399   : > { %v4106_v17 = vpop.xlane.xlu0 %4105 }
0x339a   : > { %v4107_v23 = vmul.f32 0.03125, %v4106_v17 }
0x339c   : > { %v4108_v40 = vsub.f32 %v4083_v34, %v4107_v23  ;;  %v692_v34 = vsub.f32 %v7436_v54, %v6520_v51 }
0x339e   : > { %v4109_v41 = vmul.f32 %v4108_v40, %v4108_v40  ;;  %v770_v23 = vand.u32 2147483647, %v692_v34 }
0x33a0   : > { %v4110_v13 = vsel %vm1750_vm3, %v4109_v41, 0.0 }
0x33a1   : > { %4111 = vadd.xlane.f32.xlu0 %v4110_v13 }
0x33b7   : > { %4092 = vrot.lane.b32.xlu0 %v4090_v4, %s6017_s21  ;;  %v780_v4 = vand.u32 2147483648, %v692_v34 }
0x342a   : > { %v4112_v21 = vpop.xlane.xlu0 %4111 }
0x342b   : > { %v4113_v22 = vmul.f32 0.03125, %v4112_v21 }
0x342d   : > { %v4114_v44 = vadd.f32 1e-05, %v4113_v22 }
0x342e   : > { %v4093_v56 = vpop.permute.xlu0 %4092 }
0x342f   : > { %5608 = vrsqrt.f32 %v4114_v44  ;;  %v4095_v59 = vsel %vm1750_vm3, %v4093_v56, 0.0 }
0x3430   : > { %4096 = vadd.xlane.f32.xlu1 %v4095_v59 }
0x343c   : > { %v5609_v55 = vpop.eup %5608 }
0x343d   : > { %v4116_v39 = vmul.f32 %v5609_v55, %v4108_v40  ;;  %v773_v40 = vmul.f32 %v6531_v57, %v770_v23 }
0x343f   : > { %v4117_v27 = vmul.f32 %v4116_v39, %v6358_v26  ;;  %v774_v41 = vfloor.f32 %v773_v40 }
0x3441   : > { %v7463_v3 = vadd.f32 %v4117_v27, %v6369_v30  ;;  %v775_v13 = vmul.f32 %v774_v41, %v6512_v46 }
0x3443   : > { %5152 = vmatmul.mubr.msk.f32.vlgmr.msra.gmra.mxu0 %vm1750_vm3, %v7463_v3  ;;  %v776_v10 = vsub.f32 %v770_v23, %v775_v13 }
0x3444   : > { %5155 = vmatpush3.msra.mxu0 %v5696_v7  ;;  %5162 = vmatprep.mubr.msk.f32.mxu0 %vm6016_vm4, %v7909_v53 }
0x3445   : > { %5156 = vmatprep.subr.mxu0 %v7909_v53  ;;  %vm777_vm6 = vcmp.eq.f32.partialorder %v776_v10, %v6512_v46 }
0x3446   : > { %5157 = vmatpush3.msra.mxu0 %v5697_v33  ;;  %v778_v54 = vsel %vm777_vm6, 0.0, %v776_v10 }
0x3447   : > { %5158 = vmatprep.subr.mxu0 %v7909_v53 }
0x3448   : > { %5159 = vmatpush3.msra.mxu0 %v5698_v61 }
0x3449   : > { %5160 = vmatprep.subr.mxu0 %v7909_v53 }
0x344a   : > { %5161 = vmatpush3.msra.mxu0 %v5699_v19 }
0x34b9   : > { %v4097_v2 = vpop.xlane.xlu1 %4096 }
0x34ba   : > { %v4098_v43 = vmul.f32 0.03125, %v4097_v2 }
0x34bc   : > { %v4099_v16 = vadd.f32 1e-05, %v4098_v43 }
0x34be   : > { %5610 = vrsqrt.f32 %v4099_v16 }
0x34cb   : > { %v5611_v24 = vpop.eup %5610 }
0x34cc   : > { %v4101_v45 = vmul.f32 %v5611_v24, %v4089_v9  ;;  %v779_v9 = vand.u32 2147483647, %v778_v54 }
0x34ce   : > { %v4102_v0 = vmul.f32 %v4101_v45, %v6515_v50  ;;  %v781_v21 = vor.u32 %v780_v4, %v779_v9 }
0x34d0   : > { %v7476_v17 = vadd.f32 %v4102_v0, %v6522_v18  ;;  %vm808_vm8 = vcmp.lt.f32.partialorder %v781_v21, 0.0  ;;  %vm800_vm9 = vcmp.ne.f32.partialorder %v781_v21, 0.0  ;;  %v839_v22 = vadd.f32 %v781_v21, %v7944_v62 }
0x34d1   : > { %vm823_vm10 = vmxor %vm808_vm8, %vm6541_vm7 }
0x34d2   : > { %5612 = vtanh.f32 %v7476_v17  ;;  %vm831_vm11 = vmand %vm823_vm10, %vm800_vm9 }
0x34d3   : > { %v847_v44 = vsel %vm831_vm11, %v839_v22, %v781_v21 }
0x34d4   : > { %v856_v56 = vmul.f32 %v7945_v25, %v847_v44 }
0x34d6   : > { %v864_v55 = vmul.f32 6.2831855, %v856_v56 }
0x34d8   : > { %v7490_v27 = vmul.f32 %v7946_v14, %v864_v55 }
0x34da   : > { %v1500_v7 = vand.u32 2139095040, %v7490_v27  ;;  %v1497_v34 = vand.u32 2147483647, %v7490_v27  ;;  %vm1499_vm6 = vcmp.lt.s32.totalorder %v7490_v27, 0 }
0x34dc   : > { %v1501_v33 = vshrl.u32 %v1500_v7, 23  ;;  %v1504_v22 = vand.u32 8388607, %v1497_v34  ;;  %vm1498_vm8 = vcmp.le.f32.partialorder %v1497_v34, 0.7853982 }
0x34de   : > { %v4827_v61 = vadd.s32 4294967169, %v1501_v33  ;;  %v1505_v33 = vor.u32 8388608, %v1504_v22 }
0x34df   : > { %v5613_v63 = vpop.eup %5612 }
0x34e0   : > { %4200 = vrot.lane.b32.xlu1 %v5613_v63, %s6015_s18  ;;  %v1507_v19 = vadd.s32 1, %v4827_v61 }
0x34e2   : > { %vm1508_vm12 = vcmp.gt.s32.totalorder %v1507_v19, 0 }
0x34e3   : > { %v1509_v2 = vsel %vm1508_vm12, %v1507_v19, 0  ;;  %vm1589_vm12 = vweird.f32 %v7490_v27 }
0x34e4   : > { %v1511_v43 = vand.u32 31, %v1509_v2  ;;  %v1510_v0 = vshrl.u32 %v1509_v2, 5 }
0x34e6   : > { %v1512_v16 = vsub.s32 32, %v1511_v43  ;;  %v1523_v23 = vshll.u32 %v7948_v48, %v1511_v43  ;;  %v1526_v63 = vshll.u32 %v7922_v15, %v1511_v43  ;;  %v1514_v54 = vshll.u32 %v7907_v8, %v1511_v43 }
0x34e7   : > { %v1517_v9 = vshll.u32 %v7949_v5, %v1511_v43  ;;  %v1520_v4 = vshll.u32 %v7926_v1, %v1511_v43  ;;  %vm1532_vm2 = vcmp.lt.s32.totalorder %v1510_v0, 4  ;;  %vm1529_vm14 = vcmp.lt.s32.totalorder %v1510_v0, 1 }
0x34e8   : > { %v1524_v24 = vshrl.u32 %v7922_v15, %v1512_v16  ;;  %v1527_v45 = vshrl.u32 %v7947_v58, %v1512_v16  ;;  %v1515_v40 = vshrl.u32 %v7949_v5, %v1512_v16  ;;  %v1518_v41 = vshrl.u32 %v7926_v1, %v1512_v16 }
0x34e9   : > { %v1521_v13 = vshrl.u32 %v7948_v48, %v1512_v16  ;;  %vm1531_vm15 = vcmp.lt.s32.totalorder %v1510_v0, 3  ;;  %vm1530_vm0 = vcmp.lt.s32.totalorder %v1510_v0, 2 }
0x34ea   : > { %v1525_v10 = vor.u32 %v1524_v24, %v1523_v23  ;;  %v1528_v21 = vor.u32 %v1527_v45, %v1526_v63  ;;  %v1516_v44 = vor.u32 %v1515_v40, %v1514_v54  ;;  %v1519_v56 = vor.u32 %v1518_v41, %v1517_v9 }
0x34eb   : > { %v1522_v55 = vor.u32 %v1521_v13, %v1520_v4  ;;  %v1545_v23 = vshll.u32 %v1505_v33, 8  ;;  %v1513_v9 = vshrl.u32 %v7907_v8, %v1512_v16 }
0x34ec   : > { %v1542_v7 = vsel %vm1532_vm2, %v1528_v21, 1326507024  ;;  %v1537_v61 = vsel %vm1529_vm14, %v1516_v44, %v1519_v56 }
0x34ed   : > { %v1541_v2 = vsel %vm1529_vm14, %v1519_v56, %v1522_v55  ;;  %v1543_v43 = vsel %vm1531_vm15, %v1525_v10, %v1542_v7  ;;  %v1534_v54 = vsel %vm1532_vm2, %v1522_v55, 2102212464  ;;  %v1533_v4 = vsel %vm1529_vm14, %v1513_v9, %v1516_v44 }
0x34ee   : > { %v1544_v45 = vsel %vm1530_vm0, %v1541_v2, %v1543_v43  ;;  %v1535_v21 = vsel %vm1531_vm15, %v1519_v56, %v1534_v54 }
0x34ef   : > { %v7515_v13 = vmul.u32.u64.low %v1545_v23, %v1544_v45  ;;  %v7516_v63 = vmul.u32.u64.high %v1545_v23, %v1544_v45, %v7515_v13  ;;  %v1536_v22 = vsel %vm1530_vm0, %v1533_v4, %v1535_v21 }
0x34f0   : > { %v1552_v7 = vmul.u32 %v1545_v23, %v1536_v22 }
0x3503   : > { %v7487_v59 = vpop.f32.mrf.mxu0 }
0x3505   : > { %v5153_v39 = vpop.f32.mrf.mxu0 }
0x3506   : > { %v1538_v39 = vsel %vm1532_vm2, %v1525_v10, 920167782 }
0x3507   : > { %v1539_v19 = vsel %vm1531_vm15, %v1522_v55, %v1538_v39 }
0x3508   : > { %v1540_v24 = vsel %vm1530_vm0, %v1537_v61, %v1539_v19 }
0x3509   : > { %v7512_v40 = vmul.u32.u64.low %v1545_v23, %v1540_v24  ;;  %v7513_v41 = vmul.u32.u64.high %v1545_v23, %v1540_v24, %v7512_v40 }
0x350b   : > { %v1555_v10 = vadd.s32 1, %v7513_v41  ;;  %vm1554_vm1 = vc.u32 %v7516_v63, %v7512_v40  ;;  %v1553_v23 = vadd.s32 %v7512_v40, %v7516_v63  ;;  %v4189_v40 = vadd.f32 %v7487_v59, %v6605_v60 }
0x350d   : > { %v1556_v39 = vsel %vm1554_vm1, %v1555_v10, %v7513_v41 }
0x350e   : > { %v1557_v33 = vadd.s32 %v1556_v39, %v1552_v7 }
0x3510   : > { %v1558_v61 = vadd.s32 536870912, %v1557_v33 }
0x3512   : > { %v1559_v2 = vshrl.u32 %v1558_v61, 30 }
0x3514   : > { %v1560_v16 = vshll.u32 %v1559_v2, 30  ;;  %v1583_v63 = vsub.s32 4, %v1559_v2 }
0x3516   : > { %v1561_v44 = vsub.s32 %v1557_v33, %v1560_v16  ;;  %v1584_v16 = vsel %vm1499_vm6, %v1583_v63, %v1559_v2 }
0x3518   : > { %v1563_v0 = vsub.s32 0, %v1561_v44 }
0x351a   : > { %v4828_v56 = vmin.u32 %v1563_v0, %v1561_v44  ;;  %v1586_v0 = vsel %vm1498_vm8, 0, %v1584_v16 }
0x351c   : > { %v1565_v43 = vclz %v4828_v56 }
0x351e   : > { %v4829_v24 = vadd.s32 4294967294, %v1565_v43  ;;  %v1590_v43 = vand.u32 3, %v1586_v0 }
0x3520   : > { %vm4830_vm5 = vcmp.lt.s32.totalorder %v4829_v24, 0  ;;  %vm1592_vm9 = vcmp.eq.s32.totalorder %v1590_v43, 0  ;;  %vm1595_vm10 = vcmp.eq.s32.totalorder %v1590_v43, 2  ;;  %vm1591_vm11 = vcmp.lt.s32.totalorder %v1590_v43, 2 }
0x3521   : > { %v1568_v45 = vsel %vm4830_vm5, 0, %v4829_v24 }
0x3522   : > { %v1573_v13 = vsub.s32 4294967266, %v1568_v45  ;;  %v1569_v41 = vsub.s32 32, %v1568_v45  ;;  %v1570_v21 = vshll.u32 %v1561_v44, %v1568_v45 }
0x3524   : > { %v1574_v54 = vadd.s32 127, %v1573_v13  ;;  %v1571_v4 = vshrl.u32 %v1553_v23, %v1569_v41 }
0x3526   : > { %v1575_v9 = vshll.u32 %v1574_v54, 23 }
0x3528   : > { %v1576_v10 = vor.u32 4788187, %v1575_v9 }
0x352a   : > { %v1577_v22 = vand.u32 2147483647, %v1576_v10 }
0x3552   : > { %v4201_v19 = vpop.permute.xlu1 %4200 }
0x3553   : > { %v4203_v55 = vmul.f32 %v7443_v42, %v4201_v19  ;;  %v1572_v42 = vor.u32 %v1571_v4, %v1570_v21 }
0x3555   : > { %4205 = vrot.lane.b32.xlu0 %v4203_v55, %s6012_s12  ;;  %v1579_v39 = vcvt.s32.f32 %v1572_v42  ;;  %v4898_v55 = vmul.f32 -1.442695, %v4189_v40 }
0x3557   : > { %v1580_v7 = vmul.f32 %v1579_v39, %v1577_v22 }
0x3559   : > { %v1581_v33 = vxor.u32 2147483648, %v1580_v7 }
0x355b   : > { %v1582_v61 = vsel %vm1499_vm6, %v1581_v33, %v1580_v7 }
0x355c   : > { %v1585_v19 = vsel %vm1498_vm8, %v7490_v27, %v1582_v61 }
0x355d   : > { %5614 = vcosq.f32 %v1585_v19 }
0x355e   : > { %5616 = vsinq.f32 %v1585_v19 }
0x355f   : > { %5618 = vpow2.f32 %v4898_v55 }
0x356a   : > { %v5615_v44 = vpop.eup %5614 }
0x356b   : > { %v5617_v56 = vpop.eup %5616  ;;  %v1596_v45 = vxor.u32 2147483648, %v5615_v44 }
0x356c   : > { %v1593_v24 = vxor.u32 2147483648, %v5617_v56  ;;  %v5619_v41 = vpop.eup %5618 }
0x356d   : > { %v1597_v13 = vsel %vm1595_vm10, %v1596_v45, %v5617_v56  ;;  %v4195_v23 = vadd.f32 1.0, %v5619_v41 }
0x356e   : > { %v1594_v34 = vsel %vm1592_vm9, %v5615_v44, %v1593_v24  ;;  %v5700_v24 = vld [vmem:[%s6295_s4 + $0x38] sm:$0xff]  ;;  %s7960_s4 = sld [smem:[#allocation27_spill]] }
0x356f   : > { %v1598_v54 = vsel %vm1591_vm11, %v1594_v34, %v1597_v13  ;;  %5620 = vrcp.f32 %v4195_v23 }
0x3570   : > { %v1599_v59 = vsel %vm1589_vm12, nan, %v1598_v54  ;;  %5622 = vtanh.f32 %v7463_v3 }
0x3571   : > { %v1709_v9 = vadd.f32 1.0, %v1599_v59 }
0x3573   : > { %v1717_v2 = vmul.f32 0.5, %v1709_v9 }
0x3574   : > { %p7962_p1 = scmp.ne.s32.totalorder %s7960_s4, 0 }
0x3575   : > { %v1725_v4 = vmax.f32 %v1717_v2, 0.0  ;;  %v7953_v2 = vld [vmem:[#allocation42_spill] sm:$0xff] }
0x3576   : > { %p5863_p6 = pnand %p5862_p2, %p7962_p1 }
0x3577   : > { %v1733_v21 = vmin.f32 %v1725_v4, 1.0 }
0x3578   : > { %p5864_p0 = pneg %p5863_p6 }
0x3579   : > { %v4209_v10 = vsub.f32 1.0, %v1733_v21 }
0x357b   : > { %v4210_v7 = vmul.f32 %v4209_v10, %v7414_v11  ;;  %v7952_v11 = vmov 32  }
0x357c   : > { %v5621_v42 = vpop.eup %5620 }
0x357d   : > { %v4213_v33 = vsub.f32 1.0, %v5621_v42  ;;  %v5623_v27 = vpop.eup %5622 }
0x357f   : > { %v4215_v40 = vmul.f32 %v5623_v27, %v4213_v33 }
0x35c7   : > { %v4206_v22 = vpop.permute.xlu0 %4205 }
0x35c8   : > { %v4208_v39 = vmul.f32 %v4206_v22, %v1733_v21 }
0x35ca   : > { %v4211_v61 = vadd.f32 %v4210_v7, %v4208_v39 }
0x35cc   : > { %v4212_v19 = vmul.f32 %v5621_v42, %v4211_v61 }
0x35ce   : > { %v4216_v63 = vadd.f32 %v4215_v40, %v4212_v19 }
0x35d0   : > { %v4217_v55 = vsel %vm1750_vm3, %v4216_v63, 0.0 }
0x35d1   : > { %4218 = vadd.xlane.f32.xlu1 %v4217_v55 }
0x365a   : > { %v4219_v16 = vpop.xlane.xlu1 %4218 }
0x365b   : > { %v4220_v44 = vmul.f32 0.03125, %v4219_v16 }
0x365d   : > { %v4221_v0 = vsub.f32 %v4216_v63, %v4220_v44 }
0x365f   : > { %v4222_v56 = vmul.f32 %v4221_v0, %v4221_v0 }
0x3661   : > { %v4223_v43 = vsel %vm1750_vm3, %v4222_v56, 0.0 }
0x3662   : > { %4224 = vadd.xlane.f32.xlu0 %v4223_v43 }
0x3678   : > { %655 = vperm.xlu0 %5379, %v5700_v24  }
0x367c   : > { %5381 = vset.pattern.permute.xlu0 %v7952_v11 }
0x36eb   : > { %v4225_v45 = vpop.xlane.xlu0 %4224 }
0x36ec   : > { %v4226_v34 = vmul.f32 0.03125, %v4225_v45 }
0x36ee   : > { %v4227_v13 = vadd.f32 1e-05, %v4226_v34 }
0x36f0   : > { %5624 = vrsqrt.f32 %v4227_v13 }
0x36f3   : > { %v7564_v39 = vpop.permute.xlu0 %655 }
0x36fd   : > { %v5625_v54 = vpop.eup %5624 }
0x36fe   : > { %v4229_v41 = vmul.f32 %v5625_v54, %v4221_v0 }
0x3700   : > { %v4230_v59 = vmul.f32 %v4229_v41, %v6373_v31 }
0x3702   : > { %v7543_v23 = vadd.f32 %v4230_v59, %v6379_v32 }
0x3704   : > { %4902 = vmatmul.mubr.msk.f32.vlgmr.msra.gmra.mxu1 %vm1750_vm3, %v7543_v23  ;;  %4899 = vst.msk [vmem:[%s6319_s14 + $0x30] sm:$0xff] %vm1750_vm3, %v7543_v23 }
0x3705   : > { %5166 = vmatpush3.msra.mxu1 %v6479_v29  ;;  %5173 = vmatprep.mubr.msk.f32.mxu1 %vm6016_vm4, %v7909_v53  ;;  %4900 = vst.msk [vmem:[%s6319_s14 + $0x30] sm:$0xff] %vm2132_vm13, %v7476_v17 }
0x3706   : > { %5167 = vmatprep.subr.mxu1 %v7909_v53 }
0x3707   : > { %5168 = vmatpush3.msra.mxu1 %v6475_v6 }
0x3708   : > { %5169 = vmatprep.subr.mxu1 %v7909_v53 }
0x3709   : > { %5170 = vmatpush3.msra.mxu1 %v6477_v12  ;;  %v669_v12 = vmul.f32 %v6397_v47, %v7564_v39 }
0x370a   : > { %5171 = vmatprep.subr.mxu1 %v7909_v53 }
0x370b   : > { %5172 = vmatpush3.msra.mxu1 %v6485_v35  ;;  %v7954_v35 = vld [vmem:[#allocation41_spill] sm:$0xff]  ;;  %v681_v61 = vadd.f32 %v6402_v49, %v669_v12 }
0x37c4   : > { %v4308_v9 = vpop.f32.mrf.mxu1 }
0x37c6   : > { %v4310_v29 = vpop.f32.mrf.mxu1 }
0x37c7   : > { %v4313_v4 = vadd.f32 %v4310_v29, %v7953_v2 }
0x37c9   : > { %v4314_v21 = vadd.f32 %v4313_v4, %v6387_v37  ;;  %v4347_v41 = vadd.f32 %v4313_v4, %v6460_v38 }
0x37cb   : > { %v4903_v10 = vmul.f32 -1.442695, %v4314_v21 }
0x37cd   : > { %5626 = vpow2.f32 %v4903_v10 }
0x37da   : > { %v5627_v42 = vpop.eup %5626 }
0x37db   : > { %v4318_v22 = vadd.f32 1.0, %v5627_v42 }
0x37dd   : > { %5628 = vrcp.f32 %v4318_v22 }
0x37ea   : > { %v5629_v6 = vpop.eup %5628 }
0x37eb   : > { %4323 = vperm.xlu1 %5380, %v5629_v6  }
0x3866   : > { %v4324_v7 = vpop.permute.xlu1 %4323 }
0x3867   : > { %v4326_v33 = vmul.f32 %v4324_v7, %v7954_v35 }
0x3869   : > { %v4327_v27 = vadd.f32 %v4326_v33, %v4308_v9 }
0x386b   : > { %v4328_v19 = vadd.f32 %v4327_v27, %v681_v61 }
0x386d   : > { %5630 = vtanh.f32 %v4328_v19  ;;  %v4904_v40 = vmul.f32 -1.442695, %v4328_v19 }
0x386f   : > { %5632 = vpow2.f32 %v4904_v40 }
0x387a   : > { %v5631_v37 = vpop.eup %5630 }
0x387b   : > { %4338 = vrot.lane.b32.xlu1 %v5631_v37, %s6015_s18 }
0x387c   : > { %v5633_v63 = vpop.eup %5632 }
0x387d   : > { %v4332_v55 = vadd.f32 1.0, %v5633_v63 }
0x387f   : > { %5634 = vrcp.f32 %v4332_v55 }
0x388c   : > { %v7571_v16 = vpop.eup %5634 }
0x388d   : > { %v4336_v49 = vmul.f32 %v7571_v16, %v7476_v17 }
0x38ed   : > { %v4339_v44 = vpop.permute.xlu1 %4338 }
0x38ee   : > { %v4341_v47 = vmul.f32 %v7571_v16, %v4339_v44 }
0x38f0   : > { %4343 = vrot.lane.b32.xlu0 %v4341_v47, %s6012_s12 }
0x3962   : > { %v4344_v0 = vpop.permute.xlu0 %4343 }
0x3963   : > { %v4346_v56 = vadd.f32 %v4344_v0, %v4336_v49 }
0x3965   : > { %4350 = vrot.lane.b32.xlu1 %v4346_v56, %s6017_s21 }
0x39d7   : > { %v4351_v43 = vpop.permute.xlu1 %4350 }
0x39d8   : > { %5163 = vmatmul.mubr.msk.f32.vlgmr.msra.gmra.mxu0 %vm1750_vm3, %v4351_v43  ;;  %v4435_v24 = vsel %vm1750_vm3, %v4351_v43, 0.0 }
0x39d9   : > { %4436 = vadd.xlane.f32.xlu1 %v4435_v24 }
0x3a62   : > { %v4437_v38 = vpop.xlane.xlu1 %4436 }
0x3a63   : > { %v4438_v4 = vmul.f32 0.03125, %v4437_v38 }
0x3a65   : > { %v4439_v35 = vsub.f32 %v4346_v56, %v4438_v4 }
0x3a67   : > { %v4440_v33 = vmul.f32 %v4439_v35, %v4439_v35 }
0x3a98   : > { %v4420_v11 = vpop.f32.mrf.mxu0 }
0x3a99   : > { %v4421_v45 = vadd.f32 %v4420_v11, %v6455_v20  ;;  %v693_v11 = vsub.f32 %v7564_v39, %v6520_v51 }
0x3a9a   : > { %v5164_v34 = vpop.f32.mrf.mxu0 }
0x3a9b   : > { %v4906_v13 = vmul.f32 -1.442695, %v4421_v45  ;;  %v782_v45 = vand.u32 2147483647, %v693_v11 }
0x3a9d   : > { %5636 = vpow2.f32 %v4906_v13  ;;  %v785_v34 = vmul.f32 %v6531_v57, %v782_v45 }
0x3a9f   : > { %v786_v13 = vfloor.f32 %v785_v34 }
0x3aaa   : > { %v5637_v54 = vpop.eup %5636 }
0x3aab   : > { %v4427_v17 = vadd.f32 1.0, %v5637_v54  ;;  %v787_v54 = vmul.f32 %v786_v13, %v6512_v46 }
0x3aad   : > { %5638 = vrcp.f32 %v4427_v17  ;;  %v788_v17 = vsub.f32 %v782_v45, %v787_v54 }
0x3aae   : > { %5640 = vtanh.f32 %v4347_v41 }
0x3aaf   : > { %vm789_vm4 = vcmp.eq.f32.partialorder %v788_v17, %v6512_v46 }
0x3ab0   : > { %v790_v51 = vsel %vm789_vm4, 0.0, %v788_v17 }
0x3ab1   : > { %v791_v39 = vand.u32 2147483647, %v790_v51 }
0x3aba   : > { %v5639_v59 = vpop.eup %5638 }
0x3abb   : > { %v4431_v9 = vsub.f32 1.0, %v5639_v59  ;;  %v5641_v29 = vpop.eup %5640  ;;  %v4430_v2 = vmul.f32 %v5639_v59, %v7463_v3 }
0x3abd   : > { %v4432_v21 = vmul.f32 %v5641_v29, %v4431_v9 }
0x3abf   : > { %v4433_v10 = vadd.f32 %v4432_v21, %v4430_v2 }
0x3ac1   : > { %v4454_v42 = vsel %vm1750_vm3, %v4433_v10, 0.0 }
0x3ac2   : > { %4455 = vadd.xlane.f32.xlu0 %v4454_v42 }
0x3b4b   : > { %v4456_v20 = vpop.xlane.xlu0 %4455 }
0x3b4c   : > { %v4457_v22 = vmul.f32 0.03125, %v4456_v20 }
0x3b4e   : > { %v4458_v6 = vsub.f32 %v4433_v10, %v4457_v22 }
0x3b50   : > { %v4459_v12 = vmul.f32 %v4458_v6, %v4458_v6 }
0x3b52   : > { %v4460_v7 = vsel %vm1750_vm3, %v4459_v12, 0.0 }
0x3b53   : > { %4461 = vadd.xlane.f32.xlu0 %v4460_v7 }
0x3b69   : > { %4442 = vrot.lane.b32.xlu0 %v4440_v33, %s6017_s21 }
0x3bdc   : > { %v4462_v61 = vpop.xlane.xlu0 %4461 }
0x3bdd   : > { %v4463_v27 = vmul.f32 0.03125, %v4462_v61 }
0x3bdf   : > { %v4464_v19 = vadd.f32 1e-05, %v4463_v27 }
0x3be0   : > { %v4443_v37 = vpop.permute.xlu0 %4442 }
0x3be1   : > { %5642 = vrsqrt.f32 %v4464_v19  ;;  %v4445_v40 = vsel %vm1750_vm3, %v4443_v37, 0.0 }
0x3be2   : > { %4446 = vadd.xlane.f32.xlu1 %v4445_v40 }
0x3bee   : > { %v5643_v63 = vpop.eup %5642 }
0x3bef   : > { %v4466_v55 = vmul.f32 %v5643_v63, %v4458_v6 }
0x3bf1   : > { %v4467_v44 = vmul.f32 %v4466_v55, %v6358_v26 }
0x3bf3   : > { %v7589_v47 = vadd.f32 %v4467_v44, %v6369_v30 }
0x3bf5   : > { %5174 = vmatmul.mubr.msk.f32.vlgmr.msra.gmra.mxu1 %vm1750_vm3, %v7589_v47  ;;  %4604 = vst.msk [vmem:[#allocation4] sm:$0xff] %vm1750_vm3, %v7589_v47 }
0x3c6b   : > { %v4447_v49 = vpop.xlane.xlu1 %4446 }
0x3c6c   : > { %v4448_v0 = vmul.f32 0.03125, %v4447_v49 }
0x3c6e   : > { %v4449_v56 = vadd.f32 1e-05, %v4448_v0 }
0x3c70   : > { %5644 = vrsqrt.f32 %v4449_v56 }
0x3c7d   : > { %v5645_v43 = vpop.eup %5644 }
0x3c7e   : > { %v4451_v24 = vmul.f32 %v5645_v43, %v4439_v35 }
0x3c80   : > { %v4452_v26 = vmul.f32 %v4451_v24, %v6515_v50  ;;  %v792_v50 = vand.u32 2147483648, %v693_v11 }
0x3c82   : > { %v7599_v30 = vadd.f32 %v4452_v26, %v6522_v18  ;;  %v793_v59 = vor.u32 %v792_v50, %v791_v39 }
0x3c84   : > { %5646 = vtanh.f32 %v7599_v30  ;;  %vm809_vm2 = vcmp.lt.f32.partialorder %v793_v59, 0.0  ;;  %vm801_vm14 = vcmp.ne.f32.partialorder %v793_v59, 0.0  ;;  %v840_v18 = vadd.f32 %v793_v59, %v7944_v62 }
0x3c85   : > { %vm824_vm15 = vmxor %vm809_vm2, %vm6541_vm7 }
0x3c86   : > { %vm832_vm0 = vmand %vm824_vm15, %vm801_vm14 }
0x3c87   : > { %v848_v57 = vsel %vm832_vm0, %v840_v18, %v793_v59  ;;  %vm2137_vm0 = vcmask 785920  }
0x3c88   : > { %v857_v9 = vmul.f32 %v7945_v25, %v848_v57 }
0x3c8a   : > { %v865_v2 = vmul.f32 6.2831855, %v857_v9 }
0x3c8c   : > { %v7613_v46 = vmul.f32 %v7946_v14, %v865_v2 }
0x3c8e   : > { %v1603_v10 = vand.u32 2139095040, %v7613_v46  ;;  %v1600_v7 = vand.u32 2147483647, %v7613_v46  ;;  %vm1602_vm11 = vcmp.lt.s32.totalorder %v7613_v46, 0  ;;  %vm1692_vm15 = vweird.f32 %v7613_v46 }
0x3c90   : > { %v1604_v42 = vshrl.u32 %v1603_v10, 23  ;;  %v1607_v63 = vand.u32 8388607, %v1600_v7  ;;  %vm1601_vm12 = vcmp.le.f32.partialorder %v1600_v7, 0.7853982 }
0x3c91   : > { %v5647_v41 = vpop.eup %5646 }
0x3c92   : > { %4550 = vrot.lane.b32.xlu1 %v5647_v41, %s6015_s18  ;;  %v4831_v20 = vadd.s32 4294967169, %v1604_v42 }
0x3c94   : > { %v1610_v22 = vadd.s32 1, %v4831_v20  ;;  %v7955_v20 = vld [vmem:[#allocation29_spill] sm:$0xff] }
0x3c96   : > { %vm1611_vm1 = vcmp.gt.s32.totalorder %v1610_v22, 0 }
0x3c97   : > { %v1612_v28 = vsel %vm1611_vm1, %v1610_v22, 0  ;;  %vm4589_vm1 = vcmask 1048320  }
0x3c98   : > { %v1614_v6 = vand.u32 31, %v1612_v28  ;;  %v1613_v38 = vshrl.u32 %v1612_v28, 5 }
0x3c9a   : > { %v1615_v62 = vsub.s32 32, %v1614_v6  ;;  %v1626_v4 = vshll.u32 %v7948_v48, %v1614_v6  ;;  %v1629_v61 = vshll.u32 %v7922_v15, %v1614_v6  ;;  %v1617_v19 = vshll.u32 %v7907_v8, %v1614_v6 }
0x3c9b   : > { %v1620_v37 = vshll.u32 %v7949_v5, %v1614_v6  ;;  %vm1635_vm7 = vcmp.lt.s32.totalorder %v1613_v38, 4  ;;  %vm1632_vm5 = vcmp.lt.s32.totalorder %v1613_v38, 1  ;;  %vm1634_vm6 = vcmp.lt.s32.totalorder %v1613_v38, 3 }
0x3c9c   : > { %v1627_v12 = vshrl.u32 %v7922_v15, %v1615_v62  ;;  %v1630_v25 = vshrl.u32 %v7947_v58, %v1615_v62  ;;  %v1618_v14 = vshrl.u32 %v7949_v5, %v1615_v62  ;;  %v1621_v35 = vshrl.u32 %v7926_v1, %v1615_v62 }
0x3c9d   : > { %v1624_v33 = vshrl.u32 %v7948_v48, %v1615_v62  ;;  %v1623_v58 = vshll.u32 %v7926_v1, %v1614_v6  ;;  %v1608_v15 = vor.u32 8388608, %v1607_v63  ;;  %vm1633_vm8 = vcmp.lt.s32.totalorder %v1613_v38, 2 }
0x3c9e   : > { %v1628_v27 = vor.u32 %v1627_v12, %v1626_v4  ;;  %v1631_v40 = vor.u32 %v1630_v25, %v1629_v61  ;;  %v1619_v55 = vor.u32 %v1618_v14, %v1617_v19  ;;  %v1622_v44 = vor.u32 %v1621_v35, %v1620_v37 }
0x3c9f   : > { %v1625_v49 = vor.u32 %v1624_v33, %v1623_v58  ;;  %v1648_v26 = vshll.u32 %v1608_v15, 8  ;;  %v1616_v17 = vshrl.u32 %v7907_v8, %v1615_v62 }
0x3ca0   : > { %v1641_v0 = vsel %vm1635_vm7, %v1628_v27, 920167782  ;;  %v1645_v48 = vsel %vm1635_vm7, %v1631_v40, 1326507024  ;;  %v1640_v56 = vsel %vm1632_vm5, %v1619_v55, %v1622_v44 }
0x3ca1   : > { %v1642_v5 = vsel %vm1634_vm6, %v1625_v49, %v1641_v0  ;;  %v1644_v1 = vsel %vm1632_vm5, %v1622_v44, %v1625_v49  ;;  %v1646_v43 = vsel %vm1634_vm6, %v1628_v27, %v1645_v48  ;;  %v1637_v41 = vsel %vm1635_vm7, %v1625_v49, 2102212464 }
0x3ca2   : > { %v1643_v24 = vsel %vm1633_vm8, %v1640_v56, %v1642_v5  ;;  %v1647_v11 = vsel %vm1633_vm8, %v1644_v1, %v1646_v43  ;;  %v1636_v51 = vsel %vm1632_vm5, %v1616_v17, %v1619_v55  ;;  %v1638_v39 = vsel %vm1634_vm6, %v1622_v44, %v1637_v41 }
0x3ca3   : > { %v7635_v45 = vmul.u32.u64.low %v1648_v26, %v1643_v24  ;;  %v7636_v34 = vmul.u32.u64.high %v1648_v26, %v1643_v24, %v7635_v45  ;;  %v7638_v13 = vmul.u32.u64.low %v1648_v26, %v1647_v11  ;;  %v7639_v54 = vmul.u32.u64.high %v1648_v26, %v1647_v11, %v7638_v13 }
0x3ca4   : > { %v1639_v59 = vsel %vm1633_vm8, %v1636_v51, %v1638_v39 }
0x3ca5   : > { %v1658_v50 = vadd.s32 1, %v7636_v34  ;;  %vm1657_vm9 = vc.u32 %v7639_v54, %v7635_v45  ;;  %v1655_v57 = vmul.u32 %v1648_v26, %v1639_v59  ;;  %v1656_v35 = vadd.s32 %v7635_v45, %v7639_v54 }
0x3ca7   : > { %v1659_v18 = vsel %vm1657_vm9, %v1658_v50, %v7636_v34 }
0x3ca8   : > { %v1660_v9 = vadd.s32 %v1659_v18, %v1655_v57 }
0x3caa   : > { %v1661_v2 = vadd.s32 536870912, %v1660_v9 }
0x3cac   : > { %v1662_v10 = vshrl.u32 %v1661_v2, 30 }
0x3cae   : > { %v1663_v8 = vshll.u32 %v1662_v10, 30  ;;  %v1686_v0 = vsub.s32 4, %v1662_v10 }
0x3cb0   : > { %v1664_v22 = vsub.s32 %v1660_v9, %v1663_v8  ;;  %v1687_v15 = vsel %vm1602_vm11, %v1686_v0, %v1662_v10 }
0x3cb1   : > { %v1689_v5 = vsel %vm1601_vm12, 0, %v1687_v15 }
0x3cb2   : > { %v1666_v28 = vsub.s32 0, %v1664_v22  ;;  %v1693_v43 = vand.u32 3, %v1689_v5 }
0x3cb4   : > { %v4832_v6 = vmin.u32 %v1666_v28, %v1664_v22  ;;  %vm1695_vm4 = vcmp.eq.s32.totalorder %v1693_v43, 0  ;;  %vm1698_vm2 = vcmp.eq.s32.totalorder %v1693_v43, 2  ;;  %vm1694_vm14 = vcmp.lt.s32.totalorder %v1693_v43, 2 }
0x3cb5   : > { %v7610_v29 = vpop.f32.mrf.mxu1 }
0x3cb6   : > { %v1668_v62 = vclz %v4832_v6  ;;  %v4539_v49 = vadd.f32 %v7610_v29, %v6605_v60 }
0x3cb7   : > { %v5175_v21 = vpop.f32.mrf.mxu1 }
0x3cb8   : > { %v4833_v12 = vadd.s32 4294967294, %v1668_v62  ;;  %v4908_v48 = vmul.f32 -1.442695, %v4539_v49 }
0x3cba   : > { %vm4834_vm10 = vcmp.lt.s32.totalorder %v4833_v12, 0 }
0x3cbb   : > { %v1671_v25 = vsel %vm4834_vm10, 0, %v4833_v12 }
0x3cbc   : > { %v1676_v38 = vsub.s32 4294967266, %v1671_v25  ;;  %v1672_v14 = vsub.s32 32, %v1671_v25  ;;  %v1673_v61 = vshll.u32 %v1664_v22, %v1671_v25 }
0x3cbe   : > { %v1677_v4 = vadd.s32 127, %v1676_v38 }
0x3cc0   : > { %v1678_v33 = vshll.u32 %v1677_v4, 23 }
0x3cc2   : > { %v1679_v27 = vor.u32 4788187, %v1678_v33 }
0x3cc4   : > { %v1680_v37 = vand.u32 2147483647, %v1679_v27 }
0x3d04   : > { %v4551_v21 = vpop.permute.xlu1 %4550 }
0x3d05   : > { %v4553_v42 = vmul.f32 %v7571_v16, %v4551_v21  ;;  %v1674_v16 = vshrl.u32 %v1656_v35, %v1672_v14  ;;  %v7958_v14 = vld [vmem:[#allocation34_spill] sm:$0xff] }
0x3d07   : > { %4555 = vrot.lane.b32.xlu0 %v4553_v42, %s6012_s12  ;;  %v1675_v19 = vor.u32 %v1674_v16, %v1673_v61  ;;  %s6025_s12 = smov [#allocation16]  }
0x3d08   : > { %s5865_s24 = sshll.u32 %s6025_s12, 4  ;;  %s5866_s24 = int_to_ptr.vmem [resolvable:$false] %s5865_s24 }
0x3d09   : > { %v1682_v58 = vcvt.s32.f32 %v1675_v19  ;;  %s5867_s8 = scalar_lea.vmem %s5866_s24, 2048  ;;  %p5868_p5 = scmp.lt.s32.totalorder %s7721_s16, %s5866_s24 }
0x3d0a   : > { %p5869_p3 = scmp.lt.s32.totalorder %s5867_s8, %s5861_s20 }
0x3d0b   : > { %2134 = vrot.lane.b32.xlu0 %v7955_v20, %s6015_s18  ;;  %v1683_v40 = vmul.f32 %v1682_v58, %v1680_v37  ;;  %v7957_v20 = vld [vmem:[#allocation44_spill] sm:$0xff] }
0x3d0c   : > { %p5870_p13 = por %p5869_p3, %p5868_p5 }
0x3d0d   : > { %v1684_v63 = vxor.u32 2147483648, %v1683_v40 }
0x3d0e   : > { %p5871_p8 = pnand %p5870_p13, %p5864_p0 }
0x3d0f   : > { %v1685_v55 = vsel %vm1602_vm11, %v1684_v63, %v1683_v40 }
0x3d10   : > { %v1688_v44 = vsel %vm1601_vm12, %v7613_v46, %v1685_v55 }
0x3d11   : > { %5648 = vcosq.f32 %v1688_v44 }
0x3d12   : > { %5650 = vsinq.f32 %v1688_v44 }
0x3d13   : > { %5652 = vpow2.f32 %v4908_v48 }
0x3d1e   : > { %v5649_v56 = vpop.eup %5648 }
0x3d1f   : > { %v5651_v1 = vpop.eup %5650  ;;  %v1699_v11 = vxor.u32 2147483648, %v5649_v56 }
0x3d20   : > { %v1696_v24 = vxor.u32 2147483648, %v5651_v1  ;;  %v5653_v34 = vpop.eup %5652 }
0x3d21   : > { %v1700_v26 = vsel %vm1698_vm2, %v1699_v11, %v5651_v1  ;;  %v4545_v29 = vadd.f32 1.0, %v5653_v34 }
0x3d22   : > { %v1697_v7 = vsel %vm1695_vm4, %v5649_v56, %v1696_v24 }
0x3d23   : > { %v1701_v45 = vsel %vm1694_vm14, %v1697_v7, %v1700_v26  ;;  %5654 = vrcp.f32 %v4545_v29 }
0x3d24   : > { %v1702_v60 = vsel %vm1692_vm15, nan, %v1701_v45  ;;  %5656 = vtanh.f32 %v7589_v47 }
0x3d25   : > { %v1710_v13 = vadd.f32 1.0, %v1702_v60 }
0x3d27   : > { %v1718_v54 = vmul.f32 0.5, %v1710_v13 }
0x3d29   : > { %v1726_v41 = vmax.f32 %v1718_v54, 0.0 }
0x3d2b   : > { %v1734_v17 = vmin.f32 %v1726_v41, 1.0 }
0x3d2d   : > { %v4559_v51 = vsub.f32 1.0, %v1734_v17 }
0x3d2f   : > { %v4560_v18 = vmul.f32 %v4559_v51, %v7543_v23  ;;  %v7956_v23 = vld [vmem:[#allocation43_spill] sm:$0xff] }
0x3d30   : > { %v5655_v39 = vpop.eup %5654 }
0x3d31   : > { %v4563_v57 = vsub.f32 1.0, %v5655_v39  ;;  %v5657_v9 = vpop.eup %5656 }
0x3d33   : > { %v4565_v10 = vmul.f32 %v5657_v9, %v4563_v57 }
0x3d79   : > { %v4556_v50 = vpop.permute.xlu0 %4555 }
0x3d7a   : > { %v4558_v59 = vmul.f32 %v4556_v50, %v1734_v17 }
0x3d7c   : > { %v4561_v46 = vadd.f32 %v4560_v18, %v4558_v59 }
0x3d7d   : > { %v2135_v2 = vpop.permute.xlu0 %2134 }
0x3d7e   : > { %v4562_v21 = vmul.f32 %v5655_v39, %v4561_v46  ;;  %2138 = vst.msk [vmem:[%s6319_s14] sm:$0xff] %vm2137_vm0, %v2135_v2 }
0x3d7f   : > { %4590 = vst.msk [vmem:[%s6319_s14] sm:$0xff] %vm4589_vm1, %v7909_v53 }
0x3d80   : > { %v4566_v42 = vadd.f32 %v4565_v10, %v4562_v21 }
0x3d82   : > { %v4567_v8 = vsel %vm1750_vm3, %v4566_v42, 0.0 }
0x3d83   : > { %4568 = vadd.xlane.f32.xlu1 %v4567_v8 }
0x3d94   : > { %2485 = vrot.lane.b32.xlu1 %v7956_v23, %s6015_s18 }
0x3d98   : > { %2835 = vrot.lane.b32.xlu1 %v7957_v20, %s6015_s18 }
0x3d9c   : > { %3535 = vrot.lane.b32.xlu1 %v7183_v36, %s6015_s18 }
0x3da0   : > { %4235 = vrot.lane.b32.xlu1 %v7463_v3, %s6015_s18 }
0x3da4   : > { %4600 = vrot.lane.b32.xlu1 %v7599_v30, %s6017_s21 }
0x3e0c   : > { %v4569_v22 = vpop.xlane.xlu1 %4568 }
0x3e0d   : > { %v4570_v28 = vmul.f32 0.03125, %v4569_v22 }
0x3e0f   : > { %v4571_v6 = vsub.f32 %v4566_v42, %v4570_v28 }
0x3e10   : > { %v2486_v62 = vpop.permute.xlu1 %2485 }
0x3e11   : > { %4851 = vst.msk [vmem:[%s6319_s14 + $0x8] sm:$0xff] %vm2137_vm0, %v2486_v62  ;;  %v4572_v12 = vmul.f32 %v4571_v6, %v4571_v6 }
0x3e12   : > { %4591 = vst.msk [vmem:[%s6319_s14 + $0x8] sm:$0xff] %vm4589_vm1, %v7909_v53 }
0x3e13   : > { %v4573_v36 = vsel %vm1750_vm3, %v4572_v12, 0.0 }
0x3e14   : > { %4574 = vadd.xlane.f32.xlu0 %v4573_v36  ;;  %v2836_v3 = vpop.permute.xlu1 %2835 }
0x3e15   : > { %4861 = vst.msk [vmem:[%s6319_s14 + $0x10] sm:$0xff] %vm2137_vm0, %v2836_v3 }
0x3e16   : > { %4592 = vst.msk [vmem:[%s6319_s14 + $0x10] sm:$0xff] %vm4589_vm1, %v7909_v53 }
0x3e18   : > { %v3536_v25 = vpop.permute.xlu1 %3535 }
0x3e19   : > { %4881 = vst.msk [vmem:[%s6319_s14 + $0x20] sm:$0xff] %vm2137_vm0, %v3536_v25 }
0x3e1a   : > { %4594 = vst.msk [vmem:[%s6319_s14 + $0x20] sm:$0xff] %vm4589_vm1, %v7909_v53 }
0x3e1c   : > { %v4236_v38 = vpop.permute.xlu1 %4235 }
0x3e1d   : > { %4901 = vst.msk [vmem:[%s6319_s14 + $0x30] sm:$0xff] %vm2137_vm0, %v4236_v38 }
0x3e1e   : > { %4596 = vst.msk [vmem:[%s6319_s14 + $0x30] sm:$0xff] %vm4589_vm1, %v7909_v53 }
0x3e20   : > { %v4601_v4 = vpop.permute.xlu1 %4600 }
0x3e21   : > { %4603 = vst.msk [vmem:[#allocation3] sm:$0xff] %vm1750_vm3, %v4601_v4 }
0x3e2a   : > { %3185 = vrot.lane.b32.xlu0 %v7958_v14, %s6015_s18 }
0x3e2e   : > { %3885 = vrot.lane.b32.xlu0 %v7331_v52, %s6015_s18 }
0x3e32   : > { %4585 = vrot.lane.b32.xlu0 %v7589_v47, %s6015_s18 }
0x3e9d   : > { %v4575_v35 = vpop.xlane.xlu0 %4574 }
0x3e9e   : > { %v4576_v33 = vmul.f32 0.03125, %v4575_v35 }
0x3ea0   : > { %v4577_v16 = vadd.f32 1e-05, %v4576_v33 }
0x3ea1   : > { %v3186_v61 = vpop.permute.xlu0 %3185 }
0x3ea2   : > { %5658 = vrsqrt.f32 %v4577_v16  ;;  %4871 = vst.msk [vmem:[%s6319_s14 + $0x18] sm:$0xff] %vm2137_vm0, %v3186_v61 }
0x3ea3   : > { %4593 = vst.msk [vmem:[%s6319_s14 + $0x18] sm:$0xff] %vm4589_vm1, %v7909_v53 }
0x3ea5   : > { %v3886_v27 = vpop.permute.xlu0 %3885 }
0x3ea6   : > { %4891 = vst.msk [vmem:[%s6319_s14 + $0x28] sm:$0xff] %vm2137_vm0, %v3886_v27 }
0x3ea7   : > { %4595 = vst.msk [vmem:[%s6319_s14 + $0x28] sm:$0xff] %vm4589_vm1, %v7909_v53 }
0x3eaf   : > { %v5659_v52 = vpop.eup %5658 }
0x3eb0   : > { %v4579_v47 = vmul.f32 %v5659_v52, %v4571_v6 }
0x3eb2   : > { %v4580_v19 = vmul.f32 %v4579_v47, %v6373_v31  ;;  %v4586_v31 = vpop.permute.xlu0 %4585 }
0x3eb4   : > { %v4581_v37 = vadd.f32 %v4580_v19, %v6379_v32 }
0x3eb6   : > { %4909 = vst.msk [vmem:[%s6319_s14 + $0x38] sm:$0xff] %vm1750_vm3, %v4581_v37  ;;  %4598 = vst.msk [vmem:[#allocation2] sm:$0xff] %vm1750_vm3, %v4581_v37 }
0x3eb7   : > { %4910 = vst.msk [vmem:[%s6319_s14 + $0x38] sm:$0xff] %vm2132_vm13, %v7599_v30 }
0x3eb8   : > { %4911 = vst.msk [vmem:[%s6319_s14 + $0x38] sm:$0xff] %vm2137_vm0, %v4586_v31 }
0x3eb9   : > { %4597 = vst.msk [vmem:[%s6319_s14 + $0x38] sm:$0xff] %vm4589_vm1, %v7909_v53 }
0x3eba   : > { %5874 = shalt.err (!%p5871_p8)
}
0x3ebb   : > { %s5875_s14 = scalar_lea.hbm %s7729_s17, 1024  ;;  %s5879_s21 = scalar_lea.hbm %s7961_s6, 4096 }
0x3ebc   : > { %p5876_p7 = scmp.ne.s32.totalorder %s7729_s17, %s5875_s14  ;;  %p5880_p11 = scmp.lt.s32.totalorder %s7729_s17, %s7961_s6 }
0x3ebd   : > { %p5881_p12 = scmp.lt.s32.totalorder %s5879_s21, %s5875_s14 }
0x3ebe   : > { %p5877_p4 = pnand %p5876_p7, %p7962_p1 }
0x3ebf   : > { %p5882_p10 = por %p5881_p12, %p5880_p11 }
0x3ec0   : > { %p5878_p9 = pneg %p5877_p4 }
0x3ec2   : > { %p5883_p2 = pnand %p5882_p10, %p5878_p9 }
0x3ec4   : > { %5886 = shalt.err (!%p5883_p2)
}
0x3ec5   : > { %s6026_s2 = smov 128   ;;  %s6027_s27 = smov 256  }
0x3ec6   : > { %s6028_s30 = smov 8  }
0x3ec7   : > { %5228 = dma.vmem_to_hbm [thread:$0]  (%p7962_p1), %s7721_s16, 1024, %s7729_s17, %s4606_s22, %s6026_s2, %s6027_s27, %s6028_s30  }
0x3ec8 PF: > { %s7963_s5 = sld [smem:[#allocation23_spill]]  ;;  %p5263_p6 = scmp.ge.s32.totalorder %s5997_s11, 2 }
0x3ec9   : > { %s7964_s20 = sld [smem:[#allocation25_spill]] }
0x3ece   : > { %s4636_s12 = sand.u32 1, %s7963_s5  }
0x3ecf   : > { %p7965_p0 = scmp.ne.s32.totalorder %s7964_s20, 0  ;;  %s4637_s24 = scalar_lea.sflag [#allocation7], %s4636_s12 }
0x3ed1   : > { %p5251_p5 = pnand %p5263_p6, %p7965_p0 }
0x3ed3   : > { %p5252_p3 = pneg %p5251_p5 }
0x3ed5   : > { %5952 = dma.done.wait (%p5252_p3), %s4637_s24, 1024  }
0x3ed6   : > { %5954 = vsyncadd (%p5252_p3), %s4637_s24, 4294966272  ;;  %s28_s11 = sadd.s32 1, %s5997_s11   ;;  %s7966_s23 = sld [smem:[#allocation26_spill]] }
0x3ed7   : > { %p25_p13 = scmp.ge.s32.totalorder %s28_s11, 6   ;;  %s7967_s4 = sld [smem:[#allocation28_spill]] }
0x3ed8   : > { %s7968_s24 = smov %s5961_s25  ;;  %s7969_s25 = smov %s5965_s26 }
0x3ed9   : > { %s7970_s26 = smov %s6262_s7  ;;  %s7971_s27 = smov %s5973_s28 }
0x3eda   : > { %s7972_s28 = smov %s5977_s29  ;;  %s7973_s29 = smov %s6235_s19 }
0x3edb   : > { %s7974_s30 = smov %s5989_s9  ;;  %s7975_s8 = smov %s5993_s10 }
0x3edc   : > { %s7976_s9 = smov %s7966_s23  ;;  %27 = sbr.rel (!%p25_p13) target bundleno = 20 (0x14), region = 133 }
0x3edd   : > { %s7977_s10 = smov %s7967_s4 }
0x3ee1   :  { %4642 = vsyncpa [#allocation6], 1 }
0x3ee2   :  { %4644 = vsyncpa [#allocation6 + $0x1], 1 }
0x3ee3   :  { %4645 = vsyncpa [#allocation9], 1 }
0x3ee4   :  { %4647 = vsyncpa [#allocation9 + $0x1], 1 }
0x3ee5   :  { %4648 = vsyncpa [#allocation12], 1 }
0x3ee6   :  { %4649 = vsyncpa [#allocation15], 1 }
0x3ee7   :  { %4650 = vsyncpa [#allocation7], 1 }
0x3ee8   :  { %4652 = vsyncpa [#allocation7 + $0x1], 1 }

</bundles_post_ra>
